<compile_context>
chip_gen: v6e
topology: v6e:2x2x1
jax: 0.10.0
libtpu: 0.0.40
codegen_flags: <defaults>
</compile_context>

<pallas_src>
import functools

import jax
import jax.numpy as jnp
from jax import lax
from jax.experimental import pallas as pl
from jax.experimental.pallas import tpu as pltpu

LANE = 128
SUBLANE = 8


def _round_up(x, m):
    return (x + m - 1) // m * m


def _bottleneck_kernel(x_ref, w1_ref, w2_ref, w3_ref, b1_ref, b2_ref, b3_ref,
                       wmask_ref, o_ref, h1_ref, col_ref,
                       *, H, W, TH, d, Wp, Cp, Pp, Cop):
    """Grid = (batch, row_tile).  Channel dims are pre-padded to 128 lanes.

    x_ref    : (1, H + 2d, Wp, Cp)   spatially zero-padded input   (bf16)
    w1_ref   : (Cp, Pp)              1x1 conv #1 (bn1 scale folded)(bf16)
    w2_ref   : (9*Pp, Pp)            3x3 conv, (ky,kx,cin) flat    (bf16)
    w3_ref   : (Pp, Cop)             1x1 conv #3 (bn3 scale folded)(bf16)
    b*_ref   : (1, C)                folded BN biases              (f32)
    wmask_ref: (Wp, 1)               1.0 on valid columns, 0.0 pad (f32)
    o_ref    : (1, TH, W, Cop)       output row tile               (f32)
    h1_ref   : (TH + 2d, Wp, Pp)     conv1 activations incl. halo  (bf16)
    col_ref  : (TH * W, 9*Pp)        im2col buffer for conv2       (bf16)
    """
    r = pl.program_id(1)
    r0 = pl.multiple_of(r * TH, TH)      # first padded row of this tile's halo
    THh = TH + 2 * d

    # ---- conv1 (1x1, bn1 scale folded) + bias + relu over the halo window --
    xw = x_ref[0, pl.ds(r0, THh), :, :]                       # (THh, Wp, Cp)
    h1 = jnp.dot(xw.reshape(THh * Wp, Cp), w1_ref[...],
                 preferred_element_type=jnp.float32)
    h1 = jnp.maximum(h1 + b1_ref[...], 0.0).reshape(THh, Wp, Pp)
    # conv2's zero padding lives in h1-space: conv1 of a zero-padded pixel
    # would otherwise leave relu(bn1 bias).  Column padding -> one broadcast
    # multiply; row (top/bottom) padding -> targeted stores below.
    h1_ref[...] = (h1 * wmask_ref[...]).astype(jnp.bfloat16)

    @pl.when(r == 0)
    def _():
        h1_ref[0:d, :, :] = jnp.zeros((d, Wp, Pp), jnp.bfloat16)

    @pl.when(r == pl.num_programs(1) - 1)
    def _():
        h1_ref[TH + d:THh, :, :] = jnp.zeros((d, Wp, Pp), jnp.bfloat16)

    # ---- conv2 (3x3, dilation d, padding d) as one im2col matmul -----------
    for t in range(9):
        ky, kx = t // 3, t % 3
        tap = h1_ref[ky * d:ky * d + TH, kx * d:kx * d + W, :]  # (TH, W, Pp)
        col_ref[:, t * Pp:(t + 1) * Pp] = tap.reshape(TH * W, Pp)
    h2 = jnp.dot(col_ref[...], w2_ref[...], preferred_element_type=jnp.float32)
    h2 = jnp.maximum(h2 + b2_ref[...], 0.0)                     # (TH*W, Pp)

    # ---- conv3 (1x1, bn3 scale folded) + bias + residual + relu ------------
    # TODO(synk): chunk h2 over M with lax.fori_loop once TH*W*Pp outgrows the
    #             vreg file (not needed at these shapes).
    h3 = jnp.dot(h2.astype(jnp.bfloat16), w3_ref[...],
                 preferred_element_type=jnp.float32)            # (TH*W, Cop)
    res = x_ref[0, pl.ds(r0 + d, TH), d:d + W, :]               # (TH, W, Cp)
    out = jnp.maximum(
        h3 + b3_ref[...] + res.reshape(TH * W, Cp).astype(jnp.float32), 0.0)
    o_ref[...] = out.reshape(1, TH, W, Cop)


def bottleneck_pallas(x_nchw, params, *, planes, dilation=1, row_tile=None):
    """x_nchw: (N, Cin, H, W), Cin == 4*planes, stride=1, downsample=None."""
    N, Cin, H, W = x_nchw.shape
    P = planes
    Cout = 4 * P
    assert Cin == Cout, "downsample=None requires inplanes == planes * 4"
    d = dilation

    Cp = _round_up(Cin, LANE)
    Pp = _round_up(P, LANE)
    Cop = _round_up(Cout, LANE)
    assert Cp == Cop

    # Row tile: smallest divisor of H with M = TH*W >= 256 so conv2/conv3
    # fill the 256-wide MXU on v6e/v7x.  (On v7x also keep N*H/TH >= 2 so
    # both TensorCores get work; N=2 here guarantees that.)
    if row_tile is None:
        TH = H
        for cand in range(1, H + 1):
            if H % cand == 0 and cand * W >= 256:
                TH = cand
                break
    else:
        TH = min(row_tile, H)
    assert H % TH == 0 and W % SUBLANE == 0  # TODO(synk): pad ragged H / W
    Wp = _round_up(W + 2 * d, SUBLANE)

    # NCHW -> NHWC (channels on the lane axis), cast to bf16 (halves HBM/VMEM
    # traffic; conv1 consumes bf16 anyway), zero-pad spatially for the 3x3
    # conv halo and pad channels to the 128-lane width.
    x = jnp.transpose(x_nchw, (0, 2, 3, 1)).astype(jnp.bfloat16)
    x = jnp.pad(x, ((0, 0), (d, d), (d, Wp - W - d), (0, Cp - Cin)))

    # Fold BN scales into the conv weights in f32, *then* cast to bf16.
    w1 = (params["w1"] * params["s1"]).astype(jnp.float32)
    w1 = jnp.pad(w1, ((0, Cp - Cin), (0, Pp - P))).astype(jnp.bfloat16)
    w2 = (params["w2"] * params["s2"]).astype(jnp.float32)          # HWIO
    w2 = jnp.pad(w2, ((0, 0), (0, 0), (0, Pp - P), (0, Pp - P)))
    w2 = w2.reshape(9 * Pp, Pp).astype(jnp.bfloat16)
    # TODO(synk): for P < 128 pack conv2's K as round_up(9*P, 128) (taps at
    #             stride P) instead of 9*Pp to avoid wasted MXU K-passes.
    w3 = (params["w3"] * params["s3"]).astype(jnp.float32)
    w3 = jnp.pad(w3, ((0, Pp - P), (0, Cop - Cout))).astype(jnp.bfloat16)

    def pad_vec(v, c):
        return jnp.pad(v, ((0, 0), (0, c - v.shape[1]))).astype(jnp.float32)

    b1 = pad_vec(params["b1"], Pp)
    b2 = pad_vec(params["b2"], Pp)
    b3 = pad_vec(params["b3"], Cop)

    # Column-validity mask in h1 (padded) coordinates: 1.0 on [d, W+d).
    col_idx = jnp.arange(Wp, dtype=jnp.int32)
    wmask = ((col_idx >= d) & (col_idx < W + d)).astype(jnp.float32)
    wmask = wmask.reshape(Wp, 1)

    kernel = functools.partial(_bottleneck_kernel, H=H, W=W, TH=TH, d=d,
                               Wp=Wp, Cp=Cp, Pp=Pp, Cop=Cop)

    def full(shape):
        return pl.BlockSpec(shape, lambda n, r: (0,) * len(shape))
    # TODO(synk): mark w1/w2/w3 with pipeline_mode=pl.Buffered(1) (their block
    #             index never changes) to reclaim the dead second weight
    #             buffer on 64 MiB v7x VMEM.

    out_nhwc = pl.pallas_call(
        kernel,
        out_shape=jax.ShapeDtypeStruct((N, H, W, Cop), jnp.float32),
        grid_spec=pltpu.PrefetchScalarGridSpec(
            num_scalar_prefetch=0,
            grid=(N, H // TH),
            in_specs=[
                pl.BlockSpec((1, H + 2 * d, Wp, Cp), lambda n, r: (n, 0, 0, 0)),
                full((Cp, Pp)),
                full((9 * Pp, Pp)),
                full((Pp, Cop)),
                full((1, Pp)), full((1, Pp)), full((1, Cop)),
                full((Wp, 1)),
            ],
            out_specs=pl.BlockSpec((1, TH, W, Cop), lambda n, r: (n, r, 0, 0)),
            scratch_shapes=[
                pltpu.VMEM((TH + 2 * d, Wp, Pp), jnp.bfloat16),
                pltpu.VMEM((TH * W, 9 * Pp), jnp.bfloat16),
            ],
        ),
        compiler_params=pltpu.CompilerParams(
            dimension_semantics=("parallel", "parallel"),
            vmem_limit_bytes=48 * 1024 * 1024,
        ),
    )(x, w1, w2, w3, b1, b2, b3, wmask)

    out = out_nhwc[..., :Cout]                    # drop padded channels
    return jnp.transpose(out, (0, 3, 1, 2))       # back to NCHW


# ----------------------------- reference ---------------------------------
def bottleneck_reference(x_nchw, params, *, planes, dilation=1):
    P = planes
    x = jnp.transpose(x_nchw, (0, 2, 3, 1)).astype(jnp.float32)   # NHWC
    dn = ("NHWC", "HWIO", "NHWC")

    def conv(h, w, pad, dil):
        return lax.conv_general_dilated(
            h, w, window_strides=(1, 1), padding=pad,
            rhs_dilation=(dil, dil), dimension_numbers=dn)

    h = conv(x, params["w1"].reshape(1, 1, -1, P), "VALID", 1)
    h = jnp.maximum(h * params["s1"][0] + params["b1"][0], 0.0)
    h = conv(h, params["w2"], [(dilation, dilation)] * 2, dilation)
    h = jnp.maximum(h * params["s2"][0] + params["b2"][0], 0.0)
    h = conv(h, params["w3"].reshape(1, 1, P, 4 * P), "VALID", 1)
    h = h * params["s3"][0] + params["b3"][0]
    h = jnp.maximum(h + x, 0.0)
    return jnp.transpose(h, (0, 3, 1, 2))


def make_params(key, inplanes, planes, eps=1e-5):
    P = planes
    ks = jax.random.split(key, 6)

    def bn_fold(k, c):
        kg, kb, km, kv = jax.random.split(k, 4)
        gamma = 1.0 + 0.1 * jax.random.normal(kg, (c,), jnp.float32)
        beta = 0.1 * jax.random.normal(kb, (c,), jnp.float32)
        mean = 0.1 * jax.random.normal(km, (c,), jnp.float32)
        var = jnp.abs(jax.random.normal(kv, (c,), jnp.float32)) + 0.5
        scale = gamma / jnp.sqrt(var + eps)
        bias = beta - mean * scale
        return scale.reshape(1, c), bias.reshape(1, c)

    s1, b1 = bn_fold(ks[3], P)
    s2, b2 = bn_fold(ks[4], P)
    s3, b3 = bn_fold(ks[5], 4 * P)

    return {
        "w1": 0.1 * jax.random.normal(ks[0], (inplanes, P), jnp.float32),
        "w2": 0.1 * jax.random.normal(ks[1], (3, 3, P, P), jnp.float32),  # HWIO
        "w3": 0.1 * jax.random.normal(ks[2], (P, 4 * P), jnp.float32),
        "s1": s1, "b1": b1, "s2": s2, "b2": b2, "s3": s3, "b3": b3,
    }


if __name__ == "__main__":
    # Bottleneck(inplanes=16, planes=4, stride=1, downsample=None):
    # residual add requires inplanes == planes * expansion.
    N, C, Hh, Ww = 2, 16, 16, 16
    planes = 4

    key = jax.random.PRNGKey(0)
    kx, kp = jax.random.split(key)
    x = jax.random.normal(kx, (N, C, Hh, Ww), jnp.float32)   # NCHW like PyTorch
    params = make_params(kp, C, planes)

    for dilation in (1, 2):   # dilation=2 exercises the DeepLab dilated path
        out = bottleneck_pallas(x, params, planes=planes, dilation=dilation)
        out = jax.block_until_ready(out)
        ref = bottleneck_reference(x, params, planes=planes, dilation=dilation)
        assert out.shape == (N, 4 * planes, Hh, Ww)
        # bf16 MXU matmuls + bf16 residual vs. an f32 reference -> loose-ish
        # tolerance.
        assert jnp.allclose(out, ref, atol=5e-2, rtol=5e-2), (
            dilation, float(jnp.max(jnp.abs(out - ref))))

    print("KERNEL_OK")
</pallas_src>

<mosaic_0001>
module attributes {stable_mosaic.version = 11 : i64} {
  func.func @_bottleneck_kernel(%arg0: i32, %arg1: i32, %arg2: memref<1x18x24x128xbf16, #tpu.memory_space<vmem>>, %arg3: memref<128x128xbf16, #tpu.memory_space<vmem>>, %arg4: memref<1152x128xbf16, #tpu.memory_space<vmem>>, %arg5: memref<128x128xbf16, #tpu.memory_space<vmem>>, %arg6: memref<1x128xf32, #tpu.memory_space<vmem>>, %arg7: memref<1x128xf32, #tpu.memory_space<vmem>>, %arg8: memref<1x128xf32, #tpu.memory_space<vmem>>, %arg9: memref<24x1xf32, #tpu.memory_space<vmem>>, %arg10: memref<1x16x16x128xf32, #tpu.memory_space<vmem>>, %arg11: memref<18x24x128xbf16, #tpu.memory_space<vmem>>, %arg12: memref<256x1152xbf16, #tpu.memory_space<vmem>>) attributes {dimension_semantics = [#tpu.dimension_semantics<parallel>, #tpu.dimension_semantics<parallel>], iteration_bounds = array<i64: 2, 1>, scalar_prefetch = 0 : i64, scratch_operands = 2 : i64, tpu.core_type = #tpu.core_type<tc>, window_params = [{transform_indices = @transform_0, window_bounds = array<i64: 1, 18, 24, 128>}, {pipeline_mode = #tpu.pipeline_mode<synchronous>, transform_indices = @transform_1, window_bounds = array<i64: 128, 128>}, {pipeline_mode = #tpu.pipeline_mode<synchronous>, transform_indices = @transform_2, window_bounds = array<i64: 1152, 128>}, {pipeline_mode = #tpu.pipeline_mode<synchronous>, transform_indices = @transform_3, window_bounds = array<i64: 128, 128>}, {pipeline_mode = #tpu.pipeline_mode<synchronous>, transform_indices = @transform_4, window_bounds = array<i64: 1, 128>}, {pipeline_mode = #tpu.pipeline_mode<synchronous>, transform_indices = @transform_5, window_bounds = array<i64: 1, 128>}, {pipeline_mode = #tpu.pipeline_mode<synchronous>, transform_indices = @transform_6, window_bounds = array<i64: 1, 128>}, {pipeline_mode = #tpu.pipeline_mode<synchronous>, transform_indices = @transform_7, window_bounds = array<i64: 24, 1>}, {transform_indices = @transform_8, window_bounds = array<i64: 1, 16, 16, 128>}]} {
    %c16_i32 = arith.constant 16 : i32
    %0 = arith.muli %arg1, %c16_i32 : i32
    %1 = tpu.assume_multiple %0, 16 : i32
    %c0 = arith.constant 0 : index
    %2 = arith.index_cast %1 : i32 to index
    %c0_0 = arith.constant 0 : index
    %c0_1 = arith.constant 0 : index
    %3 = vector.load %arg2[%c0, %2, %c0_0, %c0_1] : memref<1x18x24x128xbf16, #tpu.memory_space<vmem>>, vector<1x18x24x128xbf16>
    %4 = vector.shape_cast %3 : vector<1x18x24x128xbf16> to vector<18x24x128xbf16>
    %5 = vector.shape_cast %4 : vector<18x24x128xbf16> to vector<432x128xbf16>
    %c0_2 = arith.constant 0 : index
    %c0_3 = arith.constant 0 : index
    %6 = vector.load %arg3[%c0_2, %c0_3] : memref<128x128xbf16, #tpu.memory_space<vmem>>, vector<128x128xbf16>
    %cst = arith.constant dense<0.000000e+00> : vector<432x128xf32>
    %7 = tpu.matmul %5, %6, %cst {dimension_numbers = #tpu.dot_dimension_numbers<[1], [0], [0], [1], [0, 0, 1, 1], [], []>} : vector<432x128xbf16>, vector<128x128xbf16>, vector<432x128xf32> -> vector<432x128xf32>
    %c0_4 = arith.constant 0 : index
    %c0_5 = arith.constant 0 : index
    %8 = vector.load %arg6[%c0_4, %c0_5] : memref<1x128xf32, #tpu.memory_space<vmem>>, vector<1x128xf32>
    %9 = vector.broadcast %8 : vector<1x128xf32> to vector<432x128xf32>
    %10 = arith.addf %7, %9 : vector<432x128xf32>
    %cst_6 = arith.constant 0.000000e+00 : f32
    %11 = vector.broadcast %cst_6 : f32 to vector<432x128xf32>
    %12 = arith.maximumf %10, %11 : vector<432x128xf32>
    %13 = vector.shape_cast %12 : vector<432x128xf32> to vector<18x24x128xf32>
    %c0_7 = arith.constant 0 : index
    %c0_8 = arith.constant 0 : index
    %14 = vector.load %arg9[%c0_7, %c0_8] : memref<24x1xf32, #tpu.memory_space<vmem>>, vector<24x1xf32>
    %15 = vector.shape_cast %14 : vector<24x1xf32> to vector<1x24x1xf32>
    %16 = vector.broadcast %15 : vector<1x24x1xf32> to vector<18x24x128xf32>
    %17 = arith.mulf %13, %16 : vector<18x24x128xf32>
    %18 = arith.truncf %17 : vector<18x24x128xf32> to vector<18x24x128xbf16>
    %c0_9 = arith.constant 0 : index
    %c0_10 = arith.constant 0 : index
    %c0_11 = arith.constant 0 : index
    %19 = vector.load %arg11[%c0_9, %c0_10, %c0_11] : memref<18x24x128xbf16, #tpu.memory_space<vmem>>, vector<18x24x128xbf16>
    tpu.vector_store %arg11[%c0_9, %c0_10, %c0_11], %18 {strides = array<i32>} : memref<18x24x128xbf16, #tpu.memory_space<vmem>>, vector<18x24x128xbf16>,
    %c0_i32 = arith.constant 0 : i32
    %20 = arith.cmpi eq, %arg1, %c0_i32 : i32
    %21 = arith.extui %20 : i1 to i32
    %c0_i32_12 = arith.constant 0 : i32
    %22 = arith.cmpi ne, %21, %c0_i32_12 : i32
    scf.if %22 {
      %cst_71 = arith.constant 0.000000e+00 : bf16
      %78 = vector.broadcast %cst_71 : bf16 to vector<1x24x128xbf16>
      %c0_72 = arith.constant 0 : index
      %c0_73 = arith.constant 0 : index
      %c0_74 = arith.constant 0 : index
      %79 = vector.load %arg11[%c0_72, %c0_73, %c0_74] : memref<18x24x128xbf16, #tpu.memory_space<vmem>>, vector<1x24x128xbf16>
      tpu.vector_store %arg11[%c0_72, %c0_73, %c0_74], %78 {strides = array<i32>} : memref<18x24x128xbf16, #tpu.memory_space<vmem>>, vector<1x24x128xbf16>,
    } else {
    }
    %c0_i32_13 = arith.constant 0 : i32
    %23 = arith.cmpi eq, %arg1, %c0_i32_13 : i32
    %24 = arith.extui %23 : i1 to i32
    %c0_i32_14 = arith.constant 0 : i32
    %25 = arith.cmpi ne, %24, %c0_i32_14 : i32
    scf.if %25 {
      %cst_71 = arith.constant 0.000000e+00 : bf16
      %78 = vector.broadcast %cst_71 : bf16 to vector<1x24x128xbf16>
      %c17 = arith.constant 17 : index
      %c0_72 = arith.constant 0 : index
      %c0_73 = arith.constant 0 : index
      %79 = vector.load %arg11[%c17, %c0_72, %c0_73] : memref<18x24x128xbf16, #tpu.memory_space<vmem>>, vector<1x24x128xbf16>
      tpu.vector_store %arg11[%c17, %c0_72, %c0_73], %78 {strides = array<i32>} : memref<18x24x128xbf16, #tpu.memory_space<vmem>>, vector<1x24x128xbf16>,
    } else {
    }
    %c0_15 = arith.constant 0 : index
    %c0_16 = arith.constant 0 : index
    %c0_17 = arith.constant 0 : index
    %26 = vector.load %arg11[%c0_15, %c0_16, %c0_17] : memref<18x24x128xbf16, #tpu.memory_space<vmem>>, vector<16x16x128xbf16>
    %27 = vector.shape_cast %26 : vector<16x16x128xbf16> to vector<256x128xbf16>
    %c0_18 = arith.constant 0 : index
    %c0_19 = arith.constant 0 : index
    %28 = vector.load %arg12[%c0_18, %c0_19] : memref<256x1152xbf16, #tpu.memory_space<vmem>>, vector<256x128xbf16>
    tpu.vector_store %arg12[%c0_18, %c0_19], %27 {strides = array<i32>} : memref<256x1152xbf16, #tpu.memory_space<vmem>>, vector<256x128xbf16>,
    %c0_20 = arith.constant 0 : index
    %c1 = arith.constant 1 : index
    %c0_21 = arith.constant 0 : index
    %29 = vector.load %arg11[%c0_20, %c1, %c0_21] : memref<18x24x128xbf16, #tpu.memory_space<vmem>>, vector<16x16x128xbf16>
    %30 = vector.shape_cast %29 : vector<16x16x128xbf16> to vector<256x128xbf16>
    %c0_22 = arith.constant 0 : index
    %c128 = arith.constant 128 : index
    %31 = vector.load %arg12[%c0_22, %c128] : memref<256x1152xbf16, #tpu.memory_space<vmem>>, vector<256x128xbf16>
    tpu.vector_store %arg12[%c0_22, %c128], %30 {strides = array<i32>} : memref<256x1152xbf16, #tpu.memory_space<vmem>>, vector<256x128xbf16>,
    %c0_23 = arith.constant 0 : index
    %c2 = arith.constant 2 : index
    %c0_24 = arith.constant 0 : index
    %32 = vector.load %arg11[%c0_23, %c2, %c0_24] : memref<18x24x128xbf16, #tpu.memory_space<vmem>>, vector<16x16x128xbf16>
    %33 = vector.shape_cast %32 : vector<16x16x128xbf16> to vector<256x128xbf16>
    %c0_25 = arith.constant 0 : index
    %c256 = arith.constant 256 : index
    %34 = vector.load %arg12[%c0_25, %c256] : memref<256x1152xbf16, #tpu.memory_space<vmem>>, vector<256x128xbf16>
    tpu.vector_store %arg12[%c0_25, %c256], %33 {strides = array<i32>} : memref<256x1152xbf16, #tpu.memory_space<vmem>>, vector<256x128xbf16>,
    %c1_26 = arith.constant 1 : index
    %c0_27 = arith.constant 0 : index
    %c0_28 = arith.constant 0 : index
    %35 = vector.load %arg11[%c1_26, %c0_27, %c0_28] : memref<18x24x128xbf16, #tpu.memory_space<vmem>>, vector<16x16x128xbf16>
    %36 = vector.shape_cast %35 : vector<16x16x128xbf16> to vector<256x128xbf16>
    %c0_29 = arith.constant 0 : index
    %c384 = arith.constant 384 : index
    %37 = vector.load %arg12[%c0_29, %c384] : memref<256x1152xbf16, #tpu.memory_space<vmem>>, vector<256x128xbf16>
    tpu.vector_store %arg12[%c0_29, %c384], %36 {strides = array<i32>} : memref<256x1152xbf16, #tpu.memory_space<vmem>>, vector<256x128xbf16>,
    %c1_30 = arith.constant 1 : index
    %c1_31 = arith.constant 1 : index
    %c0_32 = arith.constant 0 : index
    %38 = vector.load %arg11[%c1_30, %c1_31, %c0_32] : memref<18x24x128xbf16, #tpu.memory_space<vmem>>, vector<16x16x128xbf16>
    %39 = vector.shape_cast %38 : vector<16x16x128xbf16> to vector<256x128xbf16>
    %c0_33 = arith.constant 0 : index
    %c512 = arith.constant 512 : index
    %40 = vector.load %arg12[%c0_33, %c512] : memref<256x1152xbf16, #tpu.memory_space<vmem>>, vector<256x128xbf16>
    tpu.vector_store %arg12[%c0_33, %c512], %39 {strides = array<i32>} : memref<256x1152xbf16, #tpu.memory_space<vmem>>, vector<256x128xbf16>,
    %c1_34 = arith.constant 1 : index
    %c2_35 = arith.constant 2 : index
    %c0_36 = arith.constant 0 : index
    %41 = vector.load %arg11[%c1_34, %c2_35, %c0_36] : memref<18x24x128xbf16, #tpu.memory_space<vmem>>, vector<16x16x128xbf16>
    %42 = vector.shape_cast %41 : vector<16x16x128xbf16> to vector<256x128xbf16>
    %c0_37 = arith.constant 0 : index
    %c640 = arith.constant 640 : index
    %43 = vector.load %arg12[%c0_37, %c640] : memref<256x1152xbf16, #tpu.memory_space<vmem>>, vector<256x128xbf16>
    tpu.vector_store %arg12[%c0_37, %c640], %42 {strides = array<i32>} : memref<256x1152xbf16, #tpu.memory_space<vmem>>, vector<256x128xbf16>,
    %c2_38 = arith.constant 2 : index
    %c0_39 = arith.constant 0 : index
    %c0_40 = arith.constant 0 : index
    %44 = vector.load %arg11[%c2_38, %c0_39, %c0_40] : memref<18x24x128xbf16, #tpu.memory_space<vmem>>, vector<16x16x128xbf16>
    %45 = vector.shape_cast %44 : vector<16x16x128xbf16> to vector<256x128xbf16>
    %c0_41 = arith.constant 0 : index
    %c768 = arith.constant 768 : index
    %46 = vector.load %arg12[%c0_41, %c768] : memref<256x1152xbf16, #tpu.memory_space<vmem>>, vector<256x128xbf16>
    tpu.vector_store %arg12[%c0_41, %c768], %45 {strides = array<i32>} : memref<256x1152xbf16, #tpu.memory_space<vmem>>, vector<256x128xbf16>,
    %c2_42 = arith.constant 2 : index
    %c1_43 = arith.constant 1 : index
    %c0_44 = arith.constant 0 : index
    %47 = vector.load %arg11[%c2_42, %c1_43, %c0_44] : memref<18x24x128xbf16, #tpu.memory_space<vmem>>, vector<16x16x128xbf16>
    %48 = vector.shape_cast %47 : vector<16x16x128xbf16> to vector<256x128xbf16>
    %c0_45 = arith.constant 0 : index
    %c896 = arith.constant 896 : index
    %49 = vector.load %arg12[%c0_45, %c896] : memref<256x1152xbf16, #tpu.memory_space<vmem>>, vector<256x128xbf16>
    tpu.vector_store %arg12[%c0_45, %c896], %48 {strides = array<i32>} : memref<256x1152xbf16, #tpu.memory_space<vmem>>, vector<256x128xbf16>,
    %c2_46 = arith.constant 2 : index
    %c2_47 = arith.constant 2 : index
    %c0_48 = arith.constant 0 : index
    %50 = vector.load %arg11[%c2_46, %c2_47, %c0_48] : memref<18x24x128xbf16, #tpu.memory_space<vmem>>, vector<16x16x128xbf16>
    %51 = vector.shape_cast %50 : vector<16x16x128xbf16> to vector<256x128xbf16>
    %c0_49 = arith.constant 0 : index
    %c1024 = arith.constant 1024 : index
    %52 = vector.load %arg12[%c0_49, %c1024] : memref<256x1152xbf16, #tpu.memory_space<vmem>>, vector<256x128xbf16>
    tpu.vector_store %arg12[%c0_49, %c1024], %51 {strides = array<i32>} : memref<256x1152xbf16, #tpu.memory_space<vmem>>, vector<256x128xbf16>,
    %c0_50 = arith.constant 0 : index
    %c0_51 = arith.constant 0 : index
    %53 = vector.load %arg12[%c0_50, %c0_51] : memref<256x1152xbf16, #tpu.memory_space<vmem>>, vector<256x1152xbf16>
    %c0_52 = arith.constant 0 : index
    %c0_53 = arith.constant 0 : index
    %54 = vector.load %arg4[%c0_52, %c0_53] : memref<1152x128xbf16, #tpu.memory_space<vmem>>, vector<1152x128xbf16>
    %cst_54 = arith.constant dense<0.000000e+00> : vector<256x128xf32>
    %55 = tpu.matmul %53, %54, %cst_54 {dimension_numbers = #tpu.dot_dimension_numbers<[1], [0], [0], [1], [0, 0, 1, 1], [], []>} : vector<256x1152xbf16>, vector<1152x128xbf16>, vector<256x128xf32> -> vector<256x128xf32>
    %c0_55 = arith.constant 0 : index
    %c0_56 = arith.constant 0 : index
    %56 = vector.load %arg7[%c0_55, %c0_56] : memref<1x128xf32, #tpu.memory_space<vmem>>, vector<1x128xf32>
    %57 = vector.broadcast %56 : vector<1x128xf32> to vector<256x128xf32>
    %58 = arith.addf %55, %57 : vector<256x128xf32>
    %cst_57 = arith.constant 0.000000e+00 : f32
    %59 = vector.broadcast %cst_57 : f32 to vector<256x128xf32>
    %60 = arith.maximumf %58, %59 : vector<256x128xf32>
    %61 = arith.truncf %60 : vector<256x128xf32> to vector<256x128xbf16>
    %c0_58 = arith.constant 0 : index
    %c0_59 = arith.constant 0 : index
    %62 = vector.load %arg5[%c0_58, %c0_59] : memref<128x128xbf16, #tpu.memory_space<vmem>>, vector<128x128xbf16>
    %cst_60 = arith.constant dense<0.000000e+00> : vector<256x128xf32>
    %63 = tpu.matmul %61, %62, %cst_60 {dimension_numbers = #tpu.dot_dimension_numbers<[1], [0], [0], [1], [0, 0, 1, 1], [], []>} : vector<256x128xbf16>, vector<128x128xbf16>, vector<256x128xf32> -> vector<256x128xf32>
    %c1_i32 = arith.constant 1 : i32
    %64 = arith.addi %1, %c1_i32 : i32
    %c0_61 = arith.constant 0 : index
    %65 = arith.index_cast %64 : i32 to index
    %c1_62 = arith.constant 1 : index
    %c0_63 = arith.constant 0 : index
    %66 = vector.load %arg2[%c0_61, %65, %c1_62, %c0_63] : memref<1x18x24x128xbf16, #tpu.memory_space<vmem>>, vector<1x16x16x128xbf16>
    %67 = vector.shape_cast %66 : vector<1x16x16x128xbf16> to vector<16x16x128xbf16>
    %c0_64 = arith.constant 0 : index
    %c0_65 = arith.constant 0 : index
    %68 = vector.load %arg8[%c0_64, %c0_65] : memref<1x128xf32, #tpu.memory_space<vmem>>, vector<1x128xf32>
    %69 = vector.broadcast %68 : vector<1x128xf32> to vector<256x128xf32>
    %70 = arith.addf %63, %69 : vector<256x128xf32>
    %71 = vector.shape_cast %67 : vector<16x16x128xbf16> to vector<256x128xbf16>
    %72 = arith.extf %71 : vector<256x128xbf16> to vector<256x128xf32>
    %73 = arith.addf %70, %72 : vector<256x128xf32>
    %cst_66 = arith.constant 0.000000e+00 : f32
    %74 = vector.broadcast %cst_66 : f32 to vector<256x128xf32>
    %75 = arith.maximumf %73, %74 : vector<256x128xf32>
    %76 = vector.shape_cast %75 : vector<256x128xf32> to vector<1x16x16x128xf32>
    %c0_67 = arith.constant 0 : index
    %c0_68 = arith.constant 0 : index
    %c0_69 = arith.constant 0 : index
    %c0_70 = arith.constant 0 : index
    %77 = vector.load %arg10[%c0_67, %c0_68, %c0_69, %c0_70] : memref<1x16x16x128xf32, #tpu.memory_space<vmem>>, vector<1x16x16x128xf32>
    tpu.vector_store %arg10[%c0_67, %c0_68, %c0_69, %c0_70], %76 {strides = array<i32>} : memref<1x16x16x128xf32, #tpu.memory_space<vmem>>, vector<1x16x16x128xf32>,
    return
  }
  func.func @transform_0(%arg0: i32, %arg1: i32) -> (i32, i32, i32, i32) {
    %c0_i32 = arith.constant 0 : i32
    %c0_i32_0 = arith.constant 0 : i32
    %c0_i32_1 = arith.constant 0 : i32
    %c0_i32_2 = arith.constant 0 : i32
    return %arg0, %c0_i32, %c0_i32_0, %c0_i32_1 : i32, i32, i32, i32
  }
  func.func @transform_1(%arg0: i32, %arg1: i32) -> (i32, i32) {
    %c0_i32 = arith.constant 0 : i32
    %c0_i32_0 = arith.constant 0 : i32
    %c0_i32_1 = arith.constant 0 : i32
    return %c0_i32, %c0_i32_0 : i32, i32
  }
  func.func @transform_2(%arg0: i32, %arg1: i32) -> (i32, i32) {
    %c0_i32 = arith.constant 0 : i32
    %c0_i32_0 = arith.constant 0 : i32
    %c0_i32_1 = arith.constant 0 : i32
    return %c0_i32, %c0_i32_0 : i32, i32
  }
  func.func @transform_3(%arg0: i32, %arg1: i32) -> (i32, i32) {
    %c0_i32 = arith.constant 0 : i32
    %c0_i32_0 = arith.constant 0 : i32
    %c0_i32_1 = arith.constant 0 : i32
    return %c0_i32, %c0_i32_0 : i32, i32
  }
  func.func @transform_4(%arg0: i32, %arg1: i32) -> (i32, i32) {
    %c0_i32 = arith.constant 0 : i32
    %c0_i32_0 = arith.constant 0 : i32
    %c0_i32_1 = arith.constant 0 : i32
    return %c0_i32, %c0_i32_0 : i32, i32
  }
  func.func @transform_5(%arg0: i32, %arg1: i32) -> (i32, i32) {
    %c0_i32 = arith.constant 0 : i32
    %c0_i32_0 = arith.constant 0 : i32
    %c0_i32_1 = arith.constant 0 : i32
    return %c0_i32, %c0_i32_0 : i32, i32
  }
  func.func @transform_6(%arg0: i32, %arg1: i32) -> (i32, i32) {
    %c0_i32 = arith.constant 0 : i32
    %c0_i32_0 = arith.constant 0 : i32
    %c0_i32_1 = arith.constant 0 : i32
    return %c0_i32, %c0_i32_0 : i32, i32
  }
  func.func @transform_7(%arg0: i32, %arg1: i32) -> (i32, i32) {
    %c0_i32 = arith.constant 0 : i32
    %c0_i32_0 = arith.constant 0 : i32
    %c0_i32_1 = arith.constant 0 : i32
    return %c0_i32, %c0_i32_0 : i32, i32
  }
  func.func @transform_8(%arg0: i32, %arg1: i32) -> (i32, i32, i32, i32) {
    %c0_i32 = arith.constant 0 : i32
    %c0_i32_0 = arith.constant 0 : i32
    %c0_i32_1 = arith.constant 0 : i32
    return %arg0, %arg1, %c0_i32, %c0_i32_0 : i32, i32, i32, i32
  }
}

</mosaic_0001>

<bundles_post_ra>
// kernel: tpu_custom_call.1
= control target key start
LH: loop header
LB: loop body
LE: loop exit
PB: predicated region body
PF: predicated region fallthrough
CT: control target
= control target key end

     0   :  { %s12298_s0 = inlined_call_operand.hbm [shape: bf16[2,18,24,128], index: 0, kind: input, shape index: {}]   ;;  %s12299_s1 = inlined_call_operand.hbm [shape: bf16[128,128], index: 1, kind: input, shape index: {}]   ;;  %s12300_s2 = inlined_call_operand.hbm [shape: bf16[1152,128], index: 2, kind: input, shape index: {}]   ;;  %s12301_s3 = inlined_call_operand.hbm [shape: bf16[128,128], index: 3, kind: input, shape index: {}]   ;;  %s12302_s4 = inlined_call_operand.vmem [shape: f32[1,128], index: 4, kind: input, shape index: {}]   ;;  %s12303_s5 = inlined_call_operand.vmem [shape: f32[1,128], index: 5, kind: input, shape index: {}]   ;;  %s12304_s6 = inlined_call_operand.vmem [shape: f32[1,128], index: 6, kind: input, shape index: {}]   ;;  %s12305_s7 = inlined_call_operand.vmem [shape: f32[24,1], index: 7, kind: input, shape index: {}]   ;;  %s12306_s8 = inlined_call_operand.hbm [shape: f32[2,16,16,128], index: 8, kind: output, shape index: {}]  }
   0x1   :  { %12392 = sst [smem:[#allocation92_spill]] %s12299_s1 }
   0x2   :  { %12393 = sst [smem:[#allocation93_spill]] %s12300_s2 }
   0x3   :  { %12394 = sst [smem:[#allocation94_spill]] %s12301_s3 }
   0x4   :  { %13 = vsyncpa [#allocation5], 0 }
   0x5   :  { %15 = vsyncpa [#allocation5 + $0x1], 0 }
   0x6   :  { %16 = vsyncpa [#allocation8], 0 }
   0x7   :  { %17 = vsyncpa [#allocation11], 0 }
   0x8   :  { %18 = vsyncpa [#allocation6], 0 }
   0x9   :  { %20 = vsyncpa [#allocation6 + $0x1], 0  ;;  %s9246_s27 = smov 0   ;;  %s9248_s28 = smov 0  }
   0xa   :  { %s9250_s29 = smov 0   ;;  %s9252_s30 = smov 0  }
   0xb   :  { %s9254_s9 = smov 0   ;;  %s9256_s10 = smov 0  }
   0xc LB: > { %12395 = sst [smem:[#allocation17_spill]] %s9183_s9  ;;  %s7149_s11 = sadd.s32 4294967295, %s9187_s10   ;;  %s9187_s10 = sphi %s9256_s10, %s26_s10   ;;  %s9183_s9 = sphi %s9254_s9, %s12813_s9   ;;  %s9179_s30 = sphi %s9252_s30, %s12812_s30   ;;  %s9175_s29 = sphi %s9250_s29, %s12816_s29   ;;  %s9171_s28 = sphi %s9248_s28, %s12815_s28   ;;  %s9167_s27 = sphi %s9246_s27, %s12814_s27  }
   0xd   : > { %12396 = sst [smem:[#allocation18_spill]] %s9187_s10  ;;  %s7150_s12 = sadd.s32 4294967294, %s9187_s10  }
   0xe   : > { %p58_p0 = scmp.ne.s32.totalorder %s9171_s28, %s9167_s27  ;;  %p9280_p1 = scmp.eq.s32.totalorder %s7149_s11, 0 }
   0xf   : > { %p9284_p2 = scmp.eq.s32.totalorder %s7149_s11, 1  ;;  %p237_p3 = scmp.eq.s32.totalorder %s7150_s12, 1 }
  0x10   : > { %p9290_p4 = por %p9280_p1, %p58_p0  ;;  %p7151_p5 = scmp.ge.s32.totalorder %s9187_s10, 1 }
  0x11   : > { %p9295_p6 = por %p237_p3, %p58_p0  ;;  %p244_p7 = scmp.lt.s32.totalorder %s9187_s10, 3 }
  0x12   : > { %s9189_s18 = smov [#allocation7]   ;;  %s9190_s21 = smov [#allocation9]  }
  0x13   : > { %s12400_s16 = scalar_select %p9295_p6, 1, 0 }
  0x14   : > { %p9300_p8 = pnand %p7151_p5, %p244_p7  ;;  %s256_s19 = sshll.u32 %s9189_s18, 4  ;;  %s257_s19 = int_to_ptr.vmem [resolvable:$true] %s256_s19 }
  0x15   : > { %s269_s22 = sshll.u32 %s9190_s21, 4  ;;  %s9191_s23 = smov [#allocation10]   ;;  %s270_s22 = int_to_ptr.vmem [resolvable:$true] %s269_s22 }
  0x16   : > { %p8581_p9 = pneg %p9300_p8  ;;  %s282_s24 = sshll.u32 %s9191_s23, 4  ;;  %s283_s24 = int_to_ptr.vmem [resolvable:$true] %s282_s24 }
  0x17   : > { %s9004_s25 = scalar_lea.vmem %s257_s19, 1024  ;;  %p9012_p5 = scmp.lt.s32.totalorder %s257_s19, %s257_s19 }
  0x18   : > { %p9309_p11 = pnand %p8581_p9, %p9280_p1  ;;  %p9005_p13 = scmp.ne.s32.totalorder %s257_s19, %s9004_s25 }
  0x19   : > { %p9013_p7 = scmp.lt.s32.totalorder %s9004_s25, %s9004_s25 }
  0x1a   : > { %p8995_p12 = pneg %p9309_p11 }
  0x1b   : > { %p9014_p9 = por %p9013_p7, %p9012_p5 }
  0x1c   : > { %p9007_p0 = pnand %p9005_p13, %p8995_p12 }
  0x1e   : > { %p9008_p3 = pneg %p9007_p0 }
  0x20   : > { %p9015_p10 = pnand %p9014_p9, %p9008_p3 }
  0x22   : > { %9018 = shalt.err (!%p9015_p10)
}
  0x23   : > { %s12307_s26 = smov 64   ;;  %s12308_s11 = smov 4  }
  0x24   : > { %s12403_s1 = sld [smem:[#allocation92_spill]]  ;;  %s9030_s21 = scalar_lea.vmem %s270_s22, 9216 }
  0x25   : > { %p9031_p13 = scmp.ne.s32.totalorder %s270_s22, %s9030_s21  ;;  %p9038_p3 = scmp.lt.s32.totalorder %s270_s22, %s270_s22 }
  0x26   : > { %p9039_p10 = scmp.lt.s32.totalorder %s9030_s21, %s9030_s21 }
  0x27   : > { %p9033_p0 = pnand %p9031_p13, %p8995_p12 }
  0x28   : > { %p9040_p7 = por %p9039_p10, %p9038_p3 }
  0x29   : > { %p9034_p5 = pneg %p9033_p0 }
  0x2a   : > { %8584 = dma.hbm_to_vmem [thread:$0]  (!%p9309_p11), %s12403_s1, 1024, %s257_s19, [#allocation8], %s12307_s26, %s12307_s26, %s12308_s11  }
  0x2b   : > { %p9041_p9 = pnand %p9040_p7, %p9034_p5 }
  0x2d   : > { %9044 = shalt.err (!%p9041_p9)
}
  0x2e   : > { %s12404_s2 = sld [smem:[#allocation93_spill]]  ;;  %s9056_s19 = scalar_lea.vmem %s283_s24, 1024 }
  0x2f   : > { %p9057_p6 = scmp.ne.s32.totalorder %s283_s24, %s9056_s19  ;;  %p9064_p3 = scmp.lt.s32.totalorder %s283_s24, %s283_s24 }
  0x30   : > { %p9065_p5 = scmp.lt.s32.totalorder %s9056_s19, %s9056_s19 }
  0x31   : > { %p9059_p13 = pnand %p9057_p6, %p8995_p12 }
  0x32   : > { %p9066_p10 = por %p9065_p5, %p9064_p3 }
  0x33   : > { %p9060_p0 = pneg %p9059_p13 }
  0x34   : > { %8587 = dma.hbm_to_vmem [thread:$0]  (!%p9309_p11), %s12404_s2, 9216, %s270_s22, [#allocation8], %s12307_s26, %s12307_s26, %s12308_s11  }
  0x35   : > { %p9067_p7 = pnand %p9066_p10, %p9060_p0 }
  0x37   : > { %9070 = shalt.err (!%p9067_p7)
}
  0x38   : > { %s12405_s3 = sld [smem:[#allocation94_spill]]  ;;  %s45_s22 = sadd.s32 1, %s9175_s29 }
  0x39   : > { %s38_s20 = sadd.s32 1, %s9183_s9  ;;  %p52_p6 = scmp.ne.s32.totalorder %s9175_s29, %s9171_s28 }
  0x3a   : > { %p40_p12 = scmp.ge.s32.totalorder %s38_s20, 2  ;;  %p53_p9 = scmp.eq.s32.totalorder %s9187_s10, 0 }
  0x3b   : > { %p9355_p13 = por %p9284_p2, %p52_p6  ;;  %p8602_p0 = scmp.lt.s32.totalorder %s9187_s10, 2 }
  0x3c   : > { %s12818_s20 = smov (%p40_p12, %s38_s20), 0  ;;  %p54_p3 = por %p53_p9, %p52_p6 }
  0x3d   : > { %12407 = sst [smem:[#allocation19_spill]] %s12818_s20  ;;  %s308_s23 = sand.u32 1, %s9175_s29  }
  0x3e   : > { %8590 = dma.hbm_to_vmem [thread:$0]  (!%p9309_p11), %s12405_s3, 1024, %s283_s24, [#allocation11], %s12307_s26, %s12307_s26, %s12308_s11  }
  0x3f   : > { %s42_s25 = ssub.s32 %s9183_s9, %s12818_s20  ;;  %s8562_s24 = smul.u32 216, %s308_s23 }
  0x40   : > { %p43_p5 = scmp.eq.s32.totalorder %s42_s25, 0  ;;  %s8563_s19 = smul.u32 3456, %s9183_s9 }
  0x41   : > { %p9366_p11 = pnand %p8602_p0, %p54_p3  ;;  %s312_s1 = scalar_lea.vmem [#allocation4], %s8562_s24 }
  0x42   : > { %s9371_s14 = scalar_select %p43_p5, %s9175_s29, %s45_s22  }
  0x43   : > { %s318_s11 = scalar_lea.hbm %s12298_s0, %s8563_s19  ;;  %s319_s2 = sshll.u32 %s312_s1, 4  ;;  %s320_s2 = int_to_ptr.vmem [resolvable:$true] %s319_s2 }
  0x44   : > { %s309_s3 = scalar_lea.sflag [#allocation5], %s308_s23  ;;  %p9073_p2 = pneg %p9366_p11 }
  0x45   : > { %s9084_s25 = scalar_lea.vmem %s320_s2, 3456  ;;  %s9194_s20 = smov [#allocation4]  }
  0x46   : > { %p9085_p10 = scmp.ne.s32.totalorder %s320_s2, %s9084_s25  ;;  %s9089_s9 = sshll.u32 %s9194_s20, 4  ;;  %s9090_s9 = int_to_ptr.vmem [resolvable:$false] %s9089_s9 }
  0x47   : > { %s9091_s10 = scalar_lea.vmem %s9090_s9, 6912  ;;  %p9092_p12 = scmp.lt.s32.totalorder %s320_s2, %s9090_s9 }
  0x48   : > { %p9087_p7 = pnand %p9085_p10, %p9073_p2  ;;  %p9093_p9 = scmp.lt.s32.totalorder %s9091_s10, %s9084_s25 }
  0x4a   : > { %p9088_p6 = pneg %p9087_p7  ;;  %p9094_p0 = por %p9093_p9, %p9092_p12 }
  0x4c   : > { %p9095_p3 = pnand %p9094_p0, %p9088_p6 }
  0x4e   : > { %9098 = shalt.err (!%p9095_p3)
}
  0x4f   : > { %s12409_s1 = smov 4   ;;  %s12410_s26 = smov 64  }
  0x50   : > { %8594 = dma.hbm_to_vmem [thread:$0]  (!%p9366_p11), %s318_s11, 3456, %s320_s2, %s309_s3, %s12410_s26, %s12410_s26, %s12409_s1  }
  0x51   : > { %331 = sbr.rel (%p9300_p8) target bundleno = 1406 (0x57e), region = 52 }
  0x56   : > { %s9386_s22 = sand.u32 1, %s9171_s28  }
  0x57   : > { %s8564_s9 = smul.u32 216, %s9386_s22  ;;  %s334_s10 = scalar_lea.sflag [#allocation5], %s9386_s22 }
  0x59   : > { %s9390_s20 = scalar_lea.vmem [#allocation4], %s8564_s9 }
  0x5a   : > { %9150 = dma.done.wait (%p9290_p4), %s334_s10, 3456  }
  0x5b   : > { %9152 = vsyncadd (%p9290_p4), %s334_s10, 4294963840 }
  0x5c   : > { %9154 = dma.done.wait (%p9280_p1), [#allocation8], 10240  }
  0x5d   : > { %9156 = vsyncadd (%p9280_p1), [#allocation8], 4294957056 }
  0x5e   : > { %9158 = dma.done.wait (%p9280_p1), [#allocation11], 1024  }
  0x5f   : > { %9160 = vsyncadd (%p9280_p1), [#allocation11], 4294966272  ;;  %v9195_v0 = vmov 0.0   ;;  %vm9196_vm0 = vmmov 0   ;;  %v12313_v1 = vmov 0   ;;  %v8667_v2 = vld [vmem:[#allocation7 + $0x38] sm:$0xff]  }
  0x60   : > { %8326 = vmatprep.subr.bf16.mxu0 %v9195_v0  ;;  %8342 = vmatprep.mubr.msk.bf16.mxu0 %vm9196_vm0, %v9195_v0  ;;  %v8668_v3 = vld [vmem:[#allocation7 + $0x30] sm:$0xff]   ;;  %v8669_v4 = vld [vmem:[#allocation7 + $0x28] sm:$0xff]   ;;  %v8670_v5 = vld [vmem:[#allocation7 + $0x20] sm:$0xff]   ;;  %vm2008_vm1 = vcmask 1042432   ;;  %vm2009_vm2 = vcmask 1046532   ;;  %s7161_s13 = sshll.u32 %s9386_s22, 8 }
  0x61   : > { %8665 = vset.pattern.permute.xlu0 %v12313_v1  ;;  %8666 = vset.pattern.permute.xlu1 %v12313_v1  ;;  %v8671_v6 = vld [vmem:[#allocation7 + $0x18] sm:$0xff]   ;;  %v8672_v7 = vld [vmem:[#allocation7 + $0x10] sm:$0xff]   ;;  %v980_v9 = vld [vmem:[%s12305_s7 + $0x10] sm:$0xff]  ;;  %vm1461_vm4 = vsmask.f32 3328  ;;  %s12088_s15 = scalar_lea.vmem [#allocation12], %s7161_s13 }
  0x62   : > { %8327 = vmatpush3.bf16.msra.mxu0 %v8667_v2  ;;  %v978_v8 = vld [vmem:[%s12305_s7] sm:$0xff]  ;;  %v979_v10 = vld [vmem:[%s12305_s7 + $0x8] sm:$0xff]  ;;  %993 = vperm.xlu1 %8666, %v980_v9   ;;  %v8673_v11 = vld [vmem:[#allocation7 + $0x8] sm:$0xff]   ;;  %vm1462_vm5 = vsmask.f32 7440  ;;  %s7030_s17 = sshll.u32 %s12088_s15, 4  ;;  %s12248_s17 = int_to_ptr.vmem [resolvable:$true] %s7030_s17 }
  0x63   : > { %8328 = vmatprep.subr.bf16.mxu0 %v9195_v0  ;;  %983 = vperm.xlu0 %8665, %v978_v8   ;;  %v8674_v12 = vld [vmem:[#allocation7] sm:$0xff]   ;;  %v8675_v13 = vld [vmem:[%s9390_s20] sm:$0xff]   ;;  %v8676_v14 = vld [vmem:[%s9390_s20 + $0x8] sm:$0xff]   ;;  %s7014_s19 = scalar_lea.sflag [#allocation6], %s9386_s22  ;;  %s9099_s12 = scalar_lea.vmem %s12248_s17, 4096 }
  0x64   : > { %v8677_v15 = vld [vmem:[%s9390_s20 + $0x10] sm:$0xff]   ;;  %v8678_v16 = vld [vmem:[%s9390_s20 + $0x18] sm:$0xff]   ;;  %v8679_v17 = vld [vmem:[%s9390_s20 + $0x20] sm:$0xff]   ;;  %p9100_p1 = scmp.ne.s32.totalorder %s12248_s17, %s9099_s12 }
  0x65   : > { %v8680_v18 = vld [vmem:[%s9390_s20 + $0x28] sm:$0xff]   ;;  %v8681_v19 = vld [vmem:[%s9390_s20 + $0x30] sm:$0xff]   ;;  %v8682_v20 = vld [vmem:[%s9390_s20 + $0x38] sm:$0xff]  }
  0x66   : > { %8329 = vmatpush3.bf16.msra.mxu0 %v8668_v3  ;;  %v8683_v21 = vld [vmem:[%s9390_s20 + $0x40] sm:$0xff]   ;;  %v8684_v22 = vld [vmem:[%s9390_s20 + $0x48] sm:$0xff]   ;;  %v8685_v23 = vld [vmem:[%s9390_s20 + $0x50] sm:$0xff]   ;;  %p9101_p4 = pnand %p9100_p1, %p9355_p13 }
  0x67   : > { %8330 = vmatprep.subr.bf16.mxu0 %v9195_v0  ;;  %988 = vperm.xlu0 %8665, %v979_v10   ;;  %v8702_v24 = vld [vmem:[#allocation9 + $0x78] sm:$0xff]   ;;  %v8686_v26 = vld [vmem:[%s9390_s20 + $0x58] sm:$0xff]   ;;  %v8704_v27 = vld [vmem:[#allocation9 + $0x70] sm:$0xff]  }
  0x68   : > { %v8703_v25 = vld [vmem:[#allocation9 + $0x38] sm:$0xff]   ;;  %7830 = vmatprep.subr.bf16.mxu1 %v8702_v24  ;;  %v8705_v28 = vld [vmem:[#allocation9 + $0x30] sm:$0xff]   ;;  %v8706_v29 = vld [vmem:[#allocation9 + $0x68] sm:$0xff]   ;;  %p9102_p8 = pneg %p9101_p4 }
  0x69   : > { %7831 = vmatpush3.bf16.msra.mxu1 %v8703_v25  ;;  %v8707_v30 = vld [vmem:[#allocation9 + $0x178] sm:$0xff]   ;;  %v8708_v31 = vld [vmem:[#allocation9 + $0x28] sm:$0xff]   ;;  %v8710_v35 = vld [vmem:[#allocation9 + $0x60] sm:$0xff]  }
  0x6a   : > { %8331 = vmatpush3.bf16.msra.mxu0 %v8669_v4  ;;  %7832 = vmatprep.subr.bf16.mxu1 %v8704_v27  ;;  %v8709_v32 = vld [vmem:[#allocation9 + $0x138] sm:$0xff]   ;;  %v8687_v33 = vld [vmem:[%s9390_s20 + $0x60] sm:$0xff]   ;;  %v8712_v37 = vld [vmem:[#allocation9 + $0x20] sm:$0xff]  }
  0x6b   : > { %8332 = vmatprep.subr.bf16.mxu0 %v9195_v0  ;;  %v8688_v34 = vld [vmem:[%s9390_s20 + $0x68] sm:$0xff]   ;;  %v8715_v40 = vld [vmem:[#allocation9 + $0x168] sm:$0xff]   ;;  %v8689_v43 = vld [vmem:[%s9390_s20 + $0x70] sm:$0xff]  }
  0x6c   : > { %v8711_v36 = vld [vmem:[#allocation9 + $0x170] sm:$0xff]   ;;  %v8714_v39 = vld [vmem:[#allocation9 + $0x58] sm:$0xff]   ;;  %v8717_v42 = vld [vmem:[#allocation9 + $0x128] sm:$0xff]  }
  0x6d   : > { %7833 = vmatpush3.bf16.msra.mxu1 %v8705_v28  ;;  %v8713_v38 = vld [vmem:[#allocation9 + $0x130] sm:$0xff]   ;;  %v8716_v41 = vld [vmem:[#allocation9 + $0x18] sm:$0xff]   ;;  %v8719_v45 = vld [vmem:[#allocation9 + $0x160] sm:$0xff]  }
  0x6e   : > { %8333 = vmatpush3.bf16.msra.mxu0 %v8670_v5  ;;  %7834 = vmatprep.subr.bf16.mxu1 %v8706_v29  ;;  %v8718_v44 = vld [vmem:[#allocation9 + $0x50] sm:$0xff]   ;;  %v8721_v47 = vld [vmem:[#allocation9 + $0x120] sm:$0xff]   ;;  %v8722_v48 = vld [vmem:[#allocation9 + $0x48] sm:$0xff]  }
  0x6f   : > { %8334 = vmatprep.subr.bf16.mxu0 %v9195_v0  ;;  %v8720_v46 = vld [vmem:[#allocation9 + $0x10] sm:$0xff]   ;;  %v8723_v49 = vld [vmem:[#allocation9 + $0x158] sm:$0xff]   ;;  %v8724_v50 = vld [vmem:[#allocation9 + $0x8] sm:$0xff]  }
  0x70   : > { %v8725_v51 = vld [vmem:[#allocation9 + $0x118] sm:$0xff]   ;;  %v8690_v52 = vld [vmem:[%s9390_s20 + $0x78] sm:$0xff]   ;;  %v8727_v54 = vld [vmem:[#allocation9 + $0x150] sm:$0xff]  }
  0x71   : > { %7835 = vmatpush3.bf16.msra.mxu1 %v8708_v31  ;;  %v8726_v53 = vld [vmem:[#allocation9 + $0x40] sm:$0xff]   ;;  %v8691_v55 = vld [vmem:[%s9390_s20 + $0x80] sm:$0xff]   ;;  %v8692_v60 = vld [vmem:[%s9390_s20 + $0x88] sm:$0xff]  }
  0x72   : > { %8335 = vmatpush3.bf16.msra.mxu0 %v8671_v6  ;;  %7836 = vmatprep.subr.bf16.mxu1 %v8710_v35  ;;  %v8728_v56 = vld [vmem:[#allocation9] sm:$0xff]   ;;  %v8729_v57 = vld [vmem:[#allocation9 + $0x110] sm:$0xff]   ;;  %v8733_v58 = vld [vmem:[#allocation9 + $0x148] sm:$0xff]  }
  0x73   : > { %8336 = vmatprep.subr.bf16.mxu0 %v9195_v0  ;;  %v8734_v59 = vld [vmem:[#allocation9 + $0x108] sm:$0xff]   ;;  %v8735_v61 = vld [vmem:[#allocation9 + $0x140] sm:$0xff]   ;;  %v8696_v4 = vld [vmem:[%s9390_s20 + $0xa8] sm:$0xff]  }
  0x74   : > { %v8736_v62 = vld [vmem:[#allocation9 + $0x100] sm:$0xff]   ;;  %v8695_v3 = vld [vmem:[%s9390_s20 + $0xa0] sm:$0xff]   ;;  %v9501_v8 = vld [vmem:[%s12302_s4] ss:$0 sm:$0xff] }
  0x75   : > { %7837 = vmatpush3.bf16.msra.mxu1 %v8712_v37  ;;  %v8693_v63 = vld [vmem:[%s9390_s20 + $0x90] sm:$0xff]   ;;  %v8694_v2 = vld [vmem:[%s9390_s20 + $0x98] sm:$0xff]   ;;  %vm9530_vm3 = vmor %vm2008_vm1, %vm2009_vm2 }
  0x76   : > { %8337 = vmatpush3.bf16.msra.mxu0 %v8672_v7  ;;  %7838 = vmatprep.subr.bf16.mxu1 %v8714_v39  ;;  %v8697_v5 = vld [vmem:[%s9390_s20 + $0xb0] sm:$0xff]   ;;  %v8698_v6 = vld [vmem:[%s9390_s20 + $0xb8] sm:$0xff]   ;;  %v8699_v7 = vld [vmem:[%s9390_s20 + $0xc0] sm:$0xff]  }
  0x77   : > { %8338 = vmatprep.subr.bf16.mxu0 %v9195_v0  ;;  %v8701_v27 = vld [vmem:[%s9390_s20 + $0xd0] sm:$0xff]   ;;  %vm9542_vm6 = vmor %vm1461_vm4, %vm1462_vm5 }
  0x79   : > { %7839 = vmatpush3.bf16.msra.mxu1 %v8716_v41 }
  0x7a   : > { %8339 = vmatpush3.bf16.msra.mxu0 %v8673_v11  ;;  %7840 = vmatprep.subr.bf16.mxu1 %v8718_v44 }
  0x7b   : > { %8340 = vmatprep.subr.bf16.mxu0 %v9195_v0 }
  0x7d   : > { %7841 = vmatpush3.bf16.msra.mxu1 %v8720_v46 }
  0x7e   : > { %8341 = vmatpush3.bf16.msra.mxu0 %v8674_v12  ;;  %7842 = vmatprep.subr.bf16.mxu1 %v8722_v48 }
  0x7f   : > { %8054 = vmatprep.subr.bf16.mxu0 %v8707_v30 }
  0x81   : > { %8343 = vmatmul.mubr.bf16.vlgmr.msra.gmra.mxu0 %v8675_v13  ;;  %7843 = vmatpush3.bf16.msra.mxu1 %v8724_v50 }
  0x82   : > { %8346 = vmatprep.mubr.msk.bf16.mxu0 %vm9196_vm0, %v9195_v0  ;;  %8055 = vmatpush3.bf16.msra.mxu0 %v8709_v32 }
  0x83   : > { %8056 = vmatprep.subr.bf16.mxu0 %v8711_v36  ;;  %7844 = vmatprep.subr.bf16.mxu1 %v8726_v53 }
  0x85   : > { %7845 = vmatpush3.bf16.msra.mxu1 %v8728_v56 }
  0x86   : > { %8057 = vmatpush3.bf16.msra.mxu0 %v8713_v38 }
  0x87   : > { %8058 = vmatprep.subr.bf16.mxu0 %v8715_v40 }
  0x89   : > { %8347 = vmatmul.mubr.bf16.gmra.mxu0 %v8676_v14  ;;  %v8700_v14 = vld [vmem:[%s9390_s20 + $0xc8] sm:$0xff]  }
  0x8a   : > { %8350 = vmatprep.mubr.msk.bf16.mxu0 %vm9196_vm0, %v9195_v0  ;;  %8059 = vmatpush3.bf16.msra.mxu0 %v8717_v42 }
  0x8b   : > { %8060 = vmatprep.subr.bf16.mxu0 %v8719_v45 }
  0x8e   : > { %8061 = vmatpush3.bf16.msra.mxu0 %v8721_v47 }
  0x8f   : > { %8062 = vmatprep.subr.bf16.mxu0 %v8723_v49 }
  0x91   : > { %8351 = vmatmul.mubr.bf16.gmra.mxu0 %v8677_v15 }
  0x92   : > { %8354 = vmatprep.mubr.msk.bf16.mxu0 %vm9196_vm0, %v9195_v0  ;;  %8063 = vmatpush3.bf16.msra.mxu0 %v8725_v51 }
  0x93   : > { %8064 = vmatprep.subr.bf16.mxu0 %v8727_v54 }
  0x96   : > { %8065 = vmatpush3.bf16.msra.mxu0 %v8729_v57 }
  0x97   : > { %8066 = vmatprep.subr.bf16.mxu0 %v8733_v58 }
  0x99   : > { %8355 = vmatmul.mubr.bf16.gmra.mxu0 %v8678_v16 }
  0x9a   : > { %8358 = vmatprep.mubr.msk.bf16.mxu0 %vm9196_vm0, %v9195_v0  ;;  %8067 = vmatpush3.bf16.msra.mxu0 %v8734_v59 }
  0x9b   : > { %8068 = vmatprep.subr.bf16.mxu0 %v8735_v61 }
  0x9e   : > { %8069 = vmatpush3.bf16.msra.mxu0 %v8736_v62 }
  0xa1   : > { %8359 = vmatmul.mubr.bf16.gmra.mxu0 %v8679_v17 }
  0xa2   : > { %8362 = vmatprep.mubr.msk.bf16.mxu0 %vm9196_vm0, %v9195_v0 }
  0xa9   : > { %8363 = vmatmul.mubr.bf16.gmra.mxu0 %v8680_v18 }
  0xaa   : > { %8366 = vmatprep.mubr.msk.bf16.mxu0 %vm9196_vm0, %v9195_v0 }
  0xb1   : > { %8367 = vmatmul.mubr.bf16.gmra.mxu0 %v8681_v19 }
  0xb2   : > { %8370 = vmatprep.mubr.msk.bf16.mxu0 %vm9196_vm0, %v9195_v0 }
  0xb9   : > { %8371 = vmatmul.mubr.bf16.gmra.mxu0 %v8682_v20 }
  0xba   : > { %8374 = vmatprep.mubr.msk.bf16.mxu0 %vm9196_vm0, %v9195_v0 }
  0xc1   : > { %8375 = vmatmul.mubr.bf16.gmra.mxu0 %v8683_v21 }
  0xc2   : > { %8378 = vmatprep.mubr.msk.bf16.mxu0 %vm9196_vm0, %v9195_v0 }
  0xc9   : > { %8379 = vmatmul.mubr.bf16.gmra.mxu0 %v8684_v22 }
  0xca   : > { %8382 = vmatprep.mubr.msk.bf16.mxu0 %vm9196_vm0, %v9195_v0 }
  0xd1   : > { %8383 = vmatmul.mubr.bf16.gmra.mxu0 %v8685_v23 }
  0xd2   : > { %8386 = vmatprep.mubr.msk.bf16.mxu0 %vm9196_vm0, %v9195_v0 }
  0xd9   : > { %8387 = vmatmul.mubr.bf16.gmra.mxu0 %v8686_v26 }
  0xda   : > { %8390 = vmatprep.mubr.msk.bf16.mxu0 %vm9196_vm0, %v9195_v0 }
  0xdd   : > { %v9519_v30 = vpop.permute.xlu1 %993 }
  0xde   : > { %v9503_v10 = vpop.permute.xlu0 %983 }
  0xe1   : > { %8391 = vmatmul.mubr.bf16.gmra.mxu0 %v8687_v33 }
  0xe2   : > { %8394 = vmatprep.mubr.msk.bf16.mxu0 %vm9196_vm0, %v9195_v0  ;;  %v9510_v18 = vpop.permute.xlu0 %988 }
  0xe9   : > { %8395 = vmatmul.mubr.bf16.gmra.mxu0 %v8688_v34 }
  0xea   : > { %8398 = vmatprep.mubr.msk.bf16.mxu0 %vm9196_vm0, %v9195_v0 }
  0xf1   : > { %8399 = vmatmul.mubr.bf16.gmra.mxu0 %v8689_v43 }
  0xf2   : > { %8402 = vmatprep.mubr.msk.bf16.mxu0 %vm9196_vm0, %v9195_v0 }
  0xf9   : > { %8403 = vmatmul.mubr.bf16.gmra.mxu0 %v8690_v52 }
  0xfa   : > { %8406 = vmatprep.mubr.msk.bf16.mxu0 %vm9196_vm0, %v9195_v0 }
 0x101   : > { %8407 = vmatmul.mubr.bf16.gmra.mxu0 %v8691_v55 }
 0x102   : > { %8410 = vmatprep.mubr.msk.bf16.mxu0 %vm9196_vm0, %v9195_v0 }
 0x109   : > { %8411 = vmatmul.mubr.bf16.gmra.mxu0 %v8692_v60 }
 0x10a   : > { %8414 = vmatprep.mubr.msk.bf16.mxu0 %vm9196_vm0, %v9195_v0 }
 0x111   : > { %8415 = vmatmul.mubr.bf16.gmra.mxu0 %v8693_v63 }
 0x112   : > { %8418 = vmatprep.mubr.msk.bf16.mxu0 %vm9196_vm0, %v9195_v0 }
 0x119   : > { %8419 = vmatmul.mubr.bf16.gmra.mxu0 %v8694_v2 }
 0x11a   : > { %8422 = vmatprep.mubr.msk.bf16.mxu0 %vm9196_vm0, %v9195_v0 }
 0x121   : > { %8423 = vmatmul.mubr.bf16.gmra.mxu0 %v8695_v3 }
 0x122   : > { %8426 = vmatprep.mubr.msk.bf16.mxu0 %vm9196_vm0, %v9195_v0 }
 0x129   : > { %8427 = vmatmul.mubr.bf16.gmra.mxu0 %v8696_v4 }
 0x12a   : > { %8430 = vmatprep.mubr.msk.bf16.mxu0 %vm9196_vm0, %v9195_v0 }
 0x131   : > { %8431 = vmatmul.mubr.bf16.gmra.mxu0 %v8697_v5 }
 0x132   : > { %8434 = vmatprep.mubr.msk.bf16.mxu0 %vm9196_vm0, %v9195_v0 }
 0x139   : > { %8435 = vmatmul.mubr.bf16.gmra.mxu0 %v8698_v6 }
 0x13a   : > { %8438 = vmatprep.mubr.msk.bf16.mxu0 %vm9196_vm0, %v9195_v0 }
 0x141   : > { %v709_v9 = vpop.f32.mrf.mxu0  ;;  %8439 = vmatmul.mubr.bf16.gmra.mxu0 %v8699_v7 }
 0x142   : > { %v710_v11 = vadd.f32 %v9501_v8, %v709_v9  ;;  %8442 = vmatprep.mubr.msk.bf16.mxu0 %vm9196_vm0, %v9195_v0 }
 0x143   : > { %v8344_v12 = vpop.f32.mrf.mxu0 }
 0x144   : > { %v924_v15 = vmax.f32 %v710_v11, 0.0 }
 0x145   : > { %v712_v13 = vpop.f32.mrf.mxu0 }
 0x146   : > { %v713_v16 = vadd.f32 %v9501_v8, %v712_v13  ;;  %v996_v22 = vmul.f32 %v9503_v10, %v924_v15 }
 0x147   : > { %v8345_v17 = vpop.f32.mrf.mxu0 }
 0x148   : > { %v925_v19 = vmax.f32 %v713_v16, 0.0 }
 0x149   : > { %v717_v20 = vpop.f32.mrf.mxu0  ;;  %8443 = vmatmul.mubr.bf16.gmra.mxu0 %v8700_v14 }
 0x14a   : > { %v718_v21 = vadd.f32 %v9501_v8, %v717_v20  ;;  %8446 = vmatprep.mubr.msk.bf16.mxu0 %vm9196_vm0, %v9195_v0  ;;  %v997_v23 = vmul.f32 %v9510_v18, %v925_v19 }
 0x14b   : > { %v8348_v24 = vpop.f32.mrf.mxu0 }
 0x14c   : > { %v7637_v25 = vpack.c.bf16 %v997_v23, %v996_v22  ;;  %v926_v28 = vmax.f32 %v718_v21, 0.0  ;;  %v12413_v21 = vmov 0 }
 0x14d   : > { %v720_v26 = vpop.f32.mrf.mxu0  ;;  %v12414_v21 = vsel %vm9542_vm6, 4294967295, %v12413_v21 }
 0x14e   : > { %v721_v29 = vadd.f32 %v9501_v8, %v720_v26  ;;  %7638 = vst [vmem:[#allocation2] sm:$0xff] %v7637_v25   ;;  %v998_v33 = vmul.f32 %v9519_v30, %v926_v28  ;;  %12415 = vst [vmem:[#allocation20_spill] sm:$0xff] %v12414_v21 }
 0x14f   : > { %v8349_v31 = vpop.f32.mrf.mxu0  ;;  %1342 = vst [vmem:[#allocation2] sm:$0xf] %v12313_v1  ;;  %1343 = vst [vmem:[#allocation2 + $0x4] sm:$0xf] %v12313_v1 }
 0x150   : > { %v927_v0 = vmax.f32 %v721_v29, 0.0 }
 0x151   : > { %v725_v32 = vpop.f32.mrf.mxu0  ;;  %8447 = vmatmul.mubr.bf16.gmra.mxu0 %v8701_v27 }
 0x152   : > { %v999_v34 = vmul.f32 %v9503_v10, %v927_v0  ;;  %v726_v35 = vadd.f32 %v9501_v8, %v725_v32 }
 0x153   : > { %v8352_v36 = vpop.f32.mrf.mxu0 }
 0x154   : > { %v7642_v37 = vpack.c.bf16 %v999_v34, %v998_v33  ;;  %v928_v38 = vmax.f32 %v726_v35, 0.0 }
 0x155   : > { %v728_v39 = vpop.f32.mrf.mxu0 }
 0x156   : > { %7769 = vst [vmem:[#allocation2 + $0x8] sm:$0xff] %v7642_v37   ;;  %v729_v40 = vadd.f32 %v9501_v8, %v728_v39  ;;  %v1349_v41 = vld [vmem:[#allocation2] sm:$0xf]  ;;  %v1350_v42 = vld [vmem:[#allocation2 + $0x4] sm:$0xf]  ;;  %v1000_v59 = vmul.f32 %v9510_v18, %v928_v38 }
 0x157   : > { %v1413_v43 = vld [vmem:[#allocation2] sm:$0xf]  ;;  %1344 = vst [vmem:[#allocation2 + $0x8] sm:$0xf] %v12313_v1  ;;  %v8353_v44 = vpop.f32.mrf.mxu0  ;;  %1381 = vst [vmem:[#allocation3] sm:$0xf] %v1349_v41 }
 0x158   : > { %1382 = vst [vmem:[#allocation3 + $0x24] sm:$0xf] %v1350_v42  ;;  %v1414_v45 = vld [vmem:[#allocation2 + $0x4] sm:$0xf]  ;;  %v1465_v46 = vshrl.u32 %v1413_v43, 16  ;;  %v1468_v47 = vshll.u32 %v1413_v43, 16 }
 0x159   : > { %v1912_v48 = vld [vmem:[#allocation2] sm:$0xe]  ;;  %v929_v49 = vmax.f32 %v729_v40, 0.0  ;;  %v1474_v51 = vshll.u32 %v1414_v45, 16  ;;  %v1478_v52 = vshrl.u32 %v1414_v45, 16  ;;  %v733_v55 = vpop.f32.mrf.mxu0 }
 0x15a   : > { %v1913_v53 = vld [vmem:[#allocation2 + $0x4] sm:$0xf]  ;;  %v7252_v54 = vrot.slane %v1912_v48, 9  ;;  %v1467_v56 = vrot.slane %v1465_v46, 4  ;;  %v1470_v57 = vrot.slane %v1468_v47, 5  ;;  %v734_v63 = vadd.f32 %v9501_v8, %v733_v55 }
 0x15b   : > { %v2013_v58 = vrot.slane %v1913_v53, 5  ;;  %v1001_v60 = vmul.f32 %v9519_v30, %v929_v49  ;;  %v1476_v61 = vrot.slane %v1474_v51, 5  ;;  %v1480_v62 = vrot.slane %v1478_v52, 4  ;;  %v8356_v2 = vpop.f32.mrf.mxu0 }
 0x15c   : > { %v1471_v5 = vor.u32 %v1470_v57, %v1467_v56  ;;  %v930_v16 = vmax.f32 %v734_v63, 0.0 }
 0x15d   : > { %v2014_v3 = vsel %vm9530_vm3, %v7252_v54, %v2013_v58  ;;  %v7647_v4 = vpack.c.bf16 %v1001_v60, %v1000_v59  ;;  %v1416_v6 = vld [vmem:[#allocation2 + $0xc] sm:$0xf]  ;;  %v736_v9 = vpop.f32.mrf.mxu0  ;;  %v1481_v11 = vor.u32 %v1480_v62, %v1476_v61  ;;  %v2015_v27 = vrot.slane %v2013_v58, 4 }
 0x15e   : > { %2155 = vst [vmem:[#allocation3 + $0x8] sm:$0xf] %v2014_v3  ;;  %v2252_v7 = vld [vmem:[#allocation2 + $0xc] sm:$0xf]  ;;  %v1489_v12 = vshrl.u32 %v1416_v6, 16  ;;  %v1492_v13 = vshll.u32 %v1416_v6, 16  ;;  %v737_v17 = vadd.f32 %v9501_v8, %v736_v9  ;;  %v1002_v38 = vmul.f32 %v9503_v10, %v930_v16 }
 0x15f   : > { %v2301_v14 = vshrl.u32 %v2252_v7, 16  ;;  %7770 = vst [vmem:[#allocation2 + $0x10] sm:$0xff] %v7647_v4   ;;  %v2304_v15 = vshll.u32 %v2252_v7, 16  ;;  %v8357_v19 = vpop.f32.mrf.mxu0  ;;  %v1415_v20 = vld [vmem:[#allocation2 + $0x8] sm:$0x1]  ;;  %v1472_v25 = vrot.slane %v1471_v5, 4 }
 0x160   : > { %v1351_v22 = vld [vmem:[#allocation2 + $0xc] sm:$0xf]  ;;  %v1491_v23 = vrot.slane %v1489_v12, 4  ;;  %v1494_v24 = vrot.slane %v1492_v13, 5  ;;  %v1914_v26 = vld [vmem:[#allocation2 + $0x8] sm:$0x1] }
 0x161   : > { %1383 = vst [vmem:[#allocation3 + $0x48] sm:$0xf] %v1351_v22  ;;  %v2303_v28 = vrot.slane %v2301_v14, 4  ;;  %v931_v29 = vmax.f32 %v737_v17, 0.0  ;;  %v741_v31 = vpop.f32.mrf.mxu0  ;;  %v1482_v0 = vrot.slane %v1481_v11, 4  ;;  %v1484_v32 = vshll.u32 %v1415_v20, 16 }
 0x162   : > { %v2188_v33 = vld [vmem:[#allocation2 + $0xc] sm:$0xf]  ;;  %v2306_v34 = vrot.slane %v2304_v15, 5  ;;  %v742_v35 = vadd.f32 %v9501_v8, %v741_v31  ;;  %v1477_v36 = vsel %vm9542_vm6, %v1472_v25, %v1476_v61  ;;  %v2016_v37 = vrot.slane %v1914_v26, 5  ;;  %v8763_v17 = vld [vmem:[#allocation9 + $0xf8] sm:$0xff]  }
 0x163   : > { %2220 = vst [vmem:[#allocation3 + $0xc] sm:$0xf] %v2188_v33  ;;  %v1003_v39 = vmul.f32 %v9510_v18, %v931_v29  ;;  %v8360_v40 = vpop.f32.mrf.mxu0  ;;  %v1486_v41 = vrot.slane %v1484_v32, 5  ;;  %1880 = vst [vmem:[#allocation3 + $0x4] sm:$0xf] %v1477_v36  ;;  %v1495_v42 = vor.u32 %v1494_v24, %v1491_v23  ;;  %7942 = vmatprep.subr.bf16.mxu1 %v8763_v17  ;;  %v8768_v29 = vld [vmem:[#allocation9 + $0xb8] sm:$0xff]  }
 0x164   : > { %v2748_v43 = vld [vmem:[#allocation2 + $0xc] sm:$0xe]  ;;  %v2017_v44 = vsel %vm9530_vm3, %v2015_v27, %v2016_v37  ;;  %v2307_v52 = vor.u32 %v2306_v34, %v2303_v28  ;;  %v932_v55 = vmax.f32 %v742_v35, 0.0  ;;  %v8730_v32 = vld [vmem:[#allocation3] ss:$36 sps:$4 sm:$0xff]  }
 0x165   : > { %v7652_v48 = vpack.c.bf16 %v1003_v39, %v1002_v38  ;;  %v744_v49 = vpop.f32.mrf.mxu0  ;;  %v1487_v51 = vsel %vm9542_vm6, %v1482_v0, %v1486_v41  ;;  %2156 = vst [vmem:[#allocation3 + $0x2c] sm:$0xf] %v2017_v44  ;;  %v7268_v56 = vrot.slane %v2748_v43, 9  ;;  %v1496_v3 = vrot.slane %v1495_v42, 4  ;;  %v1915_v4 = vld [vmem:[#allocation2 + $0xc] sm:$0xe] }
 0x166   : > { %v1417_v45 = vld [vmem:[#allocation2 + $0x10] sm:$0xf]  ;;  %v1418_v46 = vld [vmem:[#allocation2 + $0x14] sm:$0x1]  ;;  %1881 = vst [vmem:[#allocation3 + $0x28] sm:$0xf] %v1487_v51  ;;  %v745_v59 = vadd.f32 %v9501_v8, %v744_v49  ;;  %v1004_v13 = vmul.f32 %v9519_v30, %v932_v55 }
 0x167   : > { %v9553_v47 = vld [vmem:[#allocation2 + $0x10] sm:$0xf]  ;;  %v1498_v53 = vshll.u32 %v1417_v45, 16  ;;  %v1502_v54 = vshrl.u32 %v1417_v45, 16  ;;  %v1508_v57 = vshll.u32 %v1418_v46, 16  ;;  %7771 = vst [vmem:[#allocation2 + $0x18] sm:$0xff] %v7652_v48   ;;  %v8361_v60 = vpop.f32.mrf.mxu0 }
 0x168   : > { %v9557_v58 = vld [vmem:[#allocation2 + $0x10] sm:$0xf]  ;;  %v2020_v63 = vrot.slane %v9553_v47, 5  ;;  %v1917_v5 = vld [vmem:[#allocation2 + $0x14] sm:$0x1]  ;;  %v933_v14 = vmax.f32 %v745_v59, 0.0 }
 0x169   : > { %v1500_v61 = vrot.slane %v1498_v53, 5  ;;  %v1504_v62 = vrot.slane %v1502_v54, 4  ;;  %v2749_v2 = vld [vmem:[#allocation2 + $0x10] sm:$0xf]  ;;  %v2310_v6 = vshll.u32 %v9557_v58, 16  ;;  %v749_v11 = vpop.f32.mrf.mxu0  ;;  %v2308_v16 = vrot.slane %v2307_v52, 4 }
 0x16a   : > { %v2750_v7 = vld [vmem:[#allocation2 + $0x14] sm:$0x1]  ;;  %v2846_v9 = vrot.slane %v2749_v2, 5  ;;  %v1352_v15 = vld [vmem:[#allocation2 + $0x10] sm:$0xf]  ;;  %v1510_v19 = vrot.slane %v1508_v57, 5  ;;  %v1005_v26 = vmul.f32 %v9503_v10, %v933_v14  ;;  %v750_v49 = vadd.f32 %v9501_v8, %v749_v11 }
 0x16b   : > { %v1505_v12 = vor.u32 %v1504_v62, %v1500_v61  ;;  %v9563_v20 = vrot.slane %v2310_v6, 5  ;;  %v2849_v23 = vrot.slane %v2750_v7, 5  ;;  %v8364_v24 = vpop.f32.mrf.mxu0  ;;  %1384 = vst [vmem:[#allocation3 + $0x6c] sm:$0xf] %v1352_v15  ;;  %v2022_v25 = vrot.slane %v2020_v63, 4 }
 0x16c   : > { %v2848_v22 = vrot.slane %v2846_v9, 4  ;;  %v1501_v27 = vsel %vm9542_vm6, %v1496_v3, %v1500_v61  ;;  %v2189_v31 = vld [vmem:[#allocation2 + $0x10] sm:$0xf]  ;;  %v2847_v35 = vsel %vm9530_vm3, %v7268_v56, %v2846_v9  ;;  %v7253_v37 = vrot.slane %v1915_v4, 9  ;;  %v2254_v45 = vld [vmem:[#allocation2 + $0x14] sm:$0x1] }
 0x16d   : > { %v1506_v28 = vrot.slane %v1505_v12, 4  ;;  %v752_v0 = vpop.f32.mrf.mxu0  ;;  %v8732_v33 = vld [vmem:[#allocation3 + $0x4] ss:$36 sps:$4 sm:$0xff]   ;;  %1882 = vst [vmem:[#allocation3 + $0x4c] sm:$0xf] %v1501_v27  ;;  %v2313_v34 = vsel %vm9542_vm6, %v2308_v16, %v9563_v20  ;;  %v2023_v38 = vrot.slane %v1917_v5, 5  ;;  %v7657_v39 = vpack.c.bf16 %v1005_v26, %v1004_v13 }
 0x16e   : > { %v2850_v36 = vsel %vm9530_vm3, %v2848_v22, %v2849_v23  ;;  %2221 = vst [vmem:[#allocation3 + $0x30] sm:$0xf] %v2189_v31  ;;  %2716 = vst [vmem:[#allocation3 + $0x10] sm:$0xf] %v2313_v34  ;;  %5364 = vmatprep.mubr.bf16.mxu1 %v8732_v33  ;;  %v2021_v42 = vsel %vm9530_vm3, %v7253_v37, %v2020_v63  ;;  %v2314_v46 = vshrl.u32 %v9557_v58, 16  ;;  %v2320_v54 = vshll.u32 %v2254_v45, 16 }
 0x16f   : > { %v1511_v40 = vsel %vm9542_vm6, %v1506_v28, %v1510_v19  ;;  %2988 = vst [vmem:[#allocation3 + $0x14] sm:$0xf] %v2847_v35  ;;  %2989 = vst [vmem:[#allocation3 + $0x38] sm:$0xf] %v2850_v36  ;;  %v8365_v41 = vpop.f32.mrf.mxu0  ;;  %5365 = vmatmul.mubr.bf16.vlgmr.msra.gmra.mxu1 %v8730_v32  ;;  %v2024_v43 = vsel %vm9530_vm3, %v2022_v25, %v2023_v38  ;;  %v1419_v47 = vld [vmem:[#allocation2 + $0x18] sm:$0xf]  ;;  %v753_v53 = vadd.f32 %v9501_v8, %v752_v0 }
 0x170   : > { %1883 = vst [vmem:[#allocation3 + $0x70] sm:$0xf] %v1511_v40  ;;  %7772 = vst [vmem:[#allocation2 + $0x20] sm:$0xff] %v7657_v39   ;;  %7943 = vmatpush3.bf16.msra.mxu1 %v8768_v29  ;;  %v1420_v48 = vld [vmem:[#allocation2 + $0x1c] sm:$0xf]  ;;  %v1513_v55 = vshrl.u32 %v1419_v47, 16 }
 0x171   : > { %v757_v44 = vpop.f32.mrf.mxu0  ;;  %2157 = vst [vmem:[#allocation3 + $0x50] sm:$0xf] %v2021_v42  ;;  %2158 = vst [vmem:[#allocation3 + $0x74] sm:$0xf] %v2024_v43  ;;  %v2255_v52 = vld [vmem:[#allocation2 + $0x18] sm:$0xf] }
 0x172   : > { %v1516_v56 = vshll.u32 %v1419_v47, 16  ;;  %v2256_v57 = vld [vmem:[#allocation2 + $0x1c] sm:$0xf]  ;;  %v9584_v60 = vrot.slane %v2314_v46, 4  ;;  %v1522_v61 = vshll.u32 %v1420_v48, 16  ;;  %v1526_v62 = vshrl.u32 %v1420_v48, 16 }
 0x173   : > { %v8368_v51 = vpop.f32.mrf.mxu0  ;;  %v9586_v63 = vld [vmem:[#allocation2 + $0x1c] sm:$0xf]  ;;  %v2325_v58 = vshrl.u32 %v2255_v52, 16  ;;  %v2328_v2 = vshll.u32 %v2255_v52, 16  ;;  %v934_v3 = vmax.f32 %v750_v49, 0.0  ;;  %v2334_v5 = vshll.u32 %v2256_v57, 16 }
 0x174   : > { %v2338_v6 = vshrl.u32 %v2256_v57, 16  ;;  %v935_v7 = vmax.f32 %v753_v53, 0.0  ;;  %v9588_v9 = vrot.slane %v2320_v54, 5  ;;  %v9590_v11 = vrot.slane %v1513_v55, 4  ;;  %v9594_v13 = vld [vmem:[#allocation2 + $0x1c] sm:$0xf] }
 0x175   : > { %v760_v59 = vpop.f32.mrf.mxu0  ;;  %v9592_v12 = vrot.slane %v1516_v56, 5  ;;  %v9596_v15 = vrot.slane %v1522_v61, 5  ;;  %v9598_v16 = vrot.slane %v1526_v62, 4  ;;  %v12316_v17 = vrot.slane %v9586_v63, 5  ;;  %v8775_v22 = vld [vmem:[#allocation9 + $0xf0] sm:$0xff]  }
 0x176   : > { %v2317_v23 = vor.u32 %v9584_v60, %v9563_v20  ;;  %v9603_v24 = vrot.slane %v2325_v58, 4  ;;  %v9605_v25 = vrot.slane %v2328_v2, 5  ;;  %v9607_v26 = vld [vmem:[#allocation2 + $0x18] sm:$0xe]  ;;  %v1006_v28 = vmul.f32 %v9510_v18, %v934_v3  ;;  %7944 = vmatprep.subr.bf16.mxu1 %v8775_v22  ;;  %v9627_v43 = vld [vmem:[#allocation2 + $0x1c] sm:$0xf] }
 0x177   : > { %v8369_v4 = vpop.f32.mrf.mxu0  ;;  %v1421_v19 = vld [vmem:[#allocation2 + $0x20] sm:$0x1]  ;;  %v9610_v31 = vrot.slane %v2334_v5, 5  ;;  %v9612_v0 = vrot.slane %v2338_v6, 4  ;;  %v2853_v32 = vrot.slane %v9594_v13, 5  ;;  %v1007_v20 = vmul.f32 %v9519_v30, %v935_v7  ;;  %v8776_v40 = vld [vmem:[#allocation9 + $0xb0] sm:$0xff]  }
 0x178   : > { %v2257_v27 = vld [vmem:[#allocation2 + $0x20] sm:$0x1]  ;;  %v9615_v33 = vld [vmem:[#allocation2 + $0x18] sm:$0xf]  ;;  %v1519_v34 = vor.u32 %v9592_v12, %v9590_v11  ;;  %v1532_v36 = vshll.u32 %v1421_v19, 16  ;;  %v758_v37 = vadd.f32 %v9501_v8, %v757_v44  ;;  %v761_v38 = vadd.f32 %v9501_v8, %v760_v59  ;;  %7945 = vmatpush3.bf16.msra.mxu1 %v8776_v40 }
 0x179   : > { %v765_v14 = vpop.f32.mrf.mxu0  ;;  %v9620_v35 = vld [vmem:[#allocation2 + $0x18] sm:$0xe]  ;;  %v1529_v41 = vor.u32 %v9598_v16, %v9596_v15  ;;  %v7269_v42 = vrot.slane %v9607_v26, 9  ;;  %v2344_v45 = vshll.u32 %v2257_v27, 16  ;;  %v7662_v46 = vpack.c.bf16 %v1007_v20, %v1006_v28  ;;  %v2753_v56 = vld [vmem:[#allocation2 + $0x20] sm:$0x1] }
 0x17a   : > { %v3134_v47 = vshrl.u32 %v9615_v33, 16  ;;  %v3137_v48 = vshll.u32 %v9615_v33, 16  ;;  %v766_v49 = vadd.f32 %v9501_v8, %v765_v14  ;;  %v2331_v52 = vor.u32 %v9605_v25, %v9603_v24  ;;  %v8737_v57 = vld [vmem:[#allocation3 + $0x4c] ss:$36 sps:$4 sm:$0xff]   ;;  %v9640_v59 = vld [vmem:[#allocation2 + $0x1c] sm:$0xf] }
 0x17b   : > { %v8372_v29 = vpop.f32.mrf.mxu0  ;;  %v2341_v53 = vor.u32 %v9612_v0, %v9610_v31  ;;  %v2855_v54 = vrot.slane %v2853_v32, 4  ;;  %v7284_v55 = vrot.slane %v9620_v35, 9  ;;  %7773 = vst [vmem:[#allocation2 + $0x28] sm:$0xff] %v7662_v46   ;;  %v3679_v60 = vrot.slane %v9627_v43, 5  ;;  %v8742_v2 = vld [vmem:[#allocation3 + $0x48] ss:$36 sps:$4 sm:$0xff]   ;;  %5372 = vmatprep.mubr.bf16.mxu1 %v8737_v57 }
 0x17c   : > { %v1534_v61 = vrot.slane %v1532_v36, 5  ;;  %v936_v62 = vmax.f32 %v758_v37, 0.0  ;;  %v937_v58 = vmax.f32 %v761_v38, 0.0  ;;  %v9643_v4 = vrot.slane %v2344_v45, 5  ;;  %v1353_v11 = vld [vmem:[#allocation2 + $0x18] sm:$0xf]  ;;  %5373 = vmatmul.mubr.bf16.gmra.mxu1 %v8742_v2 }
 0x17d   : > { %v768_v39 = vpop.f32.mrf.mxu0  ;;  %v938_v5 = vmax.f32 %v766_v49, 0.0  ;;  %v2318_v6 = vrot.slane %v2317_v23, 4  ;;  %v2856_v12 = vrot.slane %v2753_v56, 5  ;;  %v1354_v22 = vld [vmem:[#allocation2 + $0x1c] sm:$0xf]  ;;  %v1520_v24 = vrot.slane %v1519_v34, 4 }
 0x17e   : > { %v769_v44 = vadd.f32 %v9501_v8, %v768_v39  ;;  %v1008_v14 = vmul.f32 %v9503_v10, %v936_v62  ;;  %v1009_v16 = vmul.f32 %v9510_v18, %v937_v58  ;;  %1385 = vst [vmem:[#allocation3 + $0x90] sm:$0xf] %v1353_v11  ;;  %v1355_v25 = vld [vmem:[#allocation2 + $0x24] sm:$0xf]  ;;  %v9647_v27 = vld [vmem:[#allocation2 + $0x18] sm:$0xe] }
 0x17f   : > { %v8373_v51 = vpop.f32.mrf.mxu0  ;;  %v9649_v28 = vld [vmem:[#allocation2 + $0x24] sm:$0xf]  ;;  %v1010_v29 = vmul.f32 %v9519_v30, %v938_v5  ;;  %v2323_v23 = vsel %vm9542_vm6, %v2318_v6, %v9588_v9  ;;  %1386 = vst [vmem:[#allocation3 + $0xb4] sm:$0xf] %v1354_v22  ;;  %1387 = vst [vmem:[#allocation3 + $0xd8] sm:$0xf] %v1355_v25  ;;  %v1525_v37 = vsel %vm9542_vm6, %v1520_v24, %v9596_v15 }
 0x180   : > { %v939_v7 = vmax.f32 %v769_v44, 0.0  ;;  %v7667_v36 = vpack.c.bf16 %v1009_v16, %v1008_v14  ;;  %2717 = vst [vmem:[#allocation3 + $0x34] sm:$0xf] %v2323_v23  ;;  %v1530_v38 = vrot.slane %v1529_v41, 4  ;;  %v2332_v39 = vrot.slane %v2331_v52, 4 }
 0x181   : > { %v773_v3 = vpop.f32.mrf.mxu0  ;;  %v2190_v40 = vld [vmem:[#allocation2 + $0x18] sm:$0xf]  ;;  %v2191_v45 = vld [vmem:[#allocation2 + $0x1c] sm:$0xf]  ;;  %v3143_v9 = vshll.u32 %v9640_v59, 16  ;;  %v2342_v44 = vrot.slane %v2341_v53, 4  ;;  %v2854_v41 = vsel %vm9530_vm3, %v7269_v42, %v2853_v32  ;;  %v2857_v52 = vsel %vm9530_vm3, %v2855_v54, %v2856_v12 }
 0x182   : > { %v1011_v0 = vmul.f32 %v9503_v10, %v939_v7  ;;  %v9657_v20 = vadd.f32 %v9501_v8, %v773_v3  ;;  %1884 = vst [vmem:[#allocation3 + $0x94] sm:$0xf] %v1525_v37  ;;  %2222 = vst [vmem:[#allocation3 + $0x54] sm:$0xf] %v2190_v40  ;;  %v2192_v51 = vld [vmem:[#allocation2 + $0x24] sm:$0xf]  ;;  %v1535_v56 = vsel %vm9542_vm6, %v1530_v38, %v1534_v61 }
 0x183   : > { %v8376_v19 = vpop.f32.mrf.mxu0  ;;  %2223 = vst [vmem:[#allocation3 + $0x78] sm:$0xf] %v2191_v45  ;;  %7774 = vst [vmem:[#allocation2 + $0x30] sm:$0xff] %v7667_v36   ;;  %v2337_v15 = vsel %vm9542_vm6, %v2332_v39, %v9610_v31  ;;  %v3147_v61 = vshrl.u32 %v9640_v59, 16  ;;  %v1537_v62 = vshrl.u32 %v9649_v28, 16  ;;  %v1540_v31 = vshll.u32 %v9649_v28, 16 }
 0x184   : > { %v7672_v46 = vpack.c.bf16 %v1011_v0, %v1010_v29  ;;  %2224 = vst [vmem:[#allocation3 + $0x9c] sm:$0xf] %v2192_v51  ;;  %v2258_v58 = vld [vmem:[#allocation2 + $0x24] sm:$0xf]  ;;  %1885 = vst [vmem:[#allocation3 + $0xb8] sm:$0xf] %v1535_v56  ;;  %v2347_v42 = vsel %vm9542_vm6, %v2342_v44, %v9643_v4  ;;  %v3680_v59 = vsel %vm9530_vm3, %v7284_v55, %v3679_v60 }
 0x185   : > { %v776_v34 = vpop.f32.mrf.mxu0  ;;  %2718 = vst [vmem:[#allocation3 + $0x58] sm:$0xf] %v2337_v15  ;;  %2990 = vst [vmem:[#allocation3 + $0x5c] sm:$0xf] %v2854_v41  ;;  %v9681_v13 = vld [vmem:[#allocation2 + $0x20] sm:$0x1] }
 0x186   : > { %v777_v49 = vadd.f32 %v9501_v8, %v776_v34  ;;  %7775 = vst [vmem:[#allocation2 + $0x38] sm:$0xff] %v7672_v46   ;;  %2991 = vst [vmem:[#allocation3 + $0x80] sm:$0xf] %v2857_v52  ;;  %v940_v26 = vmax.f32 %v9657_v20, 0.0  ;;  %v9697_v2 = vrot.slane %v12316_v17, 4  ;;  %v9701_v3 = vrot.slane %v3134_v47, 4 }
 0x187   : > { %v8377_v53 = vpop.f32.mrf.mxu0  ;;  %12416 = vst [vmem:[#allocation21_spill] sm:$0xff] %v9681_v13  ;;  %v9705_v4 = vrot.slane %v3137_v48, 5  ;;  %v9707_v5 = vrot.slane %v3143_v9, 5  ;;  %v9709_v6 = vld [vmem:[#allocation2 + $0x24] sm:$0xe]  ;;  %v2349_v35 = vshrl.u32 %v2258_v58, 16 }
 0x188   : > { %v941_v32 = vmax.f32 %v777_v49, 0.0  ;;  %12417 = vst [vmem:[#allocation22_spill] sm:$0xff] %v9697_v2  ;;  %12418 = vst [vmem:[#allocation23_spill] sm:$0xff] %v9701_v3  ;;  %v2352_v55 = vshll.u32 %v2258_v58, 16  ;;  %v9711_v7 = vld [vmem:[#allocation2 + $0x24] sm:$0xe]  ;;  %v1012_v28 = vmul.f32 %v9510_v18, %v940_v26 }
 0x189   : > { %v9687_v54 = vpop.f32.mrf.mxu0  ;;  %12419 = vst [vmem:[#allocation24_spill] sm:$0xff] %v9705_v4  ;;  %12420 = vst [vmem:[#allocation25_spill] sm:$0xff] %v9707_v5  ;;  %v3584_v11 = vld [vmem:[#allocation2 + $0x24] sm:$0xe]  ;;  %v9713_v14 = vrot.slane %v3147_v61, 4  ;;  %v9717_v47 = vrot.slane %v3679_v60, 4 }
 0x18a   : > { %12421 = vst [vmem:[#allocation26_spill] sm:$0xff] %v9709_v6  ;;  %2719 = vst [vmem:[#allocation3 + $0x7c] sm:$0xf] %v2347_v42  ;;  %v3087_v48 = vld [vmem:[#allocation2 + $0x20] sm:$0x1]  ;;  %v1013_v16 = vmul.f32 %v9519_v30, %v941_v32  ;;  %v9721_v19 = vrot.slane %v1537_v62, 4 }
 0x18b   : > { %3821 = vst [vmem:[#allocation3 + $0x20] sm:$0xf] %v3680_v59  ;;  %v8380_v12 = vpop.f32.mrf.mxu0  ;;  %12422 = vst [vmem:[#allocation27_spill] sm:$0xff] %v9713_v14  ;;  %v9723_v22 = vrot.slane %v1540_v31, 5  ;;  %v3088_v24 = vld [vmem:[#allocation2 + $0x24] sm:$0xf] }
 0x18c   : > { %v3585_v25 = vld [vmem:[#allocation2 + $0x28] sm:$0xf]  ;;  %v7270_v43 = vrot.slane %v9711_v7, 9  ;;  %v7285_v60 = vrot.slane %v3584_v11, 9  ;;  %v3586_v0 = vld [vmem:[#allocation2 + $0x2c] sm:$0x1]  ;;  %v7677_v38 = vpack.c.bf16 %v1013_v16, %v1012_v28 }
 0x18d   : > { %v9726_v29 = vpop.f32.mrf.mxu0  ;;  %v3686_v20 = vrot.slane %v3585_v25, 5  ;;  %v9730_v36 = vrot.slane %v2349_v35, 4  ;;  %v9732_v34 = vrot.slane %v2352_v55, 5  ;;  %v3153_v37 = vshll.u32 %v3087_v48, 16  ;;  %v1423_v45 = vld [vmem:[#allocation2 + $0x28] sm:$0xf] }
 0x18e   : > { %v3158_v40 = vshrl.u32 %v3088_v24, 16  ;;  %v2755_v9 = vld [vmem:[#allocation2 + $0x28] sm:$0xf]  ;;  %v1424_v49 = vld [vmem:[#allocation2 + $0x2c] sm:$0x1]  ;;  %v3689_v56 = vrot.slane %v3586_v0, 5 }
 0x18f   : > { %v8381_v39 = vpop.f32.mrf.mxu0  ;;  %v3687_v46 = vsel %vm9530_vm3, %v7285_v60, %v3686_v20  ;;  %v9736_v44 = vld [vmem:[#allocation2 + $0x28] sm:$0xf]  ;;  %v3688_v51 = vrot.slane %v3686_v20, 4  ;;  %7776 = vst [vmem:[#allocation2 + $0x40] sm:$0xff] %v7677_v38   ;;  %v3161_v41 = vshll.u32 %v3088_v24, 16  ;;  %v1546_v61 = vshll.u32 %v1423_v45, 16 }
 0x190   : > { %12423 = vst [vmem:[#allocation28_spill] sm:$0xff] %v9736_v44  ;;  %3823 = vst [vmem:[#allocation3 + $0x68] sm:$0xf] %v3687_v46  ;;  %v9740_v52 = vld [vmem:[#allocation2 + $0x20] sm:$0x1]  ;;  %v1550_v62 = vshrl.u32 %v1423_v45, 16 }
 0x191   : > { %v9738_v15 = vpop.f32.mrf.mxu0  ;;  %v2259_v53 = vld [vmem:[#allocation2 + $0x28] sm:$0xf]  ;;  %v2860_v31 = vrot.slane %v2755_v9, 5  ;;  %v3690_v58 = vsel %vm9530_vm3, %v3688_v51, %v3689_v56  ;;  %v1556_v32 = vshll.u32 %v1424_v49, 16  ;;  %v9744_v42 = vld [vmem:[#allocation2 + $0x2c] sm:$0x1] }
 0x192   : > { %12424 = vst [vmem:[#allocation29_spill] sm:$0xff] %v9744_v42  ;;  %v12315_v59 = vrot.slane %v9736_v44, 5  ;;  %v2260_v35 = vld [vmem:[#allocation2 + $0x2c] sm:$0x1]  ;;  %3824 = vst [vmem:[#allocation3 + $0x8c] sm:$0xf] %v3690_v58 }
 0x193   : > { %v8384_v26 = vpop.f32.mrf.mxu0  ;;  %v9747_v55 = vrot.slane %v3153_v37, 5  ;;  %v2358_v12 = vshll.u32 %v2259_v53, 16  ;;  %v2362_v48 = vshrl.u32 %v2259_v53, 16  ;;  %v9752_v24 = vrot.slane %v3158_v40, 4  ;;  %v2756_v25 = vld [vmem:[#allocation2 + $0x2c] sm:$0x1] }
 0x194   : > { %v3089_v28 = vld [vmem:[#allocation2 + $0x28] sm:$0xf]  ;;  %v9754_v60 = vrot.slane %v3161_v41, 5  ;;  %v2368_v20 = vshll.u32 %v2260_v35, 16  ;;  %v2862_v38 = vrot.slane %v2860_v31, 4  ;;  %v9757_v37 = vrot.slane %v1546_v61, 5 }
 0x195   : > { %12425 = vst [vmem:[#allocation30_spill] sm:$0xff] %v9747_v55  ;;  %v9750_v16 = vpop.f32.mrf.mxu0  ;;  %12426 = vst [vmem:[#allocation31_spill] sm:$0xff] %v9752_v24  ;;  %v3090_v39 = vld [vmem:[#allocation2 + $0x2c] sm:$0x1]  ;;  %v9759_v9 = vrot.slane %v1550_v62, 4  ;;  %v9761_v46 = vrot.slane %v1556_v32, 5  ;;  %v782_v32 = vadd.f32 %v9501_v8, %v9687_v54 }
 0x196   : > { %12427 = vst [vmem:[#allocation32_spill] sm:$0xff] %v9754_v60  ;;  %v9765_v40 = vrot.slane %v12315_v59, 4  ;;  %v9767_v49 = vrot.slane %v2358_v12, 5  ;;  %v9769_v51 = vrot.slane %v2362_v48, 4  ;;  %v2863_v56 = vrot.slane %v2756_v25, 5  ;;  %v8783_v59 = vld [vmem:[#allocation9 + $0xe8] sm:$0xff]  }
 0x197   : > { %v8385_v45 = vpop.f32.mrf.mxu0  ;;  %v3167_v41 = vshll.u32 %v3089_v28, 16  ;;  %v1425_v53 = vld [vmem:[#allocation2 + $0x30] sm:$0xf]  ;;  %v3171_v26 = vshrl.u32 %v3089_v28, 16  ;;  %v3177_v61 = vshll.u32 %v3090_v39, 16  ;;  %v785_v48 = vadd.f32 %v9501_v8, %v9726_v29  ;;  %7946 = vmatprep.subr.bf16.mxu1 %v8783_v59 }
 0x198   : > { %12428 = vst [vmem:[#allocation33_spill] sm:$0xff] %v9765_v40  ;;  %v1426_v35 = vld [vmem:[#allocation2 + $0x34] sm:$0xf]  ;;  %v8739_v62 = vld [vmem:[#allocation3 + $0x10] ss:$36 sps:$4 sm:$0xff]   ;;  %v9775_v45 = vrot.slane %v2368_v20, 5  ;;  %v2861_v25 = vsel %vm9530_vm3, %v7270_v43, %v2860_v31  ;;  %v2864_v28 = vsel %vm9530_vm3, %v2862_v38, %v2863_v56 }
 0x199   : > { %v9771_v58 = vpop.f32.mrf.mxu0  ;;  %v9777_v1 = vld [vmem:[#allocation2 + $0x30] sm:$0xe]  ;;  %v1561_v20 = vshrl.u32 %v1425_v53, 16  ;;  %v2758_v23 = vld [vmem:[#allocation2 + $0x34] sm:$0xf]  ;;  %v1564_v29 = vshll.u32 %v1425_v53, 16 }
 0x19a   : > { %12429 = vst [vmem:[#allocation34_spill] sm:$0xff] %v9777_v1  ;;  %v8741_v12 = vld [vmem:[#allocation3 + $0x14] ss:$36 sps:$4 sm:$0xff]   ;;  %2992 = vst [vmem:[#allocation3 + $0xa4] sm:$0xf] %v2861_v25  ;;  %v1570_v43 = vshll.u32 %v1426_v35, 16 }
 0x19b   : > { %v8388_v39 = vpop.f32.mrf.mxu0  ;;  %v2757_v0 = vld [vmem:[#allocation2 + $0x30] sm:$0xe]  ;;  %2993 = vst [vmem:[#allocation3 + $0xc8] sm:$0xf] %v2864_v28  ;;  %v9793_v31 = vld [vmem:[#allocation2 + $0x34] sm:$0xf]  ;;  %5686 = vmatprep.mubr.bf16.mxu0 %v8741_v12 }
 0x19c   : > { %12430 = vst [vmem:[#allocation35_spill] sm:$0xff] %v9793_v31  ;;  %v2261_v38 = vld [vmem:[#allocation2 + $0x30] sm:$0xf]  ;;  %v9797_v39 = vrot.slane %v3167_v41, 5  ;;  %v9799_v33 = vrot.slane %v3171_v26, 4  ;;  %v9801_v25 = vrot.slane %v3177_v61, 5  ;;  %5687 = vmatmul.mubr.bf16.vlgmr.msra.gmra.mxu0 %v8739_v62 }
 0x19d   : > { %v9795_v56 = vpop.f32.mrf.mxu0  ;;  %v1574_v28 = vshrl.u32 %v1426_v35, 16  ;;  %v2262_v57 = vld [vmem:[#allocation2 + $0x34] sm:$0xf]  ;;  %v7271_v17 = vrot.slane %v2757_v0, 9  ;;  %v2867_v11 = vrot.slane %v2758_v23, 5  ;;  %v942_v53 = vmax.f32 %v782_v32, 0.0 }
 0x19e   : > { %12431 = vst [vmem:[#allocation36_spill] sm:$0xff] %v9797_v39  ;;  %12432 = vst [vmem:[#allocation37_spill] sm:$0xff] %v9799_v33  ;;  %v943_v8 = vmax.f32 %v785_v48, 0.0  ;;  %v9803_v54 = vrot.slane %v1561_v20, 4  ;;  %v2373_v55 = vshrl.u32 %v2261_v38, 16  ;;  %v9809_v35 = vrot.slane %v1564_v29, 5 }
 0x19f   : > { %12433 = vst [vmem:[#allocation38_spill] sm:$0xff] %v9801_v25  ;;  %v8389_v7 = vpop.f32.mrf.mxu0  ;;  %v3091_v26 = vld [vmem:[#allocation2 + $0x30] sm:$0xf]  ;;  %v9811_v59 = vrot.slane %v1570_v43, 5  ;;  %v2376_v0 = vshll.u32 %v2261_v38, 16  ;;  %v9815_v48 = vrot.slane %v1574_v28, 4  ;;  %v1014_v29 = vmul.f32 %v9503_v10, %v942_v53 }
 0x1a0   : > { %v3092_v23 = vld [vmem:[#allocation2 + $0x34] sm:$0xf]  ;;  %v2382_v20 = vshll.u32 %v2262_v57, 16  ;;  %v2386_v7 = vshrl.u32 %v2262_v57, 16  ;;  %v1427_v12 = vld [vmem:[#allocation2 + $0x38] sm:$0x1]  ;;  %v1015_v41 = vmul.f32 %v9510_v18, %v943_v8  ;;  %v2868_v43 = vsel %vm9530_vm3, %v7271_v17, %v2867_v11 }
 0x1a1   : > { %v9813_v62 = vpop.f32.mrf.mxu0  ;;  %v8784_v32 = vld [vmem:[#allocation9 + $0xa8] sm:$0xff]   ;;  %v3182_v25 = vshrl.u32 %v3091_v26, 16  ;;  %v3185_v33 = vshll.u32 %v3091_v26, 16  ;;  %v1428_v39 = vld [vmem:[#allocation2 + $0x3c] sm:$0xf]  ;;  %v12434_v61 = vrot.slane %v9793_v31, 5 }
 0x1a2   : > { %7947 = vmatpush3.bf16.msra.mxu1 %v8784_v32  ;;  %v9825_v28 = vrot.slane %v2373_v55, 4  ;;  %v3191_v57 = vshll.u32 %v3092_v23, 16  ;;  %v3195_v24 = vshrl.u32 %v3092_v23, 16  ;;  %2994 = vst [vmem:[#allocation3 + $0xec] sm:$0xf] %v2868_v43  ;;  %v9829_v26 = vrot.slane %v2376_v0, 5 }
 0x1a3   : > { %v8392_v38 = vpop.f32.mrf.mxu0  ;;  %v9823_v60 = vrot.slane %v12434_v61, 4  ;;  %v9831_v53 = vld [vmem:[#allocation2 + $0x30] sm:$0xe]  ;;  %v9833_v14 = vld [vmem:[#allocation2 + $0x34] sm:$0xf]  ;;  %v1580_v17 = vshll.u32 %v1427_v12, 16  ;;  %v7682_v32 = vpack.c.bf16 %v1015_v41, %v1014_v29  ;;  %v12439_v12 = vor.u32 %v9723_v22, %v9721_v19 }
 0x1a4   : > { %12436 = vst [vmem:[#allocation40_spill] sm:$0xff] %v9831_v53  ;;  %v9837_v61 = vrot.slane %v2382_v20, 5  ;;  %v9839_v55 = vrot.slane %v2386_v7, 4  ;;  %v2869_v5 = vrot.slane %v2867_v11, 4  ;;  %v1585_v23 = vshrl.u32 %v1428_v39, 16 }
 0x1a5   : > { %12435 = vst [vmem:[#allocation39_spill] sm:$0xff] %v9823_v60  ;;  %v9835_v38 = vpop.f32.mrf.mxu0  ;;  %v2263_v43 = vld [vmem:[#allocation2 + $0x38] sm:$0x1]  ;;  %v9841_v4 = vrot.slane %v3182_v25, 4  ;;  %v9843_v8 = vrot.slane %v3185_v33, 5  ;;  %v1588_v0 = vshll.u32 %v1428_v39, 16  ;;  %v12442_v19 = vor.u32 %v9759_v9, %v9757_v37 }
 0x1a6   : > { %v2759_v3 = vld [vmem:[#allocation2 + $0x38] sm:$0x1]  ;;  %7777 = vst [vmem:[#allocation2 + $0x48] sm:$0xff] %v7682_v32   ;;  %v1544_v41 = vrot.slane %v12439_v12, 4  ;;  %v9848_v60 = vrot.slane %v3191_v57, 5  ;;  %v9850_v20 = vrot.slane %v3195_v24, 4 }
 0x1a7   : > { %12437 = vst [vmem:[#allocation41_spill] sm:$0xff] %v9841_v4  ;;  %12438 = vst [vmem:[#allocation42_spill] sm:$0xff] %v9843_v8  ;;  %v8393_v29 = vpop.f32.mrf.mxu0  ;;  %v2264_v25 = vld [vmem:[#allocation2 + $0x3c] sm:$0xf]  ;;  %v9854_v4 = vrot.slane %v1580_v17, 5  ;;  %v2392_v33 = vshll.u32 %v2263_v43, 16 }
 0x1a8   : > { %12440 = vst [vmem:[#allocation43_spill] sm:$0xff] %v9848_v60  ;;  %12441 = vst [vmem:[#allocation44_spill] sm:$0xff] %v9850_v20  ;;  %v1549_v39 = vsel %vm9542_vm6, %v1544_v41, %v9757_v37  ;;  %v1554_v22 = vrot.slane %v12442_v19, 4  ;;  %v9868_v12 = vrot.slane %v1585_v23, 4  ;;  %v2870_v17 = vrot.slane %v2759_v3, 5 }
 0x1a9   : > { %v9862_v57 = vpop.f32.mrf.mxu0  ;;  %v1429_v43 = vld [vmem:[#allocation2 + $0x40] sm:$0xf]  ;;  %1886 = vst [vmem:[#allocation3 + $0xdc] sm:$0xf] %v1549_v39  ;;  %v9874_v37 = vrot.slane %v1588_v0, 5  ;;  %v2397_v9 = vshrl.u32 %v2264_v25, 16  ;;  %v12443_v41 = vor.u32 %v9732_v34, %v9730_v36  ;;  %v12444_v34 = vor.u32 %v9769_v51, %v9767_v49 }
 0x1aa   : > { %v9870_v29 = vld [vmem:[#allocation2 + $0x40] sm:$0xf]  ;;  %v2760_v19 = vld [vmem:[#allocation2 + $0x3c] sm:$0xe]  ;;  %v9876_v11 = vld [vmem:[#allocation2 + $0x44] sm:$0x1]  ;;  %v1559_v0 = vsel %vm9542_vm6, %v1554_v22, %v9761_v46 }
 0x1ab   : > { %v9881_v7 = vld [vmem:[%s12302_s4] ss:$0 sm:$0xff]  ;;  %v8396_v23 = vpop.f32.mrf.mxu0  ;;  %v2400_v32 = vshll.u32 %v2264_v25, 16  ;;  %v8743_v24 = vld [vmem:[#allocation3 + $0x94] ss:$36 sps:$4 sm:$0xff]   ;;  %v2356_v20 = vrot.slane %v12443_v41, 4 }
 0x1ac   : > { %v790_v3 = vadd.f32 %v9881_v7, %v9738_v15  ;;  %v2265_v39 = vld [vmem:[#allocation2 + $0x40] sm:$0xf]  ;;  %v9893_v60 = vadd.f32 %v9881_v7, %v9750_v16  ;;  %v9895_v8 = vrot.slane %v2392_v33, 5  ;;  %v1594_v1 = vshll.u32 %v1429_v43, 16  ;;  %v8745_v23 = vld [vmem:[#allocation3 + $0x58] ss:$36 sps:$4 sm:$0xff]   ;;  %5380 = vmatprep.mubr.bf16.mxu1 %v8743_v24 }
 0x1ad   : > { %v1598_v15 = vshrl.u32 %v1429_v43, 16  ;;  %v2874_v25 = vrot.slane %v9870_v29, 5  ;;  %1887 = vst [vmem:[#allocation3 + $0x100] sm:$0xf] %v1559_v0  ;;  %v9898_v31 = vpop.f32.mrf.mxu0  ;;  %v7272_v40 = vrot.slane %v2760_v19, 9  ;;  %v2361_v36 = vsel %vm9542_vm6, %v2356_v20, %v9767_v49 }
 0x1ae   : > { %v8747_v46 = vld [vmem:[#allocation3 + $0x5c] ss:$36 sps:$4 sm:$0xff]   ;;  %v8748_v22 = vld [vmem:[#allocation3 + $0x90] ss:$36 sps:$4 sm:$0xff]   ;;  %v2366_v16 = vrot.slane %v12444_v34, 4  ;;  %v2871_v33 = vsel %vm9530_vm3, %v2869_v5, %v2870_v17  ;;  %v2406_v29 = vshll.u32 %v2265_v39, 16  ;;  %v9910_v24 = vadd.f32 %v9881_v7, %v9771_v58 }
 0x1af   : > { %v2266_v43 = vld [vmem:[#allocation2 + $0x44] sm:$0x1]  ;;  %v2410_v41 = vshrl.u32 %v2265_v39, 16  ;;  %v1431_v0 = vld [vmem:[#allocation2 + $0x48] sm:$0xf]  ;;  %v9914_v19 = vadd.f32 %v9881_v7, %v9795_v56  ;;  %v8397_v20 = vpop.f32.mrf.mxu0  ;;  %v9916_v49 = vrot.slane %v2397_v9, 4  ;;  %5694 = vmatprep.mubr.bf16.mxu0 %v8747_v46  ;;  %5381 = vmatmul.mubr.bf16.gmra.mxu1 %v8748_v22  ;;  %v806_v44 = vadd.f32 %v9881_v7, %v9813_v62 }
 0x1b0   : > { %2720 = vst [vmem:[#allocation3 + $0xa0] sm:$0xf] %v2361_v36  ;;  %2995 = vst [vmem:[#allocation3 + $0x110] sm:$0xf] %v2871_v33  ;;  %v9918_v51 = vrot.slane %v2400_v32, 5  ;;  %v1604_v5 = vshll.u32 %v9876_v11, 16  ;;  %5695 = vmatmul.mubr.bf16.gmra.mxu0 %v8745_v23  ;;  %v2371_v56 = vsel %vm9542_vm6, %v2366_v16, %v9775_v45  ;;  %v2875_v32 = vsel %vm9530_vm3, %v7272_v40, %v2874_v25 }
 0x1b1   : > { %v944_v17 = vmax.f32 %v790_v3, 0.0  ;;  %v9921_v39 = vrot.slane %v1594_v1, 5  ;;  %v9923_v36 = vrot.slane %v1598_v15, 4  ;;  %v1432_v58 = vld [vmem:[#allocation2 + $0x4c] sm:$0xf]  ;;  %v9930_v9 = vpop.f32.mrf.mxu0  ;;  %v2416_v3 = vshll.u32 %v2266_v43, 16 }
 0x1b2   : > { %v2267_v34 = vld [vmem:[#allocation2 + $0x48] sm:$0xf]  ;;  %v1609_v1 = vshrl.u32 %v1431_v0, 16  ;;  %v1612_v46 = vshll.u32 %v1431_v0, 16  ;;  %v9934_v15 = vld [vmem:[#allocation2 + $0x4c] sm:$0xf] }
 0x1b3   : > { %2721 = vst [vmem:[#allocation3 + $0xc4] sm:$0xf] %v2371_v56  ;;  %2996 = vst [vmem:[#allocation3 + $0x134] sm:$0xf] %v2875_v32  ;;  %v9936_v23 = vrot.slane %v2406_v29, 5  ;;  %v9938_v22 = vrot.slane %v2410_v41, 4  ;;  %v8400_v40 = vpop.f32.mrf.mxu0  ;;  %v9943_v43 = vmul.f32 %v9519_v30, %v944_v17  ;;  %v809_v17 = vadd.f32 %v9881_v7, %v9835_v38 }
 0x1b4   : > { %v2762_v45 = vld [vmem:[#allocation2 + $0x44] sm:$0x1]  ;;  %v2421_v16 = vshrl.u32 %v2267_v34, 16  ;;  %v2424_v33 = vshll.u32 %v2267_v34, 16  ;;  %v1618_v42 = vshll.u32 %v1432_v58, 16  ;;  %v1622_v11 = vshrl.u32 %v1432_v58, 16 }
 0x1b5   : > { %v9947_v56 = vrot.slane %v1604_v5, 5  ;;  %v2876_v29 = vrot.slane %v2874_v25, 4  ;;  %v2430_v41 = vshll.u32 %v9934_v15, 16  ;;  %v9950_v32 = vpop.f32.mrf.mxu0  ;;  %v9952_v34 = vrot.slane %v2416_v3, 5  ;;  %v9958_v58 = vld [vmem:[#allocation2 + $0x48] sm:$0xe] }
 0x1b6   : > { %v2877_v40 = vrot.slane %v2762_v45, 5  ;;  %v9954_v6 = vrot.slane %v1609_v1, 4  ;;  %v9956_v20 = vrot.slane %v1612_v46, 5  ;;  %v9962_v0 = vrot.slane %v2421_v16, 4  ;;  %v1356_v25 = vld [vmem:[#allocation2 + $0x28] sm:$0xf] }
 0x1b7   : > { %v9964_v5 = vrot.slane %v2424_v33, 5  ;;  %v8401_v3 = vpop.f32.mrf.mxu0  ;;  %v9968_v53 = vrot.slane %v1618_v42, 5  ;;  %v9970_v1 = vrot.slane %v1622_v11, 4  ;;  %1388 = vst [vmem:[#allocation3 + $0xfc] sm:$0xf] %v1356_v25  ;;  %v9975_v16 = vrot.slane %v2430_v41, 5 }
 0x1b8   : > { %v1357_v45 = vld [vmem:[#allocation2 + $0x30] sm:$0xf]  ;;  %v945_v13 = vmax.f32 %v9893_v60, 0.0  ;;  %v2878_v42 = vsel %vm9530_vm3, %v2876_v29, %v2877_v40  ;;  %v8753_v25 = vld [vmem:[#allocation3 + $0xa4] ss:$36 sps:$4 sm:$0xff]   ;;  %v946_v3 = vmax.f32 %v9910_v24, 0.0  ;;  %v9989_v33 = vadd.f32 %v9881_v7, %v9862_v57 }
 0x1b9   : > { %1389 = vst [vmem:[#allocation3 + $0x120] sm:$0xf] %v1357_v45  ;;  %v9981_v62 = vpop.f32.mrf.mxu0  ;;  %v947_v38 = vmax.f32 %v9914_v19, 0.0  ;;  %v1358_v41 = vld [vmem:[#allocation2 + $0x34] sm:$0xf]  ;;  %v12445_v40 = vor.u32 %v9809_v35, %v9803_v54  ;;  %v9999_v19 = vadd.f32 %v9881_v7, %v9898_v31  ;;  %5702 = vmatprep.mubr.bf16.mxu0 %v8753_v25  ;;  %v12447_v54 = vor.u32 %v9829_v26, %v9825_v28  ;;  %v8793_v26 = vld [vmem:[#allocation9 + $0xe0] sm:$0xff]  }
 0x1ba   : > { %v8751_v2 = vld [vmem:[#allocation3 + $0xa0] ss:$36 sps:$4 sm:$0xff]   ;;  %2997 = vst [vmem:[#allocation3 + $0x158] sm:$0xf] %v2878_v42  ;;  %v1017_v29 = vmul.f32 %v9503_v10, %v945_v13  ;;  %1390 = vst [vmem:[#allocation3 + $0x144] sm:$0xf] %v1358_v41  ;;  %v1018_v57 = vmul.f32 %v9510_v18, %v946_v3  ;;  %v12446_v13 = vor.u32 %v9815_v48, %v9811_v59  ;;  %7948 = vmatprep.subr.bf16.mxu1 %v8793_v26 }
 0x1bb   : > { %v1568_v45 = vrot.slane %v12445_v40, 4  ;;  %v1359_v11 = vld [vmem:[#allocation2 + $0x3c] sm:$0xf]  ;;  %v1360_v24 = vld [vmem:[#allocation2 + $0x40] sm:$0xf]  ;;  %v8404_v46 = vpop.f32.mrf.mxu0  ;;  %v1019_v42 = vmul.f32 %v9519_v30, %v947_v38  ;;  %v2380_v35 = vrot.slane %v12447_v54, 4  ;;  %5703 = vmatmul.mubr.bf16.gmra.mxu0 %v8751_v2  ;;  %v12448_v25 = vor.u32 %v9839_v55, %v9837_v61 }
 0x1bc   : > { %v1578_v41 = vrot.slane %v12446_v13, 4  ;;  %1391 = vst [vmem:[#allocation3 + $0x168] sm:$0xf] %v1359_v11  ;;  %1392 = vst [vmem:[#allocation3 + $0x18c] sm:$0xf] %v1360_v24  ;;  %v7687_v31 = vpack.c.bf16 %v1017_v29, %v9943_v43  ;;  %v948_v3 = vmax.f32 %v806_v44, 0.0  ;;  %v825_v26 = vadd.f32 %v9881_v7, %v9950_v32 }
 0x1bd   : > { %v1361_v40 = vld [vmem:[#allocation2 + $0x48] sm:$0xf]  ;;  %v1362_v60 = vld [vmem:[#allocation2 + $0x4c] sm:$0xf]  ;;  %v1573_v46 = vsel %vm9542_vm6, %v1568_v45, %v9811_v59  ;;  %v2390_v48 = vrot.slane %v12448_v25, 4  ;;  %v10016_v28 = vpop.f32.mrf.mxu0  ;;  %v7692_v2 = vpack.c.bf16 %v1019_v42, %v1018_v57  ;;  %v2385_v59 = vsel %vm9542_vm6, %v2380_v35, %v9837_v61 }
 0x1be   : > { %1393 = vst [vmem:[#allocation3 + $0x1b0] sm:$0xf] %v1361_v40  ;;  %1394 = vst [vmem:[#allocation3 + $0x1d4] sm:$0xf] %v1362_v60  ;;  %v8798_v11 = vld [vmem:[#allocation9 + $0xa0] sm:$0xff]   ;;  %v1583_v43 = vsel %vm9542_vm6, %v1578_v41, %v9854_v4  ;;  %v949_v55 = vmax.f32 %v809_v17, 0.0  ;;  %v1020_v45 = vmul.f32 %v9503_v10, %v948_v3  ;;  %v10033_v4 = vadd.f32 %v9881_v7, %v9930_v9 }
 0x1bf   : > { %v10018_v38 = vld [vmem:[#allocation2 + $0x4c] sm:$0xf]  ;;  %1888 = vst [vmem:[#allocation3 + $0x124] sm:$0xf] %v1573_v46  ;;  %v8749_v44 = vld [vmem:[#allocation3 + $0xdc] ss:$36 sps:$4 sm:$0xff]   ;;  %v2395_v60 = vsel %vm9542_vm6, %v2390_v48, %v9895_v8  ;;  %v8405_v57 = vpop.f32.mrf.mxu0  ;;  %v12449_v17 = vor.u32 %v9874_v37, %v9868_v12  ;;  %v12450_v8 = vor.u32 %v9923_v36, %v9921_v39  ;;  %7949 = vmatpush3.bf16.msra.mxu1 %v8798_v11 }
 0x1c0   : > { %v8754_v29 = vld [vmem:[#allocation3 + $0xd8] ss:$36 sps:$4 sm:$0xff]   ;;  %7778 = vst [vmem:[#allocation2 + $0x50] sm:$0xff] %v7687_v31   ;;  %1889 = vst [vmem:[#allocation3 + $0x148] sm:$0xf] %v1583_v43  ;;  %v950_v24 = vmax.f32 %v9989_v33, 0.0  ;;  %v1021_v61 = vmul.f32 %v9510_v18, %v949_v55  ;;  %v12451_v33 = vor.u32 %v9918_v51, %v9916_v49  ;;  %5388 = vmatprep.mubr.bf16.mxu1 %v8749_v44 }
 0x1c1   : > { %2722 = vst [vmem:[#allocation3 + $0xe8] sm:$0xf] %v2385_v59  ;;  %7779 = vst [vmem:[#allocation2 + $0x58] sm:$0xff] %v7692_v2   ;;  %v1592_v42 = vrot.slane %v12449_v17, 4  ;;  %v1602_v13 = vrot.slane %v12450_v8, 4  ;;  %v12452_v35 = vshrl.u32 %v9934_v15, 16  ;;  %v12453_v12 = vor.u32 %v9938_v22, %v9936_v23  ;;  %v10056_v46 = vpop.f32.mrf.mxu0  ;;  %5389 = vmatmul.mubr.bf16.gmra.mxu1 %v8754_v29 }
 0x1c2   : > { %2723 = vst [vmem:[#allocation3 + $0x10c] sm:$0xf] %v2395_v60  ;;  %v2404_v41 = vrot.slane %v12451_v33, 4  ;;  %v2193_v9 = vld [vmem:[#allocation2 + $0x28] sm:$0xf]  ;;  %v2881_v31 = vrot.slane %v10018_v38, 5  ;;  %v7697_v51 = vpack.c.bf16 %v1021_v61, %v1020_v45  ;;  %v1022_v48 = vmul.f32 %v9519_v30, %v950_v24 }
 0x1c3   : > { %v10045_v54 = vld [vmem:[#allocation2 + $0x38] sm:$0x1]  ;;  %v10049_v40 = vrot.slane %v12452_v35, 4  ;;  %v2414_v37 = vrot.slane %v12453_v12, 4  ;;  %v951_v36 = vmax.f32 %v9999_v19, 0.0  ;;  %v1597_v15 = vsel %vm9542_vm6, %v1592_v42, %v9921_v39  ;;  %v8805_v11 = vld [vmem:[#allocation9 + $0xd8] sm:$0xff]  }
 0x1c4   : > { %2225 = vst [vmem:[#allocation3 + $0xc0] sm:$0xf] %v2193_v9  ;;  %v10058_v49 = vld [vmem:[#allocation2 + $0x38] sm:$0x1]  ;;  %v1607_v25 = vsel %vm9542_vm6, %v1602_v13, %v9947_v56  ;;  %v2409_v22 = vsel %vm9542_vm6, %v2404_v41, %v9936_v23  ;;  %v2194_v19 = vld [vmem:[#allocation2 + $0x30] sm:$0xf]  ;;  %v8408_v56 = vpop.f32.mrf.mxu0  ;;  %v12455_v44 = vor.u32 %v9956_v20, %v9954_v6  ;;  %v12456_v32 = vor.u32 %v9964_v5, %v9962_v0 }
 0x1c5   : > { %1890 = vst [vmem:[#allocation3 + $0x16c] sm:$0xf] %v1597_v15  ;;  %1891 = vst [vmem:[#allocation3 + $0x190] sm:$0xf] %v1607_v25  ;;  %v2419_v3 = vsel %vm9542_vm6, %v2414_v37, %v9952_v34  ;;  %v1023_v39 = vmul.f32 %v9503_v10, %v951_v36  ;;  %v8806_v2 = vld [vmem:[#allocation9 + $0x98] sm:$0xff]   ;;  %v12454_v23 = vrot.slane %v9833_v14, 5  ;;  %v1625_v24 = vor.u32 %v9970_v1, %v9968_v53 }
 0x1c6   : > { %2724 = vst [vmem:[#allocation3 + $0x130] sm:$0xf] %v2409_v22  ;;  %v2195_v43 = vld [vmem:[#allocation2 + $0x34] sm:$0xf]  ;;  %2226 = vst [vmem:[#allocation3 + $0xe4] sm:$0xf] %v2194_v19  ;;  %v10099_v20 = vpop.f32.mrf.mxu0  ;;  %7950 = vmatprep.subr.bf16.mxu1 %v8805_v11  ;;  %v2437_v9 = vor.u32 %v10049_v40, %v9975_v16 }
 0x1c7   : > { %v10078_v59 = vrot.slane %v12454_v23, 4  ;;  %v10080_v55 = vld [vmem:[#allocation2 + $0x3c] sm:$0xf]  ;;  %7780 = vst [vmem:[#allocation2 + $0x60] sm:$0xff] %v7697_v51   ;;  %2725 = vst [vmem:[#allocation3 + $0x154] sm:$0xf] %v2419_v3  ;;  %v7702_v57 = vpack.c.bf16 %v1023_v39, %v1022_v48  ;;  %7951 = vmatpush3.bf16.msra.mxu1 %v8806_v2 }
 0x1c8   : > { %v952_v34 = vmax.f32 %v10033_v4, 0.0  ;;  %v1616_v29 = vrot.slane %v12455_v44, 4  ;;  %v2428_v60 = vrot.slane %v12456_v32, 4  ;;  %2227 = vst [vmem:[#allocation3 + $0x108] sm:$0xf] %v2195_v43  ;;  %v953_v61 = vmax.f32 %v825_v26, 0.0 }
 0x1c9   : > { %v10089_v45 = vld [vmem:[#allocation2 + $0x40] sm:$0xf]  ;;  %v12458_v4 = vrot.slane %v9958_v58, 9  ;;  %v3201_v5 = vshll.u32 %v10058_v49, 16  ;;  %v1433_v42 = vld [vmem:[#allocation2 + $0x50] sm:$0x1] }
 0x1ca   : > { %12457 = vst [vmem:[#allocation45_spill] sm:$0xff] %v10089_v45  ;;  %v3095_v17 = vld [vmem:[#allocation2 + $0x40] sm:$0xf]  ;;  %v1621_v1 = vsel %vm9542_vm6, %v1616_v29, %v9968_v53  ;;  %v2433_v58 = vsel %vm9542_vm6, %v2428_v60, %v9975_v16  ;;  %v10109_v8 = vld [vmem:[#allocation2 + $0x3c] sm:$0xe]  ;;  %v3206_v13 = vshrl.u32 %v10080_v55, 16  ;;  %v8409_v53 = vpop.f32.mrf.mxu0  ;;  %v1024_v49 = vmul.f32 %v9510_v18, %v952_v34 }
 0x1cb   : > { %v2882_v6 = vsel %vm9530_vm3, %v12458_v4, %v2881_v31  ;;  %12459 = vst [vmem:[#allocation46_spill] sm:$0xff] %v10109_v8  ;;  %v3209_v33 = vshll.u32 %v10080_v55, 16  ;;  %v3096_v41 = vld [vmem:[#allocation2 + $0x44] sm:$0x1]  ;;  %v1628_v35 = vshll.u32 %v1433_v42, 16  ;;  %7781 = vst [vmem:[#allocation2 + $0x68] sm:$0xff] %v7702_v57   ;;  %v1025_v51 = vmul.f32 %v9519_v30, %v953_v61 }
 0x1cc   : > { %2998 = vst [vmem:[#allocation3 + $0x17c] sm:$0xf] %v2882_v6  ;;  %1892 = vst [vmem:[#allocation3 + $0x1b4] sm:$0xf] %v1621_v1  ;;  %v10115_v12 = vld [vmem:[#allocation2 + $0x38] sm:$0x1]  ;;  %v10129_v26 = vpop.f32.mrf.mxu0 }
 0x1cd   : > { %2726 = vst [vmem:[#allocation3 + $0x178] sm:$0xf] %v2433_v58  ;;  %v12337_v37 = vrot.slane %v10089_v45, 5  ;;  %v2269_v36 = vld [vmem:[#allocation2 + $0x50] sm:$0x1]  ;;  %v12460_v15 = vrot.slane %v9740_v52, 5  ;;  %v7707_v43 = vpack.c.bf16 %v1025_v51, %v1024_v49 }
 0x1ce   : > { %v10125_v40 = vld [vmem:[#allocation2 + $0x3c] sm:$0xe]  ;;  %v10127_v25 = vld [vmem:[#allocation2 + $0x44] sm:$0x1]  ;;  %v3215_v22 = vshll.u32 %v3095_v17, 16  ;;  %v1630_v19 = vrot.slane %v1628_v35, 5  ;;  %v8412_v29 = vpop.f32.mrf.mxu0 }
 0x1cf   : > { %v3683_v16 = vsel %vm9530_vm3, %v9717_v47, %v12460_v15  ;;  %12461 = vst [vmem:[#allocation47_spill] sm:$0xff] %v10127_v25  ;;  %v2440_v48 = vshll.u32 %v2269_v36, 16  ;;  %v2765_v3 = vld [vmem:[#allocation2 + $0x50] sm:$0x1]  ;;  %v1626_v39 = vrot.slane %v1625_v24, 4  ;;  %v3219_v56 = vshrl.u32 %v3095_v17, 16 }
 0x1d0   : > { %3822 = vst [vmem:[#allocation3 + $0x44] sm:$0xf] %v3683_v16  ;;  %v3225_v11 = vshll.u32 %v3096_v41, 16  ;;  %v10131_v2 = vld [vmem:[#allocation2 + $0x40] sm:$0xf]  ;;  %v2884_v52 = vrot.slane %v2765_v3, 5  ;;  %v10156_v17 = vpop.f32.mrf.mxu0 }
 0x1d1   : > { %v10133_v23 = vld [vmem:[#allocation2 + $0x4c] sm:$0xf]  ;;  %v2883_v47 = vrot.slane %v2881_v31, 4  ;;  %v2442_v55 = vrot.slane %v2440_v48, 5  ;;  %v1631_v34 = vsel %vm9542_vm6, %v1626_v39, %v1630_v19  ;;  %v2438_v44 = vrot.slane %v2437_v9, 4  ;;  %7782 = vst [vmem:[#allocation2 + $0x70] sm:$0xff] %v7707_v43  }
 0x1d2   : > { %12462 = vst [vmem:[#allocation48_spill] sm:$0xff] %v10133_v23  ;;  %v10140_v60 = vrot.slane %v3201_v5, 5  ;;  %v10142_v24 = vrot.slane %v3206_v13, 4  ;;  %v10145_v61 = vld [vmem:[#allocation2 + $0x44] sm:$0x1]  ;;  %v10147_v38 = vrot.slane %v3209_v33, 5  ;;  %v8413_v36 = vpop.f32.mrf.mxu0 }
 0x1d3   : > { %1893 = vst [vmem:[#allocation3 + $0x1d8] sm:$0xf] %v1631_v34  ;;  %v12338_v31 = vrot.slane %v10131_v2, 5  ;;  %v10150_v4 = vld [vmem:[#allocation2 + $0x48] sm:$0xf]  ;;  %v2443_v6 = vsel %vm9542_vm6, %v2438_v44, %v2442_v55  ;;  %v2885_v5 = vsel %vm9530_vm3, %v2883_v47, %v2884_v52  ;;  %v10161_v1 = vrot.slane %v12337_v37, 4 }
 0x1d4   : > { %12463 = vst [vmem:[#allocation49_spill] sm:$0xff] %v10140_v60  ;;  %12464 = vst [vmem:[#allocation50_spill] sm:$0xff] %v10142_v24  ;;  %v12336_v13 = vrot.slane %v10133_v23, 5  ;;  %v10165_v33 = vrot.slane %v3215_v22, 5  ;;  %v10167_v41 = vrot.slane %v3219_v56, 4  ;;  %v10169_v9 = vrot.slane %v3225_v11, 5  ;;  %v10189_v56 = vpop.f32.mrf.mxu0 }
 0x1d5   : > { %12465 = vst [vmem:[#allocation51_spill] sm:$0xff] %v10147_v38  ;;  %12466 = vst [vmem:[#allocation52_spill] sm:$0xff] %v10161_v1  ;;  %v10172_v53 = vld [vmem:[#allocation2 + $0x48] sm:$0xe]  ;;  %v3098_v49 = vld [vmem:[#allocation2 + $0x4c] sm:$0xf] }
 0x1d6   : > { %2727 = vst [vmem:[#allocation3 + $0x19c] sm:$0xf] %v2443_v6  ;;  %2999 = vst [vmem:[#allocation3 + $0x1a0] sm:$0xf] %v2885_v5  ;;  %v3230_v51 = vshrl.u32 %v10150_v4, 16  ;;  %v12471_v16 = vrot.slane %v9586_v63, 5  ;;  %v8416_v29 = vpop.f32.mrf.mxu0 }
 0x1d7   : > { %12467 = vst [vmem:[#allocation53_spill] sm:$0xff] %v10165_v33  ;;  %12468 = vst [vmem:[#allocation54_spill] sm:$0xff] %v10167_v41  ;;  %v10175_v15 = vld [vmem:[#allocation2 + $0x48] sm:$0xe]  ;;  %v12472_v19 = vrot.slane %v9647_v27, 9  ;;  %v10185_v48 = vrot.slane %v12338_v31, 4  ;;  %v833_v41 = vadd.f32 %v9881_v7, %v10016_v28 }
 0x1d8   : > { %12469 = vst [vmem:[#allocation55_spill] sm:$0xff] %v10169_v9  ;;  %12470 = vst [vmem:[#allocation56_spill] sm:$0xff] %v10172_v53  ;;  %v10187_v3 = vld [vmem:[#allocation2 + $0x4c] sm:$0xf]  ;;  %v2766_v39 = vld [vmem:[#allocation2 + $0x54] sm:$0xe] }
 0x1d9   : > { %v2028_v22 = vsel %vm9530_vm3, %v12472_v19, %v12471_v16  ;;  %v10194_v63 = vrot.slane %v12336_v13, 4  ;;  %v1434_v27 = vld [vmem:[#allocation2 + $0x54] sm:$0xf]  ;;  %v2767_v52 = vld [vmem:[#allocation2 + $0x58] sm:$0xf]  ;;  %v3233_v43 = vshll.u32 %v10150_v4, 16  ;;  %v10203_v4 = vpop.f32.mrf.mxu0 }
 0x1da   : > { %2159 = vst [vmem:[#allocation3 + $0x98] sm:$0xf] %v2028_v22  ;;  %v3239_v47 = vshll.u32 %v3098_v49, 16  ;;  %v3243_v55 = vshrl.u32 %v3098_v49, 16  ;;  %v2768_v34 = vld [vmem:[#allocation2 + $0x5c] sm:$0x1] }
 0x1db   : > { %12473 = vst [vmem:[#allocation57_spill] sm:$0xff] %v10194_v63  ;;  %v2888_v44 = vrot.slane %v2767_v52, 5  ;;  %v10197_v6 = vrot.slane %v3230_v51, 4  ;;  %v2270_v16 = vld [vmem:[#allocation2 + $0x54] sm:$0xf]  ;;  %v7274_v19 = vrot.slane %v2766_v39, 9 }
 0x1dc   : > { %v1633_v22 = vshrl.u32 %v1434_v27, 16  ;;  %v1636_v11 = vshll.u32 %v1434_v27, 16  ;;  %v10201_v13 = vld [vmem:[#allocation2 + $0x50] sm:$0x1]  ;;  %v2891_v32 = vrot.slane %v2768_v34, 5  ;;  %v2445_v37 = vshrl.u32 %v2270_v16, 16  ;;  %v8417_v27 = vpop.f32.mrf.mxu0 }
 0x1dd   : > { %12474 = vst [vmem:[#allocation58_spill] sm:$0xff] %v10197_v6  ;;  %12475 = vst [vmem:[#allocation59_spill] sm:$0xff] %v10201_v13  ;;  %v2890_v58 = vrot.slane %v2888_v44, 4  ;;  %v10205_v49 = vld [vmem:[#allocation2 + $0x54] sm:$0xe]  ;;  %v2889_v51 = vsel %vm9530_vm3, %v7274_v19, %v2888_v44  ;;  %v2448_v35 = vshll.u32 %v2270_v16, 16 }
 0x1de   : > { %12476 = vst [vmem:[#allocation60_spill] sm:$0xff] %v10205_v49  ;;  %v3099_v52 = vld [vmem:[#allocation2 + $0x50] sm:$0x1]  ;;  %v8755_v29 = vld [vmem:[#allocation3 + $0x124] ss:$36 sps:$4 sm:$0xff]   ;;  %v12480_v19 = vrot.slane %v9833_v14, 5  ;;  %v10226_v16 = vpop.f32.mrf.mxu0 }
 0x1df   : > { %v10209_v0 = vld [vmem:[#allocation2 + $0x54] sm:$0xf]  ;;  %v8757_v5 = vld [vmem:[#allocation3 + $0xe8] ss:$36 sps:$4 sm:$0xff]   ;;  %v2892_v39 = vsel %vm9530_vm3, %v2890_v58, %v2891_v32  ;;  %3000 = vst [vmem:[#allocation3 + $0x1c4] sm:$0xf] %v2889_v51  ;;  %5396 = vmatprep.mubr.bf16.mxu1 %v8755_v29 }
 0x1e0   : > { %v8759_v34 = vld [vmem:[#allocation3 + $0xec] ss:$36 sps:$4 sm:$0xff]   ;;  %v8760_v42 = vld [vmem:[#allocation3 + $0x120] ss:$36 sps:$4 sm:$0xff]   ;;  %3001 = vst [vmem:[#allocation3 + $0x1e8] sm:$0xf] %v2892_v39 }
 0x1e1   : > { %v12477_v31 = vld [vmem:[#allocation21_spill] sm:$0xff]  ;;  %v12479_v57 = vld [vmem:[#allocation22_spill] sm:$0xff]  ;;  %v12481_v9 = vld [vmem:[#allocation40_spill] sm:$0xff]  ;;  %v10224_v58 = vrot.slane %v3233_v43, 5  ;;  %v12484_v29 = vrot.slane %v10115_v12, 5  ;;  %v10246_v12 = vrot.slane %v3243_v55, 4  ;;  %5710 = vmatprep.mubr.bf16.mxu0 %v8759_v34  ;;  %5397 = vmatmul.mubr.bf16.gmra.mxu1 %v8760_v42  ;;  %v8420_v55 = vpop.f32.mrf.mxu0 }
 0x1e2   : > { %v12478_v36 = vrot.slane %v12477_v31, 5  ;;  %v12482_v60 = vrot.slane %v12481_v9, 9  ;;  %v12487_v14 = vld [vmem:[#allocation26_spill] sm:$0xff]  ;;  %v12491_v39 = vld [vmem:[#allocation33_spill] sm:$0xff]  ;;  %5711 = vmatmul.mubr.bf16.gmra.mxu0 %v8757_v5  ;;  %v10265_v42 = vrot.slane %v1636_v11, 5  ;;  %v10267_v34 = vrot.slane %v2445_v37, 4 }
 0x1e3   : > { %12483 = vst [vmem:[#allocation21_spill] sm:$0xff] %v10224_v58  ;;  %v3697_v31 = vsel %vm9530_vm3, %v10078_v59, %v12484_v29  ;;  %v12488_v51 = vrot.slane %v12487_v14, 9  ;;  %12493 = vst [vmem:[#allocation40_spill] sm:$0xff] %v10246_v12  ;;  %v12494_v59 = vrot.slane %v10187_v3, 5  ;;  %v10253_v29 = vld [vmem:[#allocation2 + $0x50] sm:$0x1] }
 0x1e4   : > { %v2031_v44 = vsel %vm9530_vm3, %v12479_v57, %v12478_v36  ;;  %v3694_v32 = vsel %vm9530_vm3, %v12482_v60, %v12480_v19  ;;  %v12485_v57 = vld [vmem:[#allocation28_spill] sm:$0xff]  ;;  %v12489_v60 = vld [vmem:[#allocation29_spill] sm:$0xff]  ;;  %3826 = vst [vmem:[#allocation3 + $0xd4] sm:$0xf] %v3697_v31  ;;  %v12495_v14 = vrot.slane %v10131_v2, 5  ;;  %v10269_v31 = vrot.slane %v2448_v35, 5 }
 0x1e5   : > { %2160 = vst [vmem:[#allocation3 + $0xbc] sm:$0xf] %v2031_v44  ;;  %3825 = vst [vmem:[#allocation3 + $0xb0] sm:$0xf] %v3694_v32  ;;  %v12486_v36 = vrot.slane %v12485_v57, 5  ;;  %v12490_v43 = vrot.slane %v12489_v60, 5 }
 0x1e6   : > { %v10244_v44 = vrot.slane %v3239_v47, 5  ;;  %v10250_v19 = vrot.slane %v12494_v59, 4  ;;  %v3254_v47 = vshrl.u32 %v10209_v0, 16  ;;  %v3257_v5 = vshll.u32 %v10209_v0, 16  ;;  %v10279_v11 = vld [vmem:[#allocation2 + $0x58] sm:$0xf] }
 0x1e7   : > { %v2035_v9 = vsel %vm9530_vm3, %v12488_v51, %v12486_v36  ;;  %v2038_v27 = vsel %vm9530_vm3, %v12491_v39, %v12490_v43  ;;  %v3249_v36 = vshll.u32 %v3099_v52, 16  ;;  %v12496_v51 = vrot.slane %v10125_v40, 9  ;;  %v2769_v52 = vld [vmem:[#allocation2 + $0x60] sm:$0xe]  ;;  %v1435_v40 = vld [vmem:[#allocation2 + $0x58] sm:$0xf] }
 0x1e8   : > { %12492 = vst [vmem:[#allocation22_spill] sm:$0xff] %v10244_v44  ;;  %2161 = vst [vmem:[#allocation3 + $0xe0] sm:$0xf] %v2035_v9  ;;  %v10263_v43 = vrot.slane %v1633_v22, 4  ;;  %v10272_v9 = vld [vmem:[#allocation2 + $0x54] sm:$0xe] }
 0x1e9   : > { %2162 = vst [vmem:[#allocation3 + $0x104] sm:$0xf] %v2038_v27  ;;  %v3701_v60 = vsel %vm9530_vm3, %v12496_v51, %v12495_v14  ;;  %12497 = vst [vmem:[#allocation28_spill] sm:$0xff] %v10272_v9  ;;  %v10275_v39 = vld [vmem:[#allocation2 + $0x64] sm:$0xf]  ;;  %v10277_v27 = vpop.f32.mrf.mxu0  ;;  %v10281_v59 = vrot.slane %v3249_v36, 5 }
 0x1ea   : > { %3827 = vst [vmem:[#allocation3 + $0xf8] sm:$0xf] %v3701_v60  ;;  %v1436_v22 = vld [vmem:[#allocation2 + $0x5c] sm:$0x1]  ;;  %12498 = vst [vmem:[#allocation26_spill] sm:$0xff] %v10279_v11  ;;  %v10283_v35 = vrot.slane %v3254_v47, 4 }
 0x1eb   : > { %v2271_v37 = vld [vmem:[#allocation2 + $0x58] sm:$0xf]  ;;  %12499 = vst [vmem:[#allocation29_spill] sm:$0xff] %v10281_v59  ;;  %v2272_v55 = vld [vmem:[#allocation2 + $0x5c] sm:$0x1]  ;;  %v7275_v14 = vrot.slane %v2769_v52, 9  ;;  %v8421_v51 = vpop.f32.mrf.mxu0 }
 0x1ec   : > { %12500 = vst [vmem:[#allocation33_spill] sm:$0xff] %v10283_v35  ;;  %v1642_v60 = vshll.u32 %v1435_v40, 16  ;;  %v1646_v57 = vshrl.u32 %v1435_v40, 16  ;;  %v10286_v32 = vld [vmem:[#allocation2 + $0x5c] sm:$0x1]  ;;  %v1652_v12 = vshll.u32 %v1436_v22, 16  ;;  %v10296_v51 = vadd.f32 %v9881_v7, %v9981_v62 }
 0x1ed   : > { %12501 = vst [vmem:[#allocation61_spill] sm:$0xff] %v10286_v32  ;;  %v10288_v2 = vld [vmem:[#allocation2 + $0x58] sm:$0xf]  ;;  %v2454_v58 = vshll.u32 %v2271_v37, 16  ;;  %v8761_v6 = vld [vmem:[#allocation3 + $0x16c] ss:$36 sps:$4 sm:$0xff]   ;;  %v10291_v36 = vpop.f32.mrf.mxu0 }
 0x1ee   : > { %v2458_v35 = vshrl.u32 %v2271_v37, 16  ;;  %v2464_v52 = vshll.u32 %v2272_v55, 16  ;;  %v8764_v59 = vld [vmem:[#allocation3 + $0x130] ss:$36 sps:$4 sm:$0xff]   ;;  %v10298_v40 = vrot.slane %v3257_v5, 5  ;;  %v3263_v0 = vshll.u32 %v10288_v2, 16  ;;  %5404 = vmatprep.mubr.bf16.mxu1 %v8761_v6 }
 0x1ef   : > { %v8766_v22 = vld [vmem:[#allocation3 + $0x134] ss:$36 sps:$4 sm:$0xff]   ;;  %v8767_v44 = vld [vmem:[#allocation3 + $0x168] ss:$36 sps:$4 sm:$0xff]   ;;  %v12503_v33 = vrot.slane %v10275_v39, 5  ;;  %v8424_v55 = vpop.f32.mrf.mxu0  ;;  %v10307_v47 = vrot.slane %v1642_v60, 5 }
 0x1f0   : > { %12502 = vst [vmem:[#allocation62_spill] sm:$0xff] %v10298_v40  ;;  %v10309_v62 = vrot.slane %v1646_v57, 4  ;;  %v3102_v5 = vld [vmem:[#allocation2 + $0x5c] sm:$0x1]  ;;  %v12504_v40 = vrot.slane %v10145_v61, 5  ;;  %v12505_v28 = vrot.slane %v10187_v3, 5  ;;  %5718 = vmatprep.mubr.bf16.mxu0 %v8766_v22  ;;  %5405 = vmatmul.mubr.bf16.gmra.mxu1 %v8767_v44  ;;  %v10344_v44 = vadd.f32 %v9881_v7, %v10056_v46 }
 0x1f1   : > { %v2896_v37 = vsel %vm9530_vm3, %v7275_v14, %v12503_v33  ;;  %v12506_v38 = vrot.slane %v10175_v15, 9  ;;  %v10322_v14 = vrot.slane %v1652_v12, 5  ;;  %v12507_v57 = vrot.slane %v10279_v11, 5  ;;  %v10338_v12 = vld [vmem:[#allocation2 + $0x58] sm:$0xf]  ;;  %5719 = vmatmul.mubr.bf16.gmra.mxu0 %v8764_v59 }
 0x1f2   : > { %3002 = vst [vmem:[#allocation3 + $0x20c] sm:$0xf] %v2896_v37  ;;  %v3704_v6 = vsel %vm9530_vm3, %v10185_v48, %v12504_v40  ;;  %v10329_v61 = vrot.slane %v2454_v58, 5  ;;  %v10331_v48 = vpop.f32.mrf.mxu0  ;;  %v10333_v15 = vrot.slane %v2458_v35, 4  ;;  %v10335_v3 = vrot.slane %v2464_v52, 5  ;;  %v8813_v24 = vld [vmem:[#allocation9 + $0xd0] sm:$0xff]  }
 0x1f3   : > { %v3708_v33 = vsel %vm9530_vm3, %v12506_v38, %v12505_v28  ;;  %v10326_v60 = vrot.slane %v12507_v57, 4  ;;  %3828 = vst [vmem:[#allocation3 + $0x11c] sm:$0xf] %v3704_v6  ;;  %v3267_v38 = vshrl.u32 %v10288_v2, 16  ;;  %v10340_v40 = vrot.slane %v3263_v0, 5  ;;  %v8814_v11 = vld [vmem:[#allocation9 + $0x90] sm:$0xff]   ;;  %7952 = vmatprep.subr.bf16.mxu1 %v8813_v24 }
 0x1f4   : > { %3829 = vst [vmem:[#allocation3 + $0x140] sm:$0xf] %v3708_v33  ;;  %v3273_v55 = vshll.u32 %v3102_v5, 16  ;;  %v1437_v58 = vld [vmem:[#allocation2 + $0x60] sm:$0xf]  ;;  %v8425_v22 = vpop.f32.mrf.mxu0  ;;  %v1639_v35 = vor.u32 %v10265_v42, %v10263_v43  ;;  %v954_v2 = vmax.f32 %v10296_v51, 0.0  ;;  %v10351_v59 = vadd.f32 %v9881_v7, %v10099_v20  ;;  %7953 = vmatpush3.bf16.msra.mxu1 %v8814_v11 }
 0x1f5   : > { %12508 = vst [vmem:[#allocation63_spill] sm:$0xff] %v10326_v60  ;;  %12509 = vst [vmem:[#allocation64_spill] sm:$0xff] %v10340_v40  ;;  %v1438_v28 = vld [vmem:[#allocation2 + $0x64] sm:$0xf]  ;;  %v2273_v52 = vld [vmem:[#allocation2 + $0x60] sm:$0xf]  ;;  %v10360_v43 = vadd.f32 %v9881_v7, %v10129_v26 }
 0x1f6   : > { %v2771_v6 = vld [vmem:[#allocation2 + $0x68] sm:$0x1]  ;;  %v955_v33 = vmax.f32 %v833_v41, 0.0  ;;  %v10355_v5 = vld [vmem:[#allocation2 + $0x5c] sm:$0x1]  ;;  %v10362_v42 = vpop.f32.mrf.mxu0  ;;  %v1649_v41 = vor.u32 %v10309_v62, %v10307_v47  ;;  %v1657_v20 = vshrl.u32 %v1437_v58, 16  ;;  %v1026_v62 = vmul.f32 %v9503_v10, %v954_v2 }
 0x1f7   : > { %12510 = vst [vmem:[#allocation65_spill] sm:$0xff] %v10355_v5  ;;  %v2274_v57 = vld [vmem:[#allocation2 + $0x64] sm:$0xf]  ;;  %v2898_v22 = vrot.slane %v2771_v6, 5  ;;  %v1660_v51 = vshll.u32 %v1437_v58, 16  ;;  %v12512_v0 = vrot.slane %v10275_v39, 5 }
 0x1f8   : > { %v10366_v37 = vld [vmem:[#allocation2 + $0x60] sm:$0xe]  ;;  %v1666_v46 = vshll.u32 %v1438_v28, 16  ;;  %v1670_v60 = vshrl.u32 %v1438_v28, 16  ;;  %v10370_v6 = vld [vmem:[#allocation2 + $0x64] sm:$0xf]  ;;  %v1027_v26 = vmul.f32 %v9510_v18, %v955_v33  ;;  %v8428_v49 = vpop.f32.mrf.mxu0 }
 0x1f9   : > { %12511 = vst [vmem:[#allocation66_spill] sm:$0xff] %v10366_v37  ;;  %v2897_v40 = vrot.slane %v12512_v0, 4  ;;  %12513 = vst [vmem:[#allocation67_spill] sm:$0xff] %v10370_v6  ;;  %v2469_v32 = vshrl.u32 %v2273_v52, 16  ;;  %v2472_v63 = vshll.u32 %v2273_v52, 16  ;;  %v2478_v13 = vshll.u32 %v2274_v57, 16 }
 0x1fa   : > { %v10376_v39 = vrot.slane %v3267_v38, 4  ;;  %v10378_v0 = vrot.slane %v3273_v55, 5  ;;  %v12516_v28 = vrot.slane %v10338_v12, 5  ;;  %v10385_v49 = vpop.f32.mrf.mxu0  ;;  %v7712_v24 = vpack.c.bf16 %v1027_v26, %v1026_v62  ;;  %v1439_v52 = vld [vmem:[#allocation2 + $0x68] sm:$0x1] }
 0x1fb   : > { %v2899_v58 = vsel %vm9530_vm3, %v2897_v40, %v2898_v22  ;;  %12518 = vst [vmem:[#allocation71_spill] sm:$0xff] %v10385_v49  ;;  %v2482_v40 = vshrl.u32 %v2274_v57, 16  ;;  %v10389_v38 = vrot.slane %v1657_v20, 4  ;;  %v10391_v55 = vrot.slane %v1660_v51, 5  ;;  %v1440_v20 = vld [vmem:[#allocation2 + $0x6c] sm:$0xf] }
 0x1fc   : > { %12514 = vst [vmem:[#allocation68_spill] sm:$0xff] %v10376_v39  ;;  %12515 = vst [vmem:[#allocation69_spill] sm:$0xff] %v10378_v0  ;;  %v10382_v53 = vrot.slane %v12516_v28, 4  ;;  %v10393_v22 = vrot.slane %v1666_v46, 5  ;;  %v10395_v28 = vrot.slane %v1670_v60, 4  ;;  %v8429_v0 = vpop.f32.mrf.mxu0  ;;  %v10397_v33 = vrot.slane %v2469_v32, 4 }
 0x1fd   : > { %3003 = vst [vmem:[#allocation3 + $0x230] sm:$0xf] %v2899_v58  ;;  %v10399_v58 = vrot.slane %v2472_v63, 5  ;;  %v10401_v11 = vrot.slane %v2478_v13, 5  ;;  %7783 = vst [vmem:[#allocation2 + $0x78] sm:$0xff] %v7712_v24   ;;  %v1640_v2 = vrot.slane %v1639_v35, 4  ;;  %v2461_v57 = vor.u32 %v10333_v15, %v10329_v61 }
 0x1fe   : > { %12517 = vst [vmem:[#allocation70_spill] sm:$0xff] %v10382_v53  ;;  %v2275_v51 = vld [vmem:[#allocation2 + $0x68] sm:$0x1]  ;;  %v2773_v26 = vld [vmem:[#allocation2 + $0x70] sm:$0xf]  ;;  %v10407_v60 = vadd.f32 %v9881_v7, %v10156_v17  ;;  %v10411_v32 = vadd.f32 %v9881_v7, %v10189_v56  ;;  %v10415_v13 = vadd.f32 %v9881_v7, %v10203_v4  ;;  %v10417_v63 = vpop.f32.mrf.mxu0  ;;  %v10419_v35 = vrot.slane %v2482_v40, 4 }
 0x1ff   : > { %12519 = vst [vmem:[#allocation72_spill] sm:$0xff] %v10417_v63  ;;  %v2772_v15 = vld [vmem:[#allocation2 + $0x6c] sm:$0xe]  ;;  %v2902_v46 = vrot.slane %v2773_v26, 5  ;;  %v1645_v62 = vsel %vm9542_vm6, %v1640_v2, %v10307_v47  ;;  %v1650_v17 = vrot.slane %v1649_v41, 4  ;;  %v12520_v56 = vrot.slane %v10370_v6, 5 }
 0x200   : > { %v1676_v4 = vshll.u32 %v1439_v52, 16  ;;  %v10430_v39 = vld [vmem:[#allocation2 + $0x6c] sm:$0xf]  ;;  %v2774_v63 = vld [vmem:[#allocation2 + $0x74] sm:$0x1]  ;;  %v10434_v40 = vadd.f32 %v9881_v7, %v10226_v16  ;;  %v8432_v26 = vpop.f32.mrf.mxu0  ;;  %v1681_v37 = vshrl.u32 %v1440_v20, 16  ;;  %v12522_v7 = vor.u32 %v10269_v31, %v10267_v34 }
 0x201   : > { %v10428_v24 = vrot.slane %v12520_v56, 4  ;;  %1894 = vst [vmem:[#allocation3 + $0x1fc] sm:$0xf] %v1645_v62  ;;  %v1684_v47 = vshll.u32 %v1440_v20, 16  ;;  %v2488_v41 = vshll.u32 %v2275_v51, 16  ;;  %v2904_v49 = vrot.slane %v2902_v46, 4 }
 0x202   : > { %v1441_v2 = vld [vmem:[#allocation2 + $0x70] sm:$0xf]  ;;  %v7276_v56 = vrot.slane %v2772_v15, 9  ;;  %v1655_v62 = vsel %vm9542_vm6, %v1650_v17, %v10322_v14  ;;  %v2452_v16 = vrot.slane %v12522_v7, 4  ;;  %v10446_v26 = vpop.f32.mrf.mxu0  ;;  %v2493_v15 = vshrl.u32 %v10430_v39, 16 }
 0x203   : > { %12521 = vst [vmem:[#allocation73_spill] sm:$0xff] %v10428_v24  ;;  %v10438_v24 = vld [vmem:[#allocation2 + $0x74] sm:$0x1]  ;;  %v8769_v52 = vld [vmem:[#allocation3 + $0x1b4] ss:$36 sps:$4 sm:$0xff]   ;;  %12523 = vst [vmem:[#allocation74_spill] sm:$0xff] %v10446_v26 }
 0x204   : > { %v2277_v0 = vld [vmem:[#allocation2 + $0x70] sm:$0xf]  ;;  %v2905_v6 = vrot.slane %v2774_v63, 5  ;;  %1895 = vst [vmem:[#allocation3 + $0x220] sm:$0xf] %v1655_v62  ;;  %5412 = vmatprep.mubr.bf16.mxu1 %v8769_v52  ;;  %v2457_v34 = vsel %vm9542_vm6, %v2452_v16, %v10329_v61  ;;  %v2462_v31 = vrot.slane %v2461_v57, 4  ;;  %v2903_v7 = vsel %vm9530_vm3, %v7276_v56, %v2902_v46  ;;  %v8433_v52 = vpop.f32.mrf.mxu0 }
 0x205   : > { %v8771_v23 = vld [vmem:[#allocation3 + $0x178] ss:$36 sps:$4 sm:$0xff]   ;;  %v8774_v17 = vld [vmem:[#allocation3 + $0x1b0] ss:$36 sps:$4 sm:$0xff]   ;;  %v10461_v51 = vld [vmem:[%s12302_s4] ss:$0 sm:$0xff] }
 0x206   : > { %v8773_v14 = vld [vmem:[#allocation3 + $0x17c] ss:$36 sps:$4 sm:$0xff]   ;;  %v10465_v63 = vadd.f32 %v10461_v51, %v10277_v27  ;;  %v10467_v62 = vrot.slane %v1676_v4, 5  ;;  %v10469_v20 = vrot.slane %v1681_v37, 4  ;;  %v2496_v61 = vshll.u32 %v10430_v39, 16  ;;  %5413 = vmatmul.mubr.bf16.gmra.mxu1 %v8774_v17  ;;  %v10478_v37 = vpop.f32.mrf.mxu0 }
 0x207   : > { %v2278_v57 = vld [vmem:[#allocation2 + $0x74] sm:$0x1]  ;;  %2728 = vst [vmem:[#allocation3 + $0x1c0] sm:$0xf] %v2457_v34  ;;  %v2906_v46 = vsel %vm9530_vm3, %v2904_v49, %v2905_v6  ;;  %3004 = vst [vmem:[#allocation3 + $0x254] sm:$0xf] %v2903_v7  ;;  %5726 = vmatprep.mubr.bf16.mxu0 %v8773_v14  ;;  %v2467_v49 = vsel %vm9542_vm6, %v2462_v31, %v10335_v3  ;;  %v10488_v17 = vadd.f32 %v10461_v51, %v10291_v36 }
 0x208   : > { %v10474_v56 = vrot.slane %v1684_v47, 5  ;;  %v10476_v16 = vrot.slane %v2488_v41, 5  ;;  %v1690_v26 = vshll.u32 %v1441_v2, 16  ;;  %v1694_v27 = vshrl.u32 %v1441_v2, 16  ;;  %v1443_v4 = vld [vmem:[#allocation2 + $0x78] sm:$0xf]  ;;  %5727 = vmatmul.mubr.bf16.gmra.mxu0 %v8771_v23 }
 0x209   : > { %3005 = vst [vmem:[#allocation3 + $0x278] sm:$0xf] %v2906_v46  ;;  %12524 = vst [vmem:[#allocation75_spill] sm:$0xff] %v10478_v37  ;;  %v10480_v52 = vrot.slane %v2493_v15, 4  ;;  %v1700_v39 = vshll.u32 %v10438_v24, 16  ;;  %v2502_v34 = vshll.u32 %v2277_v0, 16  ;;  %v10492_v15 = vadd.f32 %v10461_v51, %v10331_v48  ;;  %v8436_v24 = vpop.f32.mrf.mxu0 }
 0x20a   : > { %v1444_v6 = vld [vmem:[#allocation2 + $0x7c] sm:$0xf]  ;;  %v2506_v47 = vshrl.u32 %v2277_v0, 16  ;;  %v2512_v41 = vshll.u32 %v2278_v57, 16  ;;  %v2279_v2 = vld [vmem:[#allocation2 + $0x78] sm:$0xf] }
 0x20b   : > { %v2775_v14 = vld [vmem:[#allocation2 + $0x78] sm:$0xe]  ;;  %2729 = vst [vmem:[#allocation3 + $0x1e4] sm:$0xf] %v2467_v49  ;;  %v10494_v23 = vrot.slane %v2496_v61, 5  ;;  %v1705_v7 = vshrl.u32 %v1443_v4, 16  ;;  %v10505_v1 = vpop.f32.mrf.mxu0 }
 0x20c   : > { %v1708_v46 = vshll.u32 %v1443_v4, 16  ;;  %v10496_v37 = vld [vmem:[#allocation2 + $0x7c] sm:$0xf]  ;;  %v956_v3 = vmax.f32 %v10344_v44, 0.0  ;;  %v10499_v0 = vrot.slane %v1690_v26, 5  ;;  %v10501_v31 = vrot.slane %v1694_v27, 4 }
 0x20d   : > { %v1714_v57 = vshll.u32 %v1444_v6, 16  ;;  %v1718_v36 = vshrl.u32 %v1444_v6, 16  ;;  %v10503_v49 = vld [vmem:[#allocation2 + $0x7c] sm:$0xf]  ;;  %12525 = vst [vmem:[#allocation76_spill] sm:$0xff] %v10505_v1  ;;  %v2517_v48 = vshrl.u32 %v2279_v2, 16  ;;  %v8437_v27 = vpop.f32.mrf.mxu0 }
 0x20e   : > { %v2520_v24 = vshll.u32 %v2279_v2, 16  ;;  %v7277_v61 = vrot.slane %v2775_v14, 9  ;;  %v10508_v4 = vrot.slane %v1700_v39, 5  ;;  %v10510_v8 = vrot.slane %v2502_v34, 5  ;;  %v1363_v14 = vld [vmem:[#allocation2 + $0x54] sm:$0xf] }
 0x20f   : > { %v10512_v44 = vrot.slane %v2506_v47, 4  ;;  %v10514_v26 = vrot.slane %v2512_v41, 5  ;;  %v10518_v45 = vrot.slane %v1705_v7, 4  ;;  %v10520_v1 = vrot.slane %v1708_v46, 5  ;;  %v1364_v27 = vld [vmem:[#allocation2 + $0x58] sm:$0xf]  ;;  %v10530_v25 = vpop.f32.mrf.mxu0 }
 0x210   : > { %v2526_v2 = vshll.u32 %v10503_v49, 16  ;;  %v10525_v34 = vrot.slane %v1714_v57, 5  ;;  %v10527_v47 = vrot.slane %v1718_v36, 4  ;;  %1395 = vst [vmem:[#allocation3 + $0x1f8] sm:$0xf] %v1363_v14  ;;  %12526 = vst [vmem:[#allocation77_spill] sm:$0xff] %v10530_v25  ;;  %v1028_v14 = vmul.f32 %v9519_v30, %v956_v3 }
 0x211   : > { %v8823_v7 = vld [vmem:[#allocation9 + $0xc8] sm:$0xff]   ;;  %v10532_v6 = vrot.slane %v2517_v48, 4  ;;  %v10534_v46 = vrot.slane %v2520_v24, 5  ;;  %1396 = vst [vmem:[#allocation3 + $0x21c] sm:$0xf] %v1364_v27  ;;  %v957_v5 = vmax.f32 %v10351_v59, 0.0  ;;  %v8440_v27 = vpop.f32.mrf.mxu0  ;;  %v2509_v59 = vor.u32 %v10512_v44, %v10510_v8 }
 0x212   : > { %v8779_v53 = vld [vmem:[#allocation3 + $0x1c0] ss:$36 sps:$4 sm:$0xff]   ;;  %v12527_v57 = vrot.slane %v10496_v37, 5  ;;  %v958_v48 = vmax.f32 %v10360_v43, 0.0  ;;  %v959_v24 = vmax.f32 %v10407_v60, 0.0  ;;  %7954 = vmatprep.subr.bf16.mxu1 %v8823_v7  ;;  %v10548_v9 = vrot.slane %v2526_v2, 5 }
 0x213   : > { %v8781_v41 = vld [vmem:[#allocation3 + $0x1c4] ss:$36 sps:$4 sm:$0xff]   ;;  %v12528_v3 = vor.u32 %v10391_v55, %v10389_v38  ;;  %v1367_v43 = vld [vmem:[#allocation2 + $0x6c] sm:$0xf]  ;;  %v12529_v44 = vor.u32 %v10395_v28, %v10393_v22  ;;  %v1369_v27 = vld [vmem:[#allocation2 + $0x78] sm:$0xf]  ;;  %v10562_v38 = vpop.f32.mrf.mxu0 }
 0x214   : > { %v2910_v36 = vsel %vm9530_vm3, %v7277_v61, %v12527_v57  ;;  %v1365_v25 = vld [vmem:[#allocation2 + $0x60] sm:$0xf]  ;;  %v1029_v61 = vmul.f32 %v9503_v10, %v957_v5  ;;  %v1366_v57 = vld [vmem:[#allocation2 + $0x64] sm:$0xf]  ;;  %5734 = vmatprep.mubr.bf16.mxu0 %v8781_v41  ;;  %v1030_v60 = vmul.f32 %v9510_v18, %v958_v48  ;;  %v12530_v5 = vor.u32 %v10399_v58, %v10397_v33  ;;  %v1370_v33 = vld [vmem:[#allocation2 + $0x7c] sm:$0xf] }
 0x215   : > { %3006 = vst [vmem:[#allocation3 + $0x29c] sm:$0xf] %v2910_v36  ;;  %1397 = vst [vmem:[#allocation3 + $0x240] sm:$0xf] %v1365_v25  ;;  %v1664_v39 = vrot.slane %v12528_v3, 4  ;;  %v1031_v36 = vmul.f32 %v9519_v30, %v959_v24  ;;  %v1674_v2 = vrot.slane %v12529_v44, 4  ;;  %5735 = vmatmul.mubr.bf16.gmra.mxu0 %v8779_v53  ;;  %v12531_v48 = vor.u32 %v10419_v35, %v10401_v11 }
 0x216   : > { %1398 = vst [vmem:[#allocation3 + $0x264] sm:$0xf] %v1366_v57  ;;  %v2476_v7 = vrot.slane %v12530_v5, 4  ;;  %v1368_v25 = vld [vmem:[#allocation2 + $0x70] sm:$0xf]  ;;  %v7717_v55 = vpack.c.bf16 %v1029_v61, %v1028_v14  ;;  %v960_v24 = vmax.f32 %v10411_v32, 0.0  ;;  %v2523_v44 = vor.u32 %v10534_v46, %v10532_v6 }
 0x217   : > { %1399 = vst [vmem:[#allocation3 + $0x288] sm:$0xf] %v1367_v43  ;;  %v1669_v41 = vsel %vm9542_vm6, %v1664_v39, %v10393_v22  ;;  %v2486_v28 = vrot.slane %v12531_v48, 4  ;;  %1400 = vst [vmem:[#allocation3 + $0x2ac] sm:$0xf] %v1368_v25  ;;  %v8828_v58 = vld [vmem:[#allocation9 + $0x88] sm:$0xff]   ;;  %v7722_v3 = vpack.c.bf16 %v1031_v36, %v1030_v60  ;;  %v1679_v53 = vsel %vm9542_vm6, %v1674_v2, %v10467_v62  ;;  %v8441_v39 = vpop.f32.mrf.mxu0 }
 0x218   : > { %1401 = vst [vmem:[#allocation3 + $0x2d0] sm:$0xf] %v1369_v27  ;;  %v8835_v57 = vld [vmem:[#allocation9 + $0x238] sm:$0xff]   ;;  %1896 = vst [vmem:[#allocation3 + $0x244] sm:$0xf] %v1669_v41  ;;  %v2481_v22 = vsel %vm9542_vm6, %v2476_v7, %v10401_v11  ;;  %v961_v35 = vmax.f32 %v10415_v13, 0.0  ;;  %v1711_v43 = vor.u32 %v10520_v1, %v10518_v45  ;;  %v12532_v13 = vor.u32 %v10474_v56, %v10469_v20 }
 0x219   : > { %1402 = vst [vmem:[#allocation3 + $0x2f4] sm:$0xf] %v1370_v33  ;;  %v8836_v32 = vld [vmem:[#allocation9 + $0xc0] sm:$0xff]   ;;  %v8838_v14 = vld [vmem:[#allocation9 + $0x230] sm:$0xff]   ;;  %v10578_v61 = vld [vmem:[#allocation2 + $0x60] sm:$0xf]  ;;  %v2491_v62 = vsel %vm9542_vm6, %v2486_v28, %v10476_v16  ;;  %7955 = vmatpush3.bf16.msra.mxu1 %v8828_v58  ;;  %8450 = vmatprep.subr.bf16.mxu0 %v8835_v57  ;;  %v1032_v2 = vmul.f32 %v9503_v10, %v960_v24  ;;  %v10596_v20 = vpop.f32.mrf.mxu0 }
 0x21a   : > { %7784 = vst [vmem:[#allocation2 + $0x80] sm:$0xff] %v7717_v55   ;;  %1897 = vst [vmem:[#allocation3 + $0x268] sm:$0xf] %v1679_v53  ;;  %v962_v11 = vmax.f32 %v10434_v40, 0.0  ;;  %v1688_v60 = vrot.slane %v12532_v13, 4  ;;  %v8837_v36 = vld [vmem:[#allocation9 + $0x80] sm:$0xff]   ;;  %v1033_v16 = vmul.f32 %v9510_v18, %v961_v35  ;;  %v12533_v40 = vor.u32 %v10501_v31, %v10499_v0  ;;  %8451 = vmatpush3.bf16.msra.mxu0 %v8835_v57 }
 0x21b   : > { %2730 = vst [vmem:[#allocation3 + $0x208] sm:$0xf] %v2481_v22  ;;  %v8777_v45 = vld [vmem:[#allocation3 + $0x1fc] ss:$36 sps:$4 sm:$0xff]   ;;  %7785 = vst [vmem:[#allocation2 + $0x88] sm:$0xff] %v7722_v3   ;;  %7956 = vmatprep.subr.bf16.mxu1 %v8836_v32  ;;  %v12534_v56 = vshrl.u32 %v10503_v49, 16  ;;  %v12535_v46 = vor.u32 %v10494_v23, %v10480_v52  ;;  %8452 = vmatprep.subr.bf16.mxu0 %v8838_v14  ;;  %v8444_v28 = vpop.f32.mrf.mxu0 }
 0x21c   : > { %v8782_v1 = vld [vmem:[#allocation3 + $0x1f8] ss:$36 sps:$4 sm:$0xff]   ;;  %2731 = vst [vmem:[#allocation3 + $0x22c] sm:$0xf] %v2491_v62  ;;  %v1698_v5 = vrot.slane %v12533_v40, 4  ;;  %v1693_v6 = vsel %vm9542_vm6, %v1688_v60, %v10499_v0  ;;  %v2510_v27 = vrot.slane %v2509_v59, 4  ;;  %5420 = vmatprep.mubr.bf16.mxu1 %v8777_v45  ;;  %v7727_v41 = vpack.c.bf16 %v1033_v16, %v1032_v2 }
 0x21d   : > { %v10600_v7 = vrot.slane %v12534_v56, 4  ;;  %v2500_v25 = vrot.slane %v12535_v46, 4  ;;  %v8839_v31 = vld [vmem:[#allocation9 + $0x228] sm:$0xff]   ;;  %v10608_v55 = vld [vmem:[#allocation2 + $0x64] sm:$0xf]  ;;  %v963_v48 = vmax.f32 %v10465_v63, 0.0  ;;  %5421 = vmatmul.mubr.bf16.gmra.mxu1 %v8782_v1  ;;  %v1034_v58 = vmul.f32 %v9519_v30, %v962_v11 }
 0x21e   : > { %v1703_v49 = vsel %vm9542_vm6, %v1698_v5, %v10508_v4  ;;  %1898 = vst [vmem:[#allocation3 + $0x28c] sm:$0xf] %v1693_v6  ;;  %v964_v0 = vmax.f32 %v10488_v17, 0.0  ;;  %v8851_v24 = vld [vmem:[#allocation9 + $0x1f8] sm:$0xff]   ;;  %v2515_v59 = vsel %vm9542_vm6, %v2510_v27, %v10514_v26  ;;  %v965_v4 = vmax.f32 %v10492_v15, 0.0  ;;  %7786 = vst [vmem:[#allocation2 + $0x90] sm:$0xff] %v7727_v41   ;;  %7957 = vmatpush3.bf16.msra.mxu1 %v8837_v36 }
 0x21f   : > { %v10615_v52 = vld [vmem:[#allocation2 + $0x60] sm:$0xe]  ;;  %1899 = vst [vmem:[#allocation3 + $0x2b0] sm:$0xf] %v1703_v49  ;;  %v2505_v23 = vsel %vm9542_vm6, %v2500_v25, %v10510_v8  ;;  %v1712_v33 = vrot.slane %v1711_v43, 4  ;;  %v3278_v63 = vshrl.u32 %v10578_v61, 16  ;;  %v1035_v57 = vmul.f32 %v9503_v10, %v963_v48  ;;  %v10629_v8 = vpop.f32.mrf.mxu0  ;;  %8453 = vmatpush3.bf16.msra.mxu0 %v8838_v14  ;;  %8166 = vmatprep.subr.bf16.mxu1 %v8851_v24 }
 0x220   : > { %v10625_v17 = vld [vmem:[#allocation2 + $0x64] sm:$0xf]  ;;  %2732 = vst [vmem:[#allocation3 + $0x250] sm:$0xf] %v2505_v23  ;;  %2733 = vst [vmem:[#allocation3 + $0x274] sm:$0xf] %v2515_v59  ;;  %v1721_v15 = vor.u32 %v10527_v47, %v10525_v34  ;;  %v1037_v53 = vmul.f32 %v9519_v30, %v965_v4  ;;  %8454 = vmatprep.subr.bf16.mxu0 %v8839_v31  ;;  %v1036_v14 = vmul.f32 %v9510_v18, %v964_v0 }
 0x221   : > { %v2524_v3 = vrot.slane %v2523_v44, 4  ;;  %v3281_v26 = vshll.u32 %v10578_v61, 16  ;;  %v1717_v22 = vsel %vm9542_vm6, %v1712_v33, %v10525_v34  ;;  %v8846_v35 = vld [vmem:[#allocation9 + $0x220] sm:$0xff]   ;;  %v3287_v39 = vshll.u32 %v10608_v55, 16  ;;  %v1445_v32 = vld [vmem:[#allocation2 + $0x80] sm:$0x1]  ;;  %v8445_v61 = vpop.f32.mrf.mxu0 }
 0x222   : > { %v7732_v43 = vpack.c.bf16 %v1035_v57, %v1034_v58  ;;  %1900 = vst [vmem:[#allocation3 + $0x2d4] sm:$0xf] %v1717_v22  ;;  %v3291_v62 = vshrl.u32 %v10608_v55, 16  ;;  %v2533_v34 = vor.u32 %v10600_v7, %v10548_v9  ;;  %v1724_v13 = vshll.u32 %v1445_v32, 16  ;;  %v10648_v36 = vld [vmem:[#allocation2 + $0x68] sm:$0x1] }
 0x223   : > { %v2529_v47 = vsel %vm9542_vm6, %v2524_v3, %v10548_v9  ;;  %v12361_v60 = vrot.slane %v10625_v17, 5  ;;  %v2281_v44 = vld [vmem:[#allocation2 + $0x80] sm:$0x1]  ;;  %v7737_v45 = vpack.c.bf16 %v1037_v53, %v1036_v14  ;;  %v10650_v1 = vpop.f32.mrf.mxu0  ;;  %8455 = vmatpush3.bf16.msra.mxu0 %v8839_v31  ;;  %v1722_v5 = vrot.slane %v1721_v15, 4  ;;  %v10652_v6 = vld [vmem:[#allocation2 + $0x6c] sm:$0xe] }
 0x224   : > { %2734 = vst [vmem:[#allocation3 + $0x298] sm:$0xf] %v2529_v47  ;;  %7787 = vst [vmem:[#allocation2 + $0x98] sm:$0xff] %v7732_v43   ;;  %v1726_v2 = vrot.slane %v1724_v13, 5  ;;  %v2536_v16 = vshll.u32 %v2281_v44, 16  ;;  %8456 = vmatprep.subr.bf16.mxu0 %v8846_v35  ;;  %v8850_v56 = vld [vmem:[#allocation9 + $0x218] sm:$0xff]   ;;  %v10743_v22 = vadd.f32 %v10461_v51, %v10362_v42 }
 0x225   : > { %v2777_v40 = vld [vmem:[#allocation2 + $0x80] sm:$0x1]  ;;  %12536 = vst [vmem:[#allocation78_spill] sm:$0xff] %v10652_v6  ;;  %v10654_v9 = vld [vmem:[#allocation2 + $0x68] sm:$0x1]  ;;  %7788 = vst [vmem:[#allocation2 + $0xa0] sm:$0xff] %v7737_v45   ;;  %v8448_v46 = vpop.f32.mrf.mxu0 }
 0x226   : > { %12537 = vst [vmem:[#allocation79_spill] sm:$0xff] %v10654_v9  ;;  %v2912_v7 = vrot.slane %v2777_v40, 5  ;;  %v10656_v25 = vld [vmem:[#allocation2 + $0x6c] sm:$0xf]  ;;  %v12539_v27 = vrot.slane %v10496_v37, 5  ;;  %v2538_v41 = vrot.slane %v2536_v16, 5  ;;  %v1727_v31 = vsel %vm9542_vm6, %v1722_v5, %v1726_v2 }
 0x227   : > { %12538 = vst [vmem:[#allocation80_spill] sm:$0xff] %v10656_v25  ;;  %v2534_v49 = vrot.slane %v2533_v34, 4  ;;  %v10662_v48 = vrot.slane %v3278_v63, 4  ;;  %v10664_v0 = vrot.slane %v3281_v26, 5  ;;  %v10666_v28 = vrot.slane %v3287_v39, 5  ;;  %v10672_v59 = vpop.f32.mrf.mxu0  ;;  %8457 = vmatpush3.bf16.msra.mxu0 %v8846_v35  ;;  %v12560_v42 = vld [vmem:[#allocation28_spill] sm:$0xff] }
 0x228   : > { %v2911_v55 = vrot.slane %v12539_v27, 4  ;;  %v10668_v24 = vrot.slane %v3291_v62, 4  ;;  %v10670_v23 = vld [vmem:[#allocation2 + $0x70] sm:$0xf]  ;;  %1901 = vst [vmem:[#allocation3 + $0x2f8] sm:$0xf] %v1727_v31  ;;  %8458 = vmatprep.subr.bf16.mxu0 %v8850_v56 }
 0x229   : > { %12540 = vst [vmem:[#allocation81_spill] sm:$0xff] %v10662_v48  ;;  %12541 = vst [vmem:[#allocation82_spill] sm:$0xff] %v10664_v0  ;;  %v10676_v37 = vrot.slane %v12361_v60, 4  ;;  %v10679_v33 = vld [vmem:[#allocation2 + $0x68] sm:$0x1]  ;;  %v2539_v63 = vsel %vm9542_vm6, %v2534_v49, %v2538_v41  ;;  %v8449_v53 = vpop.f32.mrf.mxu0  ;;  %v12357_v32 = vrot.slane %v10670_v23, 5 }
 0x22a   : > { %12542 = vst [vmem:[#allocation83_spill] sm:$0xff] %v10666_v28  ;;  %12543 = vst [vmem:[#allocation84_spill] sm:$0xff] %v10668_v24  ;;  %v2913_v58 = vsel %vm9530_vm3, %v2911_v55, %v2912_v7  ;;  %v10688_v15 = vld [vmem:[#allocation2 + $0x70] sm:$0xf]  ;;  %v10691_v35 = vld [vmem:[#allocation2 + $0x6c] sm:$0xe] }
 0x22b   : > { %12544 = vst [vmem:[#allocation85_spill] sm:$0xff] %v10670_v23  ;;  %12545 = vst [vmem:[#allocation86_spill] sm:$0xff] %v10672_v59  ;;  %v10693_v39 = vld [vmem:[#allocation2 + $0x74] sm:$0x1]  ;;  %v10697_v14 = vld [vmem:[#allocation2 + $0x70] sm:$0xf]  ;;  %8459 = vmatpush3.bf16.msra.mxu0 %v8850_v56 }
 0x22c   : > { %2735 = vst [vmem:[#allocation3 + $0x2bc] sm:$0xf] %v2539_v63  ;;  %3007 = vst [vmem:[#allocation3 + $0x2c0] sm:$0xf] %v2913_v58  ;;  %v10699_v47 = vld [vmem:[#allocation2 + $0x74] sm:$0x1] }
 0x22d   : > { %12546 = vst [vmem:[#allocation87_spill] sm:$0xff] %v10693_v39  ;;  %12547 = vst [vmem:[#allocation88_spill] sm:$0xff] %v10697_v14  ;;  %v12549_v61 = vrot.slane %v10253_v29, 5  ;;  %v10706_v34 = vld [vmem:[#allocation2 + $0x74] sm:$0x1]  ;;  %v12359_v13 = vrot.slane %v10688_v15, 5 }
 0x22e   : > { %12548 = vst [vmem:[#allocation89_spill] sm:$0xff] %v10699_v47  ;;  %v2778_v44 = vld [vmem:[#allocation2 + $0x84] sm:$0xe]  ;;  %v10711_v16 = vld [vmem:[#allocation2 + $0x7c] sm:$0xf]  ;;  %v10715_v29 = vrot.slane %v12357_v32, 4 }
 0x22f   : > { %v3711_v62 = vsel %vm9530_vm3, %v10250_v19, %v12549_v61  ;;  %12550 = vst [vmem:[#allocation90_spill] sm:$0xff] %v10711_v16  ;;  %v2779_v40 = vld [vmem:[#allocation2 + $0x88] sm:$0xf]  ;;  %v2780_v19 = vld [vmem:[#allocation2 + $0x8c] sm:$0x1]  ;;  %v12552_v7 = vld [vmem:[#allocation35_spill] sm:$0xff] }
 0x230   : > { %3830 = vst [vmem:[#allocation3 + $0x164] sm:$0xf] %v3711_v62  ;;  %12551 = vst [vmem:[#allocation91_spill] sm:$0xff] %v10715_v29  ;;  %v2916_v56 = vrot.slane %v2779_v40, 5  ;;  %v12553_v46 = vrot.slane %v12552_v7, 5  ;;  %v12554_v27 = vld [vmem:[#allocation34_spill] sm:$0xff] }
 0x231   : > { %v12555_v55 = vrot.slane %v12554_v27, 9  ;;  %v10727_v58 = vld [vmem:[#allocation2 + $0x7c] sm:$0xf]  ;;  %v7278_v53 = vrot.slane %v2778_v44, 9  ;;  %v10731_v61 = vrot.slane %v12359_v13, 4  ;;  %v12358_v40 = vrot.slane %v10711_v16, 5 }
 0x232   : > { %v10733_v62 = vld [vmem:[#allocation2 + $0x78] sm:$0xe]  ;;  %v2918_v7 = vrot.slane %v2916_v56, 4  ;;  %v8785_v49 = vld [vmem:[#allocation3 + $0x244] ss:$36 sps:$4 sm:$0xff]   ;;  %v12360_v44 = vrot.slane %v10727_v58, 5 }
 0x233   : > { %v2042_v41 = vsel %vm9530_vm3, %v12555_v55, %v12553_v46  ;;  %12556 = vst [vmem:[#allocation35_spill] sm:$0xff] %v10733_v62  ;;  %v2919_v46 = vrot.slane %v2780_v19, 5  ;;  %v10736_v27 = vld [vmem:[#allocation2 + $0x78] sm:$0xe]  ;;  %v1446_v55 = vld [vmem:[#allocation2 + $0x84] sm:$0xf]  ;;  %v2917_v31 = vsel %vm9530_vm3, %v7278_v53, %v2916_v56  ;;  %5428 = vmatprep.mubr.bf16.mxu1 %v8785_v49 }
 0x234   : > { %2163 = vst [vmem:[#allocation3 + $0x128] sm:$0xf] %v2042_v41  ;;  %v2282_v41 = vld [vmem:[#allocation2 + $0x84] sm:$0xf]  ;;  %3008 = vst [vmem:[#allocation3 + $0x2e4] sm:$0xf] %v2917_v31 }
 0x235   : > { %v8787_v5 = vld [vmem:[#allocation3 + $0x208] ss:$36 sps:$4 sm:$0xff]   ;;  %v2920_v26 = vsel %vm9530_vm3, %v2918_v7, %v2919_v46  ;;  %v8790_v2 = vld [vmem:[#allocation3 + $0x240] ss:$36 sps:$4 sm:$0xff]   ;;  %v12557_v56 = vrot.slane %v10045_v54, 5  ;;  %v12559_v32 = vrot.slane %v10338_v12, 5 }
 0x236   : > { %v8789_v3 = vld [vmem:[#allocation3 + $0x20c] ss:$36 sps:$4 sm:$0xff]   ;;  %3009 = vst [vmem:[#allocation3 + $0x308] sm:$0xf] %v2920_v26  ;;  %v12561_v63 = vrot.slane %v12560_v42, 9  ;;  %v12562_v31 = vld [vmem:[#allocation65_spill] sm:$0xff]  ;;  %5429 = vmatmul.mubr.bf16.gmra.mxu1 %v8790_v2 }
 0x237   : > { %v12558_v53 = vld [vmem:[#allocation39_spill] sm:$0xff]  ;;  %v12563_v46 = vrot.slane %v12562_v31, 5  ;;  %v12564_v19 = vld [vmem:[#allocation70_spill] sm:$0xff]  ;;  %v10766_v54 = vrot.slane %v12358_v40, 4  ;;  %v12567_v12 = vld [vmem:[#allocation45_spill] sm:$0xff]  ;;  %5742 = vmatprep.mubr.bf16.mxu0 %v8789_v3  ;;  %v12591_v14 = vrot.slane %v10615_v52, 9 }
 0x238   : > { %v2045_v57 = vsel %vm9530_vm3, %v12558_v53, %v12557_v56  ;;  %v3715_v7 = vsel %vm9530_vm3, %v12561_v63, %v12559_v32  ;;  %v10768_v26 = vld [vmem:[#allocation2 + $0x80] sm:$0x1]  ;;  %v1447_v56 = vld [vmem:[#allocation2 + $0x88] sm:$0xf]  ;;  %v12568_v53 = vrot.slane %v12567_v12, 5  ;;  %v12569_v42 = vld [vmem:[#allocation46_spill] sm:$0xff]  ;;  %5743 = vmatmul.mubr.bf16.gmra.mxu0 %v8787_v5 }
 0x239   : > { %v3718_v49 = vsel %vm9530_vm3, %v12564_v19, %v12563_v46  ;;  %12565 = vst [vmem:[#allocation34_spill] sm:$0xff] %v10766_v54  ;;  %12566 = vst [vmem:[#allocation39_spill] sm:$0xff] %v10768_v26  ;;  %v12570_v32 = vrot.slane %v12569_v42, 9  ;;  %v12571_v31 = vld [vmem:[#allocation47_spill] sm:$0xff]  ;;  %v12573_v19 = vld [vmem:[#allocation52_spill] sm:$0xff]  ;;  %v1732_v12 = vshll.u32 %v1446_v55, 16 }
 0x23a   : > { %2164 = vst [vmem:[#allocation3 + $0x14c] sm:$0xf] %v2045_v57  ;;  %3831 = vst [vmem:[#allocation3 + $0x188] sm:$0xf] %v3715_v7  ;;  %v12572_v45 = vrot.slane %v12571_v31, 5  ;;  %v12574_v40 = vld [vmem:[#allocation48_spill] sm:$0xff] }
 0x23b   : > { %3832 = vst [vmem:[#allocation3 + $0x1ac] sm:$0xf] %v3718_v49  ;;  %v2049_v63 = vsel %vm9530_vm3, %v12570_v32, %v12568_v53  ;;  %v12575_v13 = vrot.slane %v12574_v40, 5  ;;  %v12576_v4 = vld [vmem:[#allocation56_spill] sm:$0xff]  ;;  %v1729_v49 = vshrl.u32 %v1446_v55, 16  ;;  %v2541_v53 = vshrl.u32 %v2282_v41, 16 }
 0x23c   : > { %v2052_v46 = vsel %vm9530_vm3, %v12573_v19, %v12572_v45  ;;  %v12577_v43 = vrot.slane %v12576_v4, 9  ;;  %v10788_v42 = vld [vmem:[#allocation2 + $0x84] sm:$0xe]  ;;  %2165 = vst [vmem:[#allocation3 + $0x170] sm:$0xf] %v2049_v63  ;;  %v10792_v45 = vrot.slane %v12360_v44, 4 }
 0x23d   : > { %12578 = vst [vmem:[#allocation28_spill] sm:$0xff] %v10788_v42  ;;  %2166 = vst [vmem:[#allocation3 + $0x194] sm:$0xf] %v2052_v46  ;;  %v2544_v4 = vshll.u32 %v2282_v41, 16  ;;  %v10794_v40 = vld [vmem:[#allocation2 + $0x80] sm:$0x1] }
 0x23e   : > { %v2056_v57 = vsel %vm9530_vm3, %v12577_v43, %v12575_v13  ;;  %v10796_v43 = vld [vmem:[#allocation2 + $0x84] sm:$0xe]  ;;  %v12581_v32 = vld [vmem:[#allocation57_spill] sm:$0xff]  ;;  %v12582_v2 = vld [vmem:[#allocation26_spill] sm:$0xff]  ;;  %v1738_v41 = vshll.u32 %v1447_v56, 16  ;;  %v966_v44 = vmax.f32 %v10743_v22, 0.0 }
 0x23f   : > { %2167 = vst [vmem:[#allocation3 + $0x1b8] sm:$0xf] %v2056_v57  ;;  %v12579_v13 = vld [vmem:[#allocation59_spill] sm:$0xff]  ;;  %v12583_v63 = vrot.slane %v12582_v2, 5  ;;  %v12584_v31 = vld [vmem:[#allocation60_spill] sm:$0xff]  ;;  %v10817_v2 = vrot.slane %v1732_v12, 5 }
 0x240   : > { %v12580_v55 = vrot.slane %v12579_v13, 5  ;;  %v12585_v19 = vrot.slane %v12584_v31, 9  ;;  %v1448_v57 = vld [vmem:[#allocation2 + $0x8c] sm:$0x1]  ;;  %v2781_v7 = vld [vmem:[#allocation2 + $0x90] sm:$0xe] }
 0x241   : > { %v1742_v13 = vshrl.u32 %v1447_v56, 16  ;;  %v10811_v11 = vld [vmem:[#allocation2 + $0x88] sm:$0xf]  ;;  %v10820_v31 = vrot.slane %v2541_v53, 4  ;;  %v1748_v22 = vshll.u32 %v1448_v57, 16  ;;  %v10827_v24 = vrot.slane %v1738_v41, 5 }
 0x242   : > { %v2059_v3 = vsel %vm9530_vm3, %v12581_v32, %v12580_v55  ;;  %v2063_v46 = vsel %vm9530_vm3, %v12585_v19, %v12583_v63  ;;  %12586 = vst [vmem:[#allocation65_spill] sm:$0xff] %v10811_v11  ;;  %v10813_v55 = vld [vmem:[#allocation2 + $0x94] sm:$0xf]  ;;  %v10815_v32 = vrot.slane %v1729_v49, 4  ;;  %v10822_v19 = vrot.slane %v2544_v4, 5  ;;  %v12588_v0 = vld [vmem:[#allocation71_spill] sm:$0xff] }
 0x243   : > { %2168 = vst [vmem:[#allocation3 + $0x1dc] sm:$0xf] %v2059_v3  ;;  %2169 = vst [vmem:[#allocation3 + $0x200] sm:$0xf] %v2063_v46  ;;  %v2283_v3 = vld [vmem:[#allocation2 + $0x88] sm:$0xf]  ;;  %v881_v5 = vadd.f32 %v10461_v51, %v12588_v0 }
 0x244   : > { %v7279_v46 = vrot.slane %v2781_v7, 9  ;;  %v10829_v49 = vld [vmem:[#allocation2 + $0x8c] sm:$0x1]  ;;  %v10832_v63 = vrot.slane %v1742_v13, 4  ;;  %v8791_v4 = vld [vmem:[#allocation3 + $0x28c] ss:$36 sps:$4 sm:$0xff]  }
 0x245   : > { %12587 = vst [vmem:[#allocation70_spill] sm:$0xff] %v10829_v49  ;;  %v2284_v53 = vld [vmem:[#allocation2 + $0x8c] sm:$0x1]  ;;  %v2550_v28 = vshll.u32 %v2283_v3, 16  ;;  %v10834_v57 = vld [vmem:[#allocation2 + $0x88] sm:$0xf]  ;;  %5436 = vmatprep.mubr.bf16.mxu1 %v8791_v4 }
 0x246   : > { %v8794_v7 = vld [vmem:[#allocation3 + $0x250] ss:$36 sps:$4 sm:$0xff]   ;;  %v10838_v56 = vrot.slane %v1748_v22, 5  ;;  %v2554_v60 = vshrl.u32 %v2283_v3, 16  ;;  %v8797_v48 = vld [vmem:[#allocation3 + $0x288] ss:$36 sps:$4 sm:$0xff]  }
 0x247   : > { %v8796_v41 = vld [vmem:[#allocation3 + $0x254] ss:$36 sps:$4 sm:$0xff]   ;;  %v12589_v47 = vrot.slane %v10813_v55, 5  ;;  %v12590_v12 = vrot.slane %v10625_v17, 5  ;;  %v2560_v9 = vshll.u32 %v2284_v53, 16  ;;  %v12592_v22 = vrot.slane %v10679_v33, 5  ;;  %5437 = vmatmul.mubr.bf16.gmra.mxu1 %v8797_v48 }
 0x248   : > { %v1449_v0 = vld [vmem:[#allocation2 + $0x90] sm:$0xf]  ;;  %v12596_v52 = vld [vmem:[#allocation67_spill] sm:$0xff]  ;;  %v12598_v54 = vld [vmem:[#allocation66_spill] sm:$0xff]  ;;  %v12600_v33 = vrot.slane %v10811_v11, 5  ;;  %5750 = vmatprep.mubr.bf16.mxu0 %v8796_v41  ;;  %v1735_v48 = vor.u32 %v10817_v2, %v10815_v32  ;;  %v1745_v41 = vor.u32 %v10832_v63, %v10827_v24 }
 0x249   : > { %v2924_v13 = vsel %vm9530_vm3, %v7279_v46, %v12589_v47  ;;  %v3722_v25 = vsel %vm9530_vm3, %v12591_v14, %v12590_v12  ;;  %v3725_v3 = vsel %vm9530_vm3, %v10676_v37, %v12592_v22  ;;  %v12593_v4 = vld [vmem:[#allocation61_spill] sm:$0xff]  ;;  %v12595_v47 = vld [vmem:[#allocation63_spill] sm:$0xff]  ;;  %v12597_v46 = vrot.slane %v12596_v52, 5  ;;  %5751 = vmatmul.mubr.bf16.gmra.mxu0 %v8794_v7  ;;  %v2288_v16 = vld [vmem:[#allocation2 + $0x9c] sm:$0xf] }
 0x24a   : > { %3010 = vst [vmem:[#allocation3 + $0x32c] sm:$0xf] %v2924_v13  ;;  %3833 = vst [vmem:[#allocation3 + $0x1d0] sm:$0xf] %v3722_v25  ;;  %v12594_v42 = vrot.slane %v12593_v4, 5  ;;  %v12599_v14 = vrot.slane %v12598_v54, 9  ;;  %v1038_v4 = vmul.f32 %v9503_v10, %v966_v44 }
 0x24b   : > { %v10868_v53 = vrot.slane %v12600_v33, 4  ;;  %v10871_v25 = vld [vmem:[#allocation2 + $0x8c] sm:$0x1]  ;;  %v12370_v13 = vrot.slane %v10834_v57, 5  ;;  %3834 = vst [vmem:[#allocation3 + $0x1f4] sm:$0xf] %v3725_v3 }
 0x24c   : > { %v2066_v17 = vsel %vm9530_vm3, %v12595_v47, %v12594_v42  ;;  %v2070_v12 = vsel %vm9530_vm3, %v12599_v14, %v12597_v46  ;;  %v10874_v42 = vrot.slane %v2550_v28, 5  ;;  %v1450_v54 = vld [vmem:[#allocation2 + $0x94] sm:$0xf]  ;;  %v10876_v22 = vld [vmem:[#allocation2 + $0x90] sm:$0xe]  ;;  %v12603_v47 = vrot.slane %v10648_v36, 5 }
 0x24d   : > { %12601 = vst [vmem:[#allocation45_spill] sm:$0xff] %v10868_v53  ;;  %2170 = vst [vmem:[#allocation3 + $0x224] sm:$0xf] %v2066_v17  ;;  %v12604_v52 = vld [vmem:[#allocation73_spill] sm:$0xff]  ;;  %v1753_v28 = vshrl.u32 %v1449_v0, 16  ;;  %v967_v14 = vmax.f32 %v881_v5, 0.0 }
 0x24e   : > { %2171 = vst [vmem:[#allocation3 + $0x248] sm:$0xf] %v2070_v12  ;;  %12602 = vst [vmem:[#allocation46_spill] sm:$0xff] %v10876_v22  ;;  %v2073_v46 = vsel %vm9530_vm3, %v12604_v52, %v12603_v47  ;;  %v10888_v3 = vld [vmem:[#allocation2 + $0x94] sm:$0xf]  ;;  %v10890_v7 = vrot.slane %v2554_v60, 4 }
 0x24f   : > { %12605 = vst [vmem:[#allocation47_spill] sm:$0xff] %v10888_v3  ;;  %v2285_v17 = vld [vmem:[#allocation2 + $0x90] sm:$0xf]  ;;  %2172 = vst [vmem:[#allocation3 + $0x26c] sm:$0xf] %v2073_v46  ;;  %v10892_v44 = vrot.slane %v2560_v9, 5  ;;  %v1039_v47 = vmul.f32 %v9510_v18, %v967_v14 }
 0x250   : > { %v1756_v12 = vshll.u32 %v1449_v0, 16  ;;  %v2783_v33 = vld [vmem:[#allocation2 + $0x98] sm:$0x1]  ;;  %v10897_v32 = vrot.slane %v12370_v13, 4  ;;  %v1762_v2 = vshll.u32 %v1450_v54, 16  ;;  %v12606_v52 = vrot.slane %v10688_v15, 5 }
 0x251   : > { %v2286_v63 = vld [vmem:[#allocation2 + $0x94] sm:$0xf]  ;;  %v12607_v5 = vrot.slane %v10691_v35, 9  ;;  %v1766_v9 = vshrl.u32 %v1450_v54, 16  ;;  %v12374_v0 = vrot.slane %v10888_v3, 5  ;;  %v2565_v37 = vshrl.u32 %v2285_v17, 16  ;;  %v10914_v54 = vpop.f32.mrf.mxu1 }
 0x252   : > { %v10908_v36 = vrot.slane %v1753_v28, 4  ;;  %v2568_v13 = vshll.u32 %v2285_v17, 16  ;;  %v2926_v53 = vrot.slane %v2783_v33, 5  ;;  %v7742_v49 = vpack.c.bf16 %v1039_v47, %v1038_v4  ;;  %v8853_v14 = vld [vmem:[#allocation9 + $0x210] sm:$0xff]   ;;  %v10912_v26 = vld [vmem:[#allocation2 + $0x94] sm:$0xf] }
 0x253   : > { %v3729_v60 = vsel %vm9530_vm3, %v12607_v5, %v12606_v52  ;;  %v10910_v11 = vrot.slane %v1756_v12, 5  ;;  %v2574_v15 = vshll.u32 %v2286_v63, 16  ;;  %v2578_v35 = vshrl.u32 %v2286_v63, 16  ;;  %v10922_v33 = vld [vmem:[#allocation2 + $0x90] sm:$0xe]  ;;  %8460 = vmatprep.subr.bf16.mxu0 %v8853_v14  ;;  %v12614_v3 = vld [vmem:[#allocation74_spill] sm:$0xff] }
 0x254   : > { %3835 = vst [vmem:[#allocation3 + $0x218] sm:$0xf] %v3729_v60  ;;  %v1736_v52 = vrot.slane %v1735_v48, 4  ;;  %v2547_v5 = vor.u32 %v10822_v19, %v10820_v31  ;;  %v10918_v46 = vrot.slane %v1762_v2, 5  ;;  %v12608_v28 = vrot.slane %v10813_v55, 5  ;;  %7789 = vst [vmem:[#allocation2 + $0xa8] sm:$0xff] %v7742_v49   ;;  %8461 = vmatpush3.bf16.msra.mxu0 %v8853_v14 }
 0x255   : > { %v1451_v4 = vld [vmem:[#allocation2 + $0x98] sm:$0x1]  ;;  %v10924_v12 = vrot.slane %v1766_v9, 4  ;;  %v10928_v48 = vrot.slane %v12374_v0, 4  ;;  %v10930_v63 = vrot.slane %v2565_v37, 4  ;;  %v8859_v55 = vld [vmem:[#allocation9 + $0x208] sm:$0xff]  }
 0x256   : > { %v2925_v17 = vrot.slane %v12608_v28, 4  ;;  %v1741_v31 = vsel %vm9542_vm6, %v1736_v52, %v10827_v24  ;;  %v10935_v19 = vrot.slane %v2568_v13, 5  ;;  %v12378_v2 = vrot.slane %v10912_v26, 5  ;;  %v1452_v49 = vld [vmem:[#allocation2 + $0x9c] sm:$0xf]  ;;  %8462 = vmatprep.subr.bf16.mxu0 %v8859_v55  ;;  %v7847_v24 = vpop.f32.mrf.mxu1  ;;  %v12617_v39 = vld [vmem:[#allocation76_spill] sm:$0xff] }
 0x257   : > { %12609 = vst [vmem:[#allocation52_spill] sm:$0xff] %v10928_v48  ;;  %v1746_v47 = vrot.slane %v1745_v41, 4  ;;  %1902 = vst [vmem:[#allocation3 + $0x31c] sm:$0xf] %v1741_v31  ;;  %v10940_v9 = vrot.slane %v2574_v15, 5  ;;  %v10942_v37 = vrot.slane %v2578_v35, 4  ;;  %v2557_v13 = vor.u32 %v10890_v7, %v10874_v42 }
 0x258   : > { %v2927_v60 = vsel %vm9530_vm3, %v2925_v17, %v2926_v53  ;;  %v1772_v0 = vshll.u32 %v1451_v4, 16  ;;  %v10947_v14 = vld [vmem:[#allocation2 + $0x98] sm:$0x1]  ;;  %v10949_v41 = vld [vmem:[#allocation2 + $0x9c] sm:$0xe]  ;;  %v12612_v31 = vld [vmem:[#allocation72_spill] sm:$0xff]  ;;  %8463 = vmatpush3.bf16.msra.mxu0 %v8859_v55 }
 0x259   : > { %3011 = vst [vmem:[#allocation3 + $0x350] sm:$0xf] %v2927_v60  ;;  %12610 = vst [vmem:[#allocation48_spill] sm:$0xff] %v10947_v14  ;;  %v2785_v52 = vld [vmem:[#allocation2 + $0xa0] sm:$0xf]  ;;  %v10953_v53 = vadd.f32 %v10461_v51, %v12612_v31  ;;  %v1777_v15 = vshrl.u32 %v1452_v49, 16  ;;  %v1751_v4 = vsel %vm9542_vm6, %v1746_v47, %v10838_v56  ;;  %v10964_v31 = vadd.f32 %v10461_v51, %v12614_v3 }
 0x25a   : > { %12611 = vst [vmem:[#allocation56_spill] sm:$0xff] %v10949_v41  ;;  %v1780_v35 = vshll.u32 %v1452_v49, 16  ;;  %v2784_v17 = vld [vmem:[#allocation2 + $0x9c] sm:$0xe]  ;;  %v2930_v28 = vrot.slane %v2785_v52, 5  ;;  %v10960_v7 = vrot.slane %v12378_v2, 4  ;;  %v10974_v2 = vpop.f32.mrf.mxu1 }
 0x25b   : > { %v2287_v60 = vld [vmem:[#allocation2 + $0x98] sm:$0x1]  ;;  %v2786_v48 = vld [vmem:[#allocation2 + $0xa4] sm:$0x1]  ;;  %1903 = vst [vmem:[#allocation3 + $0x340] sm:$0xf] %v1751_v4 }
 0x25c   : > { %12613 = vst [vmem:[#allocation59_spill] sm:$0xff] %v10960_v7  ;;  %v2548_v22 = vrot.slane %v2547_v5, 4  ;;  %v12615_v49 = vld [vmem:[#allocation75_spill] sm:$0xff]  ;;  %v10970_v62 = vrot.slane %v1772_v0, 5  ;;  %v2932_v47 = vrot.slane %v2930_v28, 4  ;;  %12616 = vst [vmem:[#allocation57_spill] sm:$0xff] %v10974_v2 }
 0x25d   : > { %v10968_v52 = vadd.f32 %v10461_v51, %v12615_v49  ;;  %v7280_v4 = vrot.slane %v2784_v17, 9  ;;  %v8799_v5 = vld [vmem:[#allocation3 + $0x2d4] ss:$36 sps:$4 sm:$0xff]   ;;  %v2558_v29 = vrot.slane %v2557_v13, 4  ;;  %v10981_v49 = vadd.f32 %v10461_v51, %v12617_v39  ;;  %v1453_v2 = vld [vmem:[#allocation2 + $0xa0] sm:$0xf] }
 0x25e   : > { %v2553_v3 = vsel %vm9542_vm6, %v2548_v22, %v10874_v42  ;;  %v10983_v0 = vrot.slane %v1777_v15, 4  ;;  %v10985_v56 = vrot.slane %v1780_v35, 5  ;;  %v2584_v55 = vshll.u32 %v2287_v60, 16  ;;  %v8801_v14 = vld [vmem:[#allocation3 + $0x298] ss:$36 sps:$4 sm:$0xff]   ;;  %5444 = vmatprep.mubr.bf16.mxu1 %v8799_v5 }
 0x25f   : > { %v2933_v41 = vrot.slane %v2786_v48, 5  ;;  %2736 = vst [vmem:[#allocation3 + $0x2e0] sm:$0xf] %v2553_v3  ;;  %v8803_v17 = vld [vmem:[#allocation3 + $0x29c] ss:$36 sps:$4 sm:$0xff]   ;;  %v2563_v42 = vsel %vm9542_vm6, %v2558_v29, %v10892_v44  ;;  %v10996_v13 = vadd.f32 %v10461_v51, %v10562_v38  ;;  %v2931_v48 = vsel %vm9530_vm3, %v7280_v4, %v2930_v28  ;;  %v11005_v44 = vpop.f32.mrf.mxu1 }
 0x260   : > { %v8804_v6 = vld [vmem:[#allocation3 + $0x2d0] ss:$36 sps:$4 sm:$0xff]   ;;  %v12618_v22 = vld [vmem:[#allocation77_spill] sm:$0xff]  ;;  %v2589_v15 = vshrl.u32 %v2288_v16, 16  ;;  %v2592_v35 = vshll.u32 %v2288_v16, 16  ;;  %v11003_v29 = vadd.f32 %v7847_v24, %v10914_v54  ;;  %12620 = vst [vmem:[#allocation60_spill] sm:$0xff] %v11005_v44  ;;  %5758 = vmatprep.mubr.bf16.mxu0 %v8803_v17 }
 0x261   : > { %v10992_v39 = vadd.f32 %v10461_v51, %v12618_v22  ;;  %v1454_v60 = vld [vmem:[#allocation2 + $0xa4] sm:$0x1]  ;;  %2737 = vst [vmem:[#allocation3 + $0x304] sm:$0xf] %v2563_v42  ;;  %v2934_v5 = vsel %vm9530_vm3, %v2932_v47, %v2933_v41  ;;  %3012 = vst [vmem:[#allocation3 + $0x374] sm:$0xf] %v2931_v48  ;;  %5445 = vmatmul.mubr.bf16.gmra.mxu1 %v8804_v6  ;;  %v11017_v41 = vadd.f32 %v10461_v51, %v10596_v20 }
 0x262   : > { %12619 = vst [vmem:[#allocation26_spill] sm:$0xff] %v11003_v29  ;;  %v11011_v28 = vld [vmem:[#allocation2 + $0x98] sm:$0x1]  ;;  %v11013_v16 = vld [vmem:[#allocation2 + $0x9c] sm:$0xe]  ;;  %v1786_v24 = vshll.u32 %v1453_v2, 16  ;;  %5759 = vmatmul.mubr.bf16.gmra.mxu0 %v8801_v14 }
 0x263   : > { %12621 = vst [vmem:[#allocation71_spill] sm:$0xff] %v11011_v28  ;;  %12622 = vst [vmem:[#allocation61_spill] sm:$0xff] %v11013_v16  ;;  %v2289_v4 = vld [vmem:[#allocation2 + $0xa0] sm:$0xf]  ;;  %v2290_v42 = vld [vmem:[#allocation2 + $0xa4] sm:$0x1] }
 0x264   : > { %3013 = vst [vmem:[#allocation3 + $0x398] sm:$0xf] %v2934_v5  ;;  %v11021_v47 = vld [vmem:[#allocation2 + $0xa0] sm:$0xf]  ;;  %v969_v22 = vmax.f32 %v10964_v31, 0.0  ;;  %v12624_v48 = vrot.slane %v10706_v34, 5  ;;  %v7852_v34 = vpop.f32.mrf.mxu1 }
 0x265   : > { %12623 = vst [vmem:[#allocation63_spill] sm:$0xff] %v11021_v47  ;;  %v11029_v17 = vrot.slane %v2584_v55, 5  ;;  %v1790_v51 = vshrl.u32 %v1453_v2, 16  ;;  %v1796_v20 = vshll.u32 %v1454_v60, 16  ;;  %v2787_v5 = vld [vmem:[#allocation2 + $0xa8] sm:$0xe] }
 0x266   : > { %v3732_v6 = vsel %vm9530_vm3, %v10731_v61, %v12624_v48  ;;  %v968_v54 = vmax.f32 %v10953_v53, 0.0  ;;  %v11032_v3 = vrot.slane %v2589_v15, 4  ;;  %v11034_v38 = vrot.slane %v2592_v35, 5  ;;  %v11036_v29 = vld [vmem:[#allocation2 + $0xac] sm:$0xf]  ;;  %v7853_v16 = vpop.f32.mrf.mxu1 }
 0x267   : > { %3836 = vst [vmem:[#allocation3 + $0x23c] sm:$0xf] %v3732_v6  ;;  %v2598_v14 = vshll.u32 %v2289_v4, 16  ;;  %v2602_v31 = vshrl.u32 %v2289_v4, 16  ;;  %v11040_v55 = vld [vmem:[#allocation2 + $0xa4] sm:$0x1]  ;;  %v1041_v4 = vmul.f32 %v9503_v10, %v969_v22  ;;  %v2581_v6 = vor.u32 %v10942_v37, %v10940_v9 }
 0x268   : > { %12625 = vst [vmem:[#allocation67_spill] sm:$0xff] %v11040_v55  ;;  %v2608_v60 = vshll.u32 %v2290_v42, 16  ;;  %v11043_v53 = vrot.slane %v1786_v24, 5  ;;  %v11045_v15 = vld [vmem:[#allocation2 + $0xa0] sm:$0xf]  ;;  %v7281_v35 = vrot.slane %v2787_v5, 9  ;;  %v1040_v22 = vmul.f32 %v9519_v30, %v968_v54 }
 0x269   : > { %v11053_v44 = vrot.slane %v1790_v51, 4  ;;  %v11055_v23 = vrot.slane %v1796_v20, 5  ;;  %v11057_v42 = vld [vmem:[#allocation2 + $0xa4] sm:$0x1]  ;;  %v11059_v24 = vld [vmem:[#allocation2 + $0xa8] sm:$0xf]  ;;  %v11088_v54 = vadd.f32 %v7853_v16, %v7852_v34 }
 0x26a   : > { %v11062_v2 = vrot.slane %v2598_v14, 5  ;;  %v11064_v48 = vrot.slane %v2602_v31, 4  ;;  %v1371_v37 = vld [vmem:[#allocation2 + $0x84] sm:$0xf]  ;;  %v12626_v20 = vrot.slane %v11021_v47, 5  ;;  %v11073_v7 = vrot.slane %v2608_v60, 5 }
 0x26b   : > { %v1372_v5 = vld [vmem:[#allocation2 + $0x88] sm:$0xf]  ;;  %1403 = vst [vmem:[#allocation3 + $0x318] sm:$0xf] %v1371_v37  ;;  %v11077_v31 = vld [vmem:[#allocation2 + $0xac] sm:$0xf]  ;;  %v7747_v51 = vpack.c.bf16 %v1041_v4, %v1040_v22 }
 0x26c   : > { %v11071_v61 = vrot.slane %v12626_v20, 4  ;;  %1404 = vst [vmem:[#allocation3 + $0x33c] sm:$0xf] %v1372_v5  ;;  %v8809_v55 = vld [vmem:[#allocation3 + $0x2e0] ss:$36 sps:$4 sm:$0xff]   ;;  %v12628_v47 = vrot.slane %v11036_v29, 5  ;;  %v1793_v20 = vor.u32 %v11053_v44, %v11043_v53  ;;  %v2605_v4 = vor.u32 %v11064_v48, %v11062_v2 }
 0x26d   : > { %v8811_v59 = vld [vmem:[#allocation3 + $0x2e4] ss:$36 sps:$4 sm:$0xff]   ;;  %v970_v37 = vmax.f32 %v10968_v52, 0.0  ;;  %v971_v14 = vmax.f32 %v10981_v49, 0.0  ;;  %v1373_v28 = vld [vmem:[#allocation2 + $0x90] sm:$0xf]  ;;  %v12630_v44 = vor.u32 %v10910_v11, %v10908_v36  ;;  %v12631_v49 = vor.u32 %v10924_v12, %v10918_v46 }
 0x26e   : > { %12627 = vst [vmem:[#allocation66_spill] sm:$0xff] %v11071_v61  ;;  %v2938_v60 = vsel %vm9530_vm3, %v7281_v35, %v12628_v47  ;;  %v1374_v61 = vld [vmem:[#allocation2 + $0x94] sm:$0xf]  ;;  %12629 = vst [vmem:[#allocation73_spill] sm:$0xff] %v11088_v54  ;;  %v1804_v5 = vshll.u32 %v11059_v24, 16  ;;  %5766 = vmatprep.mubr.bf16.mxu0 %v8811_v59  ;;  %v8862_v16 = vld [vmem:[#allocation9 + $0x200] sm:$0xff]   ;;  %v12632_v59 = vor.u32 %v10935_v19, %v10930_v63 }
 0x26f   : > { %3014 = vst [vmem:[#allocation3 + $0x3bc] sm:$0xf] %v2938_v60  ;;  %7790 = vst [vmem:[#allocation2 + $0xb0] sm:$0xff] %v7747_v51   ;;  %v1760_v52 = vrot.slane %v12630_v44, 4  ;;  %v1770_v47 = vrot.slane %v12631_v49, 4  ;;  %5767 = vmatmul.mubr.bf16.gmra.mxu0 %v8809_v55  ;;  %v1042_v34 = vmul.f32 %v9510_v18, %v970_v37  ;;  %v1043_v48 = vmul.f32 %v9519_v30, %v971_v14 }
 0x270   : > { %1405 = vst [vmem:[#allocation3 + $0x360] sm:$0xf] %v1373_v28  ;;  %1406 = vst [vmem:[#allocation3 + $0x384] sm:$0xf] %v1374_v61  ;;  %v1375_v35 = vld [vmem:[#allocation2 + $0x9c] sm:$0xf]  ;;  %8464 = vmatprep.subr.bf16.mxu0 %v8862_v16  ;;  %v12633_v37 = vor.u32 %v10985_v56, %v10983_v0 }
 0x271   : > { %v2572_v28 = vrot.slane %v12632_v59, 4  ;;  %v2582_v61 = vrot.slane %v2581_v6, 4  ;;  %v1376_v22 = vld [vmem:[#allocation2 + $0xa0] sm:$0xf]  ;;  %1407 = vst [vmem:[#allocation3 + $0x3a8] sm:$0xf] %v1375_v35  ;;  %v1765_v36 = vsel %vm9542_vm6, %v1760_v52, %v10918_v46  ;;  %v1775_v12 = vsel %vm9542_vm6, %v1770_v47, %v10970_v62  ;;  %8465 = vmatpush3.bf16.msra.mxu0 %v8862_v16 }
 0x272   : > { %v1377_v11 = vld [vmem:[#allocation2 + $0xa8] sm:$0xf]  ;;  %v972_v55 = vmax.f32 %v10992_v39, 0.0  ;;  %v973_v51 = vmax.f32 %v10996_v13, 0.0  ;;  %1408 = vst [vmem:[#allocation3 + $0x3cc] sm:$0xf] %v1376_v22  ;;  %v7752_v60 = vpack.c.bf16 %v1043_v48, %v1042_v34 }
 0x273   : > { %v1378_v14 = vld [vmem:[#allocation2 + $0xac] sm:$0xf]  ;;  %1409 = vst [vmem:[#allocation3 + $0x3f0] sm:$0xf] %v1377_v11  ;;  %v1810_v63 = vshll.u32 %v11077_v31, 16  ;;  %v2577_v62 = vsel %vm9542_vm6, %v2572_v28, %v10940_v9  ;;  %v2587_v46 = vsel %vm9542_vm6, %v2582_v61, %v11029_v17  ;;  %v1784_v44 = vrot.slane %v12633_v37, 4 }
 0x274   : > { %v11113_v19 = vld [vmem:[#allocation2 + $0xa8] sm:$0xe]  ;;  %v11115_v6 = vld [vmem:[#allocation2 + $0xac] sm:$0xf]  ;;  %1904 = vst [vmem:[#allocation3 + $0x364] sm:$0xf] %v1765_v36  ;;  %v1044_v39 = vmul.f32 %v9503_v10, %v972_v55  ;;  %v1045_v13 = vmul.f32 %v9510_v18, %v973_v51  ;;  %v12634_v9 = vor.u32 %v11034_v38, %v11032_v3 }
 0x275   : > { %1905 = vst [vmem:[#allocation3 + $0x388] sm:$0xf] %v1775_v12  ;;  %1410 = vst [vmem:[#allocation3 + $0x414] sm:$0xf] %v1378_v14  ;;  %v1794_v52 = vrot.slane %v1793_v20, 4  ;;  %v1789_v56 = vsel %vm9542_vm6, %v1784_v44, %v11043_v53  ;;  %v2606_v38 = vrot.slane %v2605_v4, 4 }
 0x276   : > { %2738 = vst [vmem:[#allocation3 + $0x328] sm:$0xf] %v2577_v62  ;;  %2739 = vst [vmem:[#allocation3 + $0x34c] sm:$0xf] %v2587_v46  ;;  %v8807_v49 = vld [vmem:[#allocation3 + $0x31c] ss:$36 sps:$4 sm:$0xff]   ;;  %v7757_v48 = vpack.c.bf16 %v1045_v13, %v1044_v39 }
 0x277   : > { %v8812_v47 = vld [vmem:[#allocation3 + $0x318] ss:$36 sps:$4 sm:$0xff]   ;;  %7791 = vst [vmem:[#allocation2 + $0xb8] sm:$0xff] %v7752_v60   ;;  %v2596_v17 = vrot.slane %v12634_v9, 4  ;;  %v11134_v35 = vld [vmem:[%s12302_s4] ss:$0 sm:$0xff]  ;;  %v1799_v0 = vsel %vm9542_vm6, %v1794_v52, %v11055_v23  ;;  %5452 = vmatprep.mubr.bf16.mxu1 %v8807_v49  ;;  %v2611_v14 = vsel %vm9542_vm6, %v2606_v38, %v11073_v7 }
 0x278   : > { %v913_v16 = vadd.f32 %v11134_v35, %v10629_v8  ;;  %v2291_v34 = vld [vmem:[#allocation2 + $0xa8] sm:$0xf]  ;;  %v12635_v3 = vrot.slane %v11045_v15, 5  ;;  %v1814_v59 = vshrl.u32 %v11077_v31, 16  ;;  %v2292_v28 = vld [vmem:[#allocation2 + $0xac] sm:$0xf]  ;;  %5453 = vmatmul.mubr.bf16.gmra.mxu1 %v8812_v47 }
 0x279   : > { %1906 = vst [vmem:[#allocation3 + $0x3ac] sm:$0xf] %v1789_v56  ;;  %1907 = vst [vmem:[#allocation3 + $0x3d0] sm:$0xf] %v1799_v0  ;;  %v2601_v8 = vsel %vm9542_vm6, %v2596_v17, %v11062_v2  ;;  %v12636_v53 = vrot.slane %v10727_v58, 5  ;;  %v12637_v61 = vrot.slane %v10736_v27, 9 }
 0x27a   : > { %v11146_v20 = vrot.slane %v12635_v3, 4  ;;  %v12638_v4 = vshrl.u32 %v11059_v24, 16  ;;  %7792 = vst [vmem:[#allocation2 + $0xc0] sm:$0xff] %v7757_v48   ;;  %v974_v36 = vmax.f32 %v11017_v41, 0.0  ;;  %2740 = vst [vmem:[#allocation3 + $0x370] sm:$0xf] %v2601_v8 }
 0x27b   : > { %v3736_v23 = vsel %vm9530_vm3, %v12637_v61, %v12636_v53  ;;  %v12639_v58 = vld [vmem:[#allocation23_spill] sm:$0xff]  ;;  %v12640_v2 = vld [vmem:[#allocation24_spill] sm:$0xff]  ;;  %v2613_v12 = vshrl.u32 %v2291_v34, 16  ;;  %v1457_v51 = vld [vmem:[#allocation2 + $0xb0] sm:$0x1]  ;;  %v975_v60 = vmax.f32 %v913_v16, 0.0 }
 0x27c   : > { %v11160_v22 = vrot.slane %v12638_v4, 4  ;;  %3837 = vst [vmem:[#allocation3 + $0x260] sm:$0xf] %v3736_v23  ;;  %v11167_v55 = vld [vmem:[#allocation2 + $0xac] sm:$0xf]  ;;  %v11174_v62 = vrot.slane %v1804_v5, 5  ;;  %v1046_v5 = vmul.f32 %v9519_v30, %v974_v36 }
 0x27d   : > { %v11176_v46 = vrot.slane %v1810_v63, 5  ;;  %v2616_v41 = vshll.u32 %v2291_v34, 16  ;;  %v2622_v39 = vshll.u32 %v2292_v28, 16  ;;  %v2789_v13 = vld [vmem:[#allocation2 + $0xb0] sm:$0x1]  ;;  %v2626_v37 = vshrl.u32 %v2292_v28, 16 }
 0x27e   : > { %2741 = vst [vmem:[#allocation3 + $0x394] sm:$0xf] %v2611_v14  ;;  %v12641_v44 = vrot.slane %v11036_v29, 5  ;;  %v1458_v49 = vld [vmem:[#allocation2 + $0xb4] sm:$0xf]  ;;  %v2940_v47 = vrot.slane %v2789_v13, 5  ;;  %v1047_v9 = vmul.f32 %v9503_v10, %v975_v60 }
 0x27f   : > { %v12389_v7 = vrot.slane %v11167_v55, 5  ;;  %v1820_v17 = vshll.u32 %v1457_v51, 16  ;;  %v2293_v24 = vld [vmem:[#allocation2 + $0xb0] sm:$0x1]  ;;  %v12642_v63 = vrot.slane %v10794_v40, 5  ;;  %v12644_v48 = vld [vmem:[#allocation27_spill] sm:$0xff] }
 0x280   : > { %v2939_v52 = vrot.slane %v12641_v44, 4  ;;  %v12643_v34 = vld [vmem:[#allocation25_spill] sm:$0xff]  ;;  %v12645_v56 = vld [vmem:[#allocation31_spill] sm:$0xff]  ;;  %v12646_v0 = vld [vmem:[#allocation32_spill] sm:$0xff]  ;;  %v11192_v3 = vrot.slane %v1814_v59, 4  ;;  %v11194_v10 = vrot.slane %v2613_v12, 4  ;;  %v7762_v61 = vpack.c.bf16 %v1047_v9, %v1046_v5 }
 0x281   : > { %v3739_v16 = vsel %vm9530_vm3, %v10792_v45, %v12642_v63  ;;  %v11196_v28 = vld [vmem:[#allocation2 + $0xa8] sm:$0xe]  ;;  %v2294_v8 = vld [vmem:[#allocation2 + $0xb4] sm:$0xf]  ;;  %v11198_v53 = vrot.slane %v2616_v41, 5  ;;  %v1825_v40 = vshrl.u32 %v1458_v49, 16 }
 0x282   : > { %3838 = vst [vmem:[#allocation3 + $0x284] sm:$0xf] %v3739_v16  ;;  %v2941_v45 = vsel %vm9530_vm3, %v2939_v52, %v2940_v47  ;;  %v11202_v23 = vrot.slane %v2622_v39, 5  ;;  %v11204_v4 = vrot.slane %v2626_v37, 4  ;;  %v1828_v36 = vshll.u32 %v1458_v49, 16  ;;  %7793 = vst [vmem:[#allocation2 + $0xc8] sm:$0xff] %v7762_v61   ;;  %v8070_v39 = vpop.f32.mrf.mxu0 }
 0x283   : > { %v2632_v59 = vshll.u32 %v2293_v24, 16  ;;  %3015 = vst [vmem:[#allocation3 + $0x3e0] sm:$0xf] %v2941_v45  ;;  %v11209_v51 = vrot.slane %v12389_v7, 4  ;;  %v11211_v14 = vrot.slane %v1820_v17, 5  ;;  %v2637_v60 = vshrl.u32 %v2294_v8, 16 }
 0x284   : > { %v2640_v41 = vshll.u32 %v2294_v8, 16  ;;  %v2790_v13 = vld [vmem:[#allocation2 + $0xb4] sm:$0xe]  ;;  %v12647_v44 = vmov 0   ;;  %v12648_v37 = vrot.slane %v10834_v57, 5  ;;  %v12649_v52 = vrot.slane %v10796_v43, 9  ;;  %v8071_v61 = vpop.f32.mrf.mxu0 }
 0x285   : > { %1346 = vst [vmem:[#allocation2 + $0xcc] sm:$0xf] %v12647_v44  ;;  %v12650_v47 = vrot.slane %v10871_v25, 5  ;;  %v12651_v17 = vrot.slane %v10912_v26, 5  ;;  %v12652_v24 = vrot.slane %v10922_v33, 9  ;;  %v11241_v26 = vrot.slane %v1828_v36, 5 }
 0x286   : > { %v3743_v49 = vsel %vm9530_vm3, %v12649_v52, %v12648_v37  ;;  %v11237_v52 = vrot.slane %v1825_v40, 4  ;;  %v3619_v38 = vld [vmem:[#allocation2 + $0xb0] sm:$0x1]  ;;  %v11243_v33 = vrot.slane %v2632_v59, 5  ;;  %v12659_v25 = vld [vmem:[#allocation86_spill] sm:$0xff]  ;;  %v11259_v16 = vadd.f32 %v8071_v61, %v8070_v39  ;;  %v12661_v8 = vld [vmem:[#allocation71_spill] sm:$0xff] }
 0x287   : > { %v3746_v9 = vsel %vm9530_vm3, %v10897_v32, %v12650_v47  ;;  %v3750_v5 = vsel %vm9530_vm3, %v12652_v24, %v12651_v17  ;;  %v11239_v32 = vld [vmem:[#allocation2 + $0xb4] sm:$0xe]  ;;  %3839 = vst [vmem:[#allocation3 + $0x2a8] sm:$0xf] %v3743_v49  ;;  %v11245_v47 = vld [vmem:[#allocation2 + $0xb8] sm:$0xf]  ;;  %v11249_v24 = vadd.f32 %v11134_v35, %v10650_v1  ;;  %v11253_v40 = vadd.f32 %v11134_v35, %v12659_v25  ;;  %v8073_v25 = vpop.f32.mrf.mxu0 }
 0x288   : > { %3840 = vst [vmem:[#allocation3 + $0x2cc] sm:$0xf] %v3746_v9  ;;  %3841 = vst [vmem:[#allocation3 + $0x2f0] sm:$0xf] %v3750_v5  ;;  %v2791_v17 = vld [vmem:[#allocation2 + $0xb8] sm:$0xf] }
 0x289   : > { %v7282_v9 = vrot.slane %v2790_v13, 9  ;;  %v11257_v36 = vld [vmem:[#allocation2 + $0xbc] sm:$0x1]  ;;  %v2944_v5 = vrot.slane %v2791_v17, 5  ;;  %12660 = vst [vmem:[#allocation72_spill] sm:$0xff] %v11259_v16  ;;  %v11261_v29 = vrot.slane %v2637_v60, 4 }
 0x28a   : > { %v2792_v59 = vld [vmem:[#allocation2 + $0xbc] sm:$0x1]  ;;  %v11263_v27 = vrot.slane %v2640_v41, 5  ;;  %v3766_v1 = vrot.slane %v3619_v38, 5  ;;  %v7297_v31 = vrot.slane %v11239_v32, 9  ;;  %v1834_v11 = vshll.u32 %v11245_v47, 16  ;;  %v8074_v32 = vpop.f32.mrf.mxu0 }
 0x28b   : > { %v2295_v35 = vld [vmem:[#allocation2 + $0xb8] sm:$0xf]  ;;  %v1838_v49 = vshrl.u32 %v11245_v47, 16  ;;  %v2946_v13 = vrot.slane %v2944_v5, 4  ;;  %v2947_v12 = vrot.slane %v2792_v59, 5  ;;  %v2945_v38 = vsel %vm9530_vm3, %v7282_v9, %v2944_v5  ;;  %v12663_v5 = vld [vmem:[#allocation59_spill] sm:$0xff] }
 0x28c   : > { %v3621_v7 = vld [vmem:[#allocation2 + $0xb8] sm:$0xf]  ;;  %v3622_v61 = vld [vmem:[#allocation2 + $0xbc] sm:$0x1]  ;;  %v2646_v16 = vshll.u32 %v2295_v35, 16  ;;  %v2650_v45 = vshrl.u32 %v2295_v35, 16 }
 0x28d   : > { %v3770_v41 = vrot.slane %v3621_v7, 5  ;;  %v8815_v17 = vld [vmem:[#allocation3 + $0x364] ss:$36 sps:$4 sm:$0xff]   ;;  %v3773_v47 = vrot.slane %v3622_v61, 5  ;;  %v2948_v59 = vsel %vm9530_vm3, %v2946_v13, %v2947_v12  ;;  %3016 = vst [vmem:[#allocation3 + $0x404] sm:$0xf] %v2945_v38  ;;  %v11277_v7 = vadd.f32 %v8074_v32, %v8073_v25 }
 0x28e   : > { %v11273_v54 = vld [vmem:[#allocation2 + $0xbc] sm:$0x1]  ;;  %v8817_v37 = vld [vmem:[#allocation3 + $0x328] ss:$36 sps:$4 sm:$0xff]   ;;  %5460 = vmatprep.mubr.bf16.mxu1 %v8815_v17  ;;  %3017 = vst [vmem:[#allocation3 + $0x428] sm:$0xf] %v2948_v59  ;;  %v2619_v13 = vor.u32 %v11198_v53, %v11194_v10 }
 0x28f   : > { %v3772_v39 = vrot.slane %v3770_v41, 4  ;;  %v8819_v60 = vld [vmem:[#allocation3 + $0x32c] ss:$36 sps:$4 sm:$0xff]   ;;  %v8820_v43 = vld [vmem:[#allocation3 + $0x360] ss:$36 sps:$4 sm:$0xff]   ;;  %v12662_v9 = vrot.slane %v12661_v8, 5 }
 0x290   : > { %v12664_v35 = vrot.slane %v11045_v15, 5  ;;  %v12665_v61 = vld [vmem:[#allocation61_spill] sm:$0xff]  ;;  %v2297_v17 = vld [vmem:[#allocation2 + $0xc0] sm:$0xf]  ;;  %v2298_v38 = vld [vmem:[#allocation2 + $0xc4] sm:$0xf]  ;;  %5774 = vmatprep.mubr.bf16.mxu0 %v8819_v60  ;;  %5461 = vmatmul.mubr.bf16.gmra.mxu1 %v8820_v43 }
 0x291   : > { %v3753_v63 = vsel %vm9530_vm3, %v12663_v5, %v12662_v9  ;;  %v12666_v57 = vrot.slane %v12665_v61, 9  ;;  %v2793_v25 = vld [vmem:[#allocation2 + $0xc0] sm:$0xe]  ;;  %v12667_v8 = vrot.slane %v11057_v42, 5  ;;  %v12668_v15 = vrot.slane %v11167_v55, 5  ;;  %5775 = vmatmul.mubr.bf16.gmra.mxu0 %v8817_v37 }
 0x292   : > { %3842 = vst [vmem:[#allocation3 + $0x314] sm:$0xf] %v3753_v63  ;;  %v12669_v59 = vrot.slane %v11196_v28, 9  ;;  %v3767_v9 = vsel %vm9530_vm3, %v11209_v51, %v3766_v1  ;;  %v2661_v63 = vshrl.u32 %v2297_v17, 16  ;;  %v2664_v42 = vshll.u32 %v2297_v17, 16 }
 0x293   : > { %v3757_v12 = vsel %vm9530_vm3, %v12666_v57, %v12664_v35  ;;  %v3760_v32 = vsel %vm9530_vm3, %v11146_v20, %v12667_v8  ;;  %v2670_v5 = vshll.u32 %v2298_v38, 16  ;;  %v2674_v35 = vshrl.u32 %v2298_v38, 16  ;;  %v2794_v61 = vld [vmem:[#allocation2 + $0xc4] sm:$0xf]  ;;  %3846 = vst [vmem:[#allocation3 + $0x3a4] sm:$0xf] %v3767_v9 }
 0x294   : > { %3843 = vst [vmem:[#allocation3 + $0x338] sm:$0xf] %v3757_v12  ;;  %v3764_v57 = vsel %vm9530_vm3, %v12669_v59, %v12668_v15  ;;  %3844 = vst [vmem:[#allocation3 + $0x35c] sm:$0xf] %v3760_v32  ;;  %v11306_v20 = vrot.slane %v1834_v11, 5  ;;  %v11308_v55 = vrot.slane %v1838_v49, 4  ;;  %v3771_v51 = vsel %vm9530_vm3, %v7297_v31, %v3770_v41  ;;  %v11327_v41 = vpop.f32.mrf.mxu1 }
 0x295   : > { %3845 = vst [vmem:[#allocation3 + $0x380] sm:$0xf] %v3764_v57  ;;  %v11310_v28 = vld [vmem:[#allocation2 + $0xb8] sm:$0xf]  ;;  %v3774_v43 = vsel %vm9530_vm3, %v3772_v39, %v3773_v47  ;;  %v11316_v1 = vrot.slane %v2646_v16, 5  ;;  %v2656_v60 = vshll.u32 %v11273_v54, 16  ;;  %v2629_v16 = vor.u32 %v11204_v4, %v11202_v23 }
 0x296   : > { %v7283_v12 = vrot.slane %v2793_v25, 9  ;;  %v2951_v17 = vrot.slane %v2794_v61, 5  ;;  %v3623_v38 = vld [vmem:[#allocation2 + $0xc0] sm:$0xe]  ;;  %3847 = vst [vmem:[#allocation3 + $0x3c8] sm:$0xf] %v3771_v51  ;;  %v1831_v54 = vor.u32 %v11241_v26, %v11237_v52  ;;  %v2643_v25 = vor.u32 %v11263_v27, %v11261_v29 }
 0x297   : > { %3848 = vst [vmem:[#allocation3 + $0x3ec] sm:$0xf] %v3774_v43  ;;  %v11319_v11 = vrot.slane %v2650_v45, 4  ;;  %v11321_v49 = vrot.slane %v2661_v63, 4  ;;  %v11323_v37 = vrot.slane %v2664_v42, 5  ;;  %v11325_v8 = vrot.slane %v2670_v5, 5 }
 0x298   : > { %v3624_v31 = vld [vmem:[#allocation2 + $0xc4] sm:$0xf]  ;;  %v11333_v39 = vrot.slane %v2674_v35, 4  ;;  %v7298_v47 = vrot.slane %v3623_v38, 9  ;;  %v12670_v32 = vshll.u32 %v11257_v36, 16  ;;  %v2118_v59 = vrot.slane %v11310_v28, 5  ;;  %v11360_v38 = vpop.f32.mrf.mxu1 }
 0x299   : > { %v8821_v45 = vld [vmem:[#allocation3 + $0x3ac] ss:$36 sps:$4 sm:$0xff]   ;;  %v3777_v57 = vrot.slane %v3624_v31, 5  ;;  %v1841_v4 = vor.u32 %v11308_v55, %v11306_v20  ;;  %v8826_v52 = vld [vmem:[#allocation3 + $0x374] ss:$36 sps:$4 sm:$0xff]   ;;  %v976_v63 = vmax.f32 %v11249_v24, 0.0  ;;  %v2952_v42 = vsel %vm9530_vm3, %v7283_v12, %v2951_v17 }
 0x29a   : > { %v11339_v15 = vrot.slane %v12670_v32, 5  ;;  %v8824_v9 = vld [vmem:[#allocation3 + $0x370] ss:$36 sps:$4 sm:$0xff]   ;;  %5468 = vmatprep.mubr.bf16.mxu1 %v8821_v45  ;;  %v8827_v26 = vld [vmem:[#allocation3 + $0x3a8] ss:$36 sps:$4 sm:$0xff]   ;;  %v12671_v27 = vld [vmem:[#allocation85_spill] sm:$0xff]  ;;  %v2653_v61 = vor.u32 %v11319_v11, %v11316_v1  ;;  %v2667_v31 = vor.u32 %v11323_v37, %v11321_v49  ;;  %v2677_v11 = vor.u32 %v11333_v39, %v11325_v8  ;;  %5782 = vmatprep.mubr.bf16.mxu0 %v8826_v52  ;;  %v7858_v49 = vpop.f32.mrf.mxu1  ;;  %v8076_v37 = vpop.f32.mrf.mxu0 }
 0x29b   : > { %v12672_v29 = vrot.slane %v12671_v27, 5  ;;  %v12673_v36 = vld [vmem:[#allocation78_spill] sm:$0xff]  ;;  %v11355_v51 = vrot.slane %v2656_v60, 5  ;;  %v2299_v55 = vld [vmem:[#allocation2 + $0xc8] sm:$0x1]  ;;  %v977_v24 = vmax.f32 %v11253_v40, 0.0  ;;  %v3778_v12 = vsel %vm9530_vm3, %v7298_v47, %v3777_v57  ;;  %5469 = vmatmul.mubr.bf16.gmra.mxu1 %v8827_v26  ;;  %5783 = vmatmul.mubr.bf16.gmra.mxu0 %v8824_v9 }
 0x29c   : > { %v12674_v5 = vrot.slane %v12673_v36, 9  ;;  %v11357_v43 = vld [vmem:[#allocation2 + $0xc8] sm:$0x1]  ;;  %3018 = vst [vmem:[#allocation3 + $0x44c] sm:$0xf] %v2952_v42  ;;  %v2953_v60 = vrot.slane %v2951_v17, 4  ;;  %v1048_v32 = vmul.f32 %v9510_v18, %v976_v63  ;;  %v12675_v47 = vor.u32 %v11174_v62, %v11160_v22 }
 0x29d   : > { %v2680_v45 = vshll.u32 %v2299_v55, 16  ;;  %3849 = vst [vmem:[#allocation3 + $0x410] sm:$0xf] %v3778_v12  ;;  %v11368_v40 = vld [vmem:[#allocation2 + $0xc8] sm:$0x1]  ;;  %v1049_v42 = vmul.f32 %v9519_v30, %v977_v24  ;;  %v12678_v17 = vld [vmem:[#allocation91_spill] sm:$0xff]  ;;  %v12679_v18 = vor.u32 %v11192_v3, %v11176_v46  ;;  %v8077_v55 = vpop.f32.mrf.mxu0 }
 0x29e   : > { %v2077_v35 = vsel %vm9530_vm3, %v12674_v5, %v12672_v29  ;;  %v1808_v27 = vrot.slane %v12675_v47, 4  ;;  %v12676_v29 = vld [vmem:[#allocation87_spill] sm:$0xff]  ;;  %v11380_v26 = vrot.slane %v3777_v57, 4  ;;  %v2954_v36 = vrot.slane %v11357_v43, 5  ;;  %v1379_v63 = vld [vmem:[#allocation2 + $0xb4] sm:$0xf] }
 0x29f   : > { %2173 = vst [vmem:[#allocation3 + $0x290] sm:$0xf] %v2077_v35  ;;  %v12677_v39 = vrot.slane %v12676_v29, 5  ;;  %v2682_v9 = vrot.slane %v2680_v45, 5  ;;  %v1818_v30 = vrot.slane %v12679_v18, 4  ;;  %v3780_v22 = vrot.slane %v11368_v40, 5  ;;  %v7859_v40 = vpop.f32.mrf.mxu1 }
 0x2a0   : > { %v7767_v62 = vpack.c.bf16 %v1049_v42, %v1048_v32  ;;  %v1813_v5 = vsel %vm9542_vm6, %v1808_v27, %v11176_v46  ;;  %v2620_v57 = vrot.slane %v2619_v13, 4  ;;  %v1380_v35 = vld [vmem:[#allocation2 + $0xb8] sm:$0xf]  ;;  %1411 = vst [vmem:[#allocation3 + $0x438] sm:$0xf] %v1379_v63  ;;  %v2630_v43 = vrot.slane %v2629_v16, 4  ;;  %v8079_v32 = vpop.f32.mrf.mxu0 }
 0x2a1   : > { %v2080_v52 = vsel %vm9530_vm3, %v12678_v17, %v12677_v39  ;;  %v1823_v3 = vsel %vm9542_vm6, %v1818_v30, %v11211_v14  ;;  %1908 = vst [vmem:[#allocation3 + $0x3f4] sm:$0xf] %v1813_v5  ;;  %1412 = vst [vmem:[#allocation3 + $0x45c] sm:$0xf] %v1380_v35  ;;  %v1832_v24 = vrot.slane %v1831_v54, 4  ;;  %v1842_v12 = vrot.slane %v1841_v4, 4 }
 0x2a2   : > { %2174 = vst [vmem:[#allocation3 + $0x2b4] sm:$0xf] %v2080_v52  ;;  %v11396_v45 = vld [vmem:[#allocation2 + $0xb0] sm:$0x1]  ;;  %7794 = vst [vmem:[#allocation2 + $0xd0] sm:$0xff] %v7767_v62   ;;  %v2625_v46 = vsel %vm9542_vm6, %v2620_v57, %v11202_v23  ;;  %v2644_v10 = vrot.slane %v2643_v25, 4  ;;  %v2635_v14 = vsel %vm9542_vm6, %v2630_v43, %v11243_v33  ;;  %v3781_v39 = vsel %vm9530_vm3, %v11380_v26, %v3780_v22 }
 0x2a3   : > { %1909 = vst [vmem:[#allocation3 + $0x418] sm:$0xf] %v1823_v3  ;;  %v2654_v53 = vrot.slane %v2653_v61, 4  ;;  %v2668_v13 = vrot.slane %v2667_v31, 4  ;;  %1347 = vst [vmem:[#allocation2 + $0xd0] sm:$0xf] %v12647_v44  ;;  %v1837_v16 = vsel %vm9542_vm6, %v1832_v24, %v11306_v20  ;;  %v1847_v23 = vsel %vm9542_vm6, %v1842_v12, %v11339_v15  ;;  %v8080_v61 = vpop.f32.mrf.mxu0 }
 0x2a4   : > { %1348 = vst [vmem:[#allocation2 + $0xd4] sm:$0xf] %v12647_v44  ;;  %2742 = vst [vmem:[#allocation3 + $0x3b8] sm:$0xf] %v2625_v46  ;;  %v2678_v54 = vrot.slane %v2677_v11, 4  ;;  %v2649_v44 = vsel %vm9542_vm6, %v2644_v10, %v11316_v1  ;;  %v2955_v15 = vsel %vm9530_vm3, %v2953_v60, %v2954_v36  ;;  %v2114_v11 = vrot.slane %v11396_v45, 5 }
 0x2a5   : > { %v2196_v25 = vld [vmem:[#allocation2 + $0x3c] sm:$0xf]  ;;  %2743 = vst [vmem:[#allocation3 + $0x3dc] sm:$0xf] %v2635_v14  ;;  %1910 = vst [vmem:[#allocation3 + $0x43c] sm:$0xf] %v1837_v16  ;;  %v2659_v33 = vsel %vm9542_vm6, %v2654_v53, %v11355_v51  ;;  %v2673_v20 = vsel %vm9542_vm6, %v2668_v13, %v11325_v8  ;;  %v11428_v51 = vadd.f32 %v7859_v40, %v7858_v49 }
 0x2a6   : > { %1911 = vst [vmem:[#allocation3 + $0x460] sm:$0xf] %v1847_v23  ;;  %v2197_v4 = vld [vmem:[#allocation2 + $0x40] sm:$0xf]  ;;  %2228 = vst [vmem:[#allocation3 + $0x12c] sm:$0xf] %v2196_v25  ;;  %v2683_v1 = vsel %vm9542_vm6, %v2678_v54, %v2682_v9  ;;  %v11430_v8 = vadd.f32 %v8077_v55, %v8076_v37  ;;  %v11434_v29 = vadd.f32 %v8080_v61, %v8079_v32 }
 0x2a7   : > { %v11423_v31 = vld [vmem:[#allocation2 + $0xb4] sm:$0xe]  ;;  %2744 = vst [vmem:[#allocation3 + $0x400] sm:$0xf] %v2649_v44  ;;  %2745 = vst [vmem:[#allocation3 + $0x424] sm:$0xf] %v2659_v33 }
 0x2a8   : > { %2746 = vst [vmem:[#allocation3 + $0x448] sm:$0xf] %v2673_v20  ;;  %3019 = vst [vmem:[#allocation3 + $0x470] sm:$0xf] %v2955_v15  ;;  %v11432_v60 = vld [vmem:[#allocation2 + $0x78] sm:$0xf] }
 0x2a9   : > { %2229 = vst [vmem:[#allocation3 + $0x150] sm:$0xf] %v2197_v4  ;;  %v1959_v42 = vld [vmem:[#allocation2 + $0xbc] sm:$0x1]  ;;  %2747 = vst [vmem:[#allocation3 + $0x46c] sm:$0xf] %v2683_v1 }
 0x2aa   : > { %v2198_v47 = vld [vmem:[#allocation2 + $0x48] sm:$0xf]  ;;  %v2199_v27 = vld [vmem:[#allocation2 + $0x4c] sm:$0xf]  ;;  %v12680_v17 = vld [vmem:[#allocation90_spill] sm:$0xff]  ;;  %v12687_v62 = vrot.slane %v11115_v6, 5 }
 0x2ab   : > { %v12681_v52 = vrot.slane %v12680_v17, 5  ;;  %v12682_v9 = vld [vmem:[#allocation35_spill] sm:$0xff]  ;;  %v12686_v30 = vld [vmem:[#allocation34_spill] sm:$0xff]  ;;  %v2120_v57 = vrot.slane %v2118_v59, 4  ;;  %2230 = vst [vmem:[#allocation3 + $0x174] sm:$0xf] %v2198_v47 }
 0x2ac   : > { %v12683_v36 = vrot.slane %v12682_v9, 9  ;;  %v12684_v37 = vld [vmem:[#allocation39_spill] sm:$0xff]  ;;  %v2113_v5 = vrot.slane %v12687_v62, 4  ;;  %2231 = vst [vmem:[#allocation3 + $0x198] sm:$0xf] %v2199_v27  ;;  %v12688_v26 = vld [vmem:[#allocation65_spill] sm:$0xff]  ;;  %v11489_v9 = vpop.f32.mrf.mxu1 }
 0x2ad   : > { %v12685_v18 = vrot.slane %v12684_v37, 5  ;;  %3850 = vst [vmem:[#allocation3 + $0x434] sm:$0xf] %v3781_v39  ;;  %v12689_v22 = vrot.slane %v12688_v26, 5  ;;  %v12690_v35 = vld [vmem:[#allocation28_spill] sm:$0xff]  ;;  %v12692_v43 = vld [vmem:[#allocation70_spill] sm:$0xff] }
 0x2ae   : > { %v2084_v49 = vsel %vm9530_vm3, %v12683_v36, %v12681_v52  ;;  %v12691_v55 = vrot.slane %v12690_v35, 9  ;;  %v12693_v24 = vrot.slane %v12692_v43, 5  ;;  %v12694_v12 = vld [vmem:[#allocation45_spill] sm:$0xff]  ;;  %v12695_v46 = vld [vmem:[#allocation47_spill] sm:$0xff]  ;;  %v12697_v53 = vld [vmem:[#allocation46_spill] sm:$0xff]  ;;  %v12711_v36 = vmov %v12687_v62  ;;  %v11542_v28 = vpop.f32.mrf.mxu1 }
 0x2af   : > { %v2087_v63 = vsel %vm9530_vm3, %v12686_v30, %v12685_v18  ;;  %2175 = vst [vmem:[#allocation3 + $0x2d8] sm:$0xf] %v2084_v49  ;;  %v12696_v10 = vrot.slane %v12695_v46, 5  ;;  %v12698_v13 = vrot.slane %v12697_v53, 9  ;;  %v12699_v32 = vld [vmem:[#allocation48_spill] sm:$0xff]  ;;  %v12702_v54 = vld [vmem:[#allocation63_spill] sm:$0xff]  ;;  %v2115_v18 = vsel %vm9530_vm3, %v2113_v5, %v2114_v11 }
 0x2b0   : > { %2176 = vst [vmem:[#allocation3 + $0x2fc] sm:$0xf] %v2087_v63  ;;  %v2091_v3 = vsel %vm9530_vm3, %v12691_v55, %v12689_v22  ;;  %v2094_v45 = vsel %vm9530_vm3, %v12694_v12, %v12693_v24  ;;  %v12700_v14 = vrot.slane %v12699_v32, 5  ;;  %v12701_v16 = vld [vmem:[#allocation52_spill] sm:$0xff]  ;;  %v12703_v25 = vrot.slane %v12702_v54, 5  ;;  %v12706_v15 = vld [vmem:[#allocation67_spill] sm:$0xff]  ;;  %v8082_v24 = vpop.f32.mrf.mxu0 }
 0x2b1   : > { %2177 = vst [vmem:[#allocation3 + $0x320] sm:$0xf] %v2091_v3  ;;  %2178 = vst [vmem:[#allocation3 + $0x344] sm:$0xf] %v2094_v45  ;;  %v2098_v40 = vsel %vm9530_vm3, %v12698_v13, %v12696_v10  ;;  %v12704_v44 = vld [vmem:[#allocation56_spill] sm:$0xff]  ;;  %v12707_v4 = vrot.slane %v12706_v15, 5  ;;  %v12713_v30 = vor.u32 %v12640_v2, %v12639_v58 }
 0x2b2   : > { %v2101_v23 = vsel %vm9530_vm3, %v12701_v16, %v12700_v14  ;;  %v12705_v33 = vrot.slane %v12704_v44, 9  ;;  %v12708_v61 = vld [vmem:[#allocation66_spill] sm:$0xff]  ;;  %v12710_v27 = vld [vmem:[#allocation51_spill] sm:$0xff]  ;;  %v8829_v17 = vld [vmem:[#allocation3 + $0x3f4] ss:$36 sps:$4 sm:$0xff]   ;;  %v12712_v49 = vrot.slane %v11113_v19, 9  ;;  %v8083_v53 = vpop.f32.mrf.mxu0 }
 0x2b3   : > { %v2108_v1 = vsel %vm9530_vm3, %v12708_v61, %v12707_v4  ;;  %v12709_v47 = vld [vmem:[#allocation50_spill] sm:$0xff]  ;;  %v8834_v52 = vld [vmem:[#allocation3 + $0x3f0] ss:$36 sps:$4 sm:$0xff]   ;;  %2179 = vst [vmem:[#allocation3 + $0x368] sm:$0xf] %v2098_v40  ;;  %v3141_v63 = vrot.slane %v12713_v30, 4  ;;  %5476 = vmatprep.mubr.bf16.mxu1 %v8829_v17  ;;  %v11544_v44 = vadd.f32 %v8083_v53, %v8082_v24  ;;  %v12728_v17 = vor.u32 %v12644_v48, %v12643_v34 }
 0x2b4   : > { %v2105_v20 = vsel %vm9530_vm3, %v12705_v33, %v12703_v25  ;;  %v3212_v39 = vor.u32 %v12710_v27, %v12709_v47  ;;  %2180 = vst [vmem:[#allocation3 + $0x38c] sm:$0xf] %v2101_v23  ;;  %2182 = vst [vmem:[#allocation3 + $0x3d4] sm:$0xf] %v2108_v1  ;;  %v2112_v37 = vsel %vm9530_vm3, %v12712_v49, %v12711_v36  ;;  %v12714_v62 = vld [vmem:[#allocation79_spill] sm:$0xff]  ;;  %v12716_v35 = vld [vmem:[#allocation80_spill] sm:$0xff]  ;;  %5477 = vmatmul.mubr.bf16.gmra.mxu1 %v8834_v52  ;;  %v8085_v1 = vpop.f32.mrf.mxu0 }
 0x2b5   : > { %2181 = vst [vmem:[#allocation3 + $0x3b0] sm:$0xf] %v2105_v20  ;;  %v12715_v26 = vshll.u32 %v12714_v62, 16  ;;  %v12717_v55 = vshrl.u32 %v12716_v35, 16  ;;  %v11510_v6 = vld [vmem:[#allocation2 + $0x7c] sm:$0xf]  ;;  %v12729_v36 = vor.u32 %v12646_v0, %v12645_v56 }
 0x2b6   : > { %v7267_v19 = vrot.slane %v11423_v31, 9  ;;  %v2121_v43 = vrot.slane %v1959_v42, 5  ;;  %2183 = vst [vmem:[#allocation3 + $0x3f8] sm:$0xf] %v2112_v37  ;;  %2184 = vst [vmem:[#allocation3 + $0x41c] sm:$0xf] %v2115_v18  ;;  %v8086_v48 = vpop.f32.mrf.mxu0 }
 0x2b7   : > { %v11504_v22 = vrot.slane %v12715_v26, 5  ;;  %v11508_v3 = vrot.slane %v12717_v55, 4  ;;  %v12718_v11 = vshll.u32 %v12716_v35, 16  ;;  %v12719_v2 = vld [vmem:[#allocation88_spill] sm:$0xff]  ;;  %v3326_v45 = vshrl.u32 %v11432_v60, 16  ;;  %v12722_v32 = vld [vmem:[#allocation89_spill] sm:$0xff]  ;;  %v7864_v35 = vpop.f32.mrf.mxu1 }
 0x2b8   : > { %v12720_v5 = vshll.u32 %v12719_v2, 16  ;;  %v3329_v46 = vshll.u32 %v11432_v60, 16  ;;  %v12721_v10 = vshrl.u32 %v12719_v2, 16  ;;  %v8831_v42 = vld [vmem:[#allocation3 + $0x3b8] ss:$36 sps:$4 sm:$0xff]   ;;  %v2119_v13 = vsel %vm9530_vm3, %v7267_v19, %v2118_v59  ;;  %v12726_v20 = vld [vmem:[#allocation58_spill] sm:$0xff] }
 0x2b9   : > { %v11515_v58 = vrot.slane %v12718_v11, 5  ;;  %v2122_v40 = vsel %vm9530_vm3, %v2120_v57, %v2121_v43  ;;  %v3146_v60 = vsel %vm9542_vm6, %v3141_v63, %v12643_v34  ;;  %v12723_v14 = vshll.u32 %v12722_v32, 16  ;;  %v8833_v25 = vld [vmem:[#allocation3 + $0x3bc] ss:$36 sps:$4 sm:$0xff]   ;;  %2185 = vst [vmem:[#allocation3 + $0x440] sm:$0xf] %v2119_v13  ;;  %v7865_v32 = vpop.f32.mrf.mxu1 }
 0x2ba   : > { %v11519_v12 = vrot.slane %v12720_v5, 5  ;;  %v11525_v31 = vrot.slane %v12721_v10, 4  ;;  %v3335_v23 = vshll.u32 %v11510_v6, 16  ;;  %v3339_v54 = vshrl.u32 %v11510_v6, 16  ;;  %2186 = vst [vmem:[#allocation3 + $0x464] sm:$0xf] %v2122_v40  ;;  %5790 = vmatprep.mubr.bf16.mxu0 %v8833_v25 }
 0x2bb   : > { %v11538_v16 = vrot.slane %v12723_v14, 5  ;;  %3549 = vst [vmem:[#allocation3 + $0x1c] sm:$0xf] %v3146_v60  ;;  %v12724_v59 = vld [vmem:[#allocation53_spill] sm:$0xff]  ;;  %v12725_v57 = vld [vmem:[#allocation54_spill] sm:$0xff]  ;;  %v3151_v52 = vrot.slane %v12728_v17, 4  ;;  %5791 = vmatmul.mubr.bf16.gmra.mxu0 %v8831_v42  ;;  %v11579_v14 = vadd.f32 %v8086_v48, %v8085_v1  ;;  %v11587_v17 = vadd.f32 %v7865_v32, %v7864_v35 }
 0x2bc   : > { %v3222_v33 = vor.u32 %v12725_v57, %v12724_v59  ;;  %v12727_v15 = vld [vmem:[#allocation21_spill] sm:$0xff]  ;;  %v3165_v49 = vrot.slane %v12729_v36, 4  ;;  %v12730_v37 = vld [vmem:[#allocation22_spill] sm:$0xff]  ;;  %v12731_v18 = vld [vmem:[#allocation40_spill] sm:$0xff]  ;;  %v11558_v63 = vrot.slane %v3326_v45, 4  ;;  %v11560_v62 = vrot.slane %v3329_v46, 5 }
 0x2bd   : > { %v3236_v4 = vor.u32 %v12727_v15, %v12726_v20  ;;  %v8840_v61 = vld [vmem:[#allocation3 + $0x43c] ss:$36 sps:$4 sm:$0xff]   ;;  %v3246_v30 = vor.u32 %v12731_v18, %v12730_v37  ;;  %v8844_v26 = vld [vmem:[#allocation3 + $0x404] ss:$36 sps:$4 sm:$0xff]   ;;  %v12733_v19 = vld [vmem:[#allocation36_spill] sm:$0xff]  ;;  %v11577_v42 = vrot.slane %v3335_v23, 5 }
 0x2be   : > { %v12732_v55 = vld [vmem:[#allocation37_spill] sm:$0xff]  ;;  %5484 = vmatprep.mubr.bf16.mxu1 %v8840_v61  ;;  %v12735_v56 = vld [vmem:[#allocation30_spill] sm:$0xff]  ;;  %v3170_v11 = vsel %vm9542_vm6, %v3165_v49, %v12733_v19  ;;  %v12739_v10 = vld [vmem:[#allocation44_spill] sm:$0xff]  ;;  %5798 = vmatprep.mubr.bf16.mxu0 %v8844_v26  ;;  %v3213_v20 = vrot.slane %v3212_v39, 4  ;;  %v3223_v36 = vrot.slane %v3222_v33, 4 }
 0x2bf   : > { %v12734_v43 = vor.u32 %v12732_v55, %v12733_v19  ;;  %v8845_v34 = vld [vmem:[#allocation3 + $0x438] ss:$36 sps:$4 sm:$0xff]   ;;  %v3156_v0 = vsel %vm9542_vm6, %v3151_v52, %v12735_v56  ;;  %v12736_v2 = vld [vmem:[#allocation42_spill] sm:$0xff]  ;;  %v12740_v53 = vld [vmem:[#allocation43_spill] sm:$0xff]  ;;  %3551 = vst [vmem:[#allocation3 + $0x64] sm:$0xf] %v3170_v11 }
 0x2c0   : > { %v12737_v5 = vld [vmem:[#allocation41_spill] sm:$0xff]  ;;  %v12741_v13 = vor.u32 %v12739_v10, %v12740_v53  ;;  %v8849_v60 = vld [vmem:[#allocation3 + $0xc] ss:$36 sps:$4 sm:$0xff]   ;;  %3550 = vst [vmem:[#allocation3 + $0x40] sm:$0xf] %v3156_v0  ;;  %v12742_v25 = vld [vmem:[#allocation38_spill] sm:$0xff]  ;;  %v3218_v47 = vsel %vm9542_vm6, %v3213_v20, %v12724_v59  ;;  %5485 = vmatmul.mubr.bf16.gmra.mxu1 %v8845_v34 }
 0x2c1   : > { %v3175_v24 = vrot.slane %v12734_v43, 4  ;;  %v12738_v45 = vor.u32 %v12736_v2, %v12737_v5  ;;  %v3111_v15 = vld [vmem:[#allocation2 + $0x80] sm:$0x1]  ;;  %v3112_v61 = vld [vmem:[#allocation2 + $0x84] sm:$0xf]  ;;  %v12743_v1 = vld [vmem:[#allocation49_spill] sm:$0xff]  ;;  %5525 = vmatprep.mubr.bf16.mxu1 %v8849_v60 }
 0x2c2   : > { %v3199_v40 = vrot.slane %v12741_v13, 4  ;;  %v3113_v49 = vld [vmem:[#allocation2 + $0x88] sm:$0xf]  ;;  %v3237_v27 = vrot.slane %v3236_v4, 4  ;;  %v3247_v39 = vrot.slane %v3246_v30, 4  ;;  %v12744_v55 = vld [vmem:[#allocation55_spill] sm:$0xff] }
 0x2c3   : > { %v3189_v46 = vrot.slane %v12738_v45, 4  ;;  %v3180_v57 = vsel %vm9542_vm6, %v3175_v24, %v12742_v25  ;;  %v8842_v18 = vld [vmem:[#allocation3 + $0x400] ss:$36 sps:$4 sm:$0xff]   ;;  %v8858_v26 = vld [vmem:[#allocation3 + $0x44c] ss:$36 sps:$4 sm:$0xff]   ;;  %v3228_v19 = vsel %vm9542_vm6, %v3223_v36, %v12744_v55  ;;  %v12745_v59 = vld [vmem:[#allocation29_spill] sm:$0xff] }
 0x2c4   : > { %3552 = vst [vmem:[#allocation3 + $0x88] sm:$0xf] %v3180_v57  ;;  %v3204_v52 = vsel %vm9542_vm6, %v3199_v40, %v12743_v1  ;;  %v2200_v35 = vld [vmem:[#allocation2 + $0x54] sm:$0xf]  ;;  %3555 = vst [vmem:[#allocation3 + $0xf4] sm:$0xf] %v3218_v47  ;;  %v3242_v43 = vsel %vm9542_vm6, %v3237_v27, %v12730_v37  ;;  %v3252_v4 = vsel %vm9542_vm6, %v3247_v39, %v12745_v59  ;;  %5799 = vmatmul.mubr.bf16.gmra.mxu0 %v8842_v18 }
 0x2c5   : > { %v3194_v23 = vsel %vm9542_vm6, %v3189_v46, %v12740_v53  ;;  %3554 = vst [vmem:[#allocation3 + $0xd0] sm:$0xf] %v3204_v52  ;;  %v2201_v33 = vld [vmem:[#allocation2 + $0x58] sm:$0xf]  ;;  %2232 = vst [vmem:[#allocation3 + $0x1bc] sm:$0xf] %v2200_v35  ;;  %5806 = vmatprep.mubr.bf16.mxu0 %v8858_v26  ;;  %v3308_v1 = vor.u32 %v11515_v58, %v11508_v3  ;;  %v3332_v47 = vor.u32 %v11560_v62, %v11558_v63 }
 0x2c6   : > { %3553 = vst [vmem:[#allocation3 + $0xac] sm:$0xf] %v3194_v23  ;;  %3556 = vst [vmem:[#allocation3 + $0x118] sm:$0xf] %v3228_v19  ;;  %v11609_v30 = vrot.slane %v3339_v54, 4  ;;  %v3345_v24 = vshll.u32 %v3111_v15, 16 }
 0x2c7   : > { %2233 = vst [vmem:[#allocation3 + $0x1e0] sm:$0xf] %v2201_v33  ;;  %3557 = vst [vmem:[#allocation3 + $0x13c] sm:$0xf] %v3242_v43  ;;  %v3350_v34 = vshrl.u32 %v3112_v61, 16  ;;  %v3353_v48 = vshll.u32 %v3112_v61, 16 }
 0x2c8   : > { %3558 = vst [vmem:[#allocation3 + $0x160] sm:$0xf] %v3252_v4  ;;  %v2202_v56 = vld [vmem:[#allocation2 + $0x60] sm:$0xf]  ;;  %v2203_v0 = vld [vmem:[#allocation2 + $0x64] sm:$0xf] }
 0x2c9   : > { %v12746_v11 = vld [vmem:[#allocation33_spill] sm:$0xff]  ;;  %v12747_v2 = vld [vmem:[#allocation62_spill] sm:$0xff]  ;;  %v3359_v37 = vshll.u32 %v3113_v49, 16  ;;  %v8847_v45 = vld [vmem:[#allocation3 + $0x8] ss:$36 sps:$4 sm:$0xff]   ;;  %v3363_v53 = vshrl.u32 %v3113_v49, 16  ;;  %v3318_v49 = vor.u32 %v11525_v31, %v11519_v12  ;;  %v3342_v31 = vor.u32 %v11609_v30, %v11577_v42 }
 0x2ca   : > { %v3260_v5 = vor.u32 %v12747_v2, %v12746_v11  ;;  %v8852_v46 = vld [vmem:[#allocation9 + $0x1b8] sm:$0xff]   ;;  %2234 = vst [vmem:[#allocation3 + $0x204] sm:$0xf] %v2202_v56  ;;  %2235 = vst [vmem:[#allocation3 + $0x228] sm:$0xf] %v2203_v0  ;;  %v12748_v6 = vld [vmem:[#allocation64_spill] sm:$0xff]  ;;  %5526 = vmatmul.mubr.bf16.vlgmr.msra.gmra.mxu1 %v8847_v45 }
 0x2cb   : > { %v12749_v54 = vld [vmem:[#allocation68_spill] sm:$0xff]  ;;  %v8867_v40 = vld [vmem:[#allocation9 + $0x1f0] sm:$0xff]   ;;  %v12750_v60 = vld [vmem:[#allocation81_spill] sm:$0xff]  ;;  %v11621_v52 = vrot.slane %v3350_v34, 4  ;;  %v11623_v36 = vrot.slane %v3353_v48, 5  ;;  %v11629_v18 = vrot.slane %v3345_v24, 5  ;;  %8167 = vmatpush3.bf16.msra.mxu1 %v8852_v46 }
 0x2cc   : > { %v3270_v10 = vor.u32 %v12749_v54, %v12748_v6  ;;  %v8854_v13 = vld [vmem:[#allocation3 + $0x54] ss:$36 sps:$4 sm:$0xff]   ;;  %v12751_v32 = vld [vmem:[#allocation82_spill] sm:$0xff]  ;;  %v12752_v15 = vld [vmem:[#allocation83_spill] sm:$0xff]  ;;  %v3261_v39 = vrot.slane %v3260_v5, 4  ;;  %v11633_v3 = vrot.slane %v3359_v37, 5  ;;  %8168 = vmatprep.subr.bf16.mxu1 %v8867_v40 }
 0x2cd   : > { %v3284_v25 = vor.u32 %v12751_v32, %v12750_v60  ;;  %v2204_v57 = vld [vmem:[#allocation2 + $0x6c] sm:$0xf]  ;;  %v2205_v20 = vld [vmem:[#allocation2 + $0x70] sm:$0xf]  ;;  %v8856_v27 = vld [vmem:[#allocation3 + $0x448] ss:$36 sps:$4 sm:$0xff]   ;;  %5533 = vmatprep.mubr.bf16.mxu1 %v8854_v13  ;;  %v3356_v4 = vor.u32 %v11623_v36, %v11621_v52 }
 0x2ce   : > { %v12753_v61 = vld [vmem:[#allocation84_spill] sm:$0xff]  ;;  %2236 = vst [vmem:[#allocation3 + $0x24c] sm:$0xf] %v2204_v57  ;;  %2237 = vst [vmem:[#allocation3 + $0x270] sm:$0xf] %v2205_v20  ;;  %v11635_v58 = vrot.slane %v3363_v53, 4  ;;  %v3266_v43 = vsel %vm9542_vm6, %v3261_v39, %v12748_v6  ;;  %5807 = vmatmul.mubr.bf16.gmra.mxu0 %v8856_v27  ;;  %v11654_v6 = vpop.f32.mrf.mxu1 }
 0x2cf   : > { %v3294_v23 = vor.u32 %v12753_v61, %v12752_v15  ;;  %v11631_v26 = vld [vmem:[#allocation2 + $0x8c] sm:$0x1]  ;;  %v8860_v35 = vld [vmem:[#allocation3 + $0x20] ss:$36 sps:$4 sm:$0xff]   ;;  %v3271_v19 = vrot.slane %v3270_v10, 4  ;;  %v8879_v63 = vld [vmem:[#allocation9 + $0x1e8] sm:$0xff]  }
 0x2d0   : > { %v8869_v55 = vld [vmem:[#allocation9 + $0x1b0] sm:$0xff]   ;;  %v3285_v59 = vrot.slane %v3284_v25, 4  ;;  %v11644_v24 = vld [vmem:[#allocation2 + $0x90] sm:$0xf]  ;;  %3559 = vst [vmem:[#allocation3 + $0x184] sm:$0xf] %v3266_v43  ;;  %8466 = vmatprep.mubr.bf16.mxu0 %v8860_v35  ;;  %v3366_v60 = vor.u32 %v11635_v58, %v11633_v3 }
 0x2d1   : > { %v2206_v62 = vld [vmem:[#allocation2 + $0x78] sm:$0xf]  ;;  %v2207_v33 = vld [vmem:[#allocation2 + $0x7c] sm:$0xf]  ;;  %v12754_v34 = vld [vmem:[#allocation69_spill] sm:$0xff]  ;;  %v3295_v48 = vrot.slane %v3294_v23, 4  ;;  %8169 = vmatpush3.bf16.msra.mxu1 %v8869_v55 }
 0x2d2   : > { %2238 = vst [vmem:[#allocation3 + $0x294] sm:$0xf] %v2206_v62  ;;  %2239 = vst [vmem:[#allocation3 + $0x2b8] sm:$0xf] %v2207_v33  ;;  %v3276_v30 = vsel %vm9542_vm6, %v3271_v19, %v12754_v34  ;;  %v3309_v56 = vrot.slane %v3308_v1, 4  ;;  %v3290_v37 = vsel %vm9542_vm6, %v3285_v59, %v12752_v15  ;;  %v8881_v46 = vld [vmem:[#allocation9 + $0x1a8] sm:$0xff]   ;;  %8170 = vmatprep.subr.bf16.mxu1 %v8879_v63  ;;  %v8088_v34 = vpop.f32.mrf.mxu0 }
 0x2d3   : > { %v11649_v0 = vld [vmem:[#allocation2 + $0x94] sm:$0xf]  ;;  %v8861_v11 = vld [vmem:[#allocation3 + $0x50] ss:$36 sps:$4 sm:$0xff]   ;;  %v2208_v2 = vld [vmem:[#allocation2 + $0x84] sm:$0xf]  ;;  %v3300_v10 = vsel %vm9542_vm6, %v3295_v48, %v11504_v22 }
 0x2d4   : > { %v2209_v5 = vld [vmem:[#allocation2 + $0x88] sm:$0xf]  ;;  %3560 = vst [vmem:[#allocation3 + $0x1a8] sm:$0xf] %v3276_v30  ;;  %v8863_v45 = vld [vmem:[#allocation3 + $0x9c] ss:$36 sps:$4 sm:$0xff]   ;;  %v3314_v53 = vsel %vm9542_vm6, %v3309_v56, %v11519_v12  ;;  %5534 = vmatmul.mubr.bf16.gmra.mxu1 %v8861_v11 }
 0x2d5   : > { %2240 = vst [vmem:[#allocation3 + $0x2dc] sm:$0xf] %v2208_v2  ;;  %2241 = vst [vmem:[#allocation3 + $0x300] sm:$0xf] %v2209_v5  ;;  %v2210_v54 = vld [vmem:[#allocation2 + $0x90] sm:$0xf]  ;;  %5541 = vmatprep.mubr.bf16.mxu1 %v8863_v45  ;;  %8171 = vmatpush3.bf16.msra.mxu1 %v8881_v46  ;;  %v8089_v5 = vpop.f32.mrf.mxu0 }
 0x2d6   : > { %3561 = vst [vmem:[#allocation3 + $0x1cc] sm:$0xf] %v3290_v37  ;;  %v3319_v13 = vrot.slane %v3318_v49, 4  ;;  %v3333_v40 = vrot.slane %v3332_v47, 4  ;;  %v3369_v32 = vshll.u32 %v11631_v26, 16  ;;  %v3374_v25 = vshrl.u32 %v11644_v24, 16 }
 0x2d7   : > { %v8891_v57 = vld [vmem:[#allocation9 + $0x1e0] sm:$0xff]   ;;  %2242 = vst [vmem:[#allocation3 + $0x324] sm:$0xf] %v2210_v54  ;;  %3562 = vst [vmem:[#allocation3 + $0x1f0] sm:$0xf] %v3300_v10  ;;  %v3343_v22 = vrot.slane %v3342_v31, 4 }
 0x2d8   : > { %3563 = vst [vmem:[#allocation3 + $0x214] sm:$0xf] %v3314_v53  ;;  %v3377_v20 = vshll.u32 %v11644_v24, 16  ;;  %v2211_v15 = vld [vmem:[#allocation2 + $0x94] sm:$0xf]  ;;  %v3324_v12 = vsel %vm9542_vm6, %v3319_v13, %v11538_v16  ;;  %v3338_v23 = vsel %vm9542_vm6, %v3333_v40, %v11577_v42  ;;  %v3357_v1 = vrot.slane %v3356_v4, 4  ;;  %v11679_v42 = vpop.f32.mrf.mxu1  ;;  %8172 = vmatprep.subr.bf16.mxu1 %v8891_v57 }
 0x2d9   : > { %v2212_v61 = vld [vmem:[#allocation2 + $0x9c] sm:$0xf]  ;;  %v3383_v52 = vshll.u32 %v11649_v0, 16  ;;  %v11674_v36 = vld [vmem:[#allocation2 + $0x98] sm:$0x1]  ;;  %v8893_v47 = vld [vmem:[#allocation9 + $0x1a0] sm:$0xff]   ;;  %v3348_v16 = vsel %vm9542_vm6, %v3343_v22, %v11629_v18  ;;  %v11694_v40 = vadd.f32 %v8089_v5, %v8088_v34 }
 0x2da   : > { %v8865_v49 = vld [vmem:[#allocation3 + $0x68] ss:$36 sps:$4 sm:$0xff]   ;;  %2243 = vst [vmem:[#allocation3 + $0x348] sm:$0xf] %v2211_v15  ;;  %2244 = vst [vmem:[#allocation3 + $0x36c] sm:$0xf] %v2212_v61  ;;  %v3362_v55 = vsel %vm9542_vm6, %v3357_v1, %v11633_v3  ;;  %v7870_v33 = vpop.f32.mrf.mxu1  ;;  %8173 = vmatpush3.bf16.msra.mxu1 %v8893_v47 }
 0x2db   : > { %v2213_v27 = vld [vmem:[#allocation2 + $0xa0] sm:$0xf]  ;;  %3564 = vst [vmem:[#allocation3 + $0x238] sm:$0xf] %v3324_v12  ;;  %3565 = vst [vmem:[#allocation3 + $0x25c] sm:$0xf] %v3338_v23  ;;  %8467 = vmatmul.mubr.bf16.vlgmr.msra.gmra.mxu0 %v8865_v49 }
 0x2dc   : > { %v8866_v39 = vld [vmem:[#allocation3 + $0xb0] ss:$36 sps:$4 sm:$0xff]   ;;  %2245 = vst [vmem:[#allocation3 + $0x390] sm:$0xf] %v2213_v27  ;;  %v2216_v35 = vld [vmem:[#allocation2 + $0xb4] sm:$0xf]  ;;  %v7871_v48 = vpop.f32.mrf.mxu1 }
 0x2dd   : > { %v2214_v26 = vld [vmem:[#allocation2 + $0xa8] sm:$0xf]  ;;  %v2215_v58 = vld [vmem:[#allocation2 + $0xac] sm:$0xf]  ;;  %3566 = vst [vmem:[#allocation3 + $0x280] sm:$0xf] %v3348_v16  ;;  %8470 = vmatprep.mubr.bf16.mxu0 %v8866_v39  ;;  %v11692_v2 = vadd.f32 %v7871_v48, %v7870_v33 }
 0x2de   : > { %v3371_v19 = vrot.slane %v3369_v32, 5  ;;  %v8903_v31 = vld [vmem:[#allocation9 + $0x1d8] sm:$0xff]   ;;  %2246 = vst [vmem:[#allocation3 + $0x3b4] sm:$0xf] %v2214_v26  ;;  %2247 = vst [vmem:[#allocation3 + $0x3d8] sm:$0xf] %v2215_v58  ;;  %v8091_v32 = vpop.f32.mrf.mxu0 }
 0x2df   : > { %2248 = vst [vmem:[#allocation3 + $0x3fc] sm:$0xf] %v2216_v35  ;;  %3567 = vst [vmem:[#allocation3 + $0x2a4] sm:$0xf] %v3362_v55  ;;  %v3376_v18 = vrot.slane %v3374_v25, 4  ;;  %v3379_v63 = vrot.slane %v3377_v20, 5  ;;  %8174 = vmatprep.subr.bf16.mxu1 %v8903_v31 }
 0x2e0   : > { %v3387_v62 = vshrl.u32 %v11649_v0, 16  ;;  %v2217_v43 = vld [vmem:[#allocation2 + $0xb8] sm:$0xf]  ;;  %v3367_v59 = vrot.slane %v3366_v60, 4  ;;  %v11685_v4 = vld [vmem:[#allocation2 + $0x9c] sm:$0xf]  ;;  %v11696_v60 = vpop.f32.mrf.mxu1  ;;  %v8092_v12 = vpop.f32.mrf.mxu0 }
 0x2e1   : > { %v8868_v24 = vld [vmem:[#allocation3 + $0x98] ss:$36 sps:$4 sm:$0xff]   ;;  %2249 = vst [vmem:[#allocation3 + $0x420] sm:$0xf] %v2217_v43  ;;  %v11687_v3 = vrot.slane %v3383_v52, 5  ;;  %v3393_v30 = vshll.u32 %v11674_v36, 16  ;;  %v3380_v54 = vor.u32 %v3379_v63, %v3376_v18  ;;  %v11703_v49 = vadd.f32 %v8092_v12, %v8091_v32 }
 0x2e2   : > { %v8905_v56 = vld [vmem:[#allocation9 + $0x198] sm:$0xff]   ;;  %v8911_v11 = vld [vmem:[#allocation9 + $0x1d0] sm:$0xff]   ;;  %v3372_v0 = vsel %vm9542_vm6, %v3367_v59, %v3371_v19  ;;  %v3389_v10 = vrot.slane %v3387_v62, 4  ;;  %5542 = vmatmul.mubr.bf16.gmra.mxu1 %v8868_v24  ;;  %v3398_v25 = vshrl.u32 %v11685_v4, 16  ;;  %v3401_v57 = vshll.u32 %v11685_v4, 16  ;;  %v8920_v23 = vld [vmem:[#allocation9 + $0x1c8] sm:$0xff]   ;;  %v11705_v39 = vpop.f32.mrf.mxu1  ;;  %v8094_v34 = vpop.f32.mrf.mxu0 }
 0x2e3   : > { %v2218_v37 = vld [vmem:[#allocation2 + $0xc0] sm:$0xf]  ;;  %v2219_v45 = vld [vmem:[#allocation2 + $0xc4] sm:$0xf]  ;;  %v3021_v46 = vld [vmem:[#allocation2 + $0x18] sm:$0xf]  ;;  %8175 = vmatpush3.bf16.msra.mxu1 %v8905_v56 }
 0x2e4   : > { %3568 = vst [vmem:[#allocation3 + $0x2c8] sm:$0xf] %v3372_v0  ;;  %v3119_v53 = vld [vmem:[#allocation2 + $0xa0] sm:$0xf]  ;;  %2250 = vst [vmem:[#allocation3 + $0x444] sm:$0xf] %v2218_v37  ;;  %8176 = vmatprep.subr.bf16.mxu1 %v8911_v11  ;;  %v3390_v1 = vor.u32 %v3389_v10, %v11687_v3  ;;  %v7876_v59 = vpop.f32.mrf.mxu1  ;;  %v8095_v10 = vpop.f32.mrf.mxu0 }
 0x2e5   : > { %v8870_v13 = vld [vmem:[#allocation3 + $0xe4] ss:$36 sps:$4 sm:$0xff]   ;;  %2251 = vst [vmem:[#allocation3 + $0x468] sm:$0xf] %v2219_v45  ;;  %3053 = vst [vmem:[#allocation3 + $0x18] sm:$0xf] %v3021_v46 }
 0x2e6   : > { %5549 = vmatprep.mubr.bf16.mxu1 %v8870_v13  ;;  %v8913_v22 = vld [vmem:[#allocation9 + $0x190] sm:$0xff]   ;;  %v11700_v20 = vrot.slane %v3393_v30, 5  ;;  %v3407_v15 = vshll.u32 %v3119_v53, 16  ;;  %v8872_v61 = vld [vmem:[#allocation3 + $0xf8] ss:$36 sps:$4 sm:$0xff]   ;;  %v3411_v52 = vshrl.u32 %v3119_v53, 16  ;;  %v7877_v0 = vpop.f32.mrf.mxu1 }
 0x2e7   : > { %v8873_v36 = vld [vmem:[#allocation3 + $0x140] ss:$36 sps:$4 sm:$0xff]   ;;  %v8921_v47 = vld [vmem:[#allocation9 + $0x188] sm:$0xff]   ;;  %v3381_v27 = vrot.slane %v3380_v54, 4  ;;  %8471 = vmatmul.mubr.bf16.gmra.mxu0 %v8872_v61  ;;  %v3023_v58 = vld [vmem:[#allocation2 + $0x24] sm:$0xf]  ;;  %8177 = vmatpush3.bf16.msra.mxu1 %v8913_v22  ;;  %v11718_v54 = vadd.f32 %v7877_v0, %v7876_v59 }
 0x2e8   : > { %v8874_v16 = vld [vmem:[#allocation3 + $0xe0] ss:$36 sps:$4 sm:$0xff]   ;;  %v3024_v35 = vld [vmem:[#allocation2 + $0x28] sm:$0xf]  ;;  %8474 = vmatprep.mubr.bf16.mxu0 %v8873_v36  ;;  %3055 = vst [vmem:[#allocation3 + $0x60] sm:$0xf] %v3023_v58  ;;  %8178 = vmatprep.subr.bf16.mxu1 %v8920_v23  ;;  %v8097_v23 = vpop.f32.mrf.mxu0 }
 0x2e9   : > { %v3022_v26 = vld [vmem:[#allocation2 + $0x1c] sm:$0xf]  ;;  %v8875_v55 = vld [vmem:[#allocation3 + $0x12c] ss:$36 sps:$4 sm:$0xff]   ;;  %3056 = vst [vmem:[#allocation3 + $0x84] sm:$0xf] %v3024_v35  ;;  %v3386_v63 = vsel %vm9542_vm6, %v3381_v27, %v11687_v3 }
 0x2ea   : > { %3054 = vst [vmem:[#allocation3 + $0x3c] sm:$0xf] %v3022_v26  ;;  %v3025_v19 = vld [vmem:[#allocation2 + $0x30] sm:$0xf]  ;;  %v3026_v31 = vld [vmem:[#allocation2 + $0x34] sm:$0xf]  ;;  %5550 = vmatmul.mubr.bf16.gmra.mxu1 %v8874_v16  ;;  %v8098_v16 = vpop.f32.mrf.mxu0 }
 0x2eb   : > { %v3027_v18 = vld [vmem:[#allocation2 + $0x3c] sm:$0xf]  ;;  %v11710_v62 = vrot.slane %v3398_v25, 4  ;;  %v11712_v33 = vrot.slane %v3401_v57, 5  ;;  %v11714_v43 = vrot.slane %v3407_v15, 5  ;;  %v8928_v4 = vld [vmem:[#allocation9 + $0x1c0] sm:$0xff]   ;;  %5557 = vmatprep.mubr.bf16.mxu1 %v8875_v55  ;;  %8179 = vmatpush3.bf16.msra.mxu1 %v8921_v47  ;;  %v11723_v57 = vadd.f32 %v8095_v10, %v8094_v34 }
 0x2ec   : > { %3057 = vst [vmem:[#allocation3 + $0xa8] sm:$0xf] %v3025_v19  ;;  %3058 = vst [vmem:[#allocation3 + $0xcc] sm:$0xf] %v3026_v31  ;;  %v11716_v24 = vrot.slane %v3411_v52, 4  ;;  %v8929_v30 = vld [vmem:[#allocation9 + $0x180] sm:$0xff]   ;;  %8180 = vmatprep.subr.bf16.mxu1 %v8928_v4  ;;  %v11727_v58 = vadd.f32 %v8098_v16, %v8097_v23 }
 0x2ed   : > { %3059 = vst [vmem:[#allocation3 + $0xf0] sm:$0xf] %v3027_v18  ;;  %3569 = vst [vmem:[#allocation3 + $0x2ec] sm:$0xf] %v3386_v63  ;;  %v3028_v48 = vld [vmem:[#allocation2 + $0x40] sm:$0xf]  ;;  %v3404_v12 = vor.u32 %v11712_v33, %v11710_v62 }
 0x2ee   : > { %v3391_v56 = vrot.slane %v3390_v1, 4  ;;  %v3120_v3 = vld [vmem:[#allocation2 + $0xa4] sm:$0x1]  ;;  %3060 = vst [vmem:[#allocation3 + $0x114] sm:$0xf] %v3028_v48  ;;  %v3414_v35 = vor.u32 %v11716_v24, %v11714_v43 }
 0x2ef   : > { %v8877_v11 = vld [vmem:[#allocation3 + $0x188] ss:$36 sps:$4 sm:$0xff]   ;;  %v3029_v5 = vld [vmem:[#allocation2 + $0x48] sm:$0xf]  ;;  %v3030_v37 = vld [vmem:[#allocation2 + $0x4c] sm:$0xf]  ;;  %8181 = vmatpush3.bf16.msra.mxu1 %v8929_v30 }
 0x2f0   : > { %v3031_v45 = vld [vmem:[#allocation2 + $0x54] sm:$0xf]  ;;  %v8878_v46 = vld [vmem:[#allocation3 + $0x1d0] ss:$36 sps:$4 sm:$0xff]   ;;  %3061 = vst [vmem:[#allocation3 + $0x138] sm:$0xf] %v3029_v5  ;;  %v3396_v25 = vsel %vm9542_vm6, %v3391_v56, %v11700_v20  ;;  %8475 = vmatmul.mubr.bf16.gmra.mxu0 %v8877_v11 }
 0x2f1   : > { %3062 = vst [vmem:[#allocation3 + $0x15c] sm:$0xf] %v3030_v37  ;;  %v3032_v53 = vld [vmem:[#allocation2 + $0x58] sm:$0xf]  ;;  %3063 = vst [vmem:[#allocation3 + $0x180] sm:$0xf] %v3031_v45  ;;  %8478 = vmatprep.mubr.bf16.mxu0 %v8878_v46 }
 0x2f2   : > { %v3033_v13 = vld [vmem:[#allocation2 + $0x60] sm:$0xf]  ;;  %v3034_v32 = vld [vmem:[#allocation2 + $0x64] sm:$0xf]  ;;  %3064 = vst [vmem:[#allocation3 + $0x1a4] sm:$0xf] %v3032_v53 }
 0x2f3   : > { %3065 = vst [vmem:[#allocation3 + $0x1c8] sm:$0xf] %v3033_v13  ;;  %3066 = vst [vmem:[#allocation3 + $0x1ec] sm:$0xf] %v3034_v32  ;;  %v3035_v22 = vld [vmem:[#allocation2 + $0x6c] sm:$0xf] }
 0x2f4   : > { %v3036_v15 = vld [vmem:[#allocation2 + $0x70] sm:$0xf]  ;;  %v3037_v61 = vld [vmem:[#allocation2 + $0x78] sm:$0xf]  ;;  %3570 = vst [vmem:[#allocation3 + $0x310] sm:$0xf] %v3396_v25 }
 0x2f5   : > { %3067 = vst [vmem:[#allocation3 + $0x210] sm:$0xf] %v3035_v22  ;;  %3068 = vst [vmem:[#allocation3 + $0x234] sm:$0xf] %v3036_v15  ;;  %v3038_v1 = vld [vmem:[#allocation2 + $0x7c] sm:$0xf] }
 0x2f6   : > { %3069 = vst [vmem:[#allocation3 + $0x258] sm:$0xf] %v3037_v61  ;;  %v3039_v52 = vld [vmem:[#allocation2 + $0x84] sm:$0xf]  ;;  %v3040_v20 = vld [vmem:[#allocation2 + $0x88] sm:$0xf] }
 0x2f7   : > { %v3121_v36 = vld [vmem:[#allocation2 + $0xa8] sm:$0xf]  ;;  %3070 = vst [vmem:[#allocation3 + $0x27c] sm:$0xf] %v3038_v1  ;;  %3071 = vst [vmem:[#allocation3 + $0x2a0] sm:$0xf] %v3039_v52 }
 0x2f8   : > { %3072 = vst [vmem:[#allocation3 + $0x2c4] sm:$0xf] %v3040_v20  ;;  %v3417_v47 = vshll.u32 %v3120_v3, 16  ;;  %v3122_v27 = vld [vmem:[#allocation2 + $0xac] sm:$0xf]  ;;  %v3422_v55 = vshrl.u32 %v3121_v36, 16  ;;  %v11734_v3 = vpop.f32.mrf.mxu1 }
 0x2f9   : > { %v8880_v26 = vld [vmem:[#allocation3 + $0x128] ss:$36 sps:$4 sm:$0xff]   ;;  %v3425_v19 = vshll.u32 %v3121_v36, 16  ;;  %v8882_v31 = vld [vmem:[#allocation3 + $0x174] ss:$36 sps:$4 sm:$0xff]   ;;  %v3405_v18 = vrot.slane %v3404_v12, 4 }
 0x2fa   : > { %5558 = vmatmul.mubr.bf16.gmra.mxu1 %v8880_v26  ;;  %v3419_v63 = vrot.slane %v3417_v47, 5  ;;  %v3431_v33 = vshll.u32 %v3122_v27, 16  ;;  %v3435_v59 = vshrl.u32 %v3122_v27, 16  ;;  %v8884_v4 = vld [vmem:[#allocation3 + $0x218] ss:$36 sps:$4 sm:$0xff]   ;;  %v3424_v34 = vrot.slane %v3422_v55, 4  ;;  %v11738_v32 = vpop.f32.mrf.mxu1  ;;  %v8100_v47 = vpop.f32.mrf.mxu0 }
 0x2fb   : > { %5565 = vmatprep.mubr.bf16.mxu1 %v8882_v31  ;;  %v3410_v62 = vsel %vm9542_vm6, %v3405_v18, %v11714_v43  ;;  %v3427_v30 = vrot.slane %v3425_v19, 5  ;;  %v8885_v48 = vld [vmem:[#allocation3 + $0x260] ss:$36 sps:$4 sm:$0xff]   ;;  %v3415_v56 = vrot.slane %v3414_v35, 4  ;;  %v3123_v24 = vld [vmem:[#allocation2 + $0xb0] sm:$0x1]  ;;  %8479 = vmatmul.mubr.bf16.gmra.mxu0 %v8884_v4 }
 0x2fc   : > { %3571 = vst [vmem:[#allocation3 + $0x334] sm:$0xf] %v3410_v62  ;;  %v3124_v11 = vld [vmem:[#allocation2 + $0xb4] sm:$0xf]  ;;  %8482 = vmatprep.mubr.bf16.mxu0 %v8885_v48  ;;  %v8886_v5 = vld [vmem:[#allocation3 + $0x170] ss:$36 sps:$4 sm:$0xff]   ;;  %v7882_v61 = vpop.f32.mrf.mxu1  ;;  %v8101_v31 = vpop.f32.mrf.mxu0 }
 0x2fd   : > { %v3420_v0 = vsel %vm9542_vm6, %v3415_v56, %v3419_v63  ;;  %v3428_v43 = vor.u32 %v3427_v30, %v3424_v34  ;;  %v3433_v37 = vrot.slane %v3431_v33, 5  ;;  %v3437_v45 = vrot.slane %v3435_v59, 4  ;;  %v8887_v46 = vld [vmem:[#allocation3 + $0x1bc] ss:$36 sps:$4 sm:$0xff]   ;;  %v8889_v13 = vld [vmem:[#allocation3 + $0x2a8] ss:$36 sps:$4 sm:$0xff]  }
 0x2fe   : > { %3572 = vst [vmem:[#allocation3 + $0x358] sm:$0xf] %v3420_v0  ;;  %v3441_v10 = vshll.u32 %v3123_v24, 16  ;;  %v3446_v53 = vshrl.u32 %v3124_v11, 16  ;;  %v3041_v25 = vld [vmem:[#allocation2 + $0x90] sm:$0xf]  ;;  %v7883_v26 = vpop.f32.mrf.mxu1  ;;  %v11744_v33 = vadd.f32 %v8101_v31, %v8100_v47  ;;  %v8103_v48 = vpop.f32.mrf.mxu0 }
 0x2ff   : > { %v3042_v22 = vld [vmem:[#allocation2 + $0x94] sm:$0xf]  ;;  %v3043_v15 = vld [vmem:[#allocation2 + $0x9c] sm:$0xf]  ;;  %3073 = vst [vmem:[#allocation3 + $0x2e8] sm:$0xf] %v3041_v25  ;;  %v3438_v52 = vor.u32 %v3437_v45, %v3433_v37  ;;  %v11740_v19 = vadd.f32 %v7883_v26, %v7882_v61 }
 0x300   : > { %3074 = vst [vmem:[#allocation3 + $0x30c] sm:$0xf] %v3042_v22  ;;  %v3044_v12 = vld [vmem:[#allocation2 + $0xa0] sm:$0xf]  ;;  %3075 = vst [vmem:[#allocation3 + $0x330] sm:$0xf] %v3043_v15  ;;  %v8104_v24 = vpop.f32.mrf.mxu0 }
 0x301   : > { %v3045_v23 = vld [vmem:[#allocation2 + $0xa8] sm:$0xf]  ;;  %v3046_v1 = vld [vmem:[#allocation2 + $0xac] sm:$0xf]  ;;  %v3449_v20 = vshll.u32 %v3124_v11, 16  ;;  %v3429_v27 = vrot.slane %v3428_v43, 4 }
 0x302   : > { %5566 = vmatmul.mubr.bf16.gmra.mxu1 %v8886_v5  ;;  %v8890_v36 = vld [vmem:[#allocation3 + $0x2f0] ss:$36 sps:$4 sm:$0xff]   ;;  %3076 = vst [vmem:[#allocation3 + $0x354] sm:$0xf] %v3044_v12  ;;  %3077 = vst [vmem:[#allocation3 + $0x378] sm:$0xf] %v3045_v23  ;;  %v11748_v5 = vadd.f32 %v8104_v24, %v8103_v48 }
 0x303   : > { %5573 = vmatprep.mubr.bf16.mxu1 %v8887_v46  ;;  %3078 = vst [vmem:[#allocation3 + $0x39c] sm:$0xf] %v3046_v1  ;;  %v3125_v16 = vld [vmem:[#allocation2 + $0xb8] sm:$0xf]  ;;  %8483 = vmatmul.mubr.bf16.gmra.mxu0 %v8889_v13  ;;  %v3047_v35 = vld [vmem:[#allocation2 + $0xb4] sm:$0xf]  ;;  %v3434_v18 = vsel %vm9542_vm6, %v3429_v27, %v3433_v37 }
 0x304   : > { %v3443_v55 = vrot.slane %v3441_v10, 5  ;;  %8486 = vmatprep.mubr.bf16.mxu0 %v8890_v36  ;;  %3079 = vst [vmem:[#allocation3 + $0x3c0] sm:$0xf] %v3047_v35  ;;  %v3448_v63 = vrot.slane %v3446_v53, 4  ;;  %v8892_v62 = vld [vmem:[#allocation3 + $0x1b8] ss:$36 sps:$4 sm:$0xff]  }
 0x305   : > { %3573 = vst [vmem:[#allocation3 + $0x37c] sm:$0xf] %v3434_v18  ;;  %v3451_v59 = vrot.slane %v3449_v20, 5  ;;  %v3455_v4 = vshll.u32 %v3125_v16, 16  ;;  %v3459_v34 = vshrl.u32 %v3125_v16, 16  ;;  %v3439_v56 = vrot.slane %v3438_v52, 4  ;;  %v11750_v52 = vpop.f32.mrf.mxu1  ;;  %v8106_v20 = vpop.f32.mrf.mxu0 }
 0x306   : > { %v8894_v30 = vld [vmem:[#allocation3 + $0x204] ss:$36 sps:$4 sm:$0xff]   ;;  %v8896_v0 = vld [vmem:[#allocation3 + $0x338] ss:$36 sps:$4 sm:$0xff]   ;;  %v3048_v13 = vld [vmem:[#allocation2 + $0xb8] sm:$0xf] }
 0x307   : > { %v3444_v11 = vsel %vm9542_vm6, %v3439_v56, %v3443_v55  ;;  %v3452_v43 = vor.u32 %v3451_v59, %v3448_v63  ;;  %v3126_v37 = vld [vmem:[#allocation2 + $0xbc] sm:$0x1]  ;;  %v3457_v45 = vrot.slane %v3455_v4, 5  ;;  %v3461_v46 = vrot.slane %v3459_v34, 4  ;;  %v3127_v53 = vld [vmem:[#allocation2 + $0xc0] sm:$0xf]  ;;  %v8107_v47 = vpop.f32.mrf.mxu0  ;;  %v11756_v59 = vpop.f32.mrf.mxu1 }
 0x308   : > { %3574 = vst [vmem:[#allocation3 + $0x3a0] sm:$0xf] %v3444_v11  ;;  %v8897_v10 = vld [vmem:[#allocation3 + $0x380] ss:$36 sps:$4 sm:$0xff]   ;;  %3080 = vst [vmem:[#allocation3 + $0x3e4] sm:$0xf] %v3048_v13  ;;  %v11754_v55 = vadd.f32 %v8107_v47, %v8106_v20 }
 0x309   : > { %v3465_v25 = vshll.u32 %v3126_v37, 16  ;;  %v3128_v22 = vld [vmem:[#allocation2 + $0xc4] sm:$0xf]  ;;  %v8898_v15 = vld [vmem:[#allocation3 + $0x200] ss:$36 sps:$4 sm:$0xff]   ;;  %v3462_v61 = vor.u32 %v3461_v46, %v3457_v45  ;;  %v3470_v12 = vshrl.u32 %v3127_v53, 16  ;;  %v8109_v4 = vpop.f32.mrf.mxu0  ;;  %v7888_v56 = vpop.f32.mrf.mxu1 }
 0x30a   : > { %5574 = vmatmul.mubr.bf16.gmra.mxu1 %v8892_v62  ;;  %v3473_v23 = vshll.u32 %v3127_v53, 16  ;;  %v8899_v1 = vld [vmem:[#allocation3 + $0x24c] ss:$36 sps:$4 sm:$0xff]   ;;  %v3453_v36 = vrot.slane %v3452_v43, 4  ;;  %v3479_v26 = vshll.u32 %v3128_v22, 16  ;;  %v3483_v63 = vshrl.u32 %v3128_v22, 16 }
 0x30b   : > { %5581 = vmatprep.mubr.bf16.mxu1 %v8894_v30  ;;  %8487 = vmatmul.mubr.bf16.gmra.mxu0 %v8896_v0  ;;  %v3467_v16 = vrot.slane %v3465_v25, 5  ;;  %v8901_v35 = vld [vmem:[#allocation3 + $0x3c8] ss:$36 sps:$4 sm:$0xff]   ;;  %v3472_v31 = vrot.slane %v3470_v12, 4  ;;  %v8902_v62 = vld [vmem:[#allocation3 + $0x410] ss:$36 sps:$4 sm:$0xff]   ;;  %v8110_v24 = vpop.f32.mrf.mxu0  ;;  %v7889_v13 = vpop.f32.mrf.mxu1 }
 0x30c   : > { %8490 = vmatprep.mubr.bf16.mxu0 %v8897_v10  ;;  %v3458_v27 = vsel %vm9542_vm6, %v3453_v36, %v3457_v45  ;;  %v3475_v18 = vrot.slane %v3473_v23, 5  ;;  %v3463_v34 = vrot.slane %v3462_v61, 4  ;;  %v3049_v30 = vld [vmem:[#allocation2 + $0xc0] sm:$0xf]  ;;  %v3050_v48 = vld [vmem:[#allocation2 + $0xc4] sm:$0xf]  ;;  %v11760_v37 = vadd.f32 %v8110_v24, %v8109_v4 }
 0x30d   : > { %3575 = vst [vmem:[#allocation3 + $0x3c4] sm:$0xf] %v3458_v27  ;;  %3081 = vst [vmem:[#allocation3 + $0x408] sm:$0xf] %v3049_v30  ;;  %v3129_v0 = vld [vmem:[#allocation2 + $0xc8] sm:$0x1]  ;;  %v11762_v25 = vadd.f32 %v7889_v13, %v7888_v56 }
 0x30e   : > { %v3468_v11 = vsel %vm9542_vm6, %v3463_v34, %v3467_v16  ;;  %3082 = vst [vmem:[#allocation3 + $0x42c] sm:$0xf] %v3050_v48  ;;  %v8904_v43 = vld [vmem:[#allocation3 + $0x248] ss:$36 sps:$4 sm:$0xff]   ;;  %v3476_v45 = vor.u32 %v3475_v18, %v3472_v31  ;;  %v3481_v46 = vrot.slane %v3479_v26, 5  ;;  %v3485_v10 = vrot.slane %v3483_v63, 4  ;;  %v11768_v16 = vpop.f32.mrf.mxu1  ;;  %v8112_v18 = vpop.f32.mrf.mxu0 }
 0x30f   : > { %3576 = vst [vmem:[#allocation3 + $0x3e8] sm:$0xf] %v3468_v11  ;;  %v8906_v53 = vld [vmem:[#allocation3 + $0x294] ss:$36 sps:$4 sm:$0xff]   ;;  %v3489_v22 = vshll.u32 %v3129_v0, 16 }
 0x310   : > { %v3477_v61 = vrot.slane %v3476_v45, 4  ;;  %v8909_v20 = vld [vmem:[#allocation3 + $0x2dc] ss:$36 sps:$4 sm:$0xff]   ;;  %v8914_v26 = vld [vmem:[#allocation3 + $0x324] ss:$36 sps:$4 sm:$0xff]   ;;  %v8113_v30 = vpop.f32.mrf.mxu0 }
 0x311   : > { %v3491_v12 = vrot.slane %v3489_v22, 5  ;;  %v8912_v27 = vld [vmem:[#allocation3 + $0x2d8] ss:$36 sps:$4 sm:$0xff]   ;;  %v8916_v63 = vld [vmem:[#allocation3 + $0x320] ss:$36 sps:$4 sm:$0xff]   ;;  %v11774_v48 = vadd.f32 %v8113_v30, %v8112_v18 }
 0x312   : > { %5582 = vmatmul.mubr.bf16.gmra.mxu1 %v8898_v15  ;;  %v3486_v15 = vor.u32 %v3485_v10, %v3481_v46  ;;  %v3482_v23 = vsel %vm9542_vm6, %v3477_v61, %v3481_v46  ;;  %v8919_v4 = vld [vmem:[#allocation3 + $0x36c] ss:$36 sps:$4 sm:$0xff]   ;;  %v8115_v24 = vpop.f32.mrf.mxu0  ;;  %v8924_v46 = vld [vmem:[#allocation3 + $0x3b4] ss:$36 sps:$4 sm:$0xff]   ;;  %v3628_v18 = vld [vmem:[#allocation2 + $0xd4] sm:$0x1] }
 0x313   : > { %5589 = vmatprep.mubr.bf16.mxu1 %v8899_v1  ;;  %8491 = vmatmul.mubr.bf16.gmra.mxu0 %v8901_v35  ;;  %v8908_v1 = vld [vmem:[#allocation3 + $0x290] ss:$36 sps:$4 sm:$0xff]   ;;  %3577 = vst [vmem:[#allocation3 + $0x40c] sm:$0xf] %v3482_v23  ;;  %v11770_v35 = vpop.f32.mrf.mxu1  ;;  %v8917_v45 = vld [vmem:[#allocation3 + $0x368] ss:$36 sps:$4 sm:$0xff]  }
 0x314   : > { %8494 = vmatprep.mubr.bf16.mxu0 %v8902_v62  ;;  %v3487_v36 = vrot.slane %v3486_v15, 4  ;;  %v8116_v11 = vpop.f32.mrf.mxu0  ;;  %v8922_v23 = vld [vmem:[#allocation3 + $0x3b0] ss:$36 sps:$4 sm:$0xff]   ;;  %v3131_v30 = vld [vmem:[#allocation2 + $0xd0] sm:$0xf] }
 0x315   : > { %v7894_v31 = vpop.f32.mrf.mxu1  ;;  %v11778_v0 = vadd.f32 %v8116_v11, %v8115_v24  ;;  %v3787_v11 = vrot.slane %v3628_v18, 5  ;;  %v3051_v50 = vld [vmem:[#allocation2 + $0xcc] sm:$0xf]  ;;  %v8951_v21 = vld [vmem:[#allocation3 + $0x1c8] ss:$36 sps:$4 sm:$0xff]  }
 0x316   : > { %v3492_v47 = vsel %vm9542_vm6, %v3487_v36, %v3491_v12  ;;  %3083 = vst [vmem:[#allocation3 + $0x450] sm:$0xf] %v3051_v50  ;;  %v8936_v50 = vld [vmem:[#allocation3 + $0x60] ss:$36 sps:$4 sm:$0xff]  }
 0x317   : > { %3578 = vst [vmem:[#allocation3 + $0x430] sm:$0xf] %v3492_v47  ;;  %v7895_v62 = vpop.f32.mrf.mxu1  ;;  %v3627_v47 = vld [vmem:[#allocation2 + $0xd0] sm:$0xf] }
 0x318   : > { %v11772_v34 = vadd.f32 %v7895_v62, %v7894_v31  ;;  %v3626_v31 = vld [vmem:[#allocation2 + $0xcc] sm:$0xe]  ;;  %v8932_v62 = vld [vmem:[#allocation3 + $0x444] ss:$36 sps:$4 sm:$0xff]  }
 0x319   : > { %v11776_v56 = vpop.f32.mrf.mxu1 }
 0x31a   : > { %5590 = vmatmul.mubr.bf16.gmra.mxu1 %v8904_v43 }
 0x31b   : > { %5597 = vmatprep.mubr.bf16.mxu1 %v8906_v53  ;;  %v11780_v43 = vpop.f32.mrf.mxu1  ;;  %v8118_v53 = vpop.f32.mrf.mxu0 }
 0x31d   : > { %v7900_v10 = vpop.f32.mrf.mxu1  ;;  %v8119_v15 = vpop.f32.mrf.mxu0 }
 0x31e   : > { %v11784_v61 = vadd.f32 %v8119_v15, %v8118_v53 }
 0x31f   : > { %v7901_v13 = vpop.f32.mrf.mxu1  ;;  %v8121_v12 = vpop.f32.mrf.mxu0 }
 0x320   : > { %v11782_v22 = vadd.f32 %v7901_v13, %v7900_v10  ;;  %12756 = vst [vmem:[#allocation75_spill] sm:$0xff] %v11784_v61  ;;  %v3507_v10 = vshrl.u32 %v3131_v30, 16  ;;  %v3132_v13 = vld [vmem:[#allocation2 + $0xd4] sm:$0x1] }
 0x322   : > { %5598 = vmatmul.mubr.bf16.gmra.mxu1 %v8908_v1  ;;  %12755 = vst [vmem:[#allocation74_spill] sm:$0xff] %v11782_v22  ;;  %v8122_v1 = vpop.f32.mrf.mxu0 }
 0x323   : > { %5605 = vmatprep.mubr.bf16.mxu1 %v8909_v20  ;;  %v8927_v20 = vld [vmem:[#allocation3 + $0x3fc] ss:$36 sps:$4 sm:$0xff]   ;;  %v11786_v36 = vadd.f32 %v8122_v1, %v8121_v12  ;;  %v3130_v1 = vld [vmem:[#allocation2 + $0xcc] sm:$0xf] }
 0x324   : > { %v8124_v53 = vpop.f32.mrf.mxu0 }
 0x325   : > { %12757 = vst [vmem:[#allocation76_spill] sm:$0xff] %v11786_v36 }
 0x326   : > { %v8125_v18 = vpop.f32.mrf.mxu0 }
 0x328   : > { %v8127_v22 = vpop.f32.mrf.mxu0 }
 0x32a   : > { %5606 = vmatmul.mubr.bf16.gmra.mxu1 %v8912_v27  ;;  %v3784_v27 = vrot.slane %v3627_v47, 5  ;;  %v8930_v47 = vld [vmem:[#allocation3 + $0x440] ss:$36 sps:$4 sm:$0xff]  }
 0x32b   : > { %5613 = vmatprep.mubr.bf16.mxu1 %v8914_v26  ;;  %v11788_v26 = vpop.f32.mrf.mxu1 }
 0x32c   : > { %12758 = vst [vmem:[#allocation77_spill] sm:$0xff] %v11788_v26  ;;  %v3786_v24 = vrot.slane %v3784_v27, 4  ;;  %v3513_v26 = vshll.u32 %v3132_v13, 16 }
 0x332   : > { %5614 = vmatmul.mubr.bf16.gmra.mxu1 %v8916_v63  ;;  %v8925_v63 = vld [vmem:[#allocation3 + $0x3f8] ss:$36 sps:$4 sm:$0xff]  }
 0x333   : > { %5621 = vmatprep.mubr.bf16.mxu1 %v8919_v4  ;;  %v7299_v4 = vrot.slane %v3626_v31, 9 }
 0x335   : > { %v3785_v12 = vsel %vm9530_vm3, %v7299_v4, %v3784_v27  ;;  %v3052_v4 = vld [vmem:[#allocation2 + $0xd0] sm:$0xf] }
 0x336   : > { %3851 = vst [vmem:[#allocation3 + $0x458] sm:$0xf] %v3785_v12  ;;  %3084 = vst [vmem:[#allocation3 + $0x474] sm:$0xf] %v3052_v4 }
 0x33a   : > { %5622 = vmatmul.mubr.bf16.gmra.mxu1 %v8917_v45  ;;  %v11790_v45 = vpop.f32.mrf.mxu1 }
 0x33b   : > { %5629 = vmatprep.mubr.bf16.mxu1 %v8924_v46  ;;  %12759 = vst [vmem:[#allocation23_spill] sm:$0xff] %v11790_v45  ;;  %v3509_v45 = vrot.slane %v3507_v10, 4  ;;  %v3515_v10 = vrot.slane %v3513_v26, 5 }
 0x33c   : > { %v7906_v46 = vpop.f32.mrf.mxu1 }
 0x33e   : > { %v7907_v15 = vpop.f32.mrf.mxu1 }
 0x33f   : > { %v11796_v31 = vadd.f32 %v7907_v15, %v7906_v46  ;;  %v8128_v46 = vpop.f32.mrf.mxu0 }
 0x340   : > { %v7909_v36 = vpop.f32.mrf.mxu1  ;;  %v11802_v12 = vadd.f32 %v8128_v46, %v8127_v22 }
 0x341   : > { %12760 = vst [vmem:[#allocation24_spill] sm:$0xff] %v11796_v31  ;;  %v8130_v61 = vpop.f32.mrf.mxu0 }
 0x342   : > { %5630 = vmatmul.mubr.bf16.gmra.mxu1 %v8922_v23  ;;  %v3788_v23 = vsel %vm9530_vm3, %v3786_v24, %v3787_v11  ;;  %v7910_v27 = vpop.f32.mrf.mxu1  ;;  %v3494_v24 = vshrl.u32 %v3130_v1, 16 }
 0x343   : > { %5637 = vmatprep.mubr.bf16.mxu1 %v8927_v20  ;;  %v3503_v20 = vshll.u32 %v3131_v30, 16  ;;  %3852 = vst [vmem:[#allocation3 + $0x47c] sm:$0xf] %v3788_v23  ;;  %v3497_v30 = vshll.u32 %v3130_v1, 16  ;;  %v11800_v11 = vadd.f32 %v7910_v27, %v7909_v36 }
 0x344   : > { %v7912_v4 = vpop.f32.mrf.mxu1 }
 0x345   : > { %v3505_v15 = vrot.slane %v3503_v20, 5  ;;  %v3499_v23 = vrot.slane %v3497_v30, 5  ;;  %v8131_v20 = vpop.f32.mrf.mxu0  ;;  %v8941_v30 = vld [vmem:[#allocation3 + $0xac] ss:$36 sps:$4 sm:$0xff]  }
 0x346   : > { %v11808_v26 = vadd.f32 %v8131_v20, %v8130_v61  ;;  %v7913_v46 = vpop.f32.mrf.mxu1  ;;  %v8944_v61 = vld [vmem:[#allocation3 + $0xf4] ss:$36 sps:$4 sm:$0xff]  }
 0x347   : > { %v3510_v13 = vor.u32 %v3509_v45, %v3505_v15  ;;  %v8133_v45 = vpop.f32.mrf.mxu0 }
 0x349   : > { %v3511_v31 = vrot.slane %v3510_v13, 4  ;;  %v8134_v27 = vpop.f32.mrf.mxu0  ;;  %v8947_v13 = vld [vmem:[#allocation3 + $0x13c] ss:$36 sps:$4 sm:$0xff]  }
 0x34a   : > { %5638 = vmatmul.mubr.bf16.gmra.mxu1 %v8925_v63  ;;  %v8935_v63 = vld [vmem:[#allocation3 + $0x1c] ss:$36 sps:$4 sm:$0xff]  }
 0x34b   : > { %5645 = vmatprep.mubr.bf16.mxu1 %v8932_v62  ;;  %v11798_v62 = vadd.f32 %v8125_v18, %v8124_v53  ;;  %v3496_v53 = vrot.slane %v3494_v24, 4  ;;  %v3516_v36 = vsel %vm9542_vm6, %v3511_v31, %v3515_v10  ;;  %v11810_v24 = vadd.f32 %v8134_v27, %v8133_v45  ;;  %v8942_v10 = vld [vmem:[#allocation3 + $0xf0] ss:$36 sps:$4 sm:$0xff]   ;;  %v8945_v27 = vld [vmem:[#allocation3 + $0x138] ss:$36 sps:$4 sm:$0xff]  }
 0x34c   : > { %3580 = vst [vmem:[#allocation3 + $0x478] sm:$0xf] %v3516_v36  ;;  %v11812_v31 = vadd.f32 %v7913_v46, %v7912_v4  ;;  %v8950_v4 = vld [vmem:[#allocation3 + $0x184] ss:$36 sps:$4 sm:$0xff]  }
 0x34d   : > { %12761 = vst [vmem:[#allocation25_spill] sm:$0xff] %v11798_v62  ;;  %v3500_v18 = vor.u32 %v3499_v23, %v3496_v53  ;;  %v8938_v62 = vld [vmem:[#allocation3 + $0x64] ss:$36 sps:$4 sm:$0xff]  }
 0x34f   : > { %v3501_v1 = vrot.slane %v3500_v18, 4 }
 0x351   : > { %v3506_v22 = vsel %vm9542_vm6, %v3501_v1, %v3505_v15  ;;  %v8939_v15 = vld [vmem:[#allocation3 + $0xa8] ss:$36 sps:$4 sm:$0xff]   ;;  %v8136_v18 = vpop.f32.mrf.mxu0 }
 0x352   : > { %5646 = vmatmul.mubr.bf16.gmra.mxu1 %v8930_v47  ;;  %v8978_v47 = vld [vmem:[#allocation3 + $0x458] ss:$36 sps:$4 sm:$0xff]   ;;  %3579 = vst [vmem:[#allocation3 + $0x454] sm:$0xf] %v3506_v22 }
 0x353   : > { %5847 = vmatprep.mubr.bf16.mxu1 %v8935_v63  ;;  %v8933_v63 = vld [vmem:[#allocation3 + $0x18] ss:$36 sps:$4 sm:$0xff]   ;;  %8495 = vmatmul.mubr.bf16.gmra.mxu0 %v8978_v47  ;;  %v8137_v36 = vpop.f32.mrf.mxu0 }
 0x354   : > { %v11818_v20 = vadd.f32 %v8137_v36, %v8136_v18  ;;  %v8948_v36 = vld [vmem:[#allocation3 + $0x180] ss:$36 sps:$4 sm:$0xff]  }
 0x355   : > { %v8139_v45 = vpop.f32.mrf.mxu0 }
 0x356   : > { %12764 = vst [vmem:[#allocation32_spill] sm:$0xff] %v11818_v20 }
 0x357   : > { %v8140_v46 = vpop.f32.mrf.mxu0 }
 0x35a   : > { %5848 = vmatmul.mubr.bf16.vlgmr.msra.gmra.mxu1 %v8933_v63 }
 0x35b   : > { %5855 = vmatprep.mubr.bf16.mxu1 %v8938_v62  ;;  %v7915_v62 = vpop.f32.mrf.mxu1 }
 0x35d   : > { %v7916_v53 = vpop.f32.mrf.mxu1 }
 0x35e   : > { %v11814_v23 = vadd.f32 %v7916_v53, %v7915_v62  ;;  %v11822_v62 = vadd.f32 %v8140_v46, %v8139_v45  ;;  %v8953_v45 = vld [vmem:[#allocation3 + $0x1cc] ss:$36 sps:$4 sm:$0xff]  }
 0x35f   : > { %v7918_v47 = vpop.f32.mrf.mxu1 }
 0x360   : > { %12762 = vst [vmem:[#allocation27_spill] sm:$0xff] %v11814_v23  ;;  %12766 = vst [vmem:[#allocation71_spill] sm:$0xff] %v11822_v62  ;;  %v8965_v23 = vld [vmem:[#allocation3 + $0x2ec] ss:$36 sps:$4 sm:$0xff]  }
 0x361   : > { %v7919_v63 = vpop.f32.mrf.mxu1 }
 0x362   : > { %5856 = vmatmul.mubr.bf16.gmra.mxu1 %v8936_v50  ;;  %v11816_v1 = vadd.f32 %v7919_v63, %v7918_v47 }
 0x363   : > { %5863 = vmatprep.mubr.bf16.mxu1 %v8941_v30  ;;  %v7921_v22 = vpop.f32.mrf.mxu1 }
 0x364   : > { %12763 = vst [vmem:[#allocation31_spill] sm:$0xff] %v11816_v1 }
 0x365   : > { %v7922_v50 = vpop.f32.mrf.mxu1 }
 0x366   : > { %v11820_v30 = vadd.f32 %v7922_v50, %v7921_v22 }
 0x367   : > { %v7924_v53 = vpop.f32.mrf.mxu1 }
 0x368   : > { %12765 = vst [vmem:[#allocation86_spill] sm:$0xff] %v11820_v30  ;;  %v8957_v30 = vld [vmem:[#allocation3 + $0x258] ss:$36 sps:$4 sm:$0xff]  }
 0x36a   : > { %5864 = vmatmul.mubr.bf16.gmra.mxu1 %v8939_v15  ;;  %v8982_v15 = vld [vmem:[#allocation10 + $0x38] sm:$0xff]  }
 0x36b   : > { %5871 = vmatprep.mubr.bf16.mxu1 %v8944_v61  ;;  %v8142_v61 = vpop.f32.mrf.mxu0  ;;  %8546 = vmatprep.subr.bf16.mxu1 %v8982_v15 }
 0x36c   : > { %8498 = vmatprep.subr.bf16.mxu0 %v8982_v15  ;;  %8554 = vmatpush3.bf16.msra.mxu1 %v8982_v15 }
 0x36d   : > { %v8143_v47 = vpop.f32.mrf.mxu0  ;;  %8499 = vmatpush3.bf16.msra.mxu0 %v8982_v15  ;;  %v8983_v15 = vld [vmem:[#allocation10 + $0x30] sm:$0xff]  }
 0x36e   : > { %v11826_v18 = vadd.f32 %v8143_v47, %v8142_v61  ;;  %8547 = vmatprep.subr.bf16.mxu1 %v8983_v15  ;;  %8500 = vmatprep.subr.bf16.mxu0 %v8983_v15 }
 0x36f   : > { %v8145_v22 = vpop.f32.mrf.mxu0 }
 0x370   : > { %12768 = vst [vmem:[#allocation61_spill] sm:$0xff] %v11826_v18  ;;  %8555 = vmatpush3.bf16.msra.mxu1 %v8983_v15 }
 0x371   : > { %8501 = vmatpush3.bf16.msra.mxu0 %v8983_v15 }
 0x372   : > { %5872 = vmatmul.mubr.bf16.gmra.mxu1 %v8942_v10  ;;  %v7925_v10 = vpop.f32.mrf.mxu1 }
 0x373   : > { %5879 = vmatprep.mubr.bf16.mxu1 %v8947_v13  ;;  %v11824_v13 = vadd.f32 %v7925_v10, %v7924_v53  ;;  %v8956_v53 = vld [vmem:[#allocation3 + $0x214] ss:$36 sps:$4 sm:$0xff]  }
 0x374   : > { %v7927_v63 = vpop.f32.mrf.mxu1 }
 0x375   : > { %12767 = vst [vmem:[#allocation59_spill] sm:$0xff] %v11824_v13 }
 0x37a   : > { %5880 = vmatmul.mubr.bf16.gmra.mxu1 %v8945_v27  ;;  %v7928_v27 = vpop.f32.mrf.mxu1 }
 0x37b   : > { %5887 = vmatprep.mubr.bf16.mxu1 %v8950_v4  ;;  %v11828_v50 = vadd.f32 %v7928_v27, %v7927_v63  ;;  %v8146_v4 = vpop.f32.mrf.mxu0 }
 0x37c   : > { %v11830_v46 = vadd.f32 %v8146_v4, %v8145_v22  ;;  %v7930_v10 = vpop.f32.mrf.mxu1  ;;  %v8959_v4 = vld [vmem:[#allocation3 + $0x25c] ss:$36 sps:$4 sm:$0xff]  }
 0x37d   : > { %12769 = vst [vmem:[#allocation85_spill] sm:$0xff] %v11828_v50  ;;  %v8148_v13 = vpop.f32.mrf.mxu0 }
 0x37e   : > { %12770 = vst [vmem:[#allocation78_spill] sm:$0xff] %v11830_v46  ;;  %v7931_v61 = vpop.f32.mrf.mxu1 }
 0x37f   : > { %v11832_v47 = vadd.f32 %v7931_v61, %v7930_v10  ;;  %v8149_v63 = vpop.f32.mrf.mxu0 }
 0x380   : > { %v7933_v18 = vpop.f32.mrf.mxu1  ;;  %v11834_v27 = vadd.f32 %v8149_v63, %v8148_v13  ;;  %v8962_v63 = vld [vmem:[#allocation3 + $0x2a4] ss:$36 sps:$4 sm:$0xff]  }
 0x381   : > { %12771 = vst [vmem:[#allocation87_spill] sm:$0xff] %v11832_v47 }
 0x382   : > { %5888 = vmatmul.mubr.bf16.gmra.mxu1 %v8948_v36  ;;  %v8954_v36 = vld [vmem:[#allocation3 + $0x210] ss:$36 sps:$4 sm:$0xff]   ;;  %v7934_v22 = vpop.f32.mrf.mxu1  ;;  %12772 = vst [vmem:[#allocation91_spill] sm:$0xff] %v11834_v27 }
 0x383   : > { %5895 = vmatprep.mubr.bf16.mxu1 %v8953_v45  ;;  %v11836_v45 = vadd.f32 %v7934_v22, %v7933_v18 }
 0x385   : > { %12773 = vst [vmem:[#allocation90_spill] sm:$0xff] %v11836_v45 }
 0x38a   : > { %5896 = vmatmul.mubr.bf16.gmra.mxu1 %v8951_v21  ;;  %v8151_v21 = vpop.f32.mrf.mxu0 }
 0x38b   : > { %5903 = vmatprep.mubr.bf16.mxu1 %v8956_v53  ;;  %v7936_v53 = vpop.f32.mrf.mxu1 }
 0x38c   : > { %v8152_v10 = vpop.f32.mrf.mxu0 }
 0x38d   : > { %v7937_v61 = vpop.f32.mrf.mxu1  ;;  %v11838_v47 = vadd.f32 %v8152_v10, %v8151_v21  ;;  %v12778_v21 = vld [vmem:[#allocation57_spill] sm:$0xff] }
 0x38e   : > { %v11840_v50 = vadd.f32 %v7937_v61, %v7936_v53  ;;  %v8154_v46 = vpop.f32.mrf.mxu0  ;;  %v12779_v53 = vld [vmem:[#allocation60_spill] sm:$0xff] }
 0x38f   : > { %12774 = vst [vmem:[#allocation35_spill] sm:$0xff] %v11838_v47  ;;  %v7939_v15 = vpop.f32.mrf.mxu1  ;;  %v7851_v10 = vadd.f32 %v12779_v53, %v12778_v21 }
 0x390   : > { %12775 = vst [vmem:[#allocation39_spill] sm:$0xff] %v11840_v50  ;;  %v8155_v62 = vpop.f32.mrf.mxu0 }
 0x391   : > { %v7940_v1 = vpop.f32.mrf.mxu1  ;;  %v11842_v13 = vadd.f32 %v8155_v62, %v8154_v46  ;;  %v12780_v62 = vld [vmem:[#allocation26_spill] sm:$0xff] }
 0x392   : > { %5904 = vmatmul.mubr.bf16.gmra.mxu1 %v8954_v36  ;;  %v11844_v18 = vadd.f32 %v7940_v1, %v7939_v15  ;;  %v8157_v22 = vpop.f32.mrf.mxu0  ;;  %v8984_v36 = vld [vmem:[#allocation10 + $0x28] sm:$0xff]  }
 0x393   : > { %5911 = vmatprep.mubr.bf16.mxu1 %v8959_v4  ;;  %12776 = vst [vmem:[#allocation34_spill] sm:$0xff] %v11842_v13  ;;  %v7958_v45 = vpop.f32.mrf.mxu1  ;;  %v11849_v4 = vld [vmem:[%s12303_s5] ss:$0 sm:$0xff]  ;;  %8548 = vmatprep.subr.bf16.mxu1 %v8984_v36  ;;  %v8960_v13 = vld [vmem:[#allocation3 + $0x2a0] ss:$36 sps:$4 sm:$0xff]  }
 0x394   : > { %12777 = vst [vmem:[#allocation65_spill] sm:$0xff] %v11844_v18  ;;  %v8158_v61 = vpop.f32.mrf.mxu0  ;;  %v5367_v1 = vadd.f32 %v12780_v62, %v11849_v4  ;;  %8502 = vmatprep.subr.bf16.mxu0 %v8984_v36  ;;  %8556 = vmatpush3.bf16.msra.mxu1 %v8984_v36  ;;  %v5370_v21 = vadd.f32 %v7851_v10, %v11849_v4  ;;  %v12782_v62 = vld [vmem:[#allocation72_spill] sm:$0xff] }
 0x395   : > { %v7959_v50 = vpop.f32.mrf.mxu1  ;;  %v11855_v46 = vadd.f32 %v8158_v61, %v8157_v22  ;;  %8503 = vmatpush3.bf16.msra.mxu0 %v8984_v36  ;;  %v12783_v36 = vld [vmem:[#allocation73_spill] sm:$0xff] }
 0x396   : > { %v7960_v15 = vadd.f32 %v7959_v50, %v7958_v45 }
 0x397   : > { %12781 = vst [vmem:[#allocation28_spill] sm:$0xff] %v11855_v46  ;;  %v8985_v46 = vld [vmem:[#allocation10 + $0x20] sm:$0xff]  }
 0x398   : > { %v5528_v18 = vadd.f32 %v7960_v15, %v5367_v1  ;;  %v5375_v1 = vadd.f32 %v12783_v36, %v11849_v4  ;;  %v7857_v15 = vadd.f32 %v11360_v38, %v11327_v41  ;;  %8504 = vmatprep.subr.bf16.mxu0 %v8985_v46  ;;  %8549 = vmatprep.subr.bf16.mxu1 %v8985_v46  ;;  %v8968_v38 = vld [vmem:[#allocation3 + $0x334] ss:$36 sps:$4 sm:$0xff]  }
 0x399   : > { %8505 = vmatpush3.bf16.msra.mxu0 %v8985_v46  ;;  %8557 = vmatpush3.bf16.msra.mxu1 %v8985_v46  ;;  %v7863_v46 = vadd.f32 %v11542_v28, %v11489_v9  ;;  %v8971_v9 = vld [vmem:[#allocation3 + $0x37c] ss:$36 sps:$4 sm:$0xff]  }
 0x39a   : > { %5912 = vmatmul.mubr.bf16.gmra.mxu1 %v8957_v30  ;;  %v7961_v30 = vpop.f32.mrf.mxu1  ;;  %v11861_v22 = vadd.f32 %v12782_v62, %v5528_v18  ;;  %v5378_v62 = vadd.f32 %v7857_v15, %v11849_v4  ;;  %v8988_v28 = vld [vmem:[#allocation10 + $0x8] sm:$0xff]  }
 0x39b   : > { %5919 = vmatprep.mubr.bf16.mxu1 %v8962_v63  ;;  %v8160_v63 = vpop.f32.mrf.mxu0 }
 0x39c   : > { %v7962_v47 = vpop.f32.mrf.mxu1 }
 0x39d   : > { %v8161_v27 = vpop.f32.mrf.mxu0  ;;  %v7963_v53 = vadd.f32 %v7962_v47, %v7961_v30 }
 0x39e   : > { %v11858_v20 = vadd.f32 %v8161_v27, %v8160_v63  ;;  %v7964_v50 = vpop.f32.mrf.mxu1  ;;  %v8986_v63 = vld [vmem:[#allocation10 + $0x18] sm:$0xff]  }
 0x39f   : > { %v8163_v45 = vpop.f32.mrf.mxu0  ;;  %v5531_v61 = vadd.f32 %v7963_v53, %v5370_v21  ;;  %v8963_v21 = vld [vmem:[#allocation3 + $0x2e8] ss:$36 sps:$4 sm:$0xff]   ;;  %8506 = vmatprep.subr.bf16.mxu0 %v8986_v63  ;;  %8550 = vmatprep.subr.bf16.mxu1 %v8986_v63 }
 0x3a0   : > { %v7965_v10 = vpop.f32.mrf.mxu1  ;;  %8507 = vmatpush3.bf16.msra.mxu0 %v8986_v63  ;;  %8558 = vmatpush3.bf16.msra.mxu1 %v8986_v63 }
 0x3a1   : > { %v8164_v47 = vpop.f32.mrf.mxu0  ;;  %v7966_v27 = vadd.f32 %v7965_v10, %v7964_v50  ;;  %v11870_v18 = vadd.f32 %v11277_v7, %v5531_v61  ;;  %v8987_v61 = vld [vmem:[#allocation10 + $0x10] sm:$0xff]  }
 0x3a2   : > { %5920 = vmatmul.mubr.bf16.gmra.mxu1 %v8960_v13  ;;  %v11867_v30 = vadd.f32 %v8164_v47, %v8163_v45  ;;  %v7967_v13 = vpop.f32.mrf.mxu1  ;;  %8508 = vmatprep.subr.bf16.mxu0 %v8987_v61 }
 0x3a3   : > { %5927 = vmatprep.mubr.bf16.mxu1 %v8965_v23  ;;  %v5536_v23 = vadd.f32 %v7966_v27, %v5375_v1  ;;  %v5383_v1 = vadd.f32 %v11428_v51, %v11849_v4  ;;  %8551 = vmatprep.subr.bf16.mxu1 %v8987_v61  ;;  %v8966_v27 = vld [vmem:[#allocation3 + $0x330] ss:$36 sps:$4 sm:$0xff]  }
 0x3a4   : > { %v7968_v53 = vpop.f32.mrf.mxu1  ;;  %8509 = vmatpush3.bf16.msra.mxu0 %v8987_v61  ;;  %8559 = vmatpush3.bf16.msra.mxu1 %v8987_v61 }
 0x3a5   : > { %v7969_v41 = vadd.f32 %v7968_v53, %v7967_v13  ;;  %v11874_v50 = vadd.f32 %v11430_v8, %v5536_v23  ;;  %v5386_v23 = vadd.f32 %v7863_v46, %v11849_v4  ;;  %8510 = vmatprep.subr.bf16.mxu0 %v8988_v28  ;;  %8552 = vmatprep.subr.bf16.mxu1 %v8988_v28  ;;  %v8969_v46 = vld [vmem:[#allocation3 + $0x378] ss:$36 sps:$4 sm:$0xff]  }
 0x3a6   : > { %v7970_v45 = vpop.f32.mrf.mxu1 }
 0x3a7   : > { %v5539_v7 = vadd.f32 %v7969_v41, %v5378_v62  ;;  %v5391_v62 = vadd.f32 %v11587_v17, %v11849_v4 }
 0x3a8   : > { %v7971_v36 = vpop.f32.mrf.mxu1  ;;  %8511 = vmatpush3.bf16.msra.mxu0 %v8988_v28  ;;  %8560 = vmatpush3.bf16.msra.mxu1 %v8988_v28 }
 0x3a9   : > { %v7972_v15 = vadd.f32 %v7971_v36, %v7970_v45  ;;  %v11881_v8 = vadd.f32 %v11434_v29, %v5539_v7  ;;  %v8989_v29 = vld [vmem:[#allocation10] sm:$0xff]  }
 0x3aa   : > { %5928 = vmatmul.mubr.bf16.gmra.mxu1 %v8963_v21  ;;  %v7973_v10 = vpop.f32.mrf.mxu1  ;;  %8512 = vmatprep.subr.bf16.mxu0 %v8989_v29 }
 0x3ab   : > { %5935 = vmatprep.mubr.bf16.mxu1 %v8968_v38  ;;  %v5544_v47 = vadd.f32 %v7972_v15, %v5383_v1  ;;  %v7869_v38 = vadd.f32 %v11679_v42, %v11654_v6  ;;  %8553 = vmatprep.subr.bf16.mxu1 %v8989_v29  ;;  %v8974_v15 = vld [vmem:[#allocation3 + $0x3c4] ss:$36 sps:$4 sm:$0xff]  }
 0x3ac   : > { %v7974_v13 = vpop.f32.mrf.mxu1  ;;  %8513 = vmatpush3.bf16.msra.mxu0 %v8989_v29  ;;  %8561 = vmatpush3.bf16.msra.mxu1 %v8989_v29  ;;  %v8977_v29 = vld [vmem:[#allocation3 + $0x40c] ss:$36 sps:$4 sm:$0xff]  }
 0x3ad   : > { %v7975_v63 = vadd.f32 %v7974_v13, %v7973_v10  ;;  %v11885_v21 = vadd.f32 %v11544_v44, %v5544_v47  ;;  %v5394_v17 = vadd.f32 %v7869_v38, %v11849_v4  ;;  %v5399_v47 = vadd.f32 %v11692_v2, %v11849_v4 }
 0x3ae   : > { %v7976_v51 = vpop.f32.mrf.mxu1 }
 0x3af   : > { %v5547_v53 = vadd.f32 %v7975_v63, %v5386_v23 }
 0x3b0   : > { %v7977_v41 = vpop.f32.mrf.mxu1 }
 0x3b1   : > { %v7978_v45 = vadd.f32 %v7977_v41, %v7976_v51  ;;  %v11892_v44 = vadd.f32 %v11579_v14, %v5547_v53 }
 0x3b2   : > { %5936 = vmatmul.mubr.bf16.gmra.mxu1 %v8966_v27  ;;  %v7979_v7 = vpop.f32.mrf.mxu1  ;;  %v7875_v27 = vadd.f32 %v11705_v39, %v11696_v60  ;;  %v7881_v39 = vadd.f32 %v11738_v32, %v11734_v3  ;;  %v7887_v32 = vadd.f32 %v11756_v59, %v11750_v52  ;;  %v5423_v52 = vadd.f32 %v11762_v25, %v11849_v4 }
 0x3b3   : > { %5943 = vmatprep.mubr.bf16.mxu1 %v8971_v9  ;;  %v5552_v61 = vadd.f32 %v7978_v45, %v5391_v62  ;;  %v5431_v25 = vadd.f32 %v11772_v34, %v11849_v4  ;;  %v12785_v34 = vld [vmem:[#allocation74_spill] sm:$0xff] }
 0x3b4   : > { %v7980_v36 = vpop.f32.mrf.mxu1  ;;  %v5402_v51 = vadd.f32 %v7875_v27, %v11849_v4  ;;  %v8979_v27 = vld [vmem:[#allocation3 + $0x450] ss:$36 sps:$4 sm:$0xff]  }
 0x3b5   : > { %v7981_v1 = vadd.f32 %v7980_v36, %v7979_v7  ;;  %v11896_v10 = vadd.f32 %v11694_v40, %v5552_v61  ;;  %v8972_v40 = vld [vmem:[#allocation3 + $0x3c0] ss:$36 sps:$4 sm:$0xff]  }
 0x3b7   : > { %v5555_v42 = vadd.f32 %v7981_v1, %v5394_v17  ;;  %v5410_v17 = vadd.f32 %v7881_v39, %v11849_v4 }
 0x3b9   : > { %v11903_v23 = vadd.f32 %v11703_v49, %v5555_v42  ;;  %v5407_v49 = vadd.f32 %v11718_v54, %v11849_v4 }
 0x3ba   : > { %v7982_v6 = vpop.f32.mrf.mxu1  ;;  %5944 = vmatmul.mubr.bf16.gmra.mxu1 %v8969_v46  ;;  %v8981_v46 = vld [vmem:[#allocation3 + $0x454] ss:$36 sps:$4 sm:$0xff]  }
 0x3bb   : > { %5951 = vmatprep.mubr.bf16.mxu1 %v8974_v15 }
 0x3bc   : > { %v7983_v14 = vpop.f32.mrf.mxu1 }
 0x3bd   : > { %v7984_v13 = vadd.f32 %v7983_v14, %v7982_v6 }
 0x3be   : > { %v7985_v63 = vpop.f32.mrf.mxu1 }
 0x3bf   : > { %v5560_v9 = vadd.f32 %v7984_v13, %v5399_v47 }
 0x3c0   : > { %v7986_v28 = vpop.f32.mrf.mxu1 }
 0x3c1   : > { %v7987_v53 = vadd.f32 %v7986_v28, %v7985_v63  ;;  %v11907_v62 = vadd.f32 %v11723_v57, %v5560_v9  ;;  %v8975_v57 = vld [vmem:[#allocation3 + $0x408] ss:$36 sps:$4 sm:$0xff]   ;;  %v5418_v63 = vadd.f32 %v7887_v32, %v11849_v4 }
 0x3c2   : > { %v7988_v41 = vpop.f32.mrf.mxu1  ;;  %5952 = vmatmul.mubr.bf16.gmra.mxu1 %v8972_v40 }
 0x3c3   : > { %v5563_v2 = vadd.f32 %v7987_v53, %v5402_v51  ;;  %5959 = vmatprep.mubr.bf16.mxu1 %v8977_v29 }
 0x3c4   : > { %v7989_v60 = vpop.f32.mrf.mxu1 }
 0x3c5   : > { %v7990_v38 = vadd.f32 %v7989_v60, %v7988_v41  ;;  %v11914_v45 = vadd.f32 %v11727_v58, %v5563_v2  ;;  %v5415_v58 = vadd.f32 %v11740_v19, %v11849_v4 }
 0x3c6   : > { %v7991_v7 = vpop.f32.mrf.mxu1 }
 0x3c7   : > { %v5568_v61 = vadd.f32 %v7990_v38, %v5407_v49 }
 0x3c8   : > { %v7992_v36 = vpop.f32.mrf.mxu1 }
 0x3c9   : > { %v7993_v1 = vadd.f32 %v7992_v36, %v7991_v7  ;;  %v11918_v15 = vadd.f32 %v11744_v33, %v5568_v61 }
 0x3ca   : > { %v7994_v6 = vpop.f32.mrf.mxu1  ;;  %5960 = vmatmul.mubr.bf16.gmra.mxu1 %v8975_v57 }
 0x3cb   : > { %v5571_v54 = vadd.f32 %v7993_v1, %v5410_v17  ;;  %5967 = vmatprep.mubr.bf16.mxu1 %v8981_v46  ;;  %v12784_v17 = vld [vmem:[#allocation75_spill] sm:$0xff] }
 0x3cc   : > { %v7995_v3 = vpop.f32.mrf.mxu1 }
 0x3cd   : > { %v7996_v42 = vadd.f32 %v7995_v3, %v7994_v6  ;;  %v11925_v14 = vadd.f32 %v11748_v5, %v5571_v54  ;;  %v7893_v5 = vadd.f32 %v11770_v35, %v11768_v16  ;;  %v7899_v16 = vadd.f32 %v11780_v43, %v11776_v56  ;;  %v12786_v56 = vld [vmem:[#allocation77_spill] sm:$0xff]  ;;  %v12787_v43 = vld [vmem:[#allocation23_spill] sm:$0xff] }
 0x3ce   : > { %v7997_v47 = vpop.f32.mrf.mxu1  ;;  %v7905_v32 = vadd.f32 %v12787_v43, %v12786_v56  ;;  %v12793_v43 = vld [vmem:[#allocation31_spill] sm:$0xff] }
 0x3cf   : > { %v5576_v13 = vadd.f32 %v7996_v42, %v5415_v58  ;;  %v5434_v36 = vadd.f32 %v7899_v16, %v11849_v4  ;;  %v5439_v58 = vadd.f32 %v12785_v34, %v11849_v4  ;;  %v12788_v42 = vld [vmem:[#allocation76_spill] sm:$0xff] }
 0x3d0   : > { %v7998_v33 = vpop.f32.mrf.mxu1 }
 0x3d1   : > { %v7999_v9 = vadd.f32 %v7998_v33, %v7997_v47  ;;  %v11929_v40 = vadd.f32 %v11754_v55, %v5576_v13  ;;  %v5426_v55 = vadd.f32 %v7893_v5, %v11849_v4 }
 0x3d2   : > { %v8000_v28 = vpop.f32.mrf.mxu1  ;;  %5968 = vmatmul.mubr.bf16.gmra.mxu1 %v8979_v27 }
 0x3d3   : > { %v5579_v19 = vadd.f32 %v7999_v9, %v5418_v63  ;;  %v5442_v63 = vadd.f32 %v7905_v32, %v11849_v4 }
 0x3d4   : > { %v8001_v51 = vpop.f32.mrf.mxu1 }
 0x3d5   : > { %v8002_v59 = vadd.f32 %v8001_v51, %v8000_v28  ;;  %v11936_v53 = vadd.f32 %v11760_v37, %v5579_v19  ;;  %v12789_v28 = vld [vmem:[#allocation25_spill] sm:$0xff] }
 0x3d6   : > { %v8003_v29 = vpop.f32.mrf.mxu1 }
 0x3d7   : > { %v5584_v41 = vadd.f32 %v8002_v59, %v5423_v52  ;;  %v12790_v59 = vld [vmem:[#allocation24_spill] sm:$0xff] }
 0x3d8   : > { %v8004_v2 = vpop.f32.mrf.mxu1 }
 0x3d9   : > { %v8005_v60 = vadd.f32 %v8004_v2, %v8003_v29  ;;  %v11940_v49 = vadd.f32 %v11774_v48, %v5584_v41  ;;  %v5447_v29 = vadd.f32 %v12790_v59, %v11849_v4 }
 0x3da   : > { %v8006_v39 = vpop.f32.mrf.mxu1 }
 0x3db   : > { %v5587_v38 = vadd.f32 %v8005_v60, %v5426_v55 }
 0x3dc   : > { %v8007_v7 = vpop.f32.mrf.mxu1 }
 0x3dd   : > { %v8008_v37 = vadd.f32 %v8007_v7, %v8006_v39  ;;  %v11947_v35 = vadd.f32 %v11778_v0, %v5587_v38  ;;  %v5450_v38 = vadd.f32 %v11800_v11, %v11849_v4 }
 0x3de   : > { %v8009_v61 = vpop.f32.mrf.mxu1 }
 0x3df   : > { %v5592_v46 = vadd.f32 %v8008_v37, %v5431_v25 }
 0x3e0   : > { %v8010_v57 = vpop.f32.mrf.mxu1 }
 0x3e1   : > { %v8011_v48 = vadd.f32 %v8010_v57, %v8009_v61  ;;  %v11951_v1 = vadd.f32 %v12784_v17, %v5592_v46  ;;  %v5455_v46 = vadd.f32 %v11812_v31, %v11849_v4  ;;  %v5463_v31 = vadd.f32 %v12793_v43, %v11849_v4 }
 0x3e2   : > { %v8012_v6 = vpop.f32.mrf.mxu1 }
 0x3e3   : > { %v5595_v54 = vadd.f32 %v8011_v48, %v5434_v36 }
 0x3e4   : > { %v8013_v3 = vpop.f32.mrf.mxu1 }
 0x3e5   : > { %v8014_v0 = vadd.f32 %v8013_v3, %v8012_v6  ;;  %v11958_v47 = vadd.f32 %v12788_v42, %v5595_v54  ;;  %v12791_v6 = vld [vmem:[#allocation27_spill] sm:$0xff]  ;;  %v12792_v3 = vld [vmem:[#allocation32_spill] sm:$0xff] }
 0x3e6   : > { %v8015_v27 = vpop.f32.mrf.mxu1  ;;  %v5458_v11 = vadd.f32 %v12791_v6, %v11849_v4 }
 0x3e7   : > { %v5600_v13 = vadd.f32 %v8014_v0, %v5439_v58  ;;  %v12794_v0 = vld [vmem:[#allocation71_spill] sm:$0xff] }
 0x3e8   : > { %v8016_v33 = vpop.f32.mrf.mxu1 }
 0x3e9   : > { %v8017_v9 = vadd.f32 %v8016_v33, %v8015_v27  ;;  %v11962_v19 = vadd.f32 %v12789_v28, %v5600_v13  ;;  %v12795_v33 = vld [vmem:[#allocation86_spill] sm:$0xff]  ;;  %v12796_v28 = vld [vmem:[#allocation61_spill] sm:$0xff] }
 0x3ea   : > { %v8018_v51 = vpop.f32.mrf.mxu1 }
 0x3eb   : > { %v5603_v52 = vadd.f32 %v8017_v9, %v5442_v63  ;;  %v5466_v63 = vadd.f32 %v12795_v33, %v11849_v4 }
 0x3ec   : > { %v8019_v5 = vpop.f32.mrf.mxu1 }
 0x3ed   : > { %v8020_v41 = vadd.f32 %v8019_v5, %v8018_v51  ;;  %v11967_v2 = vadd.f32 %v11802_v12, %v5603_v52 }
 0x3ee   : > { %v8021_v55 = vpop.f32.mrf.mxu1 }
 0x3ef   : > { %v5608_v60 = vadd.f32 %v8020_v41, %v5447_v29  ;;  %v12797_v29 = vld [vmem:[#allocation59_spill] sm:$0xff] }
 0x3f0   : > { %v8022_v39 = vpop.f32.mrf.mxu1  ;;  %v5471_v41 = vadd.f32 %v12797_v29, %v11849_v4 }
 0x3f1   : > { %v8023_v7 = vadd.f32 %v8022_v39, %v8021_v55  ;;  %v11972_v25 = vadd.f32 %v11808_v26, %v5608_v60  ;;  %v12798_v60 = vld [vmem:[#allocation78_spill] sm:$0xff] }
 0x3f2   : > { %v8024_v16 = vpop.f32.mrf.mxu1 }
 0x3f3   : > { %v5611_v37 = vadd.f32 %v8023_v7, %v5450_v38 }
 0x3f4   : > { %v8025_v61 = vpop.f32.mrf.mxu1 }
 0x3f5   : > { %v8026_v57 = vadd.f32 %v8025_v61, %v8024_v16  ;;  %v11977_v12 = vadd.f32 %v11810_v24, %v5611_v37  ;;  %v12799_v37 = vld [vmem:[#allocation85_spill] sm:$0xff] }
 0x3f6   : > { %v8027_v36 = vpop.f32.mrf.mxu1  ;;  %v5474_v61 = vadd.f32 %v12799_v37, %v11849_v4 }
 0x3f7   : > { %v5616_v48 = vadd.f32 %v8026_v57, %v5455_v46  ;;  %v12800_v57 = vld [vmem:[#allocation91_spill] sm:$0xff] }
 0x3f8   : > { %v8028_v17 = vpop.f32.mrf.mxu1 }
 0x3f9   : > { %v8029_v54 = vadd.f32 %v8028_v17, %v8027_v36  ;;  %v11982_v26 = vadd.f32 %v12792_v3, %v5616_v48 }
 0x3fa   : > { %v8030_v34 = vpop.f32.mrf.mxu1 }
 0x3fb   : > { %v5619_v58 = vadd.f32 %v8029_v54, %v5458_v11  ;;  %v12801_v11 = vld [vmem:[#allocation87_spill] sm:$0xff] }
 0x3fc   : > { %v8031_v56 = vpop.f32.mrf.mxu1  ;;  %v5479_v54 = vadd.f32 %v12801_v11, %v11849_v4 }
 0x3fd   : > { %v8032_v32 = vadd.f32 %v8031_v56, %v8030_v34  ;;  %v11987_v24 = vadd.f32 %v12794_v0, %v5619_v58  ;;  %v12802_v34 = vld [vmem:[#allocation35_spill] sm:$0xff] }
 0x3fe   : > { %v8033_v42 = vpop.f32.mrf.mxu1 }
 0x3ff   : > { %v5624_v27 = vadd.f32 %v8032_v32, %v5463_v31  ;;  %v12803_v32 = vld [vmem:[#allocation90_spill] sm:$0xff] }
 0x400   : > { %v8034_v13 = vpop.f32.mrf.mxu1  ;;  %v5482_v0 = vadd.f32 %v12803_v32, %v11849_v4 }
 0x401   : > { %v8035_v9 = vadd.f32 %v8034_v13, %v8033_v42  ;;  %v11992_v51 = vadd.f32 %v12796_v28, %v5624_v27  ;;  %v12804_v27 = vld [vmem:[#allocation34_spill] sm:$0xff]  ;;  %v12805_v28 = vld [vmem:[#allocation39_spill] sm:$0xff] }
 0x402   : > { %v8036_v52 = vpop.f32.mrf.mxu1 }
 0x403   : > { %v5627_v5 = vadd.f32 %v8035_v9, %v5466_v63 }
 0x404   : > { %v8037_v59 = vpop.f32.mrf.mxu1 }
 0x405   : > { %v8038_v55 = vadd.f32 %v8037_v59, %v8036_v52  ;;  %v11997_v39 = vadd.f32 %v12798_v60, %v5627_v5  ;;  %v5487_v52 = vadd.f32 %v12805_v28, %v11849_v4  ;;  %v12806_v60 = vld [vmem:[#allocation65_spill] sm:$0xff] }
 0x406   : > { %v8039_v38 = vpop.f32.mrf.mxu1 }
 0x407   : > { %v5632_v7 = vadd.f32 %v8038_v55, %v5471_v41  ;;  %v8468_v41 = vpop.f32.mrf.mxu0 }
 0x408   : > { %v8040_v16 = vpop.f32.mrf.mxu1 }
 0x409   : > { %v8041_v46 = vadd.f32 %v8040_v16, %v8039_v38  ;;  %v12002_v36 = vadd.f32 %v12800_v57, %v5632_v7  ;;  %v5490_v38 = vadd.f32 %v12806_v60, %v11849_v4 }
 0x40a   : > { %v8042_v48 = vpop.f32.mrf.mxu1 }
 0x40b   : > { %v5635_v17 = vadd.f32 %v8041_v46, %v5474_v61  ;;  %v12807_v46 = vld [vmem:[#allocation28_spill] sm:$0xff] }
 0x40c   : > { %v8043_v6 = vpop.f32.mrf.mxu1 }
 0x40d   : > { %v8044_v3 = vadd.f32 %v8043_v6, %v8042_v48  ;;  %v12007_v58 = vadd.f32 %v12802_v34, %v5635_v17  ;;  %v6010_v48 = vpop.f32.mrf.mxu0 }
 0x40e   : > { %v8045_v56 = vpop.f32.mrf.mxu1 }
 0x40f   : > { %v5640_v43 = vadd.f32 %v8044_v3, %v5479_v54  ;;  %v8469_v34 = vpop.f32.mrf.mxu0 }
 0x410   : > { %v8046_v31 = vpop.f32.mrf.mxu1 }
 0x411   : > { %v8047_v42 = vadd.f32 %v8046_v31, %v8045_v56  ;;  %v12012_v13 = vadd.f32 %v12804_v27, %v5640_v43  ;;  %v6013_v32 = vpop.f32.mrf.mxu0 }
 0x412   : > { %v8048_v33 = vpop.f32.mrf.mxu1 }
 0x413   : > { %v5643_v63 = vadd.f32 %v8047_v42, %v5482_v0  ;;  %v8472_v28 = vpop.f32.mrf.mxu0 }
 0x414   : > { %v8049_v9 = vpop.f32.mrf.mxu1 }
 0x415   : > { %v8050_v5 = vadd.f32 %v8049_v9, %v8048_v33  ;;  %v12022_v57 = vadd.f32 %v12807_v46, %v5643_v63  ;;  %v6026_v60 = vpop.f32.mrf.mxu0 }
 0x416   : > { %v8051_v59 = vpop.f32.mrf.mxu1 }
 0x417   : > { %v5648_v29 = vadd.f32 %v8050_v5, %v5487_v52 }
 0x418   : > { %v8052_v55 = vpop.f32.mrf.mxu1 }
 0x419   : > { %v8053_v7 = vadd.f32 %v8052_v55, %v8051_v59  ;;  %v12019_v16 = vadd.f32 %v11858_v20, %v5648_v29 }
 0x41a   : > { %v8182_v37 = vpop.f32.mrf.mxu1 }
 0x41b   : > { %v5651_v61 = vadd.f32 %v8053_v7, %v5490_v38 }
 0x41c   : > { %v8183_v17 = vpop.f32.mrf.mxu1 }
 0x41d   : > { %v8184_v6 = vadd.f32 %v8183_v17, %v8182_v37  ;;  %v12025_v11 = vadd.f32 %v11867_v30, %v5651_v61  ;;  %v8473_v17 = vpop.f32.mrf.mxu0 }
 0x41e   : > { %v8185_v54 = vpop.f32.mrf.mxu1 }
 0x41f   : > { %v5850_v3 = vadd.f32 %v8184_v6, %v11861_v22 }
 0x420   : > { %v8186_v4 = vpop.f32.mrf.mxu1 }
 0x421   : > { %v8187_v56 = vadd.f32 %v8186_v4, %v8185_v54  ;;  %v6011_v20 = vadd.f32 %v6010_v48, %v5850_v3 }
 0x422   : > { %v8188_v43 = vpop.f32.mrf.mxu1 }
 0x423   : > { %v5853_v31 = vadd.f32 %v8187_v56, %v11870_v18  ;;  %v6137_v63 = vmax.f32 %v6011_v20, 0.0 }
 0x424   : > { %v8189_v0 = vpop.f32.mrf.mxu1 }
 0x425   : > { %v6014_v42 = vadd.f32 %v6013_v32, %v5853_v31  ;;  %v8190_v27 = vadd.f32 %v8189_v0, %v8188_v43 }
 0x426   : > { %v8191_v33 = vpop.f32.mrf.mxu1 }
 0x427   : > { %v6138_v9 = vmax.f32 %v6014_v42, 0.0  ;;  %v5858_v30 = vadd.f32 %v8190_v27, %v11874_v50 }
 0x428   : > { %v8192_v52 = vpop.f32.mrf.mxu1 }
 0x429   : > { %v8193_v5 = vadd.f32 %v8192_v52, %v8191_v33  ;;  %v6169_v22 = vpack.c.bf16 %v6138_v9, %v6137_v63  ;;  %v6019_v29 = vadd.f32 %v8468_v41, %v5858_v30 }
 0x42a   : > { %v8194_v59 = vpop.f32.mrf.mxu1 }
 0x42b   : > { %v5861_v55 = vadd.f32 %v8193_v5, %v11881_v8  ;;  %8514 = vmatprep.mubr.bf16.mxu0 %v6169_v22  ;;  %v6139_v61 = vmax.f32 %v6019_v29, 0.0  ;;  %v6029_v8 = vpop.f32.mrf.mxu0 }
 0x42c   : > { %v8195_v18 = vpop.f32.mrf.mxu1 }
 0x42d   : > { %v6022_v38 = vadd.f32 %v8469_v34, %v5861_v55  ;;  %v8196_v7 = vadd.f32 %v8195_v18, %v8194_v59  ;;  %v8476_v42 = vpop.f32.mrf.mxu0 }
 0x42e   : > { %v8197_v37 = vpop.f32.mrf.mxu1 }
 0x42f   : > { %v6140_v46 = vmax.f32 %v6022_v38, 0.0  ;;  %v5866_v48 = vadd.f32 %v8196_v7, %v11885_v21 }
 0x430   : > { %v8198_v50 = vpop.f32.mrf.mxu1 }
 0x431   : > { %v6170_v6 = vpack.c.bf16 %v6140_v46, %v6139_v61  ;;  %v8199_v54 = vadd.f32 %v8198_v50, %v8197_v37  ;;  %v6027_v4 = vadd.f32 %v6026_v60, %v5866_v48 }
 0x432   : > { %v8200_v3 = vpop.f32.mrf.mxu1 }
 0x433   : > { %v5869_v41 = vadd.f32 %v8199_v54, %v11892_v44  ;;  %8515 = vmatmul.mubr.bf16.vlgmr.msra.gmra.mxu0 %v6170_v6  ;;  %v6141_v31 = vmax.f32 %v6027_v4, 0.0  ;;  %v6042_v44 = vpop.f32.mrf.mxu0 }
 0x434   : > { %v8201_v56 = vpop.f32.mrf.mxu1 }
 0x435   : > { %v6030_v43 = vadd.f32 %v6029_v8, %v5869_v41  ;;  %v8202_v20 = vadd.f32 %v8201_v56, %v8200_v3  ;;  %v8477_v18 = vpop.f32.mrf.mxu0 }
 0x436   : > { %v8203_v34 = vpop.f32.mrf.mxu1 }
 0x437   : > { %v6142_v32 = vmax.f32 %v6030_v43, 0.0  ;;  %v5874_v0 = vadd.f32 %v8202_v20, %v11896_v10 }
 0x438   : > { %v8204_v21 = vpop.f32.mrf.mxu1 }
 0x439   : > { %v8205_v27 = vadd.f32 %v8204_v21, %v8203_v34  ;;  %v6171_v33 = vpack.c.bf16 %v6142_v32, %v6141_v31  ;;  %v6035_v9 = vadd.f32 %v8472_v28, %v5874_v0 }
 0x43a   : > { %v8206_v63 = vpop.f32.mrf.mxu1 }
 0x43b   : > { %v5877_v30 = vadd.f32 %v8205_v27, %v11903_v23  ;;  %8518 = vmatprep.mubr.bf16.mxu0 %v6171_v33  ;;  %v6143_v29 = vmax.f32 %v6035_v9, 0.0  ;;  %v6045_v23 = vpop.f32.mrf.mxu0 }
 0x43c   : > { %v8207_v52 = vpop.f32.mrf.mxu1 }
 0x43d   : > { %v6038_v5 = vadd.f32 %v8473_v17, %v5877_v30  ;;  %v8208_v22 = vadd.f32 %v8207_v52, %v8206_v63  ;;  %v8480_v4 = vpop.f32.mrf.mxu0 }
 0x43e   : > { %v8209_v59 = vpop.f32.mrf.mxu1 }
 0x43f   : > { %v6144_v55 = vmax.f32 %v6038_v5, 0.0  ;;  %v5882_v60 = vadd.f32 %v8208_v22, %v11907_v62 }
 0x440   : > { %v8210_v10 = vpop.f32.mrf.mxu1 }
 0x441   : > { %v6172_v38 = vpack.c.bf16 %v6144_v55, %v6143_v29  ;;  %v8211_v7 = vadd.f32 %v8210_v10, %v8209_v59  ;;  %v6043_v61 = vadd.f32 %v6042_v44, %v5882_v60 }
 0x442   : > { %v8212_v37 = vpop.f32.mrf.mxu1 }
 0x443   : > { %v5885_v28 = vadd.f32 %v8211_v7, %v11914_v45  ;;  %8519 = vmatmul.mubr.bf16.gmra.mxu0 %v6172_v38  ;;  %v6145_v6 = vmax.f32 %v6043_v61, 0.0  ;;  %v6058_v45 = vpop.f32.mrf.mxu0 }
 0x444   : > { %v8213_v46 = vpop.f32.mrf.mxu1 }
 0x445   : > { %v6046_v48 = vadd.f32 %v6045_v23, %v5885_v28  ;;  %v8214_v50 = vadd.f32 %v8213_v46, %v8212_v37  ;;  %v8481_v63 = vpop.f32.mrf.mxu0 }
 0x446   : > { %v8215_v17 = vpop.f32.mrf.mxu1 }
 0x447   : > { %v6146_v54 = vmax.f32 %v6046_v48, 0.0  ;;  %v5890_v3 = vadd.f32 %v8214_v50, %v11918_v15 }
 0x448   : > { %v8216_v62 = vpop.f32.mrf.mxu1 }
 0x449   : > { %v8217_v41 = vadd.f32 %v8216_v62, %v8215_v17  ;;  %v6173_v8 = vpack.c.bf16 %v6146_v54, %v6145_v6  ;;  %v6051_v43 = vadd.f32 %v8476_v42, %v5890_v3 }
 0x44a   : > { %v8218_v56 = vpop.f32.mrf.mxu1 }
 0x44b   : > { %v5893_v20 = vadd.f32 %v8217_v41, %v11925_v14  ;;  %8522 = vmatprep.mubr.bf16.mxu1 %v6173_v8  ;;  %v6147_v21 = vmax.f32 %v6051_v43, 0.0  ;;  %v6061_v14 = vpop.f32.mrf.mxu0 }
 0x44c   : > { %v8219_v34 = vpop.f32.mrf.mxu1 }
 0x44d   : > { %v6054_v31 = vadd.f32 %v8477_v18, %v5893_v20  ;;  %v8220_v32 = vadd.f32 %v8219_v34, %v8218_v56  ;;  %v8484_v10 = vpop.f32.mrf.mxu0 }
 0x44e   : > { %v8221_v0 = vpop.f32.mrf.mxu1 }
 0x44f   : > { %v6148_v27 = vmax.f32 %v6054_v31, 0.0  ;;  %v5898_v33 = vadd.f32 %v8220_v32, %v11929_v40 }
 0x450   : > { %v8222_v15 = vpop.f32.mrf.mxu1 }
 0x451   : > { %v6174_v9 = vpack.c.bf16 %v6148_v27, %v6147_v21  ;;  %v8223_v30 = vadd.f32 %v8222_v15, %v8221_v0  ;;  %v6059_v52 = vadd.f32 %v6058_v45, %v5898_v33 }
 0x452   : > { %v8224_v44 = vpop.f32.mrf.mxu1 }
 0x453   : > { %v5901_v42 = vadd.f32 %v8223_v30, %v11936_v53  ;;  %8523 = vmatmul.mubr.bf16.vlgmr.msra.gmra.mxu1 %v6174_v9  ;;  %v6149_v55 = vmax.f32 %v6059_v52, 0.0  ;;  %v6074_v53 = vpop.f32.mrf.mxu0 }
 0x454   : > { %v8225_v5 = vpop.f32.mrf.mxu1 }
 0x455   : > { %v6062_v22 = vadd.f32 %v6061_v14, %v5901_v42  ;;  %v8226_v59 = vadd.f32 %v8225_v5, %v8224_v44  ;;  %v8485_v3 = vpop.f32.mrf.mxu0 }
 0x456   : > { %v8227_v29 = vpop.f32.mrf.mxu1 }
 0x457   : > { %v6150_v60 = vmax.f32 %v6062_v22, 0.0  ;;  %v5906_v18 = vadd.f32 %v8226_v59, %v11940_v49 }
 0x458   : > { %v8228_v40 = vpop.f32.mrf.mxu1 }
 0x459   : > { %v8229_v38 = vadd.f32 %v8228_v40, %v8227_v29  ;;  %v6175_v7 = vpack.c.bf16 %v6150_v60, %v6149_v55  ;;  %v6067_v61 = vadd.f32 %v8480_v4, %v5906_v18 }
 0x45a   : > { %v8230_v37 = vpop.f32.mrf.mxu1 }
 0x45b   : > { %v5909_v28 = vadd.f32 %v8229_v38, %v11947_v35  ;;  %8526 = vmatprep.mubr.bf16.mxu1 %v6175_v7  ;;  %v6151_v17 = vmax.f32 %v6067_v61, 0.0  ;;  %v6077_v35 = vpop.f32.mrf.mxu0 }
 0x45c   : > { %v8231_v23 = vpop.f32.mrf.mxu1 }
 0x45d   : > { %v6070_v46 = vadd.f32 %v8481_v63, %v5909_v28  ;;  %v8232_v48 = vadd.f32 %v8231_v23, %v8230_v37  ;;  %v8488_v21 = vpop.f32.mrf.mxu0 }
 0x45e   : > { %v8233_v50 = vpop.f32.mrf.mxu1 }
 0x45f   : > { %v6152_v6 = vmax.f32 %v6070_v46, 0.0  ;;  %v5914_v54 = vadd.f32 %v8232_v48, %v11951_v1 }
 0x460   : > { %v8234_v49 = vpop.f32.mrf.mxu1 }
 0x461   : > { %v6176_v62 = vpack.c.bf16 %v6152_v6, %v6151_v17  ;;  %v8235_v41 = vadd.f32 %v8234_v49, %v8233_v50  ;;  %v6075_v56 = vadd.f32 %v6074_v53, %v5914_v54 }
 0x462   : > { %v8236_v8 = vpop.f32.mrf.mxu1 }
 0x463   : > { %v5917_v4 = vadd.f32 %v8235_v41, %v11958_v47  ;;  %8527 = vmatmul.mubr.bf16.gmra.mxu1 %v6176_v62  ;;  %v6153_v31 = vmax.f32 %v6075_v56, 0.0  ;;  %v6090_v47 = vpop.f32.mrf.mxu0 }
 0x464   : > { %v8237_v43 = vpop.f32.mrf.mxu1 }
 0x465   : > { %v6078_v20 = vadd.f32 %v6077_v35, %v5917_v4  ;;  %v8238_v45 = vadd.f32 %v8237_v43, %v8236_v8  ;;  %v8489_v59 = vpop.f32.mrf.mxu0 }
 0x466   : > { %v8239_v34 = vpop.f32.mrf.mxu1 }
 0x467   : > { %v6154_v32 = vmax.f32 %v6078_v20, 0.0  ;;  %v5922_v0 = vadd.f32 %v8238_v45, %v11962_v19 }
 0x468   : > { %v8240_v1 = vpop.f32.mrf.mxu1 }
 0x469   : > { %v8241_v27 = vadd.f32 %v8240_v1, %v8239_v34  ;;  %v6177_v33 = vpack.c.bf16 %v6154_v32, %v6153_v31  ;;  %v6083_v15 = vadd.f32 %v8484_v10, %v5922_v0 }
 0x46a   : > { %v8242_v63 = vpop.f32.mrf.mxu1 }
 0x46b   : > { %v5925_v9 = vadd.f32 %v8241_v27, %v11967_v2  ;;  %8530 = vmatprep.mubr.bf16.mxu1 %v6177_v33  ;;  %v6155_v14 = vmax.f32 %v6083_v15, 0.0  ;;  %v6093_v2 = vpop.f32.mrf.mxu0 }
 0x46c   : > { %v8243_v30 = vpop.f32.mrf.mxu1 }
 0x46d   : > { %v6086_v44 = vadd.f32 %v8485_v3, %v5925_v9  ;;  %v8244_v52 = vadd.f32 %v8243_v30, %v8242_v63  ;;  %v8492_v23 = vpop.f32.mrf.mxu0 }
 0x46e   : > { %v8245_v42 = vpop.f32.mrf.mxu1 }
 0x46f   : > { %v6156_v5 = vmax.f32 %v6086_v44, 0.0  ;;  %v5930_v22 = vadd.f32 %v8244_v52, %v11972_v25 }
 0x470   : > { %v8246_v19 = vpop.f32.mrf.mxu1 }
 0x471   : > { %v6178_v29 = vpack.c.bf16 %v6156_v5, %v6155_v14  ;;  %v8247_v55 = vadd.f32 %v8246_v19, %v8245_v42  ;;  %v6091_v18 = vadd.f32 %v6090_v47, %v5930_v22 }
 0x472   : > { %v8248_v60 = vpop.f32.mrf.mxu1 }
 0x473   : > { %v5933_v10 = vadd.f32 %v8247_v55, %v11977_v12  ;;  %8531 = vmatmul.mubr.bf16.gmra.mxu1 %v6178_v29  ;;  %v6157_v61 = vmax.f32 %v6091_v18, 0.0  ;;  %v6106_v12 = vpop.f32.mrf.mxu0 }
 0x474   : > { %v8249_v40 = vpop.f32.mrf.mxu1 }
 0x475   : > { %v6094_v38 = vadd.f32 %v6093_v2, %v5933_v10  ;;  %v8250_v7 = vadd.f32 %v8249_v40, %v8248_v60  ;;  %v8493_v4 = vpop.f32.mrf.mxu0 }
 0x476   : > { %v8251_v37 = vpop.f32.mrf.mxu1 }
 0x477   : > { %v6158_v28 = vmax.f32 %v6094_v38, 0.0  ;;  %v5938_v53 = vadd.f32 %v8250_v7, %v11982_v26 }
 0x478   : > { %v8252_v25 = vpop.f32.mrf.mxu1 }
 0x479   : > { %v8253_v46 = vadd.f32 %v8252_v25, %v8251_v37  ;;  %v6179_v48 = vpack.c.bf16 %v6158_v28, %v6157_v61  ;;  %v6099_v17 = vadd.f32 %v8488_v21, %v5938_v53 }
 0x47a   : > { %v8254_v50 = vpop.f32.mrf.mxu1 }
 0x47b   : > { %v5941_v6 = vadd.f32 %v8253_v46, %v11987_v24  ;;  %8534 = vmatprep.mubr.bf16.mxu1 %v6179_v48  ;;  %v6159_v41 = vmax.f32 %v6099_v17, 0.0  ;;  %v6109_v24 = vpop.f32.mrf.mxu0 }
 0x47c   : > { %v8255_v54 = vpop.f32.mrf.mxu1 }
 0x47d   : > { %v6102_v3 = vadd.f32 %v8489_v59, %v5941_v6  ;;  %v8256_v49 = vadd.f32 %v8255_v54, %v8254_v50  ;;  %v8496_v1 = vpop.f32.mrf.mxu0 }
 0x47e   : > { %v8257_v62 = vpop.f32.mrf.mxu1 }
 0x47f   : > { %v6160_v8 = vmax.f32 %v6102_v3, 0.0  ;;  %v5946_v56 = vadd.f32 %v8256_v49, %v11992_v51  ;;  %v6122_v30 = vpop.f32.mrf.mxu0  ;;  %v7521_v49 = vld [vmem:[%s9390_s20 + $0x1c] sm:$0xf] }
 0x480   : > { %v8258_v26 = vpop.f32.mrf.mxu1 }
 0x481   : > { %v6180_v35 = vpack.c.bf16 %v6160_v8, %v6159_v41  ;;  %v8259_v43 = vadd.f32 %v8258_v26, %v8257_v62  ;;  %v6107_v45 = vadd.f32 %v6106_v12, %v5946_v56  ;;  %v8497_v22 = vpop.f32.mrf.mxu0  ;;  %v7520_v12 = vld [vmem:[%s9390_s20 + $0x18] sm:$0xf]  ;;  %v7518_v62 = vld [vmem:[%s9390_s20 + $0x10] sm:$0xf]  ;;  %v6503_v26 = vshll.u32 %v7521_v49, 16 }
 0x482   : > { %v8260_v20 = vpop.f32.mrf.mxu1  ;;  %v6494_v54 = vshrl.u32 %v7520_v12, 16  ;;  %v6497_v3 = vshll.u32 %v7520_v12, 16 }
 0x483   : > { %v5949_v34 = vadd.f32 %v8259_v43, %v11997_v39  ;;  %8535 = vmatmul.mubr.bf16.gmra.mxu1 %v6180_v35  ;;  %v6161_v27 = vmax.f32 %v6107_v45, 0.0  ;;  %v6125_v10 = vpop.f32.mrf.mxu0  ;;  %v6479_v35 = vshll.u32 %v7518_v62, 16  ;;  %v6483_v43 = vshrl.u32 %v7518_v62, 16 }
 0x484   : > { %v8261_v31 = vpop.f32.mrf.mxu1  ;;  %v6496_v41 = vrot.slane %v6494_v54, 4  ;;  %v6499_v8 = vrot.slane %v6497_v3, 5 }
 0x485   : > { %v6110_v32 = vadd.f32 %v6109_v24, %v5949_v34  ;;  %v8262_v0 = vadd.f32 %v8261_v31, %v8260_v20  ;;  %v6505_v24 = vrot.slane %v6503_v26, 5 }
 0x486   : > { %v8263_v21 = vpop.f32.mrf.mxu1  ;;  %v6500_v20 = vor.u32 %v6499_v8, %v6496_v41 }
 0x487   : > { %v6162_v33 = vmax.f32 %v6110_v32, 0.0  ;;  %v5954_v63 = vadd.f32 %v8262_v0, %v12002_v36  ;;  %v6481_v32 = vrot.slane %v6479_v35, 5  ;;  %v7522_v0 = vld [vmem:[%s9390_s20 + $0x20] sm:$0x1]  ;;  %v7525_v35 = vld [vmem:[%s9390_s20 + $0x2c] sm:$0x1] }
 0x488   : > { %v8264_v51 = vpop.f32.mrf.mxu1 }
 0x489   : > { %v8265_v15 = vadd.f32 %v8264_v51, %v8263_v21  ;;  %v6181_v9 = vpack.c.bf16 %v6162_v33, %v6161_v27  ;;  %v6115_v44 = vadd.f32 %v8492_v23, %v5954_v63  ;;  %v6485_v21 = vrot.slane %v6483_v43, 4 }
 0x48a   : > { %v8266_v47 = vpop.f32.mrf.mxu1  ;;  %v6501_v27 = vrot.slane %v6500_v20, 4  ;;  %v6513_v51 = vshll.u32 %v7522_v0, 16  ;;  %v6537_v0 = vshll.u32 %v7525_v35, 16 }
 0x48b   : > { %v5957_v52 = vadd.f32 %v8265_v15, %v12007_v58  ;;  %8538 = vmatprep.mubr.bf16.mxu1 %v6181_v9  ;;  %v6163_v59 = vmax.f32 %v6115_v44, 0.0  ;;  %v6486_v15 = vor.u32 %v6485_v21, %v6481_v32 }
 0x48c   : > { %v8267_v39 = vpop.f32.mrf.mxu1  ;;  %v6506_v44 = vsel %vm9542_vm6, %v6501_v27, %v6505_v24 }
 0x48d   : > { %v6118_v42 = vadd.f32 %v8493_v4, %v5957_v52  ;;  %v8268_v14 = vadd.f32 %v8267_v39, %v8266_v47  ;;  %v7526_v47 = vld [vmem:[%s9390_s20 + $0x30] sm:$0xf]  ;;  %v7523_v39 = vld [vmem:[%s9390_s20 + $0x24] sm:$0xf] }
 0x48e   : > { %v8269_v5 = vpop.f32.mrf.mxu1 }
 0x48f   : > { %v6164_v19 = vmax.f32 %v6118_v42, 0.0  ;;  %v5962_v29 = vadd.f32 %v8268_v14, %v12012_v13  ;;  %v6515_v14 = vrot.slane %v6513_v51, 5  ;;  %v7533_v51 = vld [vmem:[%s9390_s20 + $0x4c] sm:$0xf] }
 0x490   : > { %v8270_v55 = vpop.f32.mrf.mxu1 }
 0x491   : > { %v6182_v36 = vpack.c.bf16 %v6164_v19, %v6163_v59  ;;  %v8271_v60 = vadd.f32 %v8270_v55, %v8269_v5  ;;  %v6123_v2 = vadd.f32 %v6122_v30, %v5962_v29  ;;  %v6542_v5 = vshrl.u32 %v7526_v47, 16  ;;  %v7527_v29 = vld [vmem:[%s9390_s20 + $0x34] sm:$0xf]  ;;  %v7524_v55 = vld [vmem:[%s9390_s20 + $0x28] sm:$0xf] }
 0x492   : > { %v8272_v18 = vpop.f32.mrf.mxu1  ;;  %v6487_v59 = vrot.slane %v6486_v15, 4 }
 0x493   : > { %8539 = vmatmul.mubr.bf16.gmra.mxu1 %v6182_v36  ;;  %v5965_v40 = vadd.f32 %v8271_v60, %v12022_v57  ;;  %v6165_v61 = vmax.f32 %v6123_v2, 0.0  ;;  %v6518_v36 = vshrl.u32 %v7523_v39, 16  ;;  %v6521_v60 = vshll.u32 %v7523_v39, 16 }
 0x494   : > { %v8273_v58 = vpop.f32.mrf.mxu1 }
 0x495   : > { %v8274_v38 = vadd.f32 %v8273_v58, %v8272_v18  ;;  %v6126_v7 = vadd.f32 %v6125_v10, %v5965_v40  ;;  %v12074_v18 = vld [vmem:[%s12304_s6] ss:$0 sm:$0xff]  ;;  %v6887_v10 = vunpack.c.l.bf16 %v6506_v44  ;;  %v6544_v58 = vrot.slane %v6542_v5, 4 }
 0x496   : > { %v8275_v37 = vpop.f32.mrf.mxu1 }
 0x497   : > { %v5970_v28 = vadd.f32 %v8274_v38, %v12019_v16  ;;  %v6166_v53 = vmax.f32 %v6126_v7, 0.0  ;;  %v7517_v16 = vld [vmem:[%s9390_s20 + $0xc] sm:$0xf]  ;;  %v6551_v7 = vshll.u32 %v7527_v29, 16 }
 0x498   : > { %v8276_v13 = vpop.f32.mrf.mxu1  ;;  %v6470_v56 = vshrl.u32 %v7517_v16, 16  ;;  %v6473_v4 = vshll.u32 %v7517_v16, 16 }
 0x499   : > { %v6183_v23 = vpack.c.bf16 %v6166_v53, %v6165_v61  ;;  %v8277_v25 = vadd.f32 %v8276_v13, %v8275_v37  ;;  %v6131_v46 = vadd.f32 %v8496_v1, %v5970_v28  ;;  %v7519_v1 = vld [vmem:[%s9390_s20 + $0x14] sm:$0x1]  ;;  %v6555_v28 = vshrl.u32 %v7527_v29, 16  ;;  %v7530_v29 = vld [vmem:[%s9390_s20 + $0x40] sm:$0xf] }
 0x49a   : > { %v6472_v45 = vrot.slane %v6470_v56, 4  ;;  %v6475_v34 = vrot.slane %v6473_v4, 5  ;;  %v6489_v9 = vshll.u32 %v7519_v1, 16  ;;  %v6527_v53 = vshll.u32 %v7524_v55, 16 }
 0x49b   : > { %v5973_v48 = vadd.f32 %v8277_v25, %v12025_v11  ;;  %8542 = vmatprep.mubr.bf16.mxu1 %v6183_v23  ;;  %v6167_v50 = vmax.f32 %v6131_v46, 0.0  ;;  %v6507_v11 = vshrl.u32 %v7521_v49, 16  ;;  %v6531_v13 = vshrl.u32 %v7524_v55, 16 }
 0x49c   : > { %v6476_v33 = vor.u32 %v6475_v34, %v6472_v45  ;;  %v6491_v19 = vrot.slane %v6489_v9, 5  ;;  %v6520_v46 = vrot.slane %v6518_v36, 4  ;;  %v6553_v16 = vrot.slane %v6551_v7, 5 }
 0x49d   : > { %v6134_v57 = vadd.f32 %v8497_v22, %v5973_v48  ;;  %v6509_v31 = vrot.slane %v6507_v11, 4  ;;  %v6545_v22 = vshll.u32 %v7526_v47, 16  ;;  %v6523_v48 = vrot.slane %v6521_v60, 5  ;;  %v7528_v11 = vld [vmem:[%s9390_s20 + $0x38] sm:$0x1] }
 0x49e   : > { %v6477_v52 = vrot.slane %v6476_v33, 4  ;;  %v6492_v61 = vsel %vm9542_vm6, %v6487_v59, %v6491_v19  ;;  %v6529_v49 = vrot.slane %v6527_v53, 5  ;;  %v6557_v62 = vrot.slane %v6555_v28, 4  ;;  %v7529_v47 = vld [vmem:[%s9390_s20 + $0x3c] sm:$0xf] }
 0x49f   : > { %v6168_v17 = vmax.f32 %v6134_v57, 0.0  ;;  %v6510_v63 = vor.u32 %v6509_v31, %v6505_v24  ;;  %v6547_v38 = vrot.slane %v6545_v22, 5  ;;  %v6886_v12 = vunpack.c.l.bf16 %v6492_v61 }
 0x4a0   : > { %v6482_v2 = vsel %vm9542_vm6, %v6477_v52, %v6481_v32  ;;  %v6533_v41 = vrot.slane %v6531_v13, 4  ;;  %v6524_v26 = vor.u32 %v6523_v48, %v6520_v46  ;;  %v6558_v31 = vor.u32 %v6557_v62, %v6553_v16 }
 0x4a1   : > { %v6184_v6 = vpack.c.bf16 %v6168_v17, %v6167_v50  ;;  %v6511_v42 = vrot.slane %v6510_v63, 4  ;;  %v6885_v25 = vunpack.c.l.bf16 %v6482_v2  ;;  %v6548_v54 = vor.u32 %v6547_v38, %v6544_v58  ;;  %v7532_v63 = vld [vmem:[%s9390_s20 + $0x48] sm:$0xf] }
 0x4a2   : > { %v6561_v32 = vshll.u32 %v7528_v11, 16  ;;  %v6525_v27 = vrot.slane %v6524_v26, 4  ;;  %v6534_v33 = vor.u32 %v6533_v41, %v6529_v49  ;;  %v6559_v44 = vrot.slane %v6558_v31, 4 }
 0x4a3   : > { %8543 = vmatmul.mubr.bf16.gmra.mxu1 %v6184_v6  ;;  %v6516_v40 = vsel %vm9542_vm6, %v6511_v42, %v6515_v14  ;;  %v6549_v24 = vrot.slane %v6548_v54, 4  ;;  %v6590_v39 = vshrl.u32 %v7532_v63, 16  ;;  %v6593_v42 = vshll.u32 %v7532_v63, 16 }
 0x4a4   : > { %v6888_v50 = vunpack.c.l.bf16 %v6516_v40  ;;  %v6563_v52 = vrot.slane %v6561_v32, 5  ;;  %v6530_v14 = vsel %vm9542_vm6, %v6525_v27, %v6529_v49  ;;  %v6535_v5 = vrot.slane %v6534_v33, 4 }
 0x4a5   : > { %v6554_v9 = vsel %vm9542_vm6, %v6549_v24, %v6553_v16  ;;  %v6539_v22 = vrot.slane %v6537_v0, 5  ;;  %v6599_v59 = vshll.u32 %v7533_v51, 16  ;;  %v6603_v19 = vshrl.u32 %v7533_v51, 16  ;;  %v7539_v24 = vld [vmem:[%s9390_s20 + $0x64] sm:$0xf] }
 0x4a6   : > { %v6566_v55 = vshrl.u32 %v7529_v47, 16  ;;  %v6569_v36 = vshll.u32 %v7529_v47, 16  ;;  %v6891_v60 = vunpack.c.l.bf16 %v6554_v9  ;;  %v6889_v2 = vunpack.c.l.bf16 %v6530_v14 }
 0x4a7   : > { %v6564_v40 = vsel %vm9542_vm6, %v6559_v44, %v6563_v52  ;;  %v6592_v58 = vrot.slane %v6590_v39, 4  ;;  %v6595_v38 = vrot.slane %v6593_v42, 5  ;;  %v6601_v61 = vrot.slane %v6599_v59, 5  ;;  %v7536_v39 = vld [vmem:[%s9390_s20 + $0x58] sm:$0xf] }
 0x4a8   : > { %v6575_v28 = vshll.u32 %v7530_v29, 16  ;;  %v6568_v13 = vrot.slane %v6566_v55, 4  ;;  %v6605_v46 = vrot.slane %v6603_v19, 4  ;;  %v6647_v47 = vshll.u32 %v7539_v24, 16 }
 0x4a9   : > { %v6651_v52 = vshrl.u32 %v7539_v24, 16 }
 0x4f3   : > { %v8516_v37 = vpop.f32.mrf.mxu0 }
 0x4f4   : > { %v6351_v23 = vadd.f32 %v8516_v37, %v12074_v18  ;;  %v6540_v37 = vsel %vm9542_vm6, %v6535_v5, %v6539_v22 }
 0x4f5   : > { %v6342_v57 = vpop.f32.mrf.mxu0  ;;  %v6890_v49 = vunpack.c.l.bf16 %v6540_v37 }
 0x4f6   : > { %v6919_v17 = vadd.f32 %v6887_v10, %v6351_v23  ;;  %v6343_v6 = vadd.f32 %v12074_v18, %v6342_v57  ;;  %v6571_v23 = vrot.slane %v6569_v36, 5 }
 0x4f7   : > { %v8517_v3 = vpop.f32.mrf.mxu0 }
 0x4f8   : > { %v6951_v8 = vmax.f32 %v6919_v17, 0.0  ;;  %v6917_v56 = vadd.f32 %v6885_v25, %v6343_v6  ;;  %v6354_v4 = vadd.f32 %v8517_v3, %v12074_v18  ;;  %v6579_v25 = vshrl.u32 %v7530_v29, 16 }
 0x4f9   : > { %v6345_v43 = vpop.f32.mrf.mxu0  ;;  %v6596_v6 = vor.u32 %v6595_v38, %v6592_v58  ;;  %v6572_v41 = vor.u32 %v6571_v23, %v6568_v13  ;;  %v6627_v38 = vshrl.u32 %v7536_v39, 16 }
 0x4fa   : > { %6983 = vst [vmem:[%s12088_s15 + $0x10] sm:$0xff] %v6951_v8  ;;  %v6949_v20 = vmax.f32 %v6917_v56, 0.0  ;;  %v6920_v45 = vadd.f32 %v6888_v50, %v6354_v4  ;;  %v6346_v34 = vadd.f32 %v12074_v18, %v6345_v43  ;;  %v6892_v50 = vunpack.c.l.bf16 %v6564_v40  ;;  %v7531_v4 = vld [vmem:[%s9390_s20 + $0x44] sm:$0x1] }
 0x4fb   : > { %v6577_v8 = vrot.slane %v6575_v28, 5  ;;  %v6606_v56 = vor.u32 %v6605_v46, %v6601_v61  ;;  %v6581_v26 = vrot.slane %v6579_v25, 4  ;;  %v6585_v0 = vshll.u32 %v7531_v4, 16  ;;  %v7540_v28 = vld [vmem:[%s9390_s20 + $0x68] sm:$0x1] }
 0x4fc   : > { %6981 = vst [vmem:[%s12088_s15] sm:$0xff] %v6949_v20  ;;  %v6952_v21 = vmax.f32 %v6920_v45, 0.0  ;;  %v6918_v1 = vadd.f32 %v6886_v12, %v6346_v34  ;;  %v7534_v12 = vld [vmem:[%s9390_s20 + $0x50] sm:$0x1]  ;;  %v7538_v45 = vld [vmem:[%s9390_s20 + $0x60] sm:$0xf]  ;;  %v6597_v34 = vrot.slane %v6596_v6, 4 }
 0x4fd   : > { %v6609_v20 = vshll.u32 %v7534_v12, 16  ;;  %v6582_v27 = vor.u32 %v6581_v26, %v6577_v8  ;;  %v6638_v33 = vshrl.u32 %v7538_v45, 16  ;;  %v6641_v63 = vshll.u32 %v7538_v45, 16  ;;  %v7544_v4 = vld [vmem:[%s9390_s20 + $0x78] sm:$0xf] }
 0x4fe   : > { %6984 = vst [vmem:[%s12088_s15 + $0x18] sm:$0xff] %v6952_v21  ;;  %v6950_v15 = vmax.f32 %v6918_v1, 0.0  ;;  %v7535_v21 = vld [vmem:[%s9390_s20 + $0x54] sm:$0xf]  ;;  %v6573_v1 = vrot.slane %v6572_v41, 4  ;;  %v6602_v44 = vsel %vm9542_vm6, %v6597_v34, %v6601_v61  ;;  %v6587_v5 = vrot.slane %v6585_v0, 5 }
 0x4ff   : > { %v6611_v9 = vrot.slane %v6609_v20, 5  ;;  %v6614_v42 = vshrl.u32 %v7535_v21, 16  ;;  %v6617_v14 = vshll.u32 %v7535_v21, 16  ;;  %v6583_v59 = vrot.slane %v6582_v27, 4  ;;  %v7545_v27 = vld [vmem:[%s9390_s20 + $0x7c] sm:$0xf] }
 0x500   : > { %6982 = vst [vmem:[%s12088_s15 + $0x8] sm:$0xff] %v6950_v15  ;;  %v6607_v15 = vrot.slane %v6606_v56, 4  ;;  %v6578_v22 = vsel %vm9542_vm6, %v6573_v1, %v6577_v8  ;;  %v6640_v19 = vrot.slane %v6638_v33, 4  ;;  %v6643_v29 = vrot.slane %v6641_v63, 5  ;;  %v7541_v33 = vld [vmem:[%s9390_s20 + $0x6c] sm:$0xf] }
 0x501   : > { %v6895_v55 = vunpack.c.l.bf16 %v6602_v44  ;;  %v6616_v40 = vrot.slane %v6614_v42, 4  ;;  %v6619_v58 = vrot.slane %v6617_v14, 5  ;;  %v6893_v61 = vunpack.c.l.bf16 %v6578_v22 }
 0x502   : > { %v6612_v36 = vsel %vm9542_vm6, %v6607_v15, %v6611_v9  ;;  %v6588_v13 = vsel %vm9542_vm6, %v6583_v59, %v6587_v5  ;;  %v6644_v23 = vor.u32 %v6643_v29, %v6640_v19  ;;  %v6657_v12 = vshll.u32 %v7540_v28, 16  ;;  %v7542_v9 = vld [vmem:[%s9390_s20 + $0x70] sm:$0xf] }
 0x503   : > { %v8520_v10 = vpop.f32.mrf.mxu0  ;;  %v6894_v41 = vunpack.c.l.bf16 %v6588_v13  ;;  %v6686_v0 = vshrl.u32 %v7544_v4, 16  ;;  %v6689_v21 = vshll.u32 %v7544_v4, 16  ;;  %v6695_v42 = vshll.u32 %v7545_v27, 16 }
 0x504   : > { %v6367_v7 = vadd.f32 %v8520_v10, %v12074_v18  ;;  %v6623_v10 = vshll.u32 %v7536_v39, 16  ;;  %v6645_v56 = vrot.slane %v6644_v23, 4  ;;  %v6659_v34 = vrot.slane %v6657_v12, 5  ;;  %v7546_v23 = vld [vmem:[%s9390_s20 + $0x80] sm:$0x1] }
 0x505   : > { %v6358_v53 = vpop.f32.mrf.mxu0  ;;  %v6691_v39 = vrot.slane %v6689_v21, 5  ;;  %v6699_v14 = vshrl.u32 %v7545_v27, 16  ;;  %v6662_v5 = vshrl.u32 %v7541_v33, 16  ;;  %v6665_v22 = vshll.u32 %v7541_v33, 16  ;;  %v7551_v27 = vld [vmem:[%s9390_s20 + $0x94] sm:$0xf] }
 0x506   : > { %v6923_v48 = vadd.f32 %v6891_v60, %v6367_v7  ;;  %v6359_v57 = vadd.f32 %v12074_v18, %v6358_v53  ;;  %v6649_v60 = vrot.slane %v6647_v47, 5  ;;  %v6653_v7 = vrot.slane %v6651_v52, 4  ;;  %v7548_v33 = vld [vmem:[%s9390_s20 + $0x88] sm:$0xf] }
 0x507   : > { %v8521_v17 = vpop.f32.mrf.mxu0  ;;  %v6688_v52 = vrot.slane %v6686_v0, 4  ;;  %v6671_v19 = vshll.u32 %v7542_v9, 16  ;;  %v6675_v29 = vshrl.u32 %v7542_v9, 16 }
 0x508   : > { %v6955_v54 = vmax.f32 %v6923_v48, 0.0  ;;  %v6921_v3 = vadd.f32 %v6889_v2, %v6359_v57  ;;  %v6370_v16 = vadd.f32 %v8521_v17, %v12074_v18  ;;  %v6896_v48 = vunpack.c.l.bf16 %v6612_v36 }
 0x509   : > { %v6361_v62 = vpop.f32.mrf.mxu0  ;;  %v6625_v57 = vrot.slane %v6623_v10, 5  ;;  %v6620_v17 = vor.u32 %v6619_v58, %v6616_v40  ;;  %v6654_v6 = vor.u32 %v6653_v7, %v6649_v60  ;;  %v6650_v63 = vsel %vm9542_vm6, %v6645_v56, %v6649_v60 }
 0x50a   : > { %6987 = vst [vmem:[%s12088_s15 + $0x30] sm:$0xff] %v6955_v54  ;;  %v6953_v11 = vmax.f32 %v6921_v3, 0.0  ;;  %v6924_v35 = vadd.f32 %v6892_v50, %v6370_v16  ;;  %v6362_v43 = vadd.f32 %v12074_v18, %v6361_v62  ;;  %v7537_v54 = vld [vmem:[%s9390_s20 + $0x5c] sm:$0x1]  ;;  %v6629_v3 = vrot.slane %v6627_v38, 4 }
 0x50b   : > { %v6621_v20 = vrot.slane %v6620_v17, 4  ;;  %v6655_v45 = vrot.slane %v6654_v6, 4  ;;  %v6899_v59 = vunpack.c.l.bf16 %v6650_v63  ;;  %v6692_v40 = vor.u32 %v6691_v39, %v6688_v52 }
 0x50c   : > { %6985 = vst [vmem:[%s12088_s15 + $0x20] sm:$0xff] %v6953_v11  ;;  %v6956_v31 = vmax.f32 %v6924_v35, 0.0  ;;  %v6922_v32 = vadd.f32 %v6890_v49, %v6362_v43  ;;  %v6633_v43 = vshll.u32 %v7537_v54, 16  ;;  %v6630_v24 = vor.u32 %v6629_v3, %v6625_v57 }
 0x50d   : > { %v6626_v47 = vsel %vm9542_vm6, %v6621_v20, %v6625_v57  ;;  %v6697_v38 = vrot.slane %v6695_v42, 5  ;;  %v6664_v7 = vrot.slane %v6662_v5, 4  ;;  %v6673_v13 = vrot.slane %v6671_v19, 5 }
 0x50e   : > { %6988 = vst [vmem:[%s12088_s15 + $0x38] sm:$0xff] %v6956_v31  ;;  %v6954_v51 = vmax.f32 %v6922_v32, 0.0  ;;  %v6635_v15 = vrot.slane %v6633_v43, 5  ;;  %v6631_v44 = vrot.slane %v6630_v24, 4  ;;  %v6897_v10 = vunpack.c.l.bf16 %v6626_v47 }
 0x50f   : > { %v6693_v12 = vrot.slane %v6692_v40, 4  ;;  %v6747_v5 = vshrl.u32 %v7551_v27, 16 }
 0x510   : > { %6986 = vst [vmem:[%s12088_s15 + $0x28] sm:$0xff] %v6954_v51  ;;  %v6660_v51 = vsel %vm9542_vm6, %v6655_v45, %v6659_v34 }
 0x511   : > { %v6900_v36 = vunpack.c.l.bf16 %v6660_v51  ;;  %v6698_v43 = vsel %vm9542_vm6, %v6693_v12, %v6697_v38 }
 0x513   : > { %v8524_v2 = vpop.f32.mrf.mxu1 }
 0x514   : > { %v6383_v37 = vadd.f32 %v8524_v2, %v12074_v18  ;;  %v6636_v2 = vsel %vm9542_vm6, %v6631_v44, %v6635_v15  ;;  %v6903_v15 = vunpack.c.l.bf16 %v6698_v43  ;;  %v7553_v43 = vld [vmem:[%s9390_s20 + $0x9c] sm:$0xf] }
 0x515   : > { %v6374_v53 = vpop.f32.mrf.mxu1  ;;  %v6898_v57 = vunpack.c.l.bf16 %v6636_v2 }
 0x516   : > { %v6927_v25 = vadd.f32 %v6895_v55, %v6383_v37  ;;  %v6375_v46 = vadd.f32 %v12074_v18, %v6374_v53  ;;  %v6667_v37 = vrot.slane %v6665_v22, 5  ;;  %v6719_v22 = vshll.u32 %v7548_v33, 16 }
 0x517   : > { %v8525_v50 = vpop.f32.mrf.mxu1 }
 0x518   : > { %v6959_v16 = vmax.f32 %v6927_v25, 0.0  ;;  %v6925_v49 = vadd.f32 %v6893_v61, %v6375_v46  ;;  %v6386_v62 = vadd.f32 %v8525_v50, %v12074_v18  ;;  %v6701_v61 = vrot.slane %v6699_v14, 4  ;;  %v7543_v25 = vld [vmem:[%s9390_s20 + $0x74] sm:$0x1] }
 0x519   : > { %v6377_v8 = vpop.f32.mrf.mxu1  ;;  %v6677_v46 = vrot.slane %v6675_v29, 4  ;;  %v6668_v3 = vor.u32 %v6667_v37, %v6664_v7  ;;  %v6743_v14 = vshll.u32 %v7551_v27, 16 }
 0x51a   : > { %6991 = vst [vmem:[%s12088_s15 + $0x50] sm:$0xff] %v6959_v16  ;;  %v6957_v26 = vmax.f32 %v6925_v49, 0.0  ;;  %v6928_v11 = vadd.f32 %v6896_v48, %v6386_v62  ;;  %v6378_v35 = vadd.f32 %v12074_v18, %v6377_v8  ;;  %v6702_v16 = vor.u32 %v6701_v61, %v6697_v38 }
 0x51b   : > { %v6705_v49 = vshll.u32 %v7546_v23, 16  ;;  %v6681_v62 = vshll.u32 %v7543_v25, 16  ;;  %v6678_v4 = vor.u32 %v6677_v46, %v6673_v13  ;;  %v6669_v20 = vrot.slane %v6668_v3, 4 }
 0x51c   : > { %6989 = vst [vmem:[%s12088_s15 + $0x40] sm:$0xff] %v6957_v26  ;;  %v6960_v31 = vmax.f32 %v6928_v11, 0.0  ;;  %v6926_v32 = vadd.f32 %v6894_v41, %v6378_v35  ;;  %v7550_v26 = vld [vmem:[%s9390_s20 + $0x90] sm:$0xf]  ;;  %v6703_v45 = vrot.slane %v6702_v16, 4  ;;  %v6745_v37 = vrot.slane %v6743_v14, 5 }
 0x51d   : > { %v6707_v34 = vrot.slane %v6705_v49, 5  ;;  %v6683_v24 = vrot.slane %v6681_v62, 5  ;;  %v6679_v0 = vrot.slane %v6678_v4, 4  ;;  %v6734_v21 = vshrl.u32 %v7550_v26, 16  ;;  %v7556_v4 = vld [vmem:[%s9390_s20 + $0xa8] sm:$0xf] }
 0x51e   : > { %6992 = vst [vmem:[%s12088_s15 + $0x58] sm:$0xff] %v6960_v31  ;;  %v6958_v1 = vmax.f32 %v6926_v32, 0.0  ;;  %v7547_v31 = vld [vmem:[%s9390_s20 + $0x84] sm:$0xf]  ;;  %v6674_v9 = vsel %vm9542_vm6, %v6669_v20, %v6673_v13  ;;  %v6721_v61 = vrot.slane %v6719_v22, 5 }
 0x51f   : > { %v6710_v63 = vshrl.u32 %v7547_v31, 16  ;;  %v6713_v51 = vshll.u32 %v7547_v31, 16  ;;  %v6708_v47 = vsel %vm9542_vm6, %v6703_v45, %v6707_v34  ;;  %v6684_v44 = vsel %vm9542_vm6, %v6679_v0, %v6683_v24 }
 0x520   : > { %6990 = vst [vmem:[%s12088_s15 + $0x48] sm:$0xff] %v6958_v1  ;;  %v6737_v1 = vshll.u32 %v7550_v26, 16  ;;  %v6736_v52 = vrot.slane %v6734_v21, 4  ;;  %v6901_v29 = vunpack.c.l.bf16 %v6674_v9  ;;  %v6782_v34 = vshrl.u32 %v7556_v4, 16  ;;  %v7554_v21 = vld [vmem:[%s9390_s20 + $0xa0] sm:$0xf] }
 0x521   : > { %v6785_v24 = vshll.u32 %v7556_v4, 16  ;;  %v7559_v4 = vld [vmem:[%s9390_s20 + $0xb4] sm:$0xf] }
 0x522   : > { %v6739_v39 = vrot.slane %v6737_v1, 5 }
 0x523   : > { %v8528_v55 = vpop.f32.mrf.mxu1 }
 0x524   : > { %v6399_v60 = vadd.f32 %v8528_v55, %v12074_v18  ;;  %v6712_v55 = vrot.slane %v6710_v63, 4  ;;  %v6740_v38 = vor.u32 %v6739_v39, %v6736_v52  ;;  %v6761_v63 = vshll.u32 %v7553_v43, 16 }
 0x525   : > { %v6390_v58 = vpop.f32.mrf.mxu1  ;;  %v6767_v52 = vshll.u32 %v7554_v21, 16 }
 0x526   : > { %v6931_v28 = vadd.f32 %v6899_v59, %v6399_v60  ;;  %v6391_v53 = vadd.f32 %v12074_v18, %v6390_v58  ;;  %v6723_v59 = vshrl.u32 %v7548_v33, 16  ;;  %v6902_v58 = vunpack.c.l.bf16 %v6684_v44 }
 0x527   : > { %v8529_v48 = vpop.f32.mrf.mxu1  ;;  %v6758_v33 = vshrl.u32 %v7553_v43, 16  ;;  %v6787_v44 = vrot.slane %v6785_v24, 5  ;;  %v6806_v24 = vshrl.u32 %v7559_v4, 16 }
 0x528   : > { %v6963_v50 = vmax.f32 %v6931_v28, 0.0  ;;  %v6929_v17 = vadd.f32 %v6897_v10, %v6391_v53  ;;  %v6402_v6 = vadd.f32 %v8529_v48, %v12074_v18  ;;  %v6904_v10 = vunpack.c.l.bf16 %v6708_v47  ;;  %v7552_v48 = vld [vmem:[%s9390_s20 + $0x98] sm:$0x1] }
 0x529   : > { %v6393_v54 = vpop.f32.mrf.mxu1  ;;  %v6749_v28 = vrot.slane %v6747_v5, 4  ;;  %v6725_v53 = vrot.slane %v6723_v59, 4  ;;  %v6753_v16 = vshll.u32 %v7552_v48, 16  ;;  %v6784_v47 = vrot.slane %v6782_v34, 4 }
 0x52a   : > { %6995 = vst [vmem:[%s12088_s15 + $0x70] sm:$0xff] %v6963_v50  ;;  %v6961_v41 = vmax.f32 %v6929_v17, 0.0  ;;  %v6932_v8 = vadd.f32 %v6900_v36, %v6402_v6  ;;  %v6394_v56 = vadd.f32 %v12074_v18, %v6393_v54  ;;  %v6715_v36 = vrot.slane %v6713_v51, 5 }
 0x52b   : > { %v6741_v54 = vrot.slane %v6740_v38, 4  ;;  %v6750_v3 = vor.u32 %v6749_v28, %v6745_v37  ;;  %v6755_v45 = vrot.slane %v6753_v16, 5  ;;  %v6771_v5 = vshrl.u32 %v7554_v21, 16  ;;  %v7560_v21 = vld [vmem:[%s9390_s20 + $0xb8] sm:$0xf] }
 0x52c   : > { %6993 = vst [vmem:[%s12088_s15 + $0x60] sm:$0xff] %v6961_v41  ;;  %v6964_v11 = vmax.f32 %v6932_v8, 0.0  ;;  %v6930_v35 = vadd.f32 %v6898_v57, %v6394_v56  ;;  %v6716_v46 = vor.u32 %v6715_v36, %v6712_v55  ;;  %v7549_v57 = vld [vmem:[%s9390_s20 + $0x8c] sm:$0x1]  ;;  %v6726_v56 = vor.u32 %v6725_v53, %v6721_v61 }
 0x52d   : > { %v6729_v49 = vshll.u32 %v7549_v57, 16  ;;  %v6751_v20 = vrot.slane %v6750_v3, 4  ;;  %v6769_v38 = vrot.slane %v6767_v52, 5  ;;  %v6773_v53 = vrot.slane %v6771_v5, 4 }
 0x52e   : > { %6996 = vst [vmem:[%s12088_s15 + $0x78] sm:$0xff] %v6964_v11  ;;  %v6962_v32 = vmax.f32 %v6930_v35, 0.0  ;;  %v6717_v8 = vrot.slane %v6716_v46, 4  ;;  %v6746_v11 = vsel %vm9542_vm6, %v6741_v54, %v6745_v37  ;;  %v7557_v35 = vld [vmem:[%s9390_s20 + $0xac] sm:$0xf]  ;;  %v6808_v52 = vrot.slane %v6806_v24, 4 }
 0x52f   : > { %v6731_v0 = vrot.slane %v6729_v49, 5  ;;  %v6791_v1 = vshll.u32 %v7557_v35, 16  ;;  %v6795_v27 = vshrl.u32 %v7557_v35, 16  ;;  %v6907_v51 = vunpack.c.l.bf16 %v6746_v11  ;;  %v7555_v46 = vld [vmem:[%s9390_s20 + $0xa4] sm:$0x1] }
 0x530   : > { %6994 = vst [vmem:[%s12088_s15 + $0x68] sm:$0xff] %v6962_v32  ;;  %v6722_v31 = vsel %vm9542_vm6, %v6717_v8, %v6721_v61  ;;  %v6727_v32 = vrot.slane %v6726_v56, 4  ;;  %v6756_v9 = vsel %vm9542_vm6, %v6751_v20, %v6755_v45  ;;  %v6774_v3 = vor.u32 %v6773_v53, %v6769_v38  ;;  %v7562_v49 = vld [vmem:[%s9390_s20 + $0xc0] sm:$0xf]  ;;  %v7563_v45 = vld [vmem:[%s9390_s20 + $0xc4] sm:$0xf] }
 0x531   : > { %v6793_v59 = vrot.slane %v6791_v1, 5  ;;  %v6797_v55 = vrot.slane %v6795_v27, 4  ;;  %v6777_v16 = vshll.u32 %v7555_v46, 16  ;;  %v6830_v11 = vshrl.u32 %v7562_v49, 16 }
 0x532   : > { %v6732_v14 = vsel %vm9542_vm6, %v6727_v32, %v6731_v0  ;;  %v6833_v35 = vshll.u32 %v7562_v49, 16  ;;  %v6775_v43 = vrot.slane %v6774_v3, 4 }
 0x533   : > { %v8532_v42 = vpop.f32.mrf.mxu1  ;;  %v6779_v20 = vrot.slane %v6777_v16, 5  ;;  %v6832_v27 = vrot.slane %v6830_v11, 4 }
 0x534   : > { %v6415_v19 = vadd.f32 %v8532_v42, %v12074_v18  ;;  %v6905_v42 = vunpack.c.l.bf16 %v6722_v31  ;;  %v6809_v31 = vshll.u32 %v7559_v4, 16 }
 0x535   : > { %v6406_v60 = vpop.f32.mrf.mxu1 }
 0x536   : > { %v6935_v2 = vadd.f32 %v6903_v15, %v6415_v19  ;;  %v6407_v40 = vadd.f32 %v12074_v18, %v6406_v60  ;;  %v6760_v19 = vrot.slane %v6758_v33, 4  ;;  %v6835_v33 = vrot.slane %v6833_v35, 5 }
 0x537   : > { %v8533_v7 = vpop.f32.mrf.mxu1 }
 0x538   : > { %v6967_v13 = vmax.f32 %v6935_v2, 0.0  ;;  %v6933_v23 = vadd.f32 %v6901_v29, %v6407_v40  ;;  %v6418_v25 = vadd.f32 %v8533_v7, %v12074_v18  ;;  %v6763_v29 = vrot.slane %v6761_v63, 5  ;;  %v7558_v7 = vld [vmem:[%s9390_s20 + $0xb0] sm:$0x1] }
 0x539   : > { %v6409_v50 = vpop.f32.mrf.mxu1  ;;  %v6906_v40 = vunpack.c.l.bf16 %v6732_v14  ;;  %v6839_v63 = vshll.u32 %v7563_v45, 16  ;;  %v6819_v14 = vshrl.u32 %v7560_v21, 16 }
 0x53a   : > { %6999 = vst [vmem:[%s12088_s15 + $0x90] sm:$0xff] %v6967_v13  ;;  %v6965_v17 = vmax.f32 %v6933_v23, 0.0  ;;  %v6936_v6 = vadd.f32 %v6904_v10, %v6418_v25  ;;  %v6410_v12 = vadd.f32 %v12074_v18, %v6409_v50  ;;  %v6908_v10 = vunpack.c.l.bf16 %v6756_v9 }
 0x53b   : > { %v6764_v23 = vor.u32 %v6763_v29, %v6760_v19  ;;  %v6798_v25 = vor.u32 %v6797_v55, %v6793_v59  ;;  %v6836_v29 = vor.u32 %v6835_v33, %v6832_v27  ;;  %v6841_v55 = vrot.slane %v6839_v63, 5 }
 0x53c   : > { %6997 = vst [vmem:[%s12088_s15 + $0x80] sm:$0xff] %v6965_v17  ;;  %v6968_v62 = vmax.f32 %v6936_v6, 0.0  ;;  %v6934_v41 = vadd.f32 %v6902_v58, %v6410_v12  ;;  %v6788_v58 = vor.u32 %v6787_v44, %v6784_v47  ;;  %v6801_v17 = vshll.u32 %v7558_v7, 16 }
 0x53d   : > { %v6799_v8 = vrot.slane %v6798_v25, 4  ;;  %v6780_v47 = vsel %vm9542_vm6, %v6775_v43, %v6779_v20  ;;  %v6837_v25 = vrot.slane %v6836_v29, 4 }
 0x53e   : > { %7000 = vst [vmem:[%s12088_s15 + $0x98] sm:$0xff] %v6968_v62  ;;  %v6966_v26 = vmax.f32 %v6934_v41, 0.0  ;;  %v6789_v6 = vrot.slane %v6788_v58, 4  ;;  %v6765_v62 = vrot.slane %v6764_v23, 4  ;;  %v6803_v56 = vrot.slane %v6801_v17, 5 }
 0x53f   : > { %v7564_v58 = vld [vmem:[%s9390_s20 + $0xc8] sm:$0x1]  ;;  %v7561_v23 = vld [vmem:[%s9390_s20 + $0xbc] sm:$0x1]  ;;  %v6842_v3 = vsel %vm9542_vm6, %v6837_v25, %v6841_v55  ;;  %s7633_s20 = sshll.u32 %s9179_s30, 12  ;;  %s9198_s30 = smov [#allocation12]  }
 0x540   : > { %6998 = vst [vmem:[%s12088_s15 + $0x88] sm:$0xff] %v6966_v26  ;;  %v6794_v26 = vsel %vm9542_vm6, %v6789_v6, %v6793_v59  ;;  %v6770_v34 = vsel %vm9542_vm6, %v6765_v62, %v6769_v38  ;;  %v6804_v0 = vsel %vm9542_vm6, %v6799_v8, %v6803_v56  ;;  %v6915_v56 = vunpack.c.l.bf16 %v6842_v3  ;;  %s12246_s24 = scalar_lea.hbm %s12306_s8, %s7633_s20  ;;  %s9103_s18 = sshll.u32 %s9198_s30, 4  ;;  %s9104_s18 = int_to_ptr.vmem [resolvable:$false] %s9103_s18 }
 0x541   : > { %v6911_v32 = vunpack.c.l.bf16 %v6794_v26  ;;  %v6909_v9 = vunpack.c.l.bf16 %v6770_v34  ;;  %v6912_v59 = vunpack.c.l.bf16 %v6804_v0  ;;  %s9105_s25 = scalar_lea.vmem %s9104_s18, 8192  ;;  %p9106_p5 = scmp.lt.s32.totalorder %s12248_s17, %s9104_s18 }
 0x542   : > { %p9107_p11 = scmp.lt.s32.totalorder %s9105_s25, %s9099_s12 }
 0x543   : > { %v8536_v15 = vpop.f32.mrf.mxu1 }
 0x544   : > { %v6431_v39 = vadd.f32 %v8536_v15, %v12074_v18  ;;  %p9108_p2 = por %p9107_p11, %p9106_p5 }
 0x545   : > { %v6422_v22 = vpop.f32.mrf.mxu1 }
 0x546   : > { %v6939_v36 = vadd.f32 %v6907_v51, %v6431_v39  ;;  %v6423_v60 = vadd.f32 %v12074_v18, %v6422_v22  ;;  %v6843_v51 = vshrl.u32 %v7563_v45, 16  ;;  %v6811_v39 = vrot.slane %v6809_v31, 5  ;;  %p9109_p10 = pnand %p9108_p2, %p9102_p8 }
 0x547   : > { %v8537_v2 = vpop.f32.mrf.mxu1 }
 0x548   : > { %v6971_v37 = vmax.f32 %v6939_v36, 0.0  ;;  %v6937_v61 = vadd.f32 %v6905_v42, %v6423_v60  ;;  %v6434_v28 = vadd.f32 %v8537_v2, %v12074_v18  ;;  %v6815_v42 = vshll.u32 %v7560_v21, 16 }
 0x549   : > { %v6425_v13 = vpop.f32.mrf.mxu1  ;;  %v6845_v36 = vrot.slane %v6843_v51, 4  ;;  %v6812_v7 = vor.u32 %v6811_v39, %v6808_v52 }
 0x54a   : > { %7003 = vst [vmem:[%s12088_s15 + $0xb0] sm:$0xff] %v6971_v37  ;;  %v6969_v48 = vmax.f32 %v6937_v61, 0.0  ;;  %v6940_v57 = vadd.f32 %v6908_v10, %v6434_v28  ;;  %v6426_v50 = vadd.f32 %v12074_v18, %v6425_v13  ;;  %v6817_v37 = vrot.slane %v6815_v42, 5 }
 0x54b   : > { %v6821_v61 = vrot.slane %v6819_v14, 4  ;;  %v6846_v46 = vor.u32 %v6845_v36, %v6841_v55  ;;  %v6813_v17 = vrot.slane %v6812_v7, 4 }
 0x54c   : > { %7001 = vst [vmem:[%s12088_s15 + $0xa0] sm:$0xff] %v6969_v48  ;;  %v6972_v12 = vmax.f32 %v6940_v57, 0.0  ;;  %v6938_v54 = vadd.f32 %v6906_v40, %v6426_v50  ;;  %v6910_v40 = vunpack.c.l.bf16 %v6780_v47  ;;  %v6849_v48 = vshll.u32 %v7564_v58, 16 }
 0x54d   : > { %v6822_v6 = vor.u32 %v6821_v61, %v6817_v37  ;;  %v6847_v16 = vrot.slane %v6846_v46, 4  ;;  %v6818_v62 = vsel %vm9542_vm6, %v6813_v17, %v6817_v37 }
 0x54e   : > { %7004 = vst [vmem:[%s12088_s15 + $0xb8] sm:$0xff] %v6972_v12  ;;  %v6970_v41 = vmax.f32 %v6938_v54, 0.0  ;;  %v6825_v12 = vshll.u32 %v7561_v23, 16  ;;  %v6851_v49 = vrot.slane %v6849_v48, 5  ;;  %v6913_v35 = vunpack.c.l.bf16 %v6818_v62 }
 0x550   : > { %7002 = vst [vmem:[%s12088_s15 + $0xa8] sm:$0xff] %v6970_v41  ;;  %v6823_v41 = vrot.slane %v6822_v6, 4  ;;  %v6827_v8 = vrot.slane %v6825_v12, 5  ;;  %v6852_v26 = vsel %vm9542_vm6, %v6847_v16, %v6851_v49 }
 0x551   : > { %v6916_v24 = vunpack.c.l.bf16 %v6852_v26 }
 0x552   : > { %v6828_v20 = vsel %vm9542_vm6, %v6823_v41, %v6827_v8 }
 0x553   : > { %v8540_v1 = vpop.f32.mrf.mxu1 }
 0x554   : > { %v6447_v15 = vadd.f32 %v8540_v1, %v12074_v18  ;;  %v6914_v1 = vunpack.c.l.bf16 %v6828_v20 }
 0x555   : > { %v6438_v44 = vpop.f32.mrf.mxu1 }
 0x556   : > { %v6943_v5 = vadd.f32 %v6911_v32, %v6447_v15  ;;  %v6439_v22 = vadd.f32 %v12074_v18, %v6438_v44 }
 0x557   : > { %v8541_v19 = vpop.f32.mrf.mxu1 }
 0x558   : > { %v6975_v60 = vmax.f32 %v6943_v5, 0.0  ;;  %v6941_v10 = vadd.f32 %v6909_v9, %v6439_v22  ;;  %v6450_v2 = vadd.f32 %v8541_v19, %v12074_v18 }
 0x559   : > { %v6441_v38 = vpop.f32.mrf.mxu1 }
 0x55a   : > { %7007 = vst [vmem:[%s12088_s15 + $0xd0] sm:$0xff] %v6975_v60  ;;  %v6973_v28 = vmax.f32 %v6941_v10, 0.0  ;;  %v6944_v53 = vadd.f32 %v6912_v59, %v6450_v2  ;;  %v6442_v13 = vadd.f32 %v12074_v18, %v6441_v38 }
 0x55c   : > { %7005 = vst [vmem:[%s12088_s15 + $0xc0] sm:$0xff] %v6973_v28  ;;  %v6976_v57 = vmax.f32 %v6944_v53, 0.0  ;;  %v6942_v50 = vadd.f32 %v6910_v40, %v6442_v13 }
 0x55e   : > { %7008 = vst [vmem:[%s12088_s15 + $0xd8] sm:$0xff] %v6976_v57  ;;  %v6974_v54 = vmax.f32 %v6942_v50, 0.0 }
 0x560   : > { %7006 = vst [vmem:[%s12088_s15 + $0xc8] sm:$0xff] %v6974_v54 }
 0x563   : > { %v8544_v4 = vpop.f32.mrf.mxu1 }
 0x564   : > { %v6463_v11 = vadd.f32 %v8544_v4, %v12074_v18 }
 0x565   : > { %v6454_v43 = vpop.f32.mrf.mxu1 }
 0x566   : > { %v6947_v45 = vadd.f32 %v6915_v56, %v6463_v11  ;;  %v6455_v34 = vadd.f32 %v12074_v18, %v6454_v43 }
 0x567   : > { %v8545_v31 = vpop.f32.mrf.mxu1 }
 0x568   : > { %v6979_v32 = vmax.f32 %v6947_v45, 0.0  ;;  %v6945_v0 = vadd.f32 %v6913_v35, %v6455_v34  ;;  %v6466_v21 = vadd.f32 %v8545_v31, %v12074_v18 }
 0x569   : > { %v6457_v27 = vpop.f32.mrf.mxu1 }
 0x56a   : > { %7011 = vst [vmem:[%s12088_s15 + $0xf0] sm:$0xff] %v6979_v32  ;;  %v6977_v33 = vmax.f32 %v6945_v0, 0.0  ;;  %v6948_v30 = vadd.f32 %v6916_v24, %v6466_v21  ;;  %v6458_v63 = vadd.f32 %v12074_v18, %v6457_v27 }
 0x56c   : > { %7009 = vst [vmem:[%s12088_s15 + $0xe0] sm:$0xff] %v6977_v33  ;;  %v6980_v51 = vmax.f32 %v6948_v30, 0.0  ;;  %v6946_v15 = vadd.f32 %v6914_v1, %v6458_v63 }
 0x56e   : > { %7012 = vst [vmem:[%s12088_s15 + $0xf8] sm:$0xff] %v6980_v51  ;;  %v6978_v9 = vmax.f32 %v6946_v15, 0.0 }
 0x570   : > { %7010 = vst [vmem:[%s12088_s15 + $0xe8] sm:$0xff] %v6978_v9 }
 0x571   : > { %9112 = shalt.err (!%p9109_p10)
}
 0x572   : > { %s9113_s1 = scalar_lea.hbm %s12246_s24, 4096  ;;  %s9117_s10 = scalar_lea.hbm %s12306_s8, 8192 }
 0x573   : > { %p9114_p7 = scmp.ne.s32.totalorder %s12246_s24, %s9113_s1  ;;  %p9118_p9 = scmp.lt.s32.totalorder %s12246_s24, %s12306_s8 }
 0x574   : > { %p9119_p0 = scmp.lt.s32.totalorder %s9117_s10, %s9113_s1 }
 0x575   : > { %p9115_p6 = pnand %p9114_p7, %p9355_p13 }
 0x576   : > { %p9120_p3 = por %p9119_p0, %p9118_p9 }
 0x577   : > { %p9116_p12 = pneg %p9115_p6 }
 0x579   : > { %p9121_p1 = pnand %p9120_p3, %p9116_p12 }
 0x57b   : > { %9124 = shalt.err (!%p9121_p1)
}
 0x57c   : > { %s9199_s13 = smov 128   ;;  %s9200_s15 = smov 8  }
 0x57d   : > { %8579 = dma.vmem_to_hbm [thread:$0]  (%p9355_p13), %s12248_s17, 4096, %s12246_s24, %s7014_s19, %s9199_s13, %s9199_s13, %s9200_s15  }
 0x57e PF: > { %s12809_s20 = sld [smem:[#allocation18_spill]]  ;;  %s7045_s11 = sand.u32 1, %s9167_s27  }
 0x57f   : > { %p12810_p4 = scmp.ne.s32.totalorder %s12400_s16, 0  ;;  %s7046_s23 = scalar_lea.sflag [#allocation6], %s7045_s11 }
 0x584   : > { %p12811_p8 = scmp.ge.s32.totalorder %s12809_s20, 2 }
 0x586   : > { %p8596_p5 = pnand %p12811_p8, %p12810_p4 }
 0x588   : > { %p8597_p11 = pneg %p8596_p5 }
 0x58a   : > { %9162 = dma.done.wait (%p8597_p11), %s7046_s23, 4096  }
 0x58b   : > { %9164 = vsyncadd (%p8597_p11), %s7046_s23, 4294963200  ;;  %s26_s10 = sadd.s32 1, %s12809_s20   ;;  %s12812_s30 = sld [smem:[#allocation17_spill]] }
 0x58c   : > { %p23_p2 = scmp.ge.s32.totalorder %s26_s10, 4   ;;  %s12813_s9 = sld [smem:[#allocation19_spill]] }
 0x58d   : > { %s12814_s27 = smov %s9171_s28  ;;  %s12815_s28 = smov %s9175_s29 }
 0x58e   : > { %s12816_s29 = smov %s9371_s14  ;;  %25 = sbr.rel (!%p23_p2) target bundleno = 12 (0xc), region = 118 }
 0x593   :  { %7051 = vsyncpa [#allocation5], 1 }
 0x594   :  { %7053 = vsyncpa [#allocation5 + $0x1], 1 }
 0x595   :  { %7054 = vsyncpa [#allocation8], 1 }
 0x596   :  { %7055 = vsyncpa [#allocation11], 1 }
 0x597   :  { %7056 = vsyncpa [#allocation6], 1 }
 0x598   :  { %7058 = vsyncpa [#allocation6 + $0x1], 1 }

</bundles_post_ra>
